<compile_context>
chip_gen: v5e
topology: v5e:2x2
jax: 0.10.0
libtpu: 0.0.40
codegen_flags: <defaults>
</compile_context>

<pallas_src>
import jax
import jax.numpy as jnp
from jax.experimental import pallas as pl
from jax.experimental.pallas import tpu as pltpu

# ---- small test config (channelNum, spatial, batch) ----
BATCH = 2
CH = 64          # channelNum
HH = 16
WW = 16
BN_EPS = 1e-5
PAD = 8          # sublane-aligned interior offset of the conv2 staging buffer


def resblock_kernel(x_ref, w1_ref, s1_ref, t1_ref, w2_ref, s2_ref, t2_ref,
                    out_ref, mid_ref):
    Bb, H, W, C = out_ref.shape
    M = Bb * H * W
    WP = W + 2 * PAD                       # staging-buffer width

    # Hoist the three column(dx)-shifted views of the padded input once;
    # dx = 1, 2 are the only sublane-misaligned relayouts and are paid once,
    # not once per tap.
    xs = [x_ref[:, :, dx:dx + W, :] for dx in range(3)]

    # ---- conv1: 3x3, C -> 2C, as 9 (M, C) @ (C, 2C) MXU matmuls ----------
    acc1 = jnp.zeros((M, 2 * C), jnp.float32)
    res = None
    for dy in range(3):
        for dx in range(3):
            patch = xs[dx][:, dy:dy + H].reshape(M, C)
            if dy == 1 and dx == 1:
                res = patch                # center tap == residual input
            acc1 = acc1 + jnp.dot(patch, w1_ref[3 * dy + dx],
                                  preferred_element_type=jnp.float32)

    # ---- BatchNorm1 (folded scale/shift, lane-dense over 2C) + GLU --------
    h = acc1 * s1_ref[...] + t1_ref[...]
    g = h[:, :C] * jax.nn.sigmoid(h[:, C:])

    # ---- stage GLU output; zero only the border strips conv2 reads --------
    # (zeroed every grid step -- NOT under pl.when(pid == 0) -- so it stays
    # correct when the batch axis is megacore-parallel on v7x.)
    zrow = jnp.zeros((Bb, 1, WP, C), jnp.float32)
    mid_ref[:, 0:1, :, :] = zrow
    mid_ref[:, H + 1:H + 2, :, :] = zrow
    zcol = jnp.zeros((Bb, H, PAD, C), jnp.float32)
    mid_ref[:, 1:H + 1, 0:PAD, :] = zcol
    mid_ref[:, 1:H + 1, PAD + W:WP, :] = zcol
    # Interior sits at sublane offset PAD (multiple of 8) -> aligned store.
    mid_ref[:, 1:H + 1, PAD:PAD + W, :] = g.reshape(Bb, H, W, C)

    # ---- conv2: 3x3, C -> C (dx-shifted views hoisted again) --------------
    ms = [mid_ref[:, :, PAD - 1 + dx:PAD - 1 + dx + W, :] for dx in range(3)]
    acc2 = jnp.zeros((M, C), jnp.float32)
    for dy in range(3):
        for dx in range(3):
            patch = ms[dx][:, dy:dy + H].reshape(M, C)
            acc2 = acc2 + jnp.dot(patch, w2_ref[3 * dy + dx],
                                  preferred_element_type=jnp.float32)

    # ---- BatchNorm2 (folded) + residual add --------------------------------
    o = acc2 * s2_ref[...] + t2_ref[...] + res
    out_ref[...] = o.reshape(Bb, H, W, C).astype(out_ref.dtype)


def _fold_bn(gamma, beta, mean, var, eps):
    scale = gamma / jnp.sqrt(var + eps)
    shift = beta - mean * scale
    return scale, shift


def _default_batch_block(batch):
    # v7x has 2 TensorCores sharing the grid -> give each core one block;
    # v5e / v6e are single-TC, so fold the whole batch into one grid step.
    try:
        kind = jax.devices()[0].device_kind.lower()
    except Exception:
        kind = ""
    if ("v7" in kind or "7x" in kind) and batch % 2 == 0:
        return max(1, batch // 2)
    return batch


def resblock_forward(x_nhwc, w1_oihw, g1, b1, m1, v1,
                     w2_oihw, g2, b2, m2, v2, bn_eps=BN_EPS,
                     batch_block=None):
    B, H, W, C = x_nhwc.shape
    C2 = 2 * C
    if batch_block is None:
        batch_block = _default_batch_block(B)
    assert B % batch_block == 0
    steps = B // batch_block
    Bb = batch_block

    # Eval-mode BatchNorm folded into per-channel scale/shift.
    s1, t1 = _fold_bn(g1, b1, m1, v1, bn_eps)          # (2C,)
    s2, t2 = _fold_bn(g2, b2, m2, v2, bn_eps)          # (C,)

    # PyTorch OIHW -> (tap, in, out).  conv1 is kept as a single N=2C weight
    # so each tap is one full-width MXU matmul; the GLU halves are split on
    # the lane axis inside the kernel.
    w1 = jnp.transpose(w1_oihw, (2, 3, 1, 0)).reshape(9, C, C2)
    w2 = jnp.transpose(w2_oihw, (2, 3, 1, 0)).reshape(9, C, C)

    s1r, t1r = s1.reshape(1, C2), t1.reshape(1, C2)
    s2r, t2r = s2.reshape(1, C), t2.reshape(1, C)

    # Spatial zero padding for conv1 done once here.
    xp = jnp.pad(x_nhwc, ((0, 0), (1, 1), (1, 1), (0, 0)))

    res3 = lambda b: (0, 0, 0)
    res2 = lambda b: (0, 0)

    out = pl.pallas_call(
        resblock_kernel,
        out_shape=jax.ShapeDtypeStruct((B, H, W, C), x_nhwc.dtype),
        grid_spec=pltpu.PrefetchScalarGridSpec(
            num_scalar_prefetch=0,
            grid=(steps,),
            in_specs=[
                pl.BlockSpec((Bb, H + 2, W + 2, C), lambda b: (b, 0, 0, 0)),
                pl.BlockSpec((9, C, C2), res3),   # conv1 weight (value|gate)
                pl.BlockSpec((1, C2), res2),      # bn1 scale
                pl.BlockSpec((1, C2), res2),      # bn1 shift
                pl.BlockSpec((9, C, C), res3),    # conv2 weight
                pl.BlockSpec((1, C), res2),       # bn2 scale
                pl.BlockSpec((1, C), res2),       # bn2 shift
            ],
            out_specs=pl.BlockSpec((Bb, H, W, C), lambda b: (b, 0, 0, 0)),
            scratch_shapes=[
                pltpu.VMEM((Bb, H + 2, W + 2 * PAD, C), jnp.float32)],
        ),
        compiler_params=pltpu.CompilerParams(
            dimension_semantics=("parallel",)),
    )(xp, w1, s1r, t1r, w2, s2r, t2r)
    return out


def _reference(x, w1_oihw, g1, b1, m1, v1, w2_oihw, g2, b2, m2, v2,
               eps=BN_EPS):
    def conv(inp, w_oihw):
        w_hwio = jnp.transpose(w_oihw, (2, 3, 1, 0))
        return jax.lax.conv_general_dilated(
            inp, w_hwio, window_strides=(1, 1), padding="SAME",
            dimension_numbers=("NHWC", "HWIO", "NHWC"),
            precision=jax.lax.Precision.HIGHEST)

    C = x.shape[-1]
    h = conv(x, w1_oihw)
    h = (h - m1) / jnp.sqrt(v1 + eps) * g1 + b1
    g = h[..., :C] * jax.nn.sigmoid(h[..., C:])
    o = conv(g, w2_oihw)
    o = (o - m2) / jnp.sqrt(v2 + eps) * g2 + b2
    return o + x


if __name__ == "__main__":
    key = jax.random.PRNGKey(0)
    ks = jax.random.split(key, 11)
    C, C2 = CH, 2 * CH

    x = jax.random.normal(ks[0], (BATCH, HH, WW, C), dtype=jnp.float32)
    w1 = jax.random.normal(ks[1], (C2, C, 3, 3), dtype=jnp.float32) * 0.05
    g1 = 1.0 + 0.1 * jax.random.normal(ks[2], (C2,), dtype=jnp.float32)
    b1 = 0.1 * jax.random.normal(ks[3], (C2,), dtype=jnp.float32)
    m1 = 0.1 * jax.random.normal(ks[4], (C2,), dtype=jnp.float32)
    v1 = jax.random.uniform(ks[5], (C2,), minval=0.5, maxval=1.5,
                            dtype=jnp.float32)
    w2 = jax.random.normal(ks[6], (C, C, 3, 3), dtype=jnp.float32) * 0.05
    g2 = 1.0 + 0.1 * jax.random.normal(ks[7], (C,), dtype=jnp.float32)
    b2 = 0.1 * jax.random.normal(ks[8], (C,), dtype=jnp.float32)
    m2 = 0.1 * jax.random.normal(ks[9], (C,), dtype=jnp.float32)
    v2 = jax.random.uniform(ks[10], (C,), minval=0.5, maxval=1.5,
                            dtype=jnp.float32)

    out = resblock_forward(x, w1, g1, b1, m1, v1, w2, g2, b2, m2, v2)
    out = jax.block_until_ready(out)

    ref = _reference(x, w1, g1, b1, m1, v1, w2, g2, b2, m2, v2)
    err = float(jnp.max(jnp.abs(out - ref)))
    assert out.shape == ref.shape
    assert jnp.allclose(out, ref, atol=2e-3, rtol=2e-3), f"max abs err {err}"

    print("KERNEL_OK")
</pallas_src>

<mosaic_0001>
module attributes {stable_mosaic.version = 11 : i64} {
  func.func @resblock_kernel(%arg0: i32, %arg1: memref<2x18x18x64xf32, #tpu.memory_space<vmem>>, %arg2: memref<9x64x128xf32, #tpu.memory_space<vmem>>, %arg3: memref<1x128xf32, #tpu.memory_space<vmem>>, %arg4: memref<1x128xf32, #tpu.memory_space<vmem>>, %arg5: memref<9x64x64xf32, #tpu.memory_space<vmem>>, %arg6: memref<1x64xf32, #tpu.memory_space<vmem>>, %arg7: memref<1x64xf32, #tpu.memory_space<vmem>>, %arg8: memref<2x16x16x64xf32, #tpu.memory_space<vmem>>, %arg9: memref<2x18x32x64xf32, #tpu.memory_space<vmem>>) attributes {dimension_semantics = [#tpu.dimension_semantics<parallel>], iteration_bounds = array<i64: 1>, scalar_prefetch = 0 : i64, scratch_operands = 1 : i64, tpu.core_type = #tpu.core_type<tc>, window_params = [{transform_indices = @transform_0, window_bounds = array<i64: 2, 18, 18, 64>}, {pipeline_mode = #tpu.pipeline_mode<synchronous>, transform_indices = @transform_1, window_bounds = array<i64: 9, 64, 128>}, {pipeline_mode = #tpu.pipeline_mode<synchronous>, transform_indices = @transform_2, window_bounds = array<i64: 1, 128>}, {pipeline_mode = #tpu.pipeline_mode<synchronous>, transform_indices = @transform_3, window_bounds = array<i64: 1, 128>}, {pipeline_mode = #tpu.pipeline_mode<synchronous>, transform_indices = @transform_4, window_bounds = array<i64: 9, 64, 64>}, {pipeline_mode = #tpu.pipeline_mode<synchronous>, transform_indices = @transform_5, window_bounds = array<i64: 1, 64>}, {pipeline_mode = #tpu.pipeline_mode<synchronous>, transform_indices = @transform_6, window_bounds = array<i64: 1, 64>}, {transform_indices = @transform_7, window_bounds = array<i64: 2, 16, 16, 64>}]} {
    %c0 = arith.constant 0 : index
    %c0_0 = arith.constant 0 : index
    %c0_1 = arith.constant 0 : index
    %c0_2 = arith.constant 0 : index
    %0 = vector.load %arg1[%c0, %c0_0, %c0_1, %c0_2] : memref<2x18x18x64xf32, #tpu.memory_space<vmem>>, vector<2x18x16x64xf32>
    %c0_3 = arith.constant 0 : index
    %c0_4 = arith.constant 0 : index
    %c1 = arith.constant 1 : index
    %c0_5 = arith.constant 0 : index
    %1 = vector.load %arg1[%c0_3, %c0_4, %c1, %c0_5] : memref<2x18x18x64xf32, #tpu.memory_space<vmem>>, vector<2x18x16x64xf32>
    %c0_6 = arith.constant 0 : index
    %c0_7 = arith.constant 0 : index
    %c2 = arith.constant 2 : index
    %c0_8 = arith.constant 0 : index
    %2 = vector.load %arg1[%c0_6, %c0_7, %c2, %c0_8] : memref<2x18x18x64xf32, #tpu.memory_space<vmem>>, vector<2x18x16x64xf32>
    %cst = arith.constant 0.000000e+00 : f32
    %3 = vector.broadcast %cst : f32 to vector<512x128xf32>
    %4 = vector.extract_strided_slice %0 {offsets = [0, 0, 0, 0], sizes = [2, 16, 16, 64], strides = [1, 1, 1, 1]} : vector<2x18x16x64xf32> to vector<2x16x16x64xf32>
    %5 = vector.shape_cast %4 : vector<2x16x16x64xf32> to vector<512x64xf32>
    %c0_9 = arith.constant 0 : index
    %c0_10 = arith.constant 0 : index
    %c0_11 = arith.constant 0 : index
    %6 = vector.load %arg2[%c0_9, %c0_10, %c0_11] : memref<9x64x128xf32, #tpu.memory_space<vmem>>, vector<1x64x128xf32>
    %7 = vector.shape_cast %6 : vector<1x64x128xf32> to vector<64x128xf32>
    %cst_12 = arith.constant dense<0.000000e+00> : vector<512x128xf32>
    %8 = tpu.matmul %5, %7, %cst_12 {dimension_numbers = #tpu.dot_dimension_numbers<[1], [0], [0], [1], [0, 0, 1, 1], [], []>} : vector<512x64xf32>, vector<64x128xf32>, vector<512x128xf32> -> vector<512x128xf32>
    %9 = arith.addf %3, %8 : vector<512x128xf32>
    %10 = vector.extract_strided_slice %1 {offsets = [0, 0, 0, 0], sizes = [2, 16, 16, 64], strides = [1, 1, 1, 1]} : vector<2x18x16x64xf32> to vector<2x16x16x64xf32>
    %11 = vector.shape_cast %10 : vector<2x16x16x64xf32> to vector<512x64xf32>
    %c1_13 = arith.constant 1 : index
    %c0_14 = arith.constant 0 : index
    %c0_15 = arith.constant 0 : index
    %12 = vector.load %arg2[%c1_13, %c0_14, %c0_15] : memref<9x64x128xf32, #tpu.memory_space<vmem>>, vector<1x64x128xf32>
    %13 = vector.shape_cast %12 : vector<1x64x128xf32> to vector<64x128xf32>
    %cst_16 = arith.constant dense<0.000000e+00> : vector<512x128xf32>
    %14 = tpu.matmul %11, %13, %cst_16 {dimension_numbers = #tpu.dot_dimension_numbers<[1], [0], [0], [1], [0, 0, 1, 1], [], []>} : vector<512x64xf32>, vector<64x128xf32>, vector<512x128xf32> -> vector<512x128xf32>
    %15 = arith.addf %9, %14 : vector<512x128xf32>
    %16 = vector.extract_strided_slice %2 {offsets = [0, 0, 0, 0], sizes = [2, 16, 16, 64], strides = [1, 1, 1, 1]} : vector<2x18x16x64xf32> to vector<2x16x16x64xf32>
    %17 = vector.shape_cast %16 : vector<2x16x16x64xf32> to vector<512x64xf32>
    %c2_17 = arith.constant 2 : index
    %c0_18 = arith.constant 0 : index
    %c0_19 = arith.constant 0 : index
    %18 = vector.load %arg2[%c2_17, %c0_18, %c0_19] : memref<9x64x128xf32, #tpu.memory_space<vmem>>, vector<1x64x128xf32>
    %19 = vector.shape_cast %18 : vector<1x64x128xf32> to vector<64x128xf32>
    %cst_20 = arith.constant dense<0.000000e+00> : vector<512x128xf32>
    %20 = tpu.matmul %17, %19, %cst_20 {dimension_numbers = #tpu.dot_dimension_numbers<[1], [0], [0], [1], [0, 0, 1, 1], [], []>} : vector<512x64xf32>, vector<64x128xf32>, vector<512x128xf32> -> vector<512x128xf32>
    %21 = arith.addf %15, %20 : vector<512x128xf32>
    %22 = vector.extract_strided_slice %0 {offsets = [0, 1, 0, 0], sizes = [2, 16, 16, 64], strides = [1, 1, 1, 1]} : vector<2x18x16x64xf32> to vector<2x16x16x64xf32>
    %23 = vector.shape_cast %22 : vector<2x16x16x64xf32> to vector<512x64xf32>
    %c3 = arith.constant 3 : index
    %c0_21 = arith.constant 0 : index
    %c0_22 = arith.constant 0 : index
    %24 = vector.load %arg2[%c3, %c0_21, %c0_22] : memref<9x64x128xf32, #tpu.memory_space<vmem>>, vector<1x64x128xf32>
    %25 = vector.shape_cast %24 : vector<1x64x128xf32> to vector<64x128xf32>
    %cst_23 = arith.constant dense<0.000000e+00> : vector<512x128xf32>
    %26 = tpu.matmul %23, %25, %cst_23 {dimension_numbers = #tpu.dot_dimension_numbers<[1], [0], [0], [1], [0, 0, 1, 1], [], []>} : vector<512x64xf32>, vector<64x128xf32>, vector<512x128xf32> -> vector<512x128xf32>
    %27 = arith.addf %21, %26 : vector<512x128xf32>
    %28 = vector.extract_strided_slice %1 {offsets = [0, 1, 0, 0], sizes = [2, 16, 16, 64], strides = [1, 1, 1, 1]} : vector<2x18x16x64xf32> to vector<2x16x16x64xf32>
    %29 = vector.shape_cast %28 : vector<2x16x16x64xf32> to vector<512x64xf32>
    %c4 = arith.constant 4 : index
    %c0_24 = arith.constant 0 : index
    %c0_25 = arith.constant 0 : index
    %30 = vector.load %arg2[%c4, %c0_24, %c0_25] : memref<9x64x128xf32, #tpu.memory_space<vmem>>, vector<1x64x128xf32>
    %31 = vector.shape_cast %30 : vector<1x64x128xf32> to vector<64x128xf32>
    %cst_26 = arith.constant dense<0.000000e+00> : vector<512x128xf32>
    %32 = tpu.matmul %29, %31, %cst_26 {dimension_numbers = #tpu.dot_dimension_numbers<[1], [0], [0], [1], [0, 0, 1, 1], [], []>} : vector<512x64xf32>, vector<64x128xf32>, vector<512x128xf32> -> vector<512x128xf32>
    %33 = arith.addf %27, %32 : vector<512x128xf32>
    %34 = vector.extract_strided_slice %2 {offsets = [0, 1, 0, 0], sizes = [2, 16, 16, 64], strides = [1, 1, 1, 1]} : vector<2x18x16x64xf32> to vector<2x16x16x64xf32>
    %35 = vector.shape_cast %34 : vector<2x16x16x64xf32> to vector<512x64xf32>
    %c5 = arith.constant 5 : index
    %c0_27 = arith.constant 0 : index
    %c0_28 = arith.constant 0 : index
    %36 = vector.load %arg2[%c5, %c0_27, %c0_28] : memref<9x64x128xf32, #tpu.memory_space<vmem>>, vector<1x64x128xf32>
    %37 = vector.shape_cast %36 : vector<1x64x128xf32> to vector<64x128xf32>
    %cst_29 = arith.constant dense<0.000000e+00> : vector<512x128xf32>
    %38 = tpu.matmul %35, %37, %cst_29 {dimension_numbers = #tpu.dot_dimension_numbers<[1], [0], [0], [1], [0, 0, 1, 1], [], []>} : vector<512x64xf32>, vector<64x128xf32>, vector<512x128xf32> -> vector<512x128xf32>
    %39 = arith.addf %33, %38 : vector<512x128xf32>
    %40 = vector.extract_strided_slice %0 {offsets = [0, 2, 0, 0], sizes = [2, 16, 16, 64], strides = [1, 1, 1, 1]} : vector<2x18x16x64xf32> to vector<2x16x16x64xf32>
    %41 = vector.shape_cast %40 : vector<2x16x16x64xf32> to vector<512x64xf32>
    %c6 = arith.constant 6 : index
    %c0_30 = arith.constant 0 : index
    %c0_31 = arith.constant 0 : index
    %42 = vector.load %arg2[%c6, %c0_30, %c0_31] : memref<9x64x128xf32, #tpu.memory_space<vmem>>, vector<1x64x128xf32>
    %43 = vector.shape_cast %42 : vector<1x64x128xf32> to vector<64x128xf32>
    %cst_32 = arith.constant dense<0.000000e+00> : vector<512x128xf32>
    %44 = tpu.matmul %41, %43, %cst_32 {dimension_numbers = #tpu.dot_dimension_numbers<[1], [0], [0], [1], [0, 0, 1, 1], [], []>} : vector<512x64xf32>, vector<64x128xf32>, vector<512x128xf32> -> vector<512x128xf32>
    %45 = arith.addf %39, %44 : vector<512x128xf32>
    %46 = vector.extract_strided_slice %1 {offsets = [0, 2, 0, 0], sizes = [2, 16, 16, 64], strides = [1, 1, 1, 1]} : vector<2x18x16x64xf32> to vector<2x16x16x64xf32>
    %47 = vector.shape_cast %46 : vector<2x16x16x64xf32> to vector<512x64xf32>
    %c7 = arith.constant 7 : index
    %c0_33 = arith.constant 0 : index
    %c0_34 = arith.constant 0 : index
    %48 = vector.load %arg2[%c7, %c0_33, %c0_34] : memref<9x64x128xf32, #tpu.memory_space<vmem>>, vector<1x64x128xf32>
    %49 = vector.shape_cast %48 : vector<1x64x128xf32> to vector<64x128xf32>
    %cst_35 = arith.constant dense<0.000000e+00> : vector<512x128xf32>
    %50 = tpu.matmul %47, %49, %cst_35 {dimension_numbers = #tpu.dot_dimension_numbers<[1], [0], [0], [1], [0, 0, 1, 1], [], []>} : vector<512x64xf32>, vector<64x128xf32>, vector<512x128xf32> -> vector<512x128xf32>
    %51 = arith.addf %45, %50 : vector<512x128xf32>
    %52 = vector.extract_strided_slice %2 {offsets = [0, 2, 0, 0], sizes = [2, 16, 16, 64], strides = [1, 1, 1, 1]} : vector<2x18x16x64xf32> to vector<2x16x16x64xf32>
    %53 = vector.shape_cast %52 : vector<2x16x16x64xf32> to vector<512x64xf32>
    %c8 = arith.constant 8 : index
    %c0_36 = arith.constant 0 : index
    %c0_37 = arith.constant 0 : index
    %54 = vector.load %arg2[%c8, %c0_36, %c0_37] : memref<9x64x128xf32, #tpu.memory_space<vmem>>, vector<1x64x128xf32>
    %55 = vector.shape_cast %54 : vector<1x64x128xf32> to vector<64x128xf32>
    %cst_38 = arith.constant dense<0.000000e+00> : vector<512x128xf32>
    %56 = tpu.matmul %53, %55, %cst_38 {dimension_numbers = #tpu.dot_dimension_numbers<[1], [0], [0], [1], [0, 0, 1, 1], [], []>} : vector<512x64xf32>, vector<64x128xf32>, vector<512x128xf32> -> vector<512x128xf32>
    %57 = arith.addf %51, %56 : vector<512x128xf32>
    %c0_39 = arith.constant 0 : index
    %c0_40 = arith.constant 0 : index
    %58 = vector.load %arg3[%c0_39, %c0_40] : memref<1x128xf32, #tpu.memory_space<vmem>>, vector<1x128xf32>
    %59 = vector.broadcast %58 : vector<1x128xf32> to vector<512x128xf32>
    %60 = arith.mulf %57, %59 : vector<512x128xf32>
    %c0_41 = arith.constant 0 : index
    %c0_42 = arith.constant 0 : index
    %61 = vector.load %arg4[%c0_41, %c0_42] : memref<1x128xf32, #tpu.memory_space<vmem>>, vector<1x128xf32>
    %62 = vector.broadcast %61 : vector<1x128xf32> to vector<512x128xf32>
    %63 = arith.addf %60, %62 : vector<512x128xf32>
    %64 = vector.extract_strided_slice %63 {offsets = [0, 0], sizes = [512, 64], strides = [1, 1]} : vector<512x128xf32> to vector<512x64xf32>
    %65 = vector.extract_strided_slice %63 {offsets = [0, 64], sizes = [512, 64], strides = [1, 1]} : vector<512x128xf32> to vector<512x64xf32>
    %66 = arith.negf %65 : vector<512x64xf32>
    %67 = math.exp %66 : vector<512x64xf32>
    %cst_43 = arith.constant 1.000000e+00 : f32
    %68 = vector.broadcast %cst_43 : f32 to vector<512x64xf32>
    %69 = arith.addf %68, %67 : vector<512x64xf32>
    %70 = arith.divf %68, %69 : vector<512x64xf32>
    %71 = arith.mulf %64, %70 : vector<512x64xf32>
    %cst_44 = arith.constant 0.000000e+00 : f32
    %72 = vector.broadcast %cst_44 : f32 to vector<2x1x32x64xf32>
    %c0_45 = arith.constant 0 : index
    %c0_46 = arith.constant 0 : index
    %c0_47 = arith.constant 0 : index
    %c0_48 = arith.constant 0 : index
    %73 = vector.load %arg9[%c0_45, %c0_46, %c0_47, %c0_48] : memref<2x18x32x64xf32, #tpu.memory_space<vmem>>, vector<2x1x32x64xf32>
    tpu.vector_store %arg9[%c0_45, %c0_46, %c0_47, %c0_48], %72 {strides = array<i32>} : memref<2x18x32x64xf32, #tpu.memory_space<vmem>>, vector<2x1x32x64xf32>,
    %c0_49 = arith.constant 0 : index
    %c17 = arith.constant 17 : index
    %c0_50 = arith.constant 0 : index
    %c0_51 = arith.constant 0 : index
    %74 = vector.load %arg9[%c0_49, %c17, %c0_50, %c0_51] : memref<2x18x32x64xf32, #tpu.memory_space<vmem>>, vector<2x1x32x64xf32>
    tpu.vector_store %arg9[%c0_49, %c17, %c0_50, %c0_51], %72 {strides = array<i32>} : memref<2x18x32x64xf32, #tpu.memory_space<vmem>>, vector<2x1x32x64xf32>,
    %cst_52 = arith.constant 0.000000e+00 : f32
    %75 = vector.broadcast %cst_52 : f32 to vector<2x16x8x64xf32>
    %c0_53 = arith.constant 0 : index
    %c1_54 = arith.constant 1 : index
    %c0_55 = arith.constant 0 : index
    %c0_56 = arith.constant 0 : index
    %76 = vector.load %arg9[%c0_53, %c1_54, %c0_55, %c0_56] : memref<2x18x32x64xf32, #tpu.memory_space<vmem>>, vector<2x16x8x64xf32>
    tpu.vector_store %arg9[%c0_53, %c1_54, %c0_55, %c0_56], %75 {strides = array<i32>} : memref<2x18x32x64xf32, #tpu.memory_space<vmem>>, vector<2x16x8x64xf32>,
    %c0_57 = arith.constant 0 : index
    %c1_58 = arith.constant 1 : index
    %c24 = arith.constant 24 : index
    %c0_59 = arith.constant 0 : index
    %77 = vector.load %arg9[%c0_57, %c1_58, %c24, %c0_59] : memref<2x18x32x64xf32, #tpu.memory_space<vmem>>, vector<2x16x8x64xf32>
    tpu.vector_store %arg9[%c0_57, %c1_58, %c24, %c0_59], %75 {strides = array<i32>} : memref<2x18x32x64xf32, #tpu.memory_space<vmem>>, vector<2x16x8x64xf32>,
    %78 = vector.shape_cast %71 : vector<512x64xf32> to vector<2x16x16x64xf32>
    %c0_60 = arith.constant 0 : index
    %c1_61 = arith.constant 1 : index
    %c8_62 = arith.constant 8 : index
    %c0_63 = arith.constant 0 : index
    %79 = vector.load %arg9[%c0_60, %c1_61, %c8_62, %c0_63] : memref<2x18x32x64xf32, #tpu.memory_space<vmem>>, vector<2x16x16x64xf32>
    tpu.vector_store %arg9[%c0_60, %c1_61, %c8_62, %c0_63], %78 {strides = array<i32>} : memref<2x18x32x64xf32, #tpu.memory_space<vmem>>, vector<2x16x16x64xf32>,
    %c0_64 = arith.constant 0 : index
    %c0_65 = arith.constant 0 : index
    %c7_66 = arith.constant 7 : index
    %c0_67 = arith.constant 0 : index
    %80 = vector.load %arg9[%c0_64, %c0_65, %c7_66, %c0_67] : memref<2x18x32x64xf32, #tpu.memory_space<vmem>>, vector<2x18x16x64xf32>
    %c0_68 = arith.constant 0 : index
    %c0_69 = arith.constant 0 : index
    %c8_70 = arith.constant 8 : index
    %c0_71 = arith.constant 0 : index
    %81 = vector.load %arg9[%c0_68, %c0_69, %c8_70, %c0_71] : memref<2x18x32x64xf32, #tpu.memory_space<vmem>>, vector<2x18x16x64xf32>
    %c0_72 = arith.constant 0 : index
    %c0_73 = arith.constant 0 : index
    %c9 = arith.constant 9 : index
    %c0_74 = arith.constant 0 : index
    %82 = vector.load %arg9[%c0_72, %c0_73, %c9, %c0_74] : memref<2x18x32x64xf32, #tpu.memory_space<vmem>>, vector<2x18x16x64xf32>
    %cst_75 = arith.constant 0.000000e+00 : f32
    %83 = vector.broadcast %cst_75 : f32 to vector<512x64xf32>
    %84 = vector.extract_strided_slice %80 {offsets = [0, 0, 0, 0], sizes = [2, 16, 16, 64], strides = [1, 1, 1, 1]} : vector<2x18x16x64xf32> to vector<2x16x16x64xf32>
    %85 = vector.shape_cast %84 : vector<2x16x16x64xf32> to vector<512x64xf32>
    %c0_76 = arith.constant 0 : index
    %c0_77 = arith.constant 0 : index
    %c0_78 = arith.constant 0 : index
    %86 = vector.load %arg5[%c0_76, %c0_77, %c0_78] : memref<9x64x64xf32, #tpu.memory_space<vmem>>, vector<1x64x64xf32>
    %87 = vector.shape_cast %86 : vector<1x64x64xf32> to vector<64x64xf32>
    %cst_79 = arith.constant dense<0.000000e+00> : vector<512x64xf32>
    %88 = tpu.matmul %85, %87, %cst_79 {dimension_numbers = #tpu.dot_dimension_numbers<[1], [0], [0], [1], [0, 0, 1, 1], [], []>} : vector<512x64xf32>, vector<64x64xf32>, vector<512x64xf32> -> vector<512x64xf32>
    %89 = arith.addf %83, %88 : vector<512x64xf32>
    %90 = vector.extract_strided_slice %81 {offsets = [0, 0, 0, 0], sizes = [2, 16, 16, 64], strides = [1, 1, 1, 1]} : vector<2x18x16x64xf32> to vector<2x16x16x64xf32>
    %91 = vector.shape_cast %90 : vector<2x16x16x64xf32> to vector<512x64xf32>
    %c1_80 = arith.constant 1 : index
    %c0_81 = arith.constant 0 : index
    %c0_82 = arith.constant 0 : index
    %92 = vector.load %arg5[%c1_80, %c0_81, %c0_82] : memref<9x64x64xf32, #tpu.memory_space<vmem>>, vector<1x64x64xf32>
    %93 = vector.shape_cast %92 : vector<1x64x64xf32> to vector<64x64xf32>
    %cst_83 = arith.constant dense<0.000000e+00> : vector<512x64xf32>
    %94 = tpu.matmul %91, %93, %cst_83 {dimension_numbers = #tpu.dot_dimension_numbers<[1], [0], [0], [1], [0, 0, 1, 1], [], []>} : vector<512x64xf32>, vector<64x64xf32>, vector<512x64xf32> -> vector<512x64xf32>
    %95 = arith.addf %89, %94 : vector<512x64xf32>
    %96 = vector.extract_strided_slice %82 {offsets = [0, 0, 0, 0], sizes = [2, 16, 16, 64], strides = [1, 1, 1, 1]} : vector<2x18x16x64xf32> to vector<2x16x16x64xf32>
    %97 = vector.shape_cast %96 : vector<2x16x16x64xf32> to vector<512x64xf32>
    %c2_84 = arith.constant 2 : index
    %c0_85 = arith.constant 0 : index
    %c0_86 = arith.constant 0 : index
    %98 = vector.load %arg5[%c2_84, %c0_85, %c0_86] : memref<9x64x64xf32, #tpu.memory_space<vmem>>, vector<1x64x64xf32>
    %99 = vector.shape_cast %98 : vector<1x64x64xf32> to vector<64x64xf32>
    %cst_87 = arith.constant dense<0.000000e+00> : vector<512x64xf32>
    %100 = tpu.matmul %97, %99, %cst_87 {dimension_numbers = #tpu.dot_dimension_numbers<[1], [0], [0], [1], [0, 0, 1, 1], [], []>} : vector<512x64xf32>, vector<64x64xf32>, vector<512x64xf32> -> vector<512x64xf32>
    %101 = arith.addf %95, %100 : vector<512x64xf32>
    %102 = vector.extract_strided_slice %80 {offsets = [0, 1, 0, 0], sizes = [2, 16, 16, 64], strides = [1, 1, 1, 1]} : vector<2x18x16x64xf32> to vector<2x16x16x64xf32>
    %103 = vector.shape_cast %102 : vector<2x16x16x64xf32> to vector<512x64xf32>
    %c3_88 = arith.constant 3 : index
    %c0_89 = arith.constant 0 : index
    %c0_90 = arith.constant 0 : index
    %104 = vector.load %arg5[%c3_88, %c0_89, %c0_90] : memref<9x64x64xf32, #tpu.memory_space<vmem>>, vector<1x64x64xf32>
    %105 = vector.shape_cast %104 : vector<1x64x64xf32> to vector<64x64xf32>
    %cst_91 = arith.constant dense<0.000000e+00> : vector<512x64xf32>
    %106 = tpu.matmul %103, %105, %cst_91 {dimension_numbers = #tpu.dot_dimension_numbers<[1], [0], [0], [1], [0, 0, 1, 1], [], []>} : vector<512x64xf32>, vector<64x64xf32>, vector<512x64xf32> -> vector<512x64xf32>
    %107 = arith.addf %101, %106 : vector<512x64xf32>
    %108 = vector.extract_strided_slice %81 {offsets = [0, 1, 0, 0], sizes = [2, 16, 16, 64], strides = [1, 1, 1, 1]} : vector<2x18x16x64xf32> to vector<2x16x16x64xf32>
    %109 = vector.shape_cast %108 : vector<2x16x16x64xf32> to vector<512x64xf32>
    %c4_92 = arith.constant 4 : index
    %c0_93 = arith.constant 0 : index
    %c0_94 = arith.constant 0 : index
    %110 = vector.load %arg5[%c4_92, %c0_93, %c0_94] : memref<9x64x64xf32, #tpu.memory_space<vmem>>, vector<1x64x64xf32>
    %111 = vector.shape_cast %110 : vector<1x64x64xf32> to vector<64x64xf32>
    %cst_95 = arith.constant dense<0.000000e+00> : vector<512x64xf32>
    %112 = tpu.matmul %109, %111, %cst_95 {dimension_numbers = #tpu.dot_dimension_numbers<[1], [0], [0], [1], [0, 0, 1, 1], [], []>} : vector<512x64xf32>, vector<64x64xf32>, vector<512x64xf32> -> vector<512x64xf32>
    %113 = arith.addf %107, %112 : vector<512x64xf32>
    %114 = vector.extract_strided_slice %82 {offsets = [0, 1, 0, 0], sizes = [2, 16, 16, 64], strides = [1, 1, 1, 1]} : vector<2x18x16x64xf32> to vector<2x16x16x64xf32>
    %115 = vector.shape_cast %114 : vector<2x16x16x64xf32> to vector<512x64xf32>
    %c5_96 = arith.constant 5 : index
    %c0_97 = arith.constant 0 : index
    %c0_98 = arith.constant 0 : index
    %116 = vector.load %arg5[%c5_96, %c0_97, %c0_98] : memref<9x64x64xf32, #tpu.memory_space<vmem>>, vector<1x64x64xf32>
    %117 = vector.shape_cast %116 : vector<1x64x64xf32> to vector<64x64xf32>
    %cst_99 = arith.constant dense<0.000000e+00> : vector<512x64xf32>
    %118 = tpu.matmul %115, %117, %cst_99 {dimension_numbers = #tpu.dot_dimension_numbers<[1], [0], [0], [1], [0, 0, 1, 1], [], []>} : vector<512x64xf32>, vector<64x64xf32>, vector<512x64xf32> -> vector<512x64xf32>
    %119 = arith.addf %113, %118 : vector<512x64xf32>
    %120 = vector.extract_strided_slice %80 {offsets = [0, 2, 0, 0], sizes = [2, 16, 16, 64], strides = [1, 1, 1, 1]} : vector<2x18x16x64xf32> to vector<2x16x16x64xf32>
    %121 = vector.shape_cast %120 : vector<2x16x16x64xf32> to vector<512x64xf32>
    %c6_100 = arith.constant 6 : index
    %c0_101 = arith.constant 0 : index
    %c0_102 = arith.constant 0 : index
    %122 = vector.load %arg5[%c6_100, %c0_101, %c0_102] : memref<9x64x64xf32, #tpu.memory_space<vmem>>, vector<1x64x64xf32>
    %123 = vector.shape_cast %122 : vector<1x64x64xf32> to vector<64x64xf32>
    %cst_103 = arith.constant dense<0.000000e+00> : vector<512x64xf32>
    %124 = tpu.matmul %121, %123, %cst_103 {dimension_numbers = #tpu.dot_dimension_numbers<[1], [0], [0], [1], [0, 0, 1, 1], [], []>} : vector<512x64xf32>, vector<64x64xf32>, vector<512x64xf32> -> vector<512x64xf32>
    %125 = arith.addf %119, %124 : vector<512x64xf32>
    %126 = vector.extract_strided_slice %81 {offsets = [0, 2, 0, 0], sizes = [2, 16, 16, 64], strides = [1, 1, 1, 1]} : vector<2x18x16x64xf32> to vector<2x16x16x64xf32>
    %127 = vector.shape_cast %126 : vector<2x16x16x64xf32> to vector<512x64xf32>
    %c7_104 = arith.constant 7 : index
    %c0_105 = arith.constant 0 : index
    %c0_106 = arith.constant 0 : index
    %128 = vector.load %arg5[%c7_104, %c0_105, %c0_106] : memref<9x64x64xf32, #tpu.memory_space<vmem>>, vector<1x64x64xf32>
    %129 = vector.shape_cast %128 : vector<1x64x64xf32> to vector<64x64xf32>
    %cst_107 = arith.constant dense<0.000000e+00> : vector<512x64xf32>
    %130 = tpu.matmul %127, %129, %cst_107 {dimension_numbers = #tpu.dot_dimension_numbers<[1], [0], [0], [1], [0, 0, 1, 1], [], []>} : vector<512x64xf32>, vector<64x64xf32>, vector<512x64xf32> -> vector<512x64xf32>
    %131 = arith.addf %125, %130 : vector<512x64xf32>
    %132 = vector.extract_strided_slice %82 {offsets = [0, 2, 0, 0], sizes = [2, 16, 16, 64], strides = [1, 1, 1, 1]} : vector<2x18x16x64xf32> to vector<2x16x16x64xf32>
    %133 = vector.shape_cast %132 : vector<2x16x16x64xf32> to vector<512x64xf32>
    %c8_108 = arith.constant 8 : index
    %c0_109 = arith.constant 0 : index
    %c0_110 = arith.constant 0 : index
    %134 = vector.load %arg5[%c8_108, %c0_109, %c0_110] : memref<9x64x64xf32, #tpu.memory_space<vmem>>, vector<1x64x64xf32>
    %135 = vector.shape_cast %134 : vector<1x64x64xf32> to vector<64x64xf32>
    %cst_111 = arith.constant dense<0.000000e+00> : vector<512x64xf32>
    %136 = tpu.matmul %133, %135, %cst_111 {dimension_numbers = #tpu.dot_dimension_numbers<[1], [0], [0], [1], [0, 0, 1, 1], [], []>} : vector<512x64xf32>, vector<64x64xf32>, vector<512x64xf32> -> vector<512x64xf32>
    %137 = arith.addf %131, %136 : vector<512x64xf32>
    %c0_112 = arith.constant 0 : index
    %c0_113 = arith.constant 0 : index
    %138 = vector.load %arg6[%c0_112, %c0_113] : memref<1x64xf32, #tpu.memory_space<vmem>>, vector<1x64xf32>
    %139 = vector.broadcast %138 : vector<1x64xf32> to vector<512x64xf32>
    %140 = arith.mulf %137, %139 : vector<512x64xf32>
    %c0_114 = arith.constant 0 : index
    %c0_115 = arith.constant 0 : index
    %141 = vector.load %arg7[%c0_114, %c0_115] : memref<1x64xf32, #tpu.memory_space<vmem>>, vector<1x64xf32>
    %142 = vector.broadcast %141 : vector<1x64xf32> to vector<512x64xf32>
    %143 = arith.addf %140, %142 : vector<512x64xf32>
    %144 = arith.addf %143, %29 : vector<512x64xf32>
    %145 = vector.shape_cast %144 : vector<512x64xf32> to vector<2x16x16x64xf32>
    %c0_116 = arith.constant 0 : index
    %c0_117 = arith.constant 0 : index
    %c0_118 = arith.constant 0 : index
    %c0_119 = arith.constant 0 : index
    %146 = vector.load %arg8[%c0_116, %c0_117, %c0_118, %c0_119] : memref<2x16x16x64xf32, #tpu.memory_space<vmem>>, vector<2x16x16x64xf32>
    tpu.vector_store %arg8[%c0_116, %c0_117, %c0_118, %c0_119], %145 {strides = array<i32>} : memref<2x16x16x64xf32, #tpu.memory_space<vmem>>, vector<2x16x16x64xf32>,
    return
  }
  func.func @transform_0(%arg0: i32) -> (i32, i32, i32, i32) {
    %c0_i32 = arith.constant 0 : i32
    %c0_i32_0 = arith.constant 0 : i32
    %c0_i32_1 = arith.constant 0 : i32
    %c0_i32_2 = arith.constant 0 : i32
    return %arg0, %c0_i32, %c0_i32_0, %c0_i32_1 : i32, i32, i32, i32
  }
  func.func @transform_1(%arg0: i32) -> (i32, i32, i32) {
    %c0_i32 = arith.constant 0 : i32
    %c0_i32_0 = arith.constant 0 : i32
    %c0_i32_1 = arith.constant 0 : i32
    %c0_i32_2 = arith.constant 0 : i32
    return %c0_i32, %c0_i32_0, %c0_i32_1 : i32, i32, i32
  }
  func.func @transform_2(%arg0: i32) -> (i32, i32) {
    %c0_i32 = arith.constant 0 : i32
    %c0_i32_0 = arith.constant 0 : i32
    %c0_i32_1 = arith.constant 0 : i32
    return %c0_i32, %c0_i32_0 : i32, i32
  }
  func.func @transform_3(%arg0: i32) -> (i32, i32) {
    %c0_i32 = arith.constant 0 : i32
    %c0_i32_0 = arith.constant 0 : i32
    %c0_i32_1 = arith.constant 0 : i32
    return %c0_i32, %c0_i32_0 : i32, i32
  }
  func.func @transform_4(%arg0: i32) -> (i32, i32, i32) {
    %c0_i32 = arith.constant 0 : i32
    %c0_i32_0 = arith.constant 0 : i32
    %c0_i32_1 = arith.constant 0 : i32
    %c0_i32_2 = arith.constant 0 : i32
    return %c0_i32, %c0_i32_0, %c0_i32_1 : i32, i32, i32
  }
  func.func @transform_5(%arg0: i32) -> (i32, i32) {
    %c0_i32 = arith.constant 0 : i32
    %c0_i32_0 = arith.constant 0 : i32
    %c0_i32_1 = arith.constant 0 : i32
    return %c0_i32, %c0_i32_0 : i32, i32
  }
  func.func @transform_6(%arg0: i32) -> (i32, i32) {
    %c0_i32 = arith.constant 0 : i32
    %c0_i32_0 = arith.constant 0 : i32
    %c0_i32_1 = arith.constant 0 : i32
    return %c0_i32, %c0_i32_0 : i32, i32
  }
  func.func @transform_7(%arg0: i32) -> (i32, i32, i32, i32) {
    %c0_i32 = arith.constant 0 : i32
    %c0_i32_0 = arith.constant 0 : i32
    %c0_i32_1 = arith.constant 0 : i32
    %c0_i32_2 = arith.constant 0 : i32
    return %arg0, %c0_i32, %c0_i32_0, %c0_i32_1 : i32, i32, i32, i32
  }
}

</mosaic_0001>

<bundles_post_ra>
// kernel: tpu_custom_call.1
= control target key start
LH: loop header
LB: loop body
LE: loop exit
PB: predicated region body
PF: predicated region fallthrough
CT: control target
= control target key end

     0   :  { %vm260_vm0 = vcmask 523264   ;;  %s18201_s0 = inlined_call_operand.vmem [shape: f32[2,18,18,64], index: 0, kind: input, shape index: {}]   ;;  %s18202_s1 = inlined_call_operand.vmem [shape: f32[9,64,128], index: 1, kind: input, shape index: {}]   ;;  %s18203_s2 = inlined_call_operand.vmem [shape: f32[1,128], index: 2, kind: input, shape index: {}]   ;;  %s18204_s3 = inlined_call_operand.vmem [shape: f32[1,128], index: 3, kind: input, shape index: {}]   ;;  %s18205_s4 = inlined_call_operand.vmem [shape: f32[9,64,64], index: 4, kind: input, shape index: {}]   ;;  %s18206_s5 = inlined_call_operand.vmem [shape: f32[1,64], index: 5, kind: input, shape index: {}]   ;;  %s18207_s6 = inlined_call_operand.vmem [shape: f32[1,64], index: 6, kind: input, shape index: {}]   ;;  %s18208_s7 = inlined_call_operand.hbm [shape: f32[2,16,16,64], index: 7, kind: output, shape index: {}]  }
   0x1   :  { %v8681_v0 = vld [vmem:[%s18202_s1 + $0x78] sm:$0xff]  ;;  %v8680_v2 = vld [vmem:[%s18202_s1 + $0x70] sm:$0xff]  ;;  %v8679_v4 = vld [vmem:[%s18202_s1 + $0x68] sm:$0xff] }
   0x2   :  { %v250_v1 = vld [vmem:[%s18202_s1 + $0x38] sm:$0xff]  ;;  %461 = vmatpush.msra.mxu0 %v8681_v0  ;;  %10018 = vmatpush.msra.mxu2 %v8681_v0  ;;  %v249_v3 = vld [vmem:[%s18202_s1 + $0x30] sm:$0xff]  ;;  %v248_v5 = vld [vmem:[%s18202_s1 + $0x28] sm:$0xff] }
   0x3   :  { %10026 = vmatpush.msra.mxu3 %v250_v1  ;;  %862 = vmatpush.msra.mxu1 %v250_v1  ;;  %v8678_v6 = vld [vmem:[%s18202_s1 + $0x60] sm:$0xff]  ;;  %v8677_v8 = vld [vmem:[%s18202_s1 + $0x58] sm:$0xff]  ;;  %v8676_v10 = vld [vmem:[%s18202_s1 + $0x50] sm:$0xff] }
   0x4   :  { %462 = vmatpush.msra.mxu0 %v8680_v2  ;;  %10019 = vmatpush.msra.mxu2 %v8680_v2  ;;  %v247_v7 = vld [vmem:[%s18202_s1 + $0x20] sm:$0xff]  ;;  %v246_v9 = vld [vmem:[%s18202_s1 + $0x18] sm:$0xff]  ;;  %v245_v11 = vld [vmem:[%s18202_s1 + $0x10] sm:$0xff] }
   0x5   :  { %10027 = vmatpush.msra.mxu3 %v249_v3  ;;  %863 = vmatpush.msra.mxu1 %v249_v3  ;;  %v8675_v12 = vld [vmem:[%s18202_s1 + $0x48] sm:$0xff]  ;;  %v8674_v14 = vld [vmem:[%s18202_s1 + $0x40] sm:$0xff] }
   0x6   :  { %463 = vmatpush.msra.mxu0 %v8679_v4  ;;  %10020 = vmatpush.msra.mxu2 %v8679_v4  ;;  %v244_v13 = vld [vmem:[%s18202_s1 + $0x8] sm:$0xff]  ;;  %v243_v15 = vld [vmem:[%s18202_s1] sm:$0xff] }
   0x7   :  { %10028 = vmatpush.msra.mxu3 %v248_v5  ;;  %864 = vmatpush.msra.mxu1 %v248_v5  ;;  %v99_v16 = vld [vmem:[%s18201_s0 + $0x1] sm:$0xff] }
   0x8   :  { %464 = vmatpush.msra.mxu0 %v8678_v6  ;;  %10021 = vmatpush.msra.mxu2 %v8678_v6 }
   0x9   :  { %10029 = vmatpush.msra.mxu3 %v247_v7  ;;  %865 = vmatpush.msra.mxu1 %v247_v7 }
   0xa   :  { %465 = vmatpush.msra.mxu0 %v8677_v8  ;;  %10022 = vmatpush.msra.mxu2 %v8677_v8 }
   0xb   :  { %10030 = vmatpush.msra.mxu3 %v246_v9  ;;  %866 = vmatpush.msra.mxu1 %v246_v9 }
   0xc   :  { %466 = vmatpush.msra.mxu0 %v8676_v10  ;;  %10023 = vmatpush.msra.mxu2 %v8676_v10 }
   0xd   :  { %10031 = vmatpush.msra.mxu3 %v245_v11  ;;  %867 = vmatpush.msra.mxu1 %v245_v11 }
   0xe   :  { %467 = vmatpush.msra.mxu0 %v8675_v12  ;;  %10024 = vmatpush.msra.mxu2 %v8675_v12 }
   0xf   :  { %12 = vsyncpa [#allocation4], 0  ;;  %10032 = vmatpush.msra.mxu3 %v244_v13  ;;  %v135_v17 = vld [vmem:[%s18201_s0 + $0x1b1] sm:$0xff]  ;;  %868 = vmatpush.msra.mxu1 %v244_v13  ;;  %v27_v22 = vld [vmem:[%s18201_s0] sm:$0xff]  ;;  %s10819_s9 = smov 64   ;;  %s10821_s26 = smov [#allocation3]  }
  0x10   :  { %v63_v18 = vld [vmem:[%s18201_s0 + $0x1b0] sm:$0xff]  ;;  %468 = vmatpush.msra.mxu0 %v8674_v14  ;;  %10025 = vmatpush.msra.mxu2 %v8674_v14  ;;  %v8817_v19 = vld [vmem:[%s18202_s1 + $0xb8] sm:$0xff]  ;;  %v28_v28 = vld [vmem:[%s18201_s0 + $0x8] sm:$0xff]  ;;  %s8662_s29 = sshll.u32 %s18208_s7, 4  ;;  %s10822_s8 = smov 128   ;;  %s8663_s29 = int_to_ptr.hbm [resolvable:$true] %s8662_s29 }
  0x11   :  { %v8889_v20 = vld [vmem:[%s18202_s1 + $0xf8] sm:$0xff]  ;;  %10033 = vmatpush.msra.mxu3 %v243_v15  ;;  %8682 = vmatmul.msk.f32.vlgmr.msra.gmra.mxu0 %vm260_vm0, %v99_v16  ;;  %v8816_v23 = vld [vmem:[%s18202_s1 + $0xb0] sm:$0xff]  ;;  %v65_v32 = vld [vmem:[%s18201_s0 + $0x1c8] sm:$0xff]  ;;  %s10823_s10 = smov 8  }
  0x12   :  { %v8961_v21 = vld [vmem:[%s18202_s1 + $0x138] sm:$0xff]  ;;  %8714 = vmatmul.msk.f32.vlgmr.msra.gmra.mxu2 %vm260_vm0, %v135_v17  ;;  %8778 = vmatmul.msk.f32.vlgmr.msra.gmra.mxu3 %vm260_vm0, %v63_v18  ;;  %v8888_v24 = vld [vmem:[%s18202_s1 + $0xf0] sm:$0xff]  ;;  %v10987_v34 = vld [vmem:[%s18201_s0 + $0x21] sm:$0xff] }
  0x13   :  { %1272 = vmatpush.msrb.mxu2 %v8817_v19  ;;  %1566 = vmatpush.msrb.mxu3 %v8889_v20  ;;  %v100_v25 = vld [vmem:[%s18201_s0 + $0x9] sm:$0xff]  ;;  %v136_v26 = vld [vmem:[%s18201_s0 + $0x1b9] sm:$0xff]  ;;  %v138_v35 = vld [vmem:[%s18201_s0 + $0x1d1] sm:$0xff] }
  0x14   :  { %869 = vmatpush.msra.mxu1 %v243_v15  ;;  %1860 = vmatpush.msrb.mxu0 %v8961_v21  ;;  %v64_v27 = vld [vmem:[%s18201_s0 + $0x1b8] sm:$0xff]  ;;  %v8960_v29 = vld [vmem:[%s18202_s1 + $0x130] sm:$0xff]  ;;  %v11002_v37 = vld [vmem:[%s18201_s0 + $0x20] sm:$0xff] }
  0x15   :  { %8746 = vmatmul.msk.f32.vlgmr.msra.gmra.mxu1 %vm260_vm0, %v27_v22  ;;  %1273 = vmatpush.msrb.mxu2 %v8816_v23  ;;  %v10965_v30 = vld [vmem:[%s18201_s0 + $0x19] sm:$0xff]  ;;  %v137_v31 = vld [vmem:[%s18201_s0 + $0x1c9] sm:$0xff]  ;;  %v11009_v38 = vld [vmem:[%s18201_s0 + $0x31] sm:$0xff] }
  0x16   :  { %1567 = vmatpush.msrb.mxu3 %v8888_v24  ;;  %1861 = vmatpush.msrb.mxu0 %v8960_v29  ;;  %v10980_v33 = vld [vmem:[%s18201_s0 + $0x18] sm:$0xff]  ;;  %v66_v36 = vld [vmem:[%s18201_s0 + $0x1d0] sm:$0xff]  ;;  %v139_v39 = vld [vmem:[%s18201_s0 + $0x1e1] sm:$0xff] }
  0x17   :  { %v67_v40 = vld [vmem:[%s18201_s0 + $0x1e0] sm:$0xff]  ;;  %v11024_v41 = vld [vmem:[%s18201_s0 + $0x30] sm:$0xff]  ;;  %v8815_v42 = vld [vmem:[%s18202_s1 + $0xa8] sm:$0xff] }
  0x18   :  { %v8887_v43 = vld [vmem:[%s18202_s1 + $0xe8] sm:$0xff]  ;;  %1274 = vmatpush.msrb.mxu2 %v8815_v42  ;;  %v11037_v44 = vld [vmem:[%s18201_s0 + $0x39] sm:$0xff]  ;;  %v11084_v53 = vld [vmem:[%s18201_s0 + $0x51] sm:$0xff] }
  0x19   :  { %8683 = vmatmul.msk.f32.gmra.mxu0 %vm260_vm0, %v100_v25  ;;  %1568 = vmatpush.msrb.mxu3 %v8887_v43  ;;  %v140_v45 = vld [vmem:[%s18201_s0 + $0x1e9] sm:$0xff]  ;;  %v11052_v47 = vld [vmem:[%s18201_s0 + $0x38] sm:$0xff]  ;;  %v142_v54 = vld [vmem:[%s18201_s0 + $0x201] sm:$0xff] }
  0x1a   :  { %8715 = vmatmul.msk.f32.gmra.mxu2 %vm260_vm0, %v136_v26  ;;  %8779 = vmatmul.msk.f32.gmra.mxu3 %vm260_vm0, %v64_v27  ;;  %v68_v46 = vld [vmem:[%s18201_s0 + $0x1e8] sm:$0xff]  ;;  %v141_v50 = vld [vmem:[%s18201_s0 + $0x1f9] sm:$0xff]  ;;  %v11099_v56 = vld [vmem:[%s18201_s0 + $0x50] sm:$0xff] }
  0x1b   :  { %v8959_v48 = vld [vmem:[%s18202_s1 + $0x128] sm:$0xff]  ;;  %v69_v51 = vld [vmem:[%s18201_s0 + $0x1f8] sm:$0xff]  ;;  %v70_v55 = vld [vmem:[%s18201_s0 + $0x200] sm:$0xff] }
  0x1c   :  { %1862 = vmatpush.msrb.mxu0 %v8959_v48  ;;  %v11062_v49 = vld [vmem:[%s18201_s0 + $0x49] sm:$0xff]  ;;  %v11106_v57 = vld [vmem:[%s18201_s0 + $0x61] sm:$0xff]  ;;  %v143_v58 = vld [vmem:[%s18201_s0 + $0x211] sm:$0xff] }
  0x1d   :  { %8747 = vmatmul.msk.f32.gmra.mxu1 %vm260_vm0, %v28_v28  ;;  %v11077_v52 = vld [vmem:[%s18201_s0 + $0x48] sm:$0xff]  ;;  %v71_v59 = vld [vmem:[%s18201_s0 + $0x210] sm:$0xff]  ;;  %v11121_v60 = vld [vmem:[%s18201_s0 + $0x60] sm:$0xff] }
  0x1e   :  { %v8814_v61 = vld [vmem:[%s18202_s1 + $0xa0] sm:$0xff]  ;;  %v11134_v63 = vld [vmem:[%s18201_s0 + $0x69] sm:$0xff]  ;;  %v72_v1 = vld [vmem:[%s18201_s0 + $0x218] sm:$0xff] }
  0x1f   :  { %v8886_v62 = vld [vmem:[%s18202_s1 + $0xe0] sm:$0xff]  ;;  %1275 = vmatpush.msrb.mxu2 %v8814_v61  ;;  %v11149_v2 = vld [vmem:[%s18201_s0 + $0x68] sm:$0xff]  ;;  %v11174_v7 = vld [vmem:[%s18201_s0 + $0x78] sm:$0xff] }
  0x20   :  { %1569 = vmatpush.msrb.mxu3 %v8886_v62  ;;  %v144_v0 = vld [vmem:[%s18201_s0 + $0x219] sm:$0xff]  ;;  %v145_v5 = vld [vmem:[%s18201_s0 + $0x229] sm:$0xff]  ;;  %v11181_v8 = vld [vmem:[%s18201_s0 + $0x81] sm:$0xff] }
  0x21   :  { %8684 = vmatmul.msk.f32.gmra.mxu0 %vm260_vm0, %v10965_v30  ;;  %v8958_v3 = vld [vmem:[%s18202_s1 + $0x120] sm:$0xff]  ;;  %v73_v6 = vld [vmem:[%s18201_s0 + $0x228] sm:$0xff]  ;;  %v146_v9 = vld [vmem:[%s18201_s0 + $0x231] sm:$0xff] }
  0x22   :  { %8716 = vmatmul.msk.f32.gmra.mxu2 %vm260_vm0, %v137_v31  ;;  %8780 = vmatmul.msk.f32.gmra.mxu3 %vm260_vm0, %v65_v32  ;;  %v11159_v4 = vld [vmem:[%s18201_s0 + $0x79] sm:$0xff]  ;;  %v74_v10 = vld [vmem:[%s18201_s0 + $0x230] sm:$0xff]  ;;  %v147_v13 = vld [vmem:[%s18201_s0 + $0x241] sm:$0xff] }
  0x23   :  { %1863 = vmatpush.msrb.mxu0 %v8958_v3  ;;  %v11196_v11 = vld [vmem:[%s18201_s0 + $0x80] sm:$0xff]  ;;  %v11203_v12 = vld [vmem:[%s18201_s0 + $0x91] sm:$0xff]  ;;  %v148_v19 = vld [vmem:[%s18201_s0 + $0x249] sm:$0xff] }
  0x24   :  { %v75_v14 = vld [vmem:[%s18201_s0 + $0x240] sm:$0xff]  ;;  %v11218_v15 = vld [vmem:[%s18201_s0 + $0x90] sm:$0xff]  ;;  %v8813_v16 = vld [vmem:[%s18202_s1 + $0x98] sm:$0xff] }
  0x25   :  { %8748 = vmatmul.msk.f32.gmra.mxu1 %vm260_vm0, %v10980_v33  ;;  %v8885_v17 = vld [vmem:[%s18202_s1 + $0xd8] sm:$0xff]  ;;  %1276 = vmatpush.msrb.mxu2 %v8813_v16  ;;  %v76_v20 = vld [vmem:[%s18201_s0 + $0x248] sm:$0xff]  ;;  %v78_v29 = vld [vmem:[%s18201_s0 + $0x260] sm:$0xff] }
  0x26   :  { %1570 = vmatpush.msrb.mxu3 %v8885_v17  ;;  %v11231_v18 = vld [vmem:[%s18201_s0 + $0x99] sm:$0xff]  ;;  %v11256_v23 = vld [vmem:[%s18201_s0 + $0xa9] sm:$0xff]  ;;  %v11278_v27 = vld [vmem:[%s18201_s0 + $0xb1] sm:$0xff] }
  0x27   :  { %v11246_v21 = vld [vmem:[%s18201_s0 + $0x98] sm:$0xff]  ;;  %v11271_v26 = vld [vmem:[%s18201_s0 + $0xa8] sm:$0xff]  ;;  %v11293_v31 = vld [vmem:[%s18201_s0 + $0xb0] sm:$0xff] }
  0x28   :  { %v8957_v22 = vld [vmem:[%s18202_s1 + $0x118] sm:$0xff]  ;;  %v150_v28 = vld [vmem:[%s18201_s0 + $0x261] sm:$0xff]  ;;  %v8812_v43 = vld [vmem:[%s18202_s1 + $0x90] sm:$0xff] }
  0x29   :  { %8685 = vmatmul.msk.f32.gmra.mxu0 %vm260_vm0, %v10987_v34  ;;  %v149_v24 = vld [vmem:[%s18201_s0 + $0x259] sm:$0xff]  ;;  %1277 = vmatpush.msrb.mxu2 %v8812_v43  ;;  %v11353_v61 = vld [vmem:[%s18201_s0 + $0xc8] sm:$0xff]  ;;  %v8956_v62 = vld [vmem:[%s18202_s1 + $0x110] sm:$0xff] }
  0x2a   :  { %8717 = vmatmul.msk.f32.gmra.mxu2 %vm260_vm0, %v138_v35  ;;  %8781 = vmatmul.msk.f32.gmra.mxu3 %vm260_vm0, %v66_v36  ;;  %v77_v25 = vld [vmem:[%s18201_s0 + $0x258] sm:$0xff]  ;;  %v11302_v35 = vld [vmem:[%s18201_s0 + $0xc1] sm:$0xff] }
  0x2b   :  { %1864 = vmatpush.msrb.mxu0 %v8957_v22  ;;  %v151_v36 = vld [vmem:[%s18201_s0 + $0x271] sm:$0xff]  ;;  %v11319_v42 = vld [vmem:[%s18201_s0 + $0xc0] sm:$0xff] }
  0x2c   :  { %v11395_v22 = vld [vmem:[%s18201_s0 + $0xe1] sm:$0xff] }
  0x2d   :  { %8749 = vmatmul.msk.f32.gmra.mxu1 %vm260_vm0, %v11002_v37  ;;  %1865 = vmatpush.msrb.mxu0 %v8956_v62  ;;  %v11440_v62 = vld [vmem:[%s18201_s0 + $0xf0] sm:$0xff] }
  0x31   :  { %8686 = vmatmul.msk.f32.gmra.mxu0 %vm260_vm0, %v11009_v38 }
  0x32   :  { %8718 = vmatmul.msk.f32.gmra.mxu2 %vm260_vm0, %v139_v39  ;;  %8782 = vmatmul.msk.f32.gmra.mxu3 %vm260_vm0, %v67_v40  ;;  %v79_v39 = vld [vmem:[%s18201_s0 + $0x270] sm:$0xff] }
  0x35   :  { %8750 = vmatmul.msk.f32.gmra.mxu1 %vm260_vm0, %v11024_v41 }
  0x39   :  { %8687 = vmatmul.msk.f32.gmra.mxu0 %vm260_vm0, %v11037_v44 }
  0x3a   :  { %8719 = vmatmul.msk.f32.gmra.mxu2 %vm260_vm0, %v140_v45  ;;  %8783 = vmatmul.msk.f32.gmra.mxu3 %vm260_vm0, %v68_v46  ;;  %v8884_v45 = vld [vmem:[%s18202_s1 + $0xd0] sm:$0xff] }
  0x3b   :  { %1571 = vmatpush.msrb.mxu3 %v8884_v45 }
  0x3d   :  { %8751 = vmatmul.msk.f32.gmra.mxu1 %vm260_vm0, %v11052_v47 }
  0x41   :  { %8688 = vmatmul.msk.f32.gmra.mxu0 %vm260_vm0, %v11062_v49 }
  0x42   :  { %8720 = vmatmul.msk.f32.gmra.mxu2 %vm260_vm0, %v141_v50  ;;  %8784 = vmatmul.msk.f32.gmra.mxu3 %vm260_vm0, %v69_v51 }
  0x45   :  { %8752 = vmatmul.msk.f32.gmra.mxu1 %vm260_vm0, %v11077_v52 }
  0x49   :  { %8689 = vmatmul.msk.f32.gmra.mxu0 %vm260_vm0, %v11084_v53 }
  0x4a   :  { %8721 = vmatmul.msk.f32.gmra.mxu2 %vm260_vm0, %v142_v54  ;;  %8785 = vmatmul.msk.f32.gmra.mxu3 %vm260_vm0, %v70_v55  ;;  %v11336_v54 = vld [vmem:[%s18201_s0 + $0xc9] sm:$0xff]  ;;  %v152_v55 = vld [vmem:[%s18201_s0 + $0x279] sm:$0xff] }
  0x4d   :  { %8753 = vmatmul.msk.f32.gmra.mxu1 %vm260_vm0, %v11099_v56 }
  0x51   :  { %8690 = vmatmul.msk.f32.gmra.mxu0 %vm260_vm0, %v11106_v57 }
  0x52   :  { %8722 = vmatmul.msk.f32.gmra.mxu2 %vm260_vm0, %v143_v58  ;;  %8786 = vmatmul.msk.f32.gmra.mxu3 %vm260_vm0, %v71_v59  ;;  %v80_v58 = vld [vmem:[%s18201_s0 + $0x278] sm:$0xff] }
  0x55   :  { %8754 = vmatmul.msk.f32.gmra.mxu1 %vm260_vm0, %v11121_v60 }
  0x59   :  { %8691 = vmatmul.msk.f32.gmra.mxu0 %vm260_vm0, %v11134_v63 }
  0x5a   :  { %8723 = vmatmul.msk.f32.gmra.mxu2 %vm260_vm0, %v144_v0  ;;  %8787 = vmatmul.msk.f32.gmra.mxu3 %vm260_vm0, %v72_v1 }
  0x5d   :  { %8755 = vmatmul.msk.f32.gmra.mxu1 %vm260_vm0, %v11149_v2 }
  0x61   :  { %8692 = vmatmul.msk.f32.gmra.mxu0 %vm260_vm0, %v11159_v4 }
  0x62   :  { %8724 = vmatmul.msk.f32.gmra.mxu2 %vm260_vm0, %v145_v5  ;;  %8788 = vmatmul.msk.f32.gmra.mxu3 %vm260_vm0, %v73_v6  ;;  %v11367_v6 = vld [vmem:[%s18201_s0 + $0xd9] sm:$0xff] }
  0x65   :  { %8756 = vmatmul.msk.f32.gmra.mxu1 %vm260_vm0, %v11174_v7 }
  0x69   :  { %8693 = vmatmul.msk.f32.gmra.mxu0 %vm260_vm0, %v11181_v8 }
  0x6a   :  { %8725 = vmatmul.msk.f32.gmra.mxu2 %vm260_vm0, %v146_v9  ;;  %8789 = vmatmul.msk.f32.gmra.mxu3 %vm260_vm0, %v74_v10  ;;  %v153_v9 = vld [vmem:[%s18201_s0 + $0x289] sm:$0xff] }
  0x6b   :  { %v81_v10 = vld [vmem:[%s18201_s0 + $0x288] sm:$0xff] }
  0x6d   :  { %8757 = vmatmul.msk.f32.gmra.mxu1 %vm260_vm0, %v11196_v11 }
  0x71   :  { %8694 = vmatmul.msk.f32.gmra.mxu0 %vm260_vm0, %v11203_v12 }
  0x72   :  { %8726 = vmatmul.msk.f32.gmra.mxu2 %vm260_vm0, %v147_v13  ;;  %8790 = vmatmul.msk.f32.gmra.mxu3 %vm260_vm0, %v75_v14  ;;  %v11384_v14 = vld [vmem:[%s18201_s0 + $0xd8] sm:$0xff] }
  0x75   :  { %8758 = vmatmul.msk.f32.gmra.mxu1 %vm260_vm0, %v11218_v15 }
  0x79   :  { %8695 = vmatmul.msk.f32.gmra.mxu0 %vm260_vm0, %v11231_v18 }
  0x7a   :  { %8727 = vmatmul.msk.f32.gmra.mxu2 %vm260_vm0, %v148_v19  ;;  %8791 = vmatmul.msk.f32.gmra.mxu3 %vm260_vm0, %v76_v20 }
  0x7d   :  { %8759 = vmatmul.msk.f32.gmra.mxu1 %vm260_vm0, %v11246_v21 }
  0x81   :  { %8696 = vmatmul.msk.f32.gmra.mxu0 %vm260_vm0, %v11256_v23 }
  0x82   :  { %8728 = vmatmul.msk.f32.gmra.mxu2 %vm260_vm0, %v149_v24  ;;  %8792 = vmatmul.msk.f32.gmra.mxu3 %vm260_vm0, %v77_v25  ;;  %v154_v24 = vld [vmem:[%s18201_s0 + $0x291] sm:$0xff] }
  0x83   :  { %v82_v25 = vld [vmem:[%s18201_s0 + $0x290] sm:$0xff] }
  0x85   :  { %8760 = vmatmul.msk.f32.gmra.mxu1 %vm260_vm0, %v11271_v26 }
  0x89   :  { %8697 = vmatmul.msk.f32.gmra.mxu0 %vm260_vm0, %v11278_v27 }
  0x8a   :  { %8729 = vmatmul.msk.f32.gmra.mxu2 %vm260_vm0, %v150_v28  ;;  %8793 = vmatmul.msk.f32.gmra.mxu3 %vm260_vm0, %v78_v29  ;;  %v11412_v29 = vld [vmem:[%s18201_s0 + $0xe0] sm:$0xff] }
  0x8d   :  { %8761 = vmatmul.msk.f32.gmra.mxu1 %vm260_vm0, %v11293_v31 }
  0x8e   :  { %v11297_v32 = vpop.f32.mrf.mxu0 }
  0x91   :  { %8698 = vmatmul.msk.f32.gmra.mxu0 %vm260_vm0, %v11302_v35 }
  0x92   :  { %8730 = vmatmul.msk.f32.gmra.mxu2 %vm260_vm0, %v151_v36  ;;  %8794 = vmatmul.msk.f32.gmra.mxu3 %vm260_vm0, %v79_v39  ;;  %v11314_v40 = vpop.f32.mrf.mxu1 }
  0x95   :  { %v566_v46 = vpop.f32.mrf.mxu2  ;;  %v967_v48 = vpop.f32.mrf.mxu3  ;;  %8762 = vmatmul.msk.f32.gmra.mxu1 %vm260_vm0, %v11319_v42 }
  0x96   :  { %v11329_v50 = vadd.f32 %v967_v48, %v566_v46  ;;  %v11331_v51 = vpop.f32.mrf.mxu0  ;;  %v11423_v46 = vld [vmem:[%s18201_s0 + $0xf1] sm:$0xff]  ;;  %v155_v48 = vld [vmem:[%s18201_s0 + $0x2a1] sm:$0xff] }
  0x98   :  { %18268 = vst [vmem:[#allocation6_spill] sm:$0xff] %v11329_v50 }
  0x99   :  { %8699 = vmatmul.msk.f32.gmra.mxu0 %vm260_vm0, %v11336_v54 }
  0x9a   :  { %8731 = vmatmul.msk.f32.gmra.mxu2 %vm260_vm0, %v152_v55  ;;  %8795 = vmatmul.msk.f32.gmra.mxu3 %vm260_vm0, %v80_v58  ;;  %v11348_v59 = vpop.f32.mrf.mxu1  ;;  %v83_v55 = vld [vmem:[%s18201_s0 + $0x2a0] sm:$0xff] }
  0x9d   :  { %v569_v0 = vpop.f32.mrf.mxu2  ;;  %v970_v1 = vpop.f32.mrf.mxu3  ;;  %8763 = vmatmul.msk.f32.gmra.mxu1 %vm260_vm0, %v11353_v61 }
  0x9e   :  { %v11360_v3 = vadd.f32 %v970_v1, %v569_v0  ;;  %v11362_v5 = vpop.f32.mrf.mxu0  ;;  %v8811_v0 = vld [vmem:[%s18202_s1 + $0x88] sm:$0xff] }
  0x9f   :  { %v8883_v1 = vld [vmem:[%s18202_s1 + $0xc8] sm:$0xff]  ;;  %1278 = vmatpush.msrb.mxu2 %v8811_v0 }
  0xa0   :  { %18269 = vst [vmem:[#allocation7_spill] sm:$0xff] %v11360_v3  ;;  %1572 = vmatpush.msrb.mxu3 %v8883_v1  ;;  %v86_v3 = vld [vmem:[%s18201_s0 + $0x2c0] sm:$0xff] }
  0xa1   :  { %8700 = vmatmul.msk.f32.gmra.mxu0 %vm260_vm0, %v11367_v6 }
  0xa2   :  { %8732 = vmatmul.msk.f32.gmra.mxu2 %vm260_vm0, %v153_v9  ;;  %8796 = vmatmul.msk.f32.gmra.mxu3 %vm260_vm0, %v81_v10  ;;  %v11379_v13 = vpop.f32.mrf.mxu1 }
  0xa5   :  { %v572_v16 = vpop.f32.mrf.mxu2  ;;  %v973_v17 = vpop.f32.mrf.mxu3  ;;  %8764 = vmatmul.msk.f32.gmra.mxu1 %vm260_vm0, %v11384_v14 }
  0xa6   :  { %v11388_v19 = vadd.f32 %v973_v17, %v572_v16  ;;  %v11390_v20 = vpop.f32.mrf.mxu0 }
  0xa8   :  { %18270 = vst [vmem:[#allocation8_spill] sm:$0xff] %v11388_v19 }
  0xa9   :  { %8701 = vmatmul.msk.f32.gmra.mxu0 %vm260_vm0, %v11395_v22 }
  0xaa   :  { %8733 = vmatmul.msk.f32.gmra.mxu2 %vm260_vm0, %v154_v24  ;;  %8797 = vmatmul.msk.f32.gmra.mxu3 %vm260_vm0, %v82_v25  ;;  %v11407_v28 = vpop.f32.mrf.mxu1  ;;  %v11457_v24 = vld [vmem:[%s18201_s0 + $0xf9] sm:$0xff]  ;;  %v156_v25 = vld [vmem:[%s18201_s0 + $0x2a9] sm:$0xff] }
  0xad   :  { %v575_v36 = vpop.f32.mrf.mxu2  ;;  %v976_v39 = vpop.f32.mrf.mxu3  ;;  %8765 = vmatmul.msk.f32.gmra.mxu1 %vm260_vm0, %v11412_v29 }
  0xae   :  { %v11416_v43 = vadd.f32 %v976_v39, %v575_v36  ;;  %v11418_v45 = vpop.f32.mrf.mxu0  ;;  %v84_v36 = vld [vmem:[%s18201_s0 + $0x2a8] sm:$0xff] }
  0xb0   :  { %18271 = vst [vmem:[#allocation9_spill] sm:$0xff] %v11416_v43 }
  0xb1   :  { %8702 = vmatmul.msk.f32.gmra.mxu0 %vm260_vm0, %v11423_v46 }
  0xb2   :  { %8734 = vmatmul.msk.f32.gmra.mxu2 %vm260_vm0, %v155_v48  ;;  %8798 = vmatmul.msk.f32.gmra.mxu3 %vm260_vm0, %v83_v55  ;;  %v11435_v58 = vpop.f32.mrf.mxu1  ;;  %v11474_v48 = vld [vmem:[%s18201_s0 + $0xf8] sm:$0xff]  ;;  %v8955_v55 = vld [vmem:[%s18202_s1 + $0x108] sm:$0xff] }
  0xb3   :  { %1866 = vmatpush.msrb.mxu0 %v8955_v55  ;;  %v85_v55 = vld [vmem:[%s18201_s0 + $0x2b8] sm:$0xff] }
  0xb5   :  { %v578_v9 = vpop.f32.mrf.mxu2  ;;  %v979_v10 = vpop.f32.mrf.mxu3  ;;  %8766 = vmatmul.msk.f32.gmra.mxu1 %vm260_vm0, %v11440_v62 }
  0xb6   :  { %v11450_v16 = vadd.f32 %v979_v10, %v578_v9  ;;  %v11452_v17 = vpop.f32.mrf.mxu0 }
  0xb8   :  { %18272 = vst [vmem:[#allocation10_spill] sm:$0xff] %v11450_v16 }
  0xb9   :  { %8703 = vmatmul.msk.f32.gmra.mxu0 %vm260_vm0, %v11457_v24 }
  0xba   :  { %8735 = vmatmul.msk.f32.gmra.mxu2 %vm260_vm0, %v156_v25  ;;  %8799 = vmatmul.msk.f32.gmra.mxu3 %vm260_vm0, %v84_v36  ;;  %v11469_v39 = vpop.f32.mrf.mxu1  ;;  %v11488_v25 = vld [vmem:[%s18201_s0 + $0x109] sm:$0xff]  ;;  %v157_v36 = vld [vmem:[%s18201_s0 + $0x2b9] sm:$0xff] }
  0xbb   :  { %18273 = vst [vmem:[#allocation11_spill] sm:$0xff] %v11469_v39  ;;  %v160_v39 = vld [vmem:[%s18201_s0 + $0x2d9] sm:$0xff] }
  0xbd   :  { %v581_v0 = vpop.f32.mrf.mxu2  ;;  %v982_v1 = vpop.f32.mrf.mxu3  ;;  %8767 = vmatmul.msk.f32.gmra.mxu1 %vm260_vm0, %v11474_v48 }
  0xbe   :  { %v11481_v9 = vadd.f32 %v982_v1, %v581_v0  ;;  %v11483_v10 = vpop.f32.mrf.mxu0  ;;  %v11505_v1 = vld [vmem:[%s18201_s0 + $0x108] sm:$0xff] }
  0xbf   :  { %18275 = vst [vmem:[#allocation13_spill] sm:$0xff] %v11483_v10 }
  0xc0   :  { %18274 = vst [vmem:[#allocation12_spill] sm:$0xff] %v11481_v9 }
  0xc1   :  { %8704 = vmatmul.msk.f32.gmra.mxu0 %vm260_vm0, %v11488_v25 }
  0xc2   :  { %8736 = vmatmul.msk.f32.gmra.mxu2 %vm260_vm0, %v157_v36  ;;  %8800 = vmatmul.msk.f32.gmra.mxu3 %vm260_vm0, %v85_v55  ;;  %v11500_v0 = vpop.f32.mrf.mxu1  ;;  %v11516_v36 = vld [vmem:[%s18201_s0 + $0x111] sm:$0xff]  ;;  %v158_v55 = vld [vmem:[%s18201_s0 + $0x2c1] sm:$0xff] }
  0xc3   :  { %18276 = vst [vmem:[#allocation14_spill] sm:$0xff] %v11500_v0 }
  0xc5   :  { %v584_v9 = vpop.f32.mrf.mxu2  ;;  %v985_v16 = vpop.f32.mrf.mxu3  ;;  %8768 = vmatmul.msk.f32.gmra.mxu1 %vm260_vm0, %v11505_v1 }
  0xc6   :  { %v11509_v43 = vadd.f32 %v985_v16, %v584_v9  ;;  %v11511_v19 = vpop.f32.mrf.mxu0  ;;  %v11533_v9 = vld [vmem:[%s18201_s0 + $0x110] sm:$0xff] }
  0xc7   :  { %18278 = vst [vmem:[#allocation16_spill] sm:$0xff] %v11511_v19 }
  0xc8   :  { %18277 = vst [vmem:[#allocation15_spill] sm:$0xff] %v11509_v43 }
  0xc9   :  { %8705 = vmatmul.msk.f32.gmra.mxu0 %vm260_vm0, %v11516_v36 }
  0xca   :  { %8737 = vmatmul.msk.f32.gmra.mxu2 %vm260_vm0, %v158_v55  ;;  %8801 = vmatmul.msk.f32.gmra.mxu3 %vm260_vm0, %v86_v3  ;;  %v11528_v16 = vpop.f32.mrf.mxu1  ;;  %v11544_v3 = vld [vmem:[%s18201_s0 + $0x121] sm:$0xff]  ;;  %v159_v55 = vld [vmem:[%s18201_s0 + $0x2d1] sm:$0xff] }
  0xcb   :  { %18279 = vst [vmem:[#allocation17_spill] sm:$0xff] %v11528_v16  ;;  %v87_v16 = vld [vmem:[%s18201_s0 + $0x2d0] sm:$0xff] }
  0xcc   :  { %18282 = vst [vmem:[#allocation20_spill] sm:$0xff] %v11544_v3 }
  0xcd   :  { %v587_v43 = vpop.f32.mrf.mxu2  ;;  %v988_v50 = vpop.f32.mrf.mxu3  ;;  %8769 = vmatmul.msk.f32.gmra.mxu1 %vm260_vm0, %v11533_v9 }
  0xce   :  { %v11537_v19 = vadd.f32 %v988_v50, %v587_v43  ;;  %v11539_v0 = vpop.f32.mrf.mxu0  ;;  %v11561_v43 = vld [vmem:[%s18201_s0 + $0x120] sm:$0xff] }
  0xcf   :  { %18281 = vst [vmem:[#allocation19_spill] sm:$0xff] %v11539_v0  ;;  %v8882_v0 = vld [vmem:[%s18202_s1 + $0xc0] sm:$0xff] }
  0xd0   :  { %18280 = vst [vmem:[#allocation18_spill] sm:$0xff] %v11537_v19  ;;  %v8810_v19 = vld [vmem:[%s18202_s1 + $0x80] sm:$0xff]  ;;  %1573 = vmatpush.msrb.mxu3 %v8882_v0  ;;  %v11595_v0 = vld [vmem:[%s18201_s0 + $0x128] sm:$0xff] }
  0xd1   :  { %8706 = vmatmul.msk.f32.gmra.mxu0 %vm260_vm0, %v11544_v3  ;;  %18284 = vst [vmem:[#allocation22_spill] sm:$0xff] %v11561_v43  ;;  %1279 = vmatpush.msrb.mxu2 %v8810_v19  ;;  %v11578_v3 = vld [vmem:[%s18201_s0 + $0x129] sm:$0xff]  ;;  %v88_v19 = vld [vmem:[%s18201_s0 + $0x2d8] sm:$0xff] }
  0xd2   :  { %8738 = vmatmul.msk.f32.gmra.mxu2 %vm260_vm0, %v159_v55  ;;  %8802 = vmatmul.msk.f32.gmra.mxu3 %vm260_vm0, %v87_v16  ;;  %v11556_v50 = vpop.f32.mrf.mxu1  ;;  %18287 = vst [vmem:[#allocation25_spill] sm:$0xff] %v11578_v3 }
  0xd3   :  { %18283 = vst [vmem:[#allocation21_spill] sm:$0xff] %v11556_v50 }
  0xd4   :  { %18289 = vst [vmem:[#allocation27_spill] sm:$0xff] %v11595_v0 }
  0xd5   :  { %v590_v55 = vpop.f32.mrf.mxu2  ;;  %v991_v10 = vpop.f32.mrf.mxu3  ;;  %8770 = vmatmul.msk.f32.gmra.mxu1 %vm260_vm0, %v11561_v43 }
  0xd6   :  { %v11571_v16 = vadd.f32 %v991_v10, %v590_v55  ;;  %v11573_v50 = vpop.f32.mrf.mxu0  ;;  %v8954_v55 = vld [vmem:[%s18202_s1 + $0x100] sm:$0xff] }
  0xd7   :  { %18286 = vst [vmem:[#allocation24_spill] sm:$0xff] %v11573_v50  ;;  %1867 = vmatpush.msrb.mxu0 %v8954_v55  ;;  %v89_v55 = vld [vmem:[%s18201_s0 + $0x2e8] sm:$0xff] }
  0xd8   :  { %18285 = vst [vmem:[#allocation23_spill] sm:$0xff] %v11571_v16 }
  0xd9   :  { %8707 = vmatmul.msk.f32.gmra.mxu0 %vm260_vm0, %v11578_v3  ;;  %v161_v3 = vld [vmem:[%s18201_s0 + $0x2e9] sm:$0xff] }
  0xda   :  { %8739 = vmatmul.msk.f32.gmra.mxu2 %vm260_vm0, %v160_v39  ;;  %8803 = vmatmul.msk.f32.gmra.mxu3 %vm260_vm0, %v88_v19  ;;  %v11590_v10 = vpop.f32.mrf.mxu1 }
  0xdb   :  { %18288 = vst [vmem:[#allocation26_spill] sm:$0xff] %v11590_v10  ;;  %v11609_v10 = vld [vmem:[%s18201_s0 + $0x139] sm:$0xff] }
  0xdc   :  { %18292 = vst [vmem:[#allocation30_spill] sm:$0xff] %v11609_v10 }
  0xdd   :  { %v593_v16 = vpop.f32.mrf.mxu2  ;;  %v994_v50 = vpop.f32.mrf.mxu3  ;;  %8771 = vmatmul.msk.f32.gmra.mxu1 %vm260_vm0, %v11595_v0 }
  0xde   :  { %v11602_v39 = vadd.f32 %v994_v50, %v593_v16  ;;  %v11604_v19 = vpop.f32.mrf.mxu0  ;;  %v11626_v16 = vld [vmem:[%s18201_s0 + $0x138] sm:$0xff] }
  0xdf   :  { %18291 = vst [vmem:[#allocation29_spill] sm:$0xff] %v11604_v19 }
  0xe0   :  { %18290 = vst [vmem:[#allocation28_spill] sm:$0xff] %v11602_v39 }
  0xe1   :  { %8708 = vmatmul.msk.f32.gmra.mxu0 %vm260_vm0, %v11609_v10  ;;  %18294 = vst [vmem:[#allocation32_spill] sm:$0xff] %v11626_v16 }
  0xe2   :  { %8740 = vmatmul.msk.f32.gmra.mxu2 %vm260_vm0, %v161_v3  ;;  %8804 = vmatmul.msk.f32.gmra.mxu3 %vm260_vm0, %v89_v55  ;;  %v11621_v50 = vpop.f32.mrf.mxu1  ;;  %v11637_v3 = vld [vmem:[%s18201_s0 + $0x141] sm:$0xff]  ;;  %v162_v55 = vld [vmem:[%s18201_s0 + $0x2f1] sm:$0xff] }
  0xe3   :  { %18293 = vst [vmem:[#allocation31_spill] sm:$0xff] %v11621_v50  ;;  %v90_v50 = vld [vmem:[%s18201_s0 + $0x2f0] sm:$0xff] }
  0xe4   :  { %18297 = vst [vmem:[#allocation35_spill] sm:$0xff] %v11637_v3 }
  0xe5   :  { %v596_v39 = vpop.f32.mrf.mxu2  ;;  %v997_v19 = vpop.f32.mrf.mxu3  ;;  %8772 = vmatmul.msk.f32.gmra.mxu1 %vm260_vm0, %v11626_v16 }
  0xe6   :  { %v11630_v0 = vadd.f32 %v997_v19, %v596_v39  ;;  %v11632_v43 = vpop.f32.mrf.mxu0  ;;  %v11654_v19 = vld [vmem:[%s18201_s0 + $0x140] sm:$0xff] }
  0xe7   :  { %18296 = vst [vmem:[#allocation34_spill] sm:$0xff] %v11632_v43 }
  0xe8   :  { %18295 = vst [vmem:[#allocation33_spill] sm:$0xff] %v11630_v0 }
  0xe9   :  { %8709 = vmatmul.msk.f32.gmra.mxu0 %vm260_vm0, %v11637_v3  ;;  %18299 = vst [vmem:[#allocation37_spill] sm:$0xff] %v11654_v19 }
  0xea   :  { %8741 = vmatmul.msk.f32.gmra.mxu2 %vm260_vm0, %v162_v55  ;;  %8805 = vmatmul.msk.f32.gmra.mxu3 %vm260_vm0, %v90_v50  ;;  %v11649_v39 = vpop.f32.mrf.mxu1  ;;  %v11665_v50 = vld [vmem:[%s18201_s0 + $0x151] sm:$0xff] }
  0xeb   :  { %18298 = vst [vmem:[#allocation36_spill] sm:$0xff] %v11649_v39  ;;  %v9033_v55 = vld [vmem:[%s18202_s1 + $0x178] sm:$0xff]  ;;  %v9032_v39 = vld [vmem:[%s18202_s1 + $0x170] sm:$0xff] }
  0xec   :  { %18302 = vst [vmem:[#allocation40_spill] sm:$0xff] %v11665_v50  ;;  %2154 = vmatpush.msrb.mxu1 %v9033_v55  ;;  %v9031_v55 = vld [vmem:[%s18202_s1 + $0x168] sm:$0xff] }
  0xed   :  { %v599_v0 = vpop.f32.mrf.mxu2  ;;  %v1000_v43 = vpop.f32.mrf.mxu3  ;;  %8773 = vmatmul.msk.f32.gmra.mxu1 %vm260_vm0, %v11654_v19  ;;  %v9105_v19 = vld [vmem:[%s18202_s1 + $0x1b8] sm:$0xff] }
  0xee   :  { %v11658_v16 = vadd.f32 %v1000_v43, %v599_v0  ;;  %v11660_v10 = vpop.f32.mrf.mxu0  ;;  %v163_v43 = vld [vmem:[%s18201_s0 + $0x301] sm:$0xff]  ;;  %2155 = vmatpush.msrb.mxu1 %v9032_v39  ;;  %2448 = vmatpush.msra.mxu2 %v9105_v19  ;;  %v9177_v39 = vld [vmem:[%s18202_s1 + $0x1f8] sm:$0xff] }
  0xef   :  { %18301 = vst [vmem:[#allocation39_spill] sm:$0xff] %v11660_v10  ;;  %v91_v0 = vld [vmem:[%s18201_s0 + $0x300] sm:$0xff]  ;;  %v11688_v10 = vld [vmem:[%s18201_s0 + $0x150] sm:$0xff]  ;;  %2742 = vmatpush.msra.mxu3 %v9177_v39 }
  0xf0   :  { %18300 = vst [vmem:[#allocation38_spill] sm:$0xff] %v11658_v16  ;;  %2156 = vmatpush.msrb.mxu1 %v9031_v55  ;;  %v11711_v19 = vld [vmem:[%s18201_s0 + $0x159] sm:$0xff]  ;;  %v164_v39 = vld [vmem:[%s18201_s0 + $0x309] sm:$0xff] }
  0xf1   :  { %8710 = vmatmul.msk.f32.gmra.mxu0 %vm260_vm0, %v11665_v50  ;;  %18304 = vst [vmem:[#allocation42_spill] sm:$0xff] %v11688_v10  ;;  %v9029_v55 = vld [vmem:[%s18202_s1 + $0x158] sm:$0xff] }
  0xf2   :  { %8742 = vmatmul.msk.f32.gmra.mxu2 %vm260_vm0, %v163_v43  ;;  %8806 = vmatmul.msk.f32.gmra.mxu3 %vm260_vm0, %v91_v0  ;;  %v11683_v16 = vpop.f32.mrf.mxu1  ;;  %v9030_v43 = vld [vmem:[%s18202_s1 + $0x160] sm:$0xff]  ;;  %18307 = vst [vmem:[#allocation45_spill] sm:$0xff] %v11711_v19 }
  0xf3   :  { %18303 = vst [vmem:[#allocation41_spill] sm:$0xff] %v11683_v16  ;;  %2157 = vmatpush.msrb.mxu1 %v9030_v43 }
  0xf5   :  { %v602_v0 = vpop.f32.mrf.mxu2  ;;  %v1003_v16 = vpop.f32.mrf.mxu3  ;;  %8774 = vmatmul.msk.f32.gmra.mxu1 %vm260_vm0, %v11688_v10 }
  0xf6   :  { %v11704_v50 = vadd.f32 %v1003_v16, %v602_v0  ;;  %v11706_v3 = vpop.f32.mrf.mxu0  ;;  %v92_v16 = vld [vmem:[%s18201_s0 + $0x308] sm:$0xff]  ;;  %2158 = vmatpush.msrb.mxu1 %v9029_v55  ;;  %v9028_v0 = vld [vmem:[%s18202_s1 + $0x150] sm:$0xff]  ;;  %v9249_v55 = vld [vmem:[%s18202_s1 + $0x238] sm:$0xff] }
  0xf7   :  { %18306 = vst [vmem:[#allocation44_spill] sm:$0xff] %v11706_v3  ;;  %v9027_v3 = vld [vmem:[%s18202_s1 + $0x148] sm:$0xff]  ;;  %3036 = vmatpush.msra.mxu0 %v9249_v55  ;;  %v165_v55 = vld [vmem:[%s18201_s0 + $0x319] sm:$0xff] }
  0xf8   :  { %18305 = vst [vmem:[#allocation43_spill] sm:$0xff] %v11704_v50  ;;  %v11734_v50 = vld [vmem:[%s18201_s0 + $0x158] sm:$0xff]  ;;  %2159 = vmatpush.msrb.mxu1 %v9028_v0  ;;  %v11754_v0 = vld [vmem:[%s18201_s0 + $0x169] sm:$0xff] }
  0xf9   :  { %8711 = vmatmul.msk.f32.gmra.mxu0 %vm260_vm0, %v11711_v19  ;;  %18309 = vst [vmem:[#allocation47_spill] sm:$0xff] %v11734_v50 }
  0xfa   :  { %8743 = vmatmul.msk.f32.gmra.mxu2 %vm260_vm0, %v164_v39  ;;  %8807 = vmatmul.msk.f32.gmra.mxu3 %vm260_vm0, %v92_v16  ;;  %v11729_v43 = vpop.f32.mrf.mxu1  ;;  %v9026_v16 = vld [vmem:[%s18202_s1 + $0x140] sm:$0xff]  ;;  %18312 = vst [vmem:[#allocation50_spill] sm:$0xff] %v11754_v0 }
  0xfb   :  { %18308 = vst [vmem:[#allocation46_spill] sm:$0xff] %v11729_v43  ;;  %2160 = vmatpush.msrb.mxu1 %v9027_v3  ;;  %v11771_v3 = vld [vmem:[%s18201_s0 + $0x168] sm:$0xff] }
  0xfc   :  { %18314 = vst [vmem:[#allocation52_spill] sm:$0xff] %v11771_v3 }
  0xfd   :  { %v605_v39 = vpop.f32.mrf.mxu2  ;;  %v1006_v19 = vpop.f32.mrf.mxu3  ;;  %8775 = vmatmul.msk.f32.gmra.mxu1 %vm260_vm0, %v11734_v50  ;;  %v93_v50 = vld [vmem:[%s18201_s0 + $0x318] sm:$0xff] }
  0xfe   :  { %v11747_v43 = vadd.f32 %v1006_v19, %v605_v39  ;;  %v11749_v10 = vpop.f32.mrf.mxu0  ;;  %2161 = vmatpush.msrb.mxu1 %v9026_v16 }
  0xff   :  { %18311 = vst [vmem:[#allocation49_spill] sm:$0xff] %v11749_v10 }
 0x100   :  { %18310 = vst [vmem:[#allocation48_spill] sm:$0xff] %v11747_v43 }
 0x101   :  { %8712 = vmatmul.msk.f32.gmra.mxu0 %vm260_vm0, %v11754_v0 }
 0x102   :  { %8744 = vmatmul.msk.f32.gmra.mxu2 %vm260_vm0, %v165_v55  ;;  %8808 = vmatmul.msk.f32.gmra.mxu3 %vm260_vm0, %v93_v50  ;;  %v11766_v19 = vpop.f32.mrf.mxu1  ;;  %v11782_v50 = vld [vmem:[%s18201_s0 + $0x171] sm:$0xff]  ;;  %v166_v55 = vld [vmem:[%s18201_s0 + $0x321] sm:$0xff] }
 0x103   :  { %18313 = vst [vmem:[#allocation51_spill] sm:$0xff] %v11766_v19  ;;  %v94_v19 = vld [vmem:[%s18201_s0 + $0x320] sm:$0xff] }
 0x105   :  { %v608_v39 = vpop.f32.mrf.mxu2  ;;  %v1009_v43 = vpop.f32.mrf.mxu3  ;;  %8776 = vmatmul.msk.f32.gmra.mxu1 %vm260_vm0, %v11771_v3 }
 0x106   :  { %v11775_v16 = vadd.f32 %v1009_v43, %v608_v39  ;;  %v11777_v10 = vpop.f32.mrf.mxu0  ;;  %v11799_v39 = vld [vmem:[%s18201_s0 + $0x170] sm:$0xff] }
 0x107   :  { %18316 = vst [vmem:[#allocation54_spill] sm:$0xff] %v11777_v10 }
 0x108   :  { %18315 = vst [vmem:[#allocation53_spill] sm:$0xff] %v11775_v16 }
 0x109   :  { %8713 = vmatmul.msk.f32.gmra.mxu0 %vm260_vm0, %v11782_v50 }
 0x10a   :  { %8745 = vmatmul.msk.f32.gmra.mxu2 %vm260_vm0, %v166_v55  ;;  %8809 = vmatmul.msk.f32.gmra.mxu3 %vm260_vm0, %v94_v19  ;;  %v11794_v43 = vpop.f32.mrf.mxu1  ;;  %v171_v19 = vld [vmem:[%s18201_s0 + $0x2] sm:$0xff] }
 0x10b   :  { %18317 = vst [vmem:[#allocation55_spill] sm:$0xff] %v11794_v43 }
 0x10d   :  { %v611_v16 = vpop.f32.mrf.mxu2  ;;  %v1012_v10 = vpop.f32.mrf.mxu3  ;;  %8777 = vmatmul.msk.f32.gmra.mxu1 %vm260_vm0, %v11799_v39 }
 0x10e   :  { %v11803_v3 = vadd.f32 %v1012_v10, %v611_v16  ;;  %v11805_v0 = vpop.f32.mrf.mxu0  ;;  %v173_v10 = vld [vmem:[%s18201_s0 + $0x1a] sm:$0xff] }
 0x10f   :  { %18319 = vst [vmem:[#allocation57_spill] sm:$0xff] %v11805_v0 }
 0x110   :  { %18318 = vst [vmem:[#allocation56_spill] sm:$0xff] %v11803_v3 }
 0x111   :  { %8962 = vmatmul.msk.f32.vlgmr.msrb.gmra.mxu0 %vm260_vm0, %v10965_v30  ;;  %v172_v30 = vld [vmem:[%s18201_s0 + $0xa] sm:$0xff] }
 0x112   :  { %8818 = vmatmul.msk.f32.vlgmr.msrb.gmra.mxu2 %vm260_vm0, %v171_v19  ;;  %8890 = vmatmul.msk.f32.vlgmr.msrb.gmra.mxu3 %vm260_vm0, %v10980_v33  ;;  %v11815_v55 = vpop.f32.mrf.mxu1 }
 0x115   :  { %v614_v16 = vpop.f32.mrf.mxu2  ;;  %v1015_v3 = vpop.f32.mrf.mxu3  ;;  %9034 = vmatmul.msk.f32.vlgmr.msrb.gmra.mxu1 %vm260_vm0, %v173_v10 }
 0x116   :  { %v11821_v0 = vadd.f32 %v1015_v3, %v614_v16  ;;  %v11823_v43 = vpop.f32.mrf.mxu0  ;;  %v174_v3 = vld [vmem:[%s18201_s0 + $0x22] sm:$0xff] }
 0x117   :  { %18321 = vst [vmem:[#allocation59_spill] sm:$0xff] %v11823_v43 }
 0x118   :  { %18320 = vst [vmem:[#allocation58_spill] sm:$0xff] %v11821_v0 }
 0x119   :  { %8963 = vmatmul.msk.f32.gmra.mxu0 %vm260_vm0, %v10987_v34 }
 0x11a   :  { %8819 = vmatmul.msk.f32.gmra.mxu2 %vm260_vm0, %v172_v30  ;;  %8891 = vmatmul.msk.f32.gmra.mxu3 %vm260_vm0, %v11002_v37  ;;  %v11833_v33 = vpop.f32.mrf.mxu1  ;;  %v175_v37 = vld [vmem:[%s18201_s0 + $0x32] sm:$0xff] }
 0x11b   :  { %18322 = vst [vmem:[#allocation60_spill] sm:$0xff] %v11833_v33 }
 0x11d   :  { %v617_v19 = vpop.f32.mrf.mxu2  ;;  %v1018_v16 = vpop.f32.mrf.mxu3  ;;  %9035 = vmatmul.msk.f32.gmra.mxu1 %vm260_vm0, %v174_v3 }
 0x11e   :  { %v11839_v0 = vadd.f32 %v1018_v16, %v617_v19  ;;  %v11841_v43 = vpop.f32.mrf.mxu0 }
 0x120   :  { %18323 = vst [vmem:[#allocation61_spill] sm:$0xff] %v11839_v0 }
 0x121   :  { %8964 = vmatmul.msk.f32.gmra.mxu0 %vm260_vm0, %v11009_v38 }
 0x122   :  { %8820 = vmatmul.msk.f32.gmra.mxu2 %vm260_vm0, %v173_v10  ;;  %8892 = vmatmul.msk.f32.gmra.mxu3 %vm260_vm0, %v11024_v41  ;;  %v11848_v34 = vpop.f32.mrf.mxu1  ;;  %v176_v41 = vld [vmem:[%s18201_s0 + $0x3a] sm:$0xff] }
 0x125   :  { %v620_v30 = vpop.f32.mrf.mxu2  ;;  %v1021_v33 = vpop.f32.mrf.mxu3  ;;  %9036 = vmatmul.msk.f32.gmra.mxu1 %vm260_vm0, %v175_v37 }
 0x126   :  { %v11854_v19 = vadd.f32 %v1021_v33, %v620_v30  ;;  %v11856_v16 = vpop.f32.mrf.mxu0 }
 0x128   :  { %18324 = vst [vmem:[#allocation62_spill] sm:$0xff] %v11854_v19 }
 0x129   :  { %8965 = vmatmul.msk.f32.gmra.mxu0 %vm260_vm0, %v11037_v44 }
 0x12a   :  { %8821 = vmatmul.msk.f32.gmra.mxu2 %vm260_vm0, %v174_v3  ;;  %8893 = vmatmul.msk.f32.gmra.mxu3 %vm260_vm0, %v11052_v47  ;;  %v11863_v38 = vpop.f32.mrf.mxu1  ;;  %v177_v47 = vld [vmem:[%s18201_s0 + $0x4a] sm:$0xff] }
 0x12b   :  { %v9176_v3 = vld [vmem:[%s18202_s1 + $0x1f0] sm:$0xff] }
 0x12c   :  { %2743 = vmatpush.msra.mxu3 %v9176_v3  ;;  %v9248_v3 = vld [vmem:[%s18202_s1 + $0x230] sm:$0xff] }
 0x12d   :  { %v623_v10 = vpop.f32.mrf.mxu2  ;;  %v1024_v0 = vpop.f32.mrf.mxu3  ;;  %9037 = vmatmul.msk.f32.gmra.mxu1 %vm260_vm0, %v176_v41  ;;  %3037 = vmatpush.msra.mxu0 %v9248_v3  ;;  %v179_v3 = vld [vmem:[%s18201_s0 + $0x62] sm:$0xff] }
 0x12e   :  { %v11869_v33 = vadd.f32 %v1024_v0, %v623_v10  ;;  %v11871_v30 = vpop.f32.mrf.mxu0  ;;  %v9104_v0 = vld [vmem:[%s18202_s1 + $0x1b0] sm:$0xff] }
 0x12f   :  { %2449 = vmatpush.msra.mxu2 %v9104_v0  ;;  %v178_v0 = vld [vmem:[%s18201_s0 + $0x52] sm:$0xff] }
 0x130   :  { %18325 = vst [vmem:[#allocation63_spill] sm:$0xff] %v11869_v33 }
 0x131   :  { %8966 = vmatmul.msk.f32.gmra.mxu0 %vm260_vm0, %v11062_v49 }
 0x132   :  { %8822 = vmatmul.msk.f32.gmra.mxu2 %vm260_vm0, %v175_v37  ;;  %8894 = vmatmul.msk.f32.gmra.mxu3 %vm260_vm0, %v11077_v52  ;;  %v11878_v44 = vpop.f32.mrf.mxu1 }
 0x135   :  { %v626_v49 = vpop.f32.mrf.mxu2  ;;  %v1027_v37 = vpop.f32.mrf.mxu3  ;;  %9038 = vmatmul.msk.f32.gmra.mxu1 %vm260_vm0, %v177_v47 }
 0x136   :  { %v11890_v52 = vadd.f32 %v1027_v37, %v626_v49  ;;  %v11892_v10 = vpop.f32.mrf.mxu0 }
 0x138   :  { %18326 = vst [vmem:[#allocation64_spill] sm:$0xff] %v11890_v52 }
 0x139   :  { %8967 = vmatmul.msk.f32.gmra.mxu0 %vm260_vm0, %v11084_v53 }
 0x13a   :  { %8823 = vmatmul.msk.f32.gmra.mxu2 %vm260_vm0, %v176_v41  ;;  %8895 = vmatmul.msk.f32.gmra.mxu3 %vm260_vm0, %v11099_v56  ;;  %v11899_v33 = vpop.f32.mrf.mxu1 }
 0x13d   :  { %v629_v49 = vpop.f32.mrf.mxu2  ;;  %v1030_v37 = vpop.f32.mrf.mxu3  ;;  %9039 = vmatmul.msk.f32.gmra.mxu1 %vm260_vm0, %v178_v0 }
 0x13e   :  { %v11908_v53 = vadd.f32 %v1030_v37, %v629_v49  ;;  %v11910_v41 = vpop.f32.mrf.mxu0 }
 0x140   :  { %18327 = vst [vmem:[#allocation65_spill] sm:$0xff] %v11908_v53 }
 0x141   :  { %8968 = vmatmul.msk.f32.gmra.mxu0 %vm260_vm0, %v11106_v57 }
 0x142   :  { %8824 = vmatmul.msk.f32.gmra.mxu2 %vm260_vm0, %v177_v47  ;;  %8896 = vmatmul.msk.f32.gmra.mxu3 %vm260_vm0, %v11121_v60  ;;  %v11917_v56 = vpop.f32.mrf.mxu1  ;;  %v180_v60 = vld [vmem:[%s18201_s0 + $0x6a] sm:$0xff] }
 0x145   :  { %v632_v52 = vpop.f32.mrf.mxu2  ;;  %v1033_v19 = vpop.f32.mrf.mxu3  ;;  %9040 = vmatmul.msk.f32.gmra.mxu1 %vm260_vm0, %v179_v3 }
 0x146   :  { %v11923_v49 = vadd.f32 %v1033_v19, %v632_v52  ;;  %v11925_v37 = vpop.f32.mrf.mxu0 }
 0x148   :  { %18328 = vst [vmem:[#allocation66_spill] sm:$0xff] %v11923_v49 }
 0x149   :  { %8969 = vmatmul.msk.f32.gmra.mxu0 %vm260_vm0, %v11134_v63 }
 0x14a   :  { %8825 = vmatmul.msk.f32.gmra.mxu2 %vm260_vm0, %v178_v0  ;;  %8897 = vmatmul.msk.f32.gmra.mxu3 %vm260_vm0, %v11149_v2  ;;  %v11932_v57 = vpop.f32.mrf.mxu1  ;;  %v181_v2 = vld [vmem:[%s18201_s0 + $0x7a] sm:$0xff] }
 0x14d   :  { %v635_v47 = vpop.f32.mrf.mxu2  ;;  %v1036_v53 = vpop.f32.mrf.mxu3  ;;  %9041 = vmatmul.msk.f32.gmra.mxu1 %vm260_vm0, %v180_v60 }
 0x14e   :  { %v11938_v19 = vadd.f32 %v1036_v53, %v635_v47  ;;  %v11940_v52 = vpop.f32.mrf.mxu0 }
 0x150   :  { %18329 = vst [vmem:[#allocation67_spill] sm:$0xff] %v11938_v19 }
 0x151   :  { %8970 = vmatmul.msk.f32.gmra.mxu0 %vm260_vm0, %v11159_v4 }
 0x152   :  { %8826 = vmatmul.msk.f32.gmra.mxu2 %vm260_vm0, %v179_v3  ;;  %8898 = vmatmul.msk.f32.gmra.mxu3 %vm260_vm0, %v11174_v7  ;;  %v11947_v63 = vpop.f32.mrf.mxu1  ;;  %v182_v7 = vld [vmem:[%s18201_s0 + $0x82] sm:$0xff] }
 0x155   :  { %v638_v0 = vpop.f32.mrf.mxu2  ;;  %v1039_v49 = vpop.f32.mrf.mxu3  ;;  %9042 = vmatmul.msk.f32.gmra.mxu1 %vm260_vm0, %v181_v2 }
 0x156   :  { %v11953_v53 = vadd.f32 %v1039_v49, %v638_v0  ;;  %v11955_v47 = vpop.f32.mrf.mxu0 }
 0x158   :  { %18330 = vst [vmem:[#allocation68_spill] sm:$0xff] %v11953_v53 }
 0x159   :  { %8971 = vmatmul.msk.f32.gmra.mxu0 %vm260_vm0, %v11181_v8 }
 0x15a   :  { %8827 = vmatmul.msk.f32.gmra.mxu2 %vm260_vm0, %v180_v60  ;;  %8899 = vmatmul.msk.f32.gmra.mxu3 %vm260_vm0, %v11196_v11  ;;  %v11962_v4 = vpop.f32.mrf.mxu1  ;;  %v183_v11 = vld [vmem:[%s18201_s0 + $0x92] sm:$0xff] }
 0x15d   :  { %v641_v3 = vpop.f32.mrf.mxu2  ;;  %v1042_v19 = vpop.f32.mrf.mxu3  ;;  %9043 = vmatmul.msk.f32.gmra.mxu1 %vm260_vm0, %v182_v7 }
 0x15e   :  { %v11968_v49 = vadd.f32 %v1042_v19, %v641_v3  ;;  %v11970_v0 = vpop.f32.mrf.mxu0 }
 0x160   :  { %18331 = vst [vmem:[#allocation69_spill] sm:$0xff] %v11968_v49 }
 0x161   :  { %8972 = vmatmul.msk.f32.gmra.mxu0 %vm260_vm0, %v11203_v12 }
 0x162   :  { %8828 = vmatmul.msk.f32.gmra.mxu2 %vm260_vm0, %v181_v2  ;;  %8900 = vmatmul.msk.f32.gmra.mxu3 %vm260_vm0, %v11218_v15  ;;  %v11977_v8 = vpop.f32.mrf.mxu1  ;;  %v184_v15 = vld [vmem:[%s18201_s0 + $0x9a] sm:$0xff] }
 0x165   :  { %v644_v60 = vpop.f32.mrf.mxu2  ;;  %v1045_v53 = vpop.f32.mrf.mxu3  ;;  %9044 = vmatmul.msk.f32.gmra.mxu1 %vm260_vm0, %v183_v11 }
 0x166   :  { %v11983_v19 = vadd.f32 %v1045_v53, %v644_v60  ;;  %v11985_v3 = vpop.f32.mrf.mxu0 }
 0x168   :  { %18332 = vst [vmem:[#allocation70_spill] sm:$0xff] %v11983_v19 }
 0x169   :  { %8973 = vmatmul.msk.f32.gmra.mxu0 %vm260_vm0, %v11231_v18 }
 0x16a   :  { %8829 = vmatmul.msk.f32.gmra.mxu2 %vm260_vm0, %v182_v7  ;;  %8901 = vmatmul.msk.f32.gmra.mxu3 %vm260_vm0, %v11246_v21  ;;  %v11992_v12 = vpop.f32.mrf.mxu1  ;;  %v185_v21 = vld [vmem:[%s18201_s0 + $0xaa] sm:$0xff] }
 0x16b   :  { %v9103_v7 = vld [vmem:[%s18202_s1 + $0x1a8] sm:$0xff] }
 0x16c   :  { %2450 = vmatpush.msra.mxu2 %v9103_v7  ;;  %v186_v7 = vld [vmem:[%s18201_s0 + $0xb2] sm:$0xff] }
 0x16d   :  { %v647_v2 = vpop.f32.mrf.mxu2  ;;  %v1048_v49 = vpop.f32.mrf.mxu3  ;;  %9045 = vmatmul.msk.f32.gmra.mxu1 %vm260_vm0, %v184_v15 }
 0x16e   :  { %v11998_v53 = vadd.f32 %v1048_v49, %v647_v2  ;;  %v12000_v60 = vpop.f32.mrf.mxu0  ;;  %v9175_v49 = vld [vmem:[%s18202_s1 + $0x1e8] sm:$0xff] }
 0x16f   :  { %2744 = vmatpush.msra.mxu3 %v9175_v49  ;;  %v9247_v49 = vld [vmem:[%s18202_s1 + $0x228] sm:$0xff] }
 0x170   :  { %18333 = vst [vmem:[#allocation71_spill] sm:$0xff] %v11998_v53  ;;  %3038 = vmatpush.msra.mxu0 %v9247_v49 }
 0x171   :  { %8974 = vmatmul.msk.f32.gmra.mxu0 %vm260_vm0, %v11256_v23 }
 0x172   :  { %8830 = vmatmul.msk.f32.gmra.mxu2 %vm260_vm0, %v183_v11  ;;  %8902 = vmatmul.msk.f32.gmra.mxu3 %vm260_vm0, %v11271_v26  ;;  %v12007_v18 = vpop.f32.mrf.mxu1 }
 0x175   :  { %v650_v23 = vpop.f32.mrf.mxu2  ;;  %v1051_v11 = vpop.f32.mrf.mxu3  ;;  %9046 = vmatmul.msk.f32.gmra.mxu1 %vm260_vm0, %v185_v21 }
 0x176   :  { %v12019_v26 = vadd.f32 %v1051_v11, %v650_v23  ;;  %v12021_v2 = vpop.f32.mrf.mxu0 }
 0x178   :  { %18334 = vst [vmem:[#allocation72_spill] sm:$0xff] %v12019_v26  ;;  %v187_v26 = vld [vmem:[%s18201_s0 + $0xc2] sm:$0xff] }
 0x179   :  { %8975 = vmatmul.msk.f32.gmra.mxu0 %vm260_vm0, %v11278_v27 }
 0x17a   :  { %8831 = vmatmul.msk.f32.gmra.mxu2 %vm260_vm0, %v184_v15  ;;  %8903 = vmatmul.msk.f32.gmra.mxu3 %vm260_vm0, %v11293_v31  ;;  %v12028_v53 = vpop.f32.mrf.mxu1 }
 0x17d   :  { %v653_v23 = vpop.f32.mrf.mxu2  ;;  %v1054_v11 = vpop.f32.mrf.mxu3  ;;  %9047 = vmatmul.msk.f32.gmra.mxu1 %vm260_vm0, %v186_v7 }
 0x17e   :  { %v12037_v27 = vadd.f32 %v1054_v11, %v653_v23  ;;  %v12039_v15 = vpop.f32.mrf.mxu0 }
 0x180   :  { %18335 = vst [vmem:[#allocation73_spill] sm:$0xff] %v12037_v27 }
 0x181   :  { %8976 = vmatmul.msk.f32.gmra.mxu0 %vm260_vm0, %v11302_v35 }
 0x182   :  { %8832 = vmatmul.msk.f32.gmra.mxu2 %vm260_vm0, %v185_v21  ;;  %8904 = vmatmul.msk.f32.gmra.mxu3 %vm260_vm0, %v11319_v42  ;;  %v12046_v31 = vpop.f32.mrf.mxu1  ;;  %v188_v42 = vld [vmem:[%s18201_s0 + $0xca] sm:$0xff] }
 0x185   :  { %v656_v19 = vpop.f32.mrf.mxu2  ;;  %v1057_v49 = vpop.f32.mrf.mxu3  ;;  %9048 = vmatmul.msk.f32.gmra.mxu1 %vm260_vm0, %v187_v26 }
 0x186   :  { %v12052_v23 = vadd.f32 %v1057_v49, %v656_v19  ;;  %v12054_v11 = vpop.f32.mrf.mxu0 }
 0x188   :  { %18336 = vst [vmem:[#allocation74_spill] sm:$0xff] %v12052_v23 }
 0x189   :  { %8977 = vmatmul.msk.f32.gmra.mxu0 %vm260_vm0, %v11336_v54 }
 0x18a   :  { %8833 = vmatmul.msk.f32.gmra.mxu2 %vm260_vm0, %v186_v7  ;;  %8905 = vmatmul.msk.f32.gmra.mxu3 %vm260_vm0, %v11353_v61  ;;  %v12061_v35 = vpop.f32.mrf.mxu1  ;;  %v189_v61 = vld [vmem:[%s18201_s0 + $0xda] sm:$0xff]  ;;  %v872_v7 = vadd.f32 %v11314_v40, %v11297_v32  ;;  %v190_v32 = vld [vmem:[%s18201_s0 + $0xe2] sm:$0xff]  ;;  %v875_v40 = vadd.f32 %v11348_v59, %v11331_v51  ;;  %v191_v51 = vld [vmem:[%s18201_s0 + $0xf2] sm:$0xff]  ;;  %v878_v59 = vadd.f32 %v11379_v13, %v11362_v5 }
 0x18b   :  { %v192_v5 = vld [vmem:[%s18201_s0 + $0xfa] sm:$0xff]  ;;  %v881_v13 = vadd.f32 %v11407_v28, %v11390_v20  ;;  %v193_v20 = vld [vmem:[%s18201_s0 + $0x10a] sm:$0xff] }
 0x18c   :  { %v9102_v28 = vld [vmem:[%s18202_s1 + $0x1a0] sm:$0xff] }
 0x18d   :  { %v659_v21 = vpop.f32.mrf.mxu2  ;;  %v1060_v27 = vpop.f32.mrf.mxu3  ;;  %9049 = vmatmul.msk.f32.gmra.mxu1 %vm260_vm0, %v188_v42  ;;  %2451 = vmatpush.msra.mxu2 %v9102_v28 }
 0x18e   :  { %v12067_v19 = vadd.f32 %v1060_v27, %v659_v21  ;;  %v1869_v49 = vpop.f32.mrf.mxu0 }
 0x190   :  { %18337 = vst [vmem:[#allocation75_spill] sm:$0xff] %v12067_v19 }
 0x191   :  { %8978 = vmatmul.msk.f32.gmra.mxu0 %vm260_vm0, %v11367_v6 }
 0x192   :  { %8834 = vmatmul.msk.f32.gmra.mxu2 %vm260_vm0, %v187_v26  ;;  %8906 = vmatmul.msk.f32.gmra.mxu3 %vm260_vm0, %v11384_v14  ;;  %v2163_v54 = vpop.f32.mrf.mxu1 }
 0x195   :  { %v1281_v23 = vpop.f32.mrf.mxu2  ;;  %v1575_v27 = vpop.f32.mrf.mxu3  ;;  %9050 = vmatmul.msk.f32.gmra.mxu1 %vm260_vm0, %v189_v61 }
 0x196   :  { %v1473_v21 = vadd.f32 %v1281_v23, %v872_v7  ;;  %v1872_v19 = vpop.f32.mrf.mxu0 }
 0x198   :  { %v1767_v6 = vadd.f32 %v1575_v27, %v1473_v21 }
 0x199   :  { %8979 = vmatmul.msk.f32.gmra.mxu0 %vm260_vm0, %v11395_v22 }
 0x19a   :  { %8835 = vmatmul.msk.f32.gmra.mxu2 %vm260_vm0, %v188_v42  ;;  %8907 = vmatmul.msk.f32.gmra.mxu3 %vm260_vm0, %v11412_v29  ;;  %v2061_v14 = vadd.f32 %v1869_v49, %v1767_v6  ;;  %v2166_v26 = vpop.f32.mrf.mxu1 }
 0x19c   :  { %v12090_v23 = vadd.f32 %v2163_v54, %v2061_v14 }
 0x19d   :  { %v1284_v7 = vpop.f32.mrf.mxu2  ;;  %v1578_v27 = vpop.f32.mrf.mxu3  ;;  %9051 = vmatmul.msk.f32.gmra.mxu1 %vm260_vm0, %v190_v32 }
 0x19e   :  { %v1474_v22 = vadd.f32 %v1284_v7, %v875_v40  ;;  %v1875_v42 = vpop.f32.mrf.mxu0 }
 0x1a0   :  { %v1768_v21 = vadd.f32 %v1578_v27, %v1474_v22 }
 0x1a1   :  { %8980 = vmatmul.msk.f32.gmra.mxu0 %vm260_vm0, %v11423_v46 }
 0x1a2   :  { %8836 = vmatmul.msk.f32.gmra.mxu2 %vm260_vm0, %v189_v61  ;;  %8908 = vmatmul.msk.f32.gmra.mxu3 %vm260_vm0, %v11440_v62  ;;  %v2062_v29 = vadd.f32 %v1872_v19, %v1768_v21  ;;  %v2169_v49 = vpop.f32.mrf.mxu1  ;;  %v884_v21 = vadd.f32 %v11435_v58, %v11418_v45 }
 0x1a4   :  { %v12103_v54 = vadd.f32 %v2166_v26, %v2062_v29 }
 0x1a5   :  { %v1287_v6 = vpop.f32.mrf.mxu2  ;;  %v1581_v14 = vpop.f32.mrf.mxu3  ;;  %9052 = vmatmul.msk.f32.gmra.mxu1 %vm260_vm0, %v191_v51 }
 0x1a6   :  { %v1475_v46 = vadd.f32 %v1287_v6, %v878_v59  ;;  %v1878_v61 = vpop.f32.mrf.mxu0 }
 0x1a8   :  { %v1769_v40 = vadd.f32 %v1581_v14, %v1475_v46  ;;  %v194_v14 = vld [vmem:[%s18201_s0 + $0x112] sm:$0xff]  ;;  %v18338_v46 = vld [vmem:[#allocation11_spill] sm:$0xff] }
 0x1a9   :  { %8981 = vmatmul.msk.f32.gmra.mxu0 %vm260_vm0, %v11457_v24 }
 0x1aa   :  { %8837 = vmatmul.msk.f32.gmra.mxu2 %vm260_vm0, %v190_v32  ;;  %8909 = vmatmul.msk.f32.gmra.mxu3 %vm260_vm0, %v11474_v48  ;;  %v2063_v62 = vadd.f32 %v1875_v42, %v1769_v40  ;;  %v2172_v19 = vpop.f32.mrf.mxu1 }
 0x1ac   :  { %v12116_v26 = vadd.f32 %v2169_v49, %v2063_v62 }
 0x1ad   :  { %v1290_v7 = vpop.f32.mrf.mxu2  ;;  %v1584_v27 = vpop.f32.mrf.mxu3  ;;  %9053 = vmatmul.msk.f32.gmra.mxu1 %vm260_vm0, %v192_v5 }
 0x1ae   :  { %v1476_v24 = vadd.f32 %v1290_v7, %v881_v13  ;;  %v1881_v32 = vpop.f32.mrf.mxu0  ;;  %v18339_v7 = vld [vmem:[#allocation20_spill] sm:$0xff] }
 0x1b0   :  { %v1770_v22 = vadd.f32 %v1584_v27, %v1476_v24 }
 0x1b1   :  { %8982 = vmatmul.msk.f32.gmra.mxu0 %vm260_vm0, %v11488_v25 }
 0x1b2   :  { %8838 = vmatmul.msk.f32.gmra.mxu2 %vm260_vm0, %v191_v51  ;;  %8910 = vmatmul.msk.f32.gmra.mxu3 %vm260_vm0, %v11505_v1  ;;  %v2064_v48 = vadd.f32 %v1878_v61, %v1770_v22  ;;  %v2175_v42 = vpop.f32.mrf.mxu1  ;;  %v9174_v1 = vld [vmem:[%s18202_s1 + $0x1e0] sm:$0xff]  ;;  %v887_v61 = vadd.f32 %v18338_v46, %v11452_v17  ;;  %v18341_v22 = vld [vmem:[#allocation13_spill] sm:$0xff]  ;;  %v18345_v46 = vld [vmem:[#allocation16_spill] sm:$0xff] }
 0x1b3   :  { %2745 = vmatpush.msra.mxu3 %v9174_v1  ;;  %v18340_v17 = vld [vmem:[#allocation22_spill] sm:$0xff] }
 0x1b4   :  { %v12132_v25 = vadd.f32 %v2172_v19, %v2064_v48  ;;  %v18342_v48 = vld [vmem:[#allocation14_spill] sm:$0xff] }
 0x1b5   :  { %v1293_v29 = vpop.f32.mrf.mxu2  ;;  %v1587_v49 = vpop.f32.mrf.mxu3  ;;  %9054 = vmatmul.msk.f32.gmra.mxu1 %vm260_vm0, %v193_v20 }
 0x1b6   :  { %v1477_v51 = vadd.f32 %v1293_v29, %v884_v21  ;;  %v1884_v59 = vpop.f32.mrf.mxu0 }
 0x1b8   :  { %v1771_v6 = vadd.f32 %v1587_v49, %v1477_v51  ;;  %v18343_v51 = vld [vmem:[#allocation25_spill] sm:$0xff] }
 0x1b9   :  { %8983 = vmatmul.msk.f32.gmra.mxu0 %vm260_vm0, %v11516_v36  ;;  %v9246_v36 = vld [vmem:[%s18202_s1 + $0x220] sm:$0xff] }
 0x1ba   :  { %8839 = vmatmul.msk.f32.gmra.mxu2 %vm260_vm0, %v192_v5  ;;  %8911 = vmatmul.msk.f32.gmra.mxu3 %vm260_vm0, %v11533_v9  ;;  %v2065_v45 = vadd.f32 %v1881_v32, %v1771_v6  ;;  %v2178_v58 = vpop.f32.mrf.mxu1  ;;  %v195_v32 = vld [vmem:[%s18201_s0 + $0x122] sm:$0xff] }
 0x1bb   :  { %3039 = vmatpush.msra.mxu0 %v9246_v36 }
 0x1bc   :  { %v12148_v40 = vadd.f32 %v2175_v42, %v2065_v45  ;;  %v890_v42 = vadd.f32 %v18342_v48, %v18341_v22  ;;  %v18349_v48 = vld [vmem:[#allocation19_spill] sm:$0xff] }
 0x1bd   :  { %v1296_v62 = vpop.f32.mrf.mxu2  ;;  %v1590_v19 = vpop.f32.mrf.mxu3  ;;  %9055 = vmatmul.msk.f32.gmra.mxu1 %vm260_vm0, %v194_v14 }
 0x1be   :  { %v1478_v9 = vadd.f32 %v1296_v62, %v887_v61  ;;  %v1887_v5 = vpop.f32.mrf.mxu0  ;;  %v18346_v61 = vld [vmem:[#allocation17_spill] sm:$0xff] }
 0x1bf   :  { %v893_v36 = vadd.f32 %v18346_v61, %v18345_v46 }
 0x1c0   :  { %v1772_v13 = vadd.f32 %v1590_v19, %v1478_v9 }
 0x1c1   :  { %8984 = vmatmul.msk.f32.gmra.mxu0 %vm260_vm0, %v18339_v7 }
 0x1c2   :  { %8840 = vmatmul.msk.f32.gmra.mxu2 %vm260_vm0, %v193_v20  ;;  %8912 = vmatmul.msk.f32.gmra.mxu3 %vm260_vm0, %v18340_v17  ;;  %v2066_v27 = vadd.f32 %v1884_v59, %v1772_v13  ;;  %v2181_v24 = vpop.f32.mrf.mxu1  ;;  %v18344_v59 = vld [vmem:[#allocation27_spill] sm:$0xff]  ;;  %v18347_v17 = vld [vmem:[#allocation30_spill] sm:$0xff] }
 0x1c4   :  { %v12164_v28 = vadd.f32 %v2178_v58, %v2066_v27  ;;  %v196_v58 = vld [vmem:[%s18201_s0 + $0x12a] sm:$0xff] }
 0x1c5   :  { %v1299_v21 = vpop.f32.mrf.mxu2  ;;  %v1593_v1 = vpop.f32.mrf.mxu3  ;;  %9056 = vmatmul.msk.f32.gmra.mxu1 %vm260_vm0, %v195_v32 }
 0x1c6   :  { %v1479_v29 = vadd.f32 %v1299_v21, %v890_v42  ;;  %v1890_v20 = vpop.f32.mrf.mxu0  ;;  %v18350_v42 = vld [vmem:[#allocation21_spill] sm:$0xff] }
 0x1c7   :  { %v896_v21 = vadd.f32 %v18350_v42, %v18349_v48  ;;  %v18355_v48 = vld [vmem:[#allocation40_spill] sm:$0xff] }
 0x1c8   :  { %v1773_v49 = vadd.f32 %v1593_v1, %v1479_v29 }
 0x1c9   :  { %8985 = vmatmul.msk.f32.gmra.mxu0 %vm260_vm0, %v18343_v51 }
 0x1ca   :  { %8841 = vmatmul.msk.f32.gmra.mxu2 %vm260_vm0, %v194_v14  ;;  %8913 = vmatmul.msk.f32.gmra.mxu3 %vm260_vm0, %v18344_v59  ;;  %v2067_v6 = vadd.f32 %v1887_v5, %v1773_v49  ;;  %v2184_v45 = vpop.f32.mrf.mxu1  ;;  %v18348_v5 = vld [vmem:[#allocation32_spill] sm:$0xff] }
 0x1cc   :  { %v12177_v62 = vadd.f32 %v2181_v24, %v2067_v6  ;;  %v197_v24 = vld [vmem:[%s18201_s0 + $0x13a] sm:$0xff]  ;;  %v18351_v6 = vld [vmem:[#allocation35_spill] sm:$0xff] }
 0x1cd   :  { %v1302_v19 = vpop.f32.mrf.mxu2  ;;  %v1596_v9 = vpop.f32.mrf.mxu3  ;;  %9057 = vmatmul.msk.f32.gmra.mxu1 %vm260_vm0, %v196_v58 }
 0x1ce   :  { %v1480_v13 = vadd.f32 %v1302_v19, %v893_v36  ;;  %v1893_v14 = vpop.f32.mrf.mxu0  ;;  %v18353_v36 = vld [vmem:[#allocation24_spill] sm:$0xff]  ;;  %v18354_v19 = vld [vmem:[#allocation26_spill] sm:$0xff] }
 0x1d0   :  { %v1774_v7 = vadd.f32 %v1596_v9, %v1480_v13  ;;  %v899_v9 = vadd.f32 %v18354_v19, %v18353_v36  ;;  %v18359_v19 = vld [vmem:[#allocation45_spill] sm:$0xff] }
 0x1d1   :  { %8986 = vmatmul.msk.f32.gmra.mxu0 %vm260_vm0, %v18347_v17 }
 0x1d2   :  { %8842 = vmatmul.msk.f32.gmra.mxu2 %vm260_vm0, %v195_v32  ;;  %8914 = vmatmul.msk.f32.gmra.mxu3 %vm260_vm0, %v18348_v5  ;;  %v2068_v27 = vadd.f32 %v1890_v20, %v1774_v7  ;;  %v2187_v22 = vpop.f32.mrf.mxu1  ;;  %v18352_v20 = vld [vmem:[#allocation37_spill] sm:$0xff] }
 0x1d4   :  { %v12190_v1 = vadd.f32 %v2184_v45, %v2068_v27  ;;  %v198_v45 = vld [vmem:[%s18201_s0 + $0x142] sm:$0xff] }
 0x1d5   :  { %v1305_v29 = vpop.f32.mrf.mxu2  ;;  %v1599_v49 = vpop.f32.mrf.mxu3  ;;  %9058 = vmatmul.msk.f32.gmra.mxu1 %vm260_vm0, %v197_v24 }
 0x1d6   :  { %v1481_v51 = vadd.f32 %v1305_v29, %v896_v21  ;;  %v1896_v32 = vpop.f32.mrf.mxu0  ;;  %v18357_v29 = vld [vmem:[#allocation29_spill] sm:$0xff] }
 0x1d8   :  { %v1775_v59 = vadd.f32 %v1599_v49, %v1481_v51  ;;  %v18358_v49 = vld [vmem:[#allocation31_spill] sm:$0xff] }
 0x1d9   :  { %8987 = vmatmul.msk.f32.gmra.mxu0 %vm260_vm0, %v18351_v6  ;;  %v902_v51 = vadd.f32 %v18358_v49, %v18357_v29 }
 0x1da   :  { %8843 = vmatmul.msk.f32.gmra.mxu2 %vm260_vm0, %v196_v58  ;;  %8915 = vmatmul.msk.f32.gmra.mxu3 %vm260_vm0, %v18352_v20  ;;  %v2069_v46 = vadd.f32 %v1893_v14, %v1775_v59  ;;  %v2190_v61 = vpop.f32.mrf.mxu1  ;;  %v18356_v14 = vld [vmem:[#allocation42_spill] sm:$0xff] }
 0x1dc   :  { %v12203_v13 = vadd.f32 %v2187_v22, %v2069_v46  ;;  %v199_v22 = vld [vmem:[%s18201_s0 + $0x152] sm:$0xff] }
 0x1dd   :  { %v1308_v7 = vpop.f32.mrf.mxu2  ;;  %v1602_v17 = vpop.f32.mrf.mxu3  ;;  %9059 = vmatmul.msk.f32.gmra.mxu1 %vm260_vm0, %v198_v45 }
 0x1de   :  { %v1482_v5 = vadd.f32 %v1308_v7, %v899_v9  ;;  %v1899_v58 = vpop.f32.mrf.mxu0 }
 0x1e0   :  { %v1776_v27 = vadd.f32 %v1602_v17, %v1482_v5  ;;  %v18361_v17 = vld [vmem:[#allocation34_spill] sm:$0xff]  ;;  %v18362_v5 = vld [vmem:[#allocation36_spill] sm:$0xff] }
 0x1e1   :  { %8988 = vmatmul.msk.f32.gmra.mxu0 %vm260_vm0, %v18355_v48 }
 0x1e2   :  { %8844 = vmatmul.msk.f32.gmra.mxu2 %vm260_vm0, %v197_v24  ;;  %8916 = vmatmul.msk.f32.gmra.mxu3 %vm260_vm0, %v18356_v14  ;;  %v2070_v42 = vadd.f32 %v1896_v32, %v1776_v27  ;;  %v2193_v21 = vpop.f32.mrf.mxu1  ;;  %v18360_v32 = vld [vmem:[#allocation47_spill] sm:$0xff]  ;;  %v905_v27 = vadd.f32 %v18362_v5, %v18361_v17 }
 0x1e4   :  { %v12216_v59 = vadd.f32 %v2190_v61, %v2070_v42  ;;  %v200_v61 = vld [vmem:[%s18201_s0 + $0x15a] sm:$0xff] }
 0x1e5   :  { %v1311_v6 = vpop.f32.mrf.mxu2  ;;  %v1605_v20 = vpop.f32.mrf.mxu3  ;;  %9060 = vmatmul.msk.f32.gmra.mxu1 %vm260_vm0, %v199_v22 }
 0x1e6   :  { %v1483_v46 = vadd.f32 %v1311_v6, %v902_v51  ;;  %v1902_v24 = vpop.f32.mrf.mxu0  ;;  %v18363_v51 = vld [vmem:[#allocation50_spill] sm:$0xff] }
 0x1e8   :  { %v1777_v36 = vadd.f32 %v1605_v20, %v1483_v46  ;;  %v9101_v46 = vld [vmem:[%s18202_s1 + $0x198] sm:$0xff] }
 0x1e9   :  { %8989 = vmatmul.msk.f32.gmra.mxu0 %vm260_vm0, %v18359_v19  ;;  %2452 = vmatpush.msra.mxu2 %v9101_v46  ;;  %v18366_v19 = vld [vmem:[#allocation41_spill] sm:$0xff] }
 0x1ea   :  { %8845 = vmatmul.msk.f32.gmra.mxu2 %vm260_vm0, %v198_v45  ;;  %8917 = vmatmul.msk.f32.gmra.mxu3 %vm260_vm0, %v18360_v32  ;;  %v2071_v9 = vadd.f32 %v1899_v58, %v1777_v36  ;;  %v2196_v7 = vpop.f32.mrf.mxu1  ;;  %v18364_v58 = vld [vmem:[#allocation52_spill] sm:$0xff]  ;;  %v18365_v36 = vld [vmem:[#allocation39_spill] sm:$0xff] }
 0x1eb   :  { %v908_v32 = vadd.f32 %v18366_v19, %v18365_v36  ;;  %v131_v36 = vld [vmem:[%s18201_s0 + $0x181] sm:$0xff] }
 0x1ec   :  { %v12229_v48 = vadd.f32 %v2193_v21, %v2071_v9  ;;  %v201_v21 = vld [vmem:[%s18201_s0 + $0x16a] sm:$0xff] }
 0x1ed   :  { %v1314_v14 = vpop.f32.mrf.mxu2  ;;  %v1608_v42 = vpop.f32.mrf.mxu3  ;;  %9061 = vmatmul.msk.f32.gmra.mxu1 %vm260_vm0, %v200_v61 }
 0x1ee   :  { %v1484_v29 = vadd.f32 %v1314_v14, %v905_v27  ;;  %v1905_v45 = vpop.f32.mrf.mxu0 }
 0x1f0   :  { %v1778_v49 = vadd.f32 %v1608_v42, %v1484_v29  ;;  %v202_v29 = vld [vmem:[%s18201_s0 + $0x172] sm:$0xff] }
 0x1f1   :  { %8990 = vmatmul.msk.f32.gmra.mxu0 %vm260_vm0, %v18363_v51  ;;  %v18368_v51 = vld [vmem:[#allocation46_spill] sm:$0xff] }
 0x1f2   :  { %8846 = vmatmul.msk.f32.gmra.mxu2 %vm260_vm0, %v199_v22  ;;  %8918 = vmatmul.msk.f32.gmra.mxu3 %vm260_vm0, %v18364_v58  ;;  %v2072_v6 = vadd.f32 %v1902_v24, %v1778_v49  ;;  %v2199_v20 = vpop.f32.mrf.mxu1  ;;  %v9173_v22 = vld [vmem:[%s18202_s1 + $0x1d8] sm:$0xff]  ;;  %v18367_v49 = vld [vmem:[#allocation44_spill] sm:$0xff] }
 0x1f3   :  { %2746 = vmatpush.msra.mxu3 %v9173_v22  ;;  %v911_v58 = vadd.f32 %v18368_v51, %v18367_v49 }
 0x1f4   :  { %v12245_v9 = vadd.f32 %v2196_v7, %v2072_v6 }
 0x1f5   :  { %v1317_v24 = vpop.f32.mrf.mxu2  ;;  %v1611_v17 = vpop.f32.mrf.mxu3  ;;  %9062 = vmatmul.msk.f32.gmra.mxu1 %vm260_vm0, %v201_v21 }
 0x1f6   :  { %v1485_v5 = vadd.f32 %v1317_v24, %v908_v32  ;;  %v1908_v27 = vpop.f32.mrf.mxu0  ;;  %v203_v24 = vld [vmem:[%s18201_s0 + $0x182] sm:$0xff] }
 0x1f8   :  { %v1779_v14 = vadd.f32 %v1611_v17, %v1485_v5  ;;  %v18369_v17 = vld [vmem:[#allocation49_spill] sm:$0xff]  ;;  %v18370_v5 = vld [vmem:[#allocation51_spill] sm:$0xff] }
 0x1f9   :  { %8991 = vmatmul.msk.f32.gmra.mxu0 %vm260_vm0, %v11782_v50  ;;  %v9245_v50 = vld [vmem:[%s18202_s1 + $0x218] sm:$0xff] }
 0x1fa   :  { %8847 = vmatmul.msk.f32.gmra.mxu2 %vm260_vm0, %v200_v61  ;;  %8919 = vmatmul.msk.f32.gmra.mxu3 %vm260_vm0, %v11799_v39  ;;  %v2073_v7 = vadd.f32 %v1905_v45, %v1779_v14  ;;  %v2202_v42 = vpop.f32.mrf.mxu1  ;;  %v914_v14 = vadd.f32 %v18370_v5, %v18369_v17 }
 0x1fb   :  { %3040 = vmatpush.msra.mxu0 %v9245_v50 }
 0x1fc   :  { %v12261_v6 = vadd.f32 %v2199_v20, %v2073_v7  ;;  %v59_v20 = vld [vmem:[%s18201_s0 + $0x180] sm:$0xff] }
 0x1fd   :  { %v1320_v46 = vpop.f32.mrf.mxu2  ;;  %v1614_v61 = vpop.f32.mrf.mxu3  ;;  %9063 = vmatmul.msk.f32.gmra.mxu1 %vm260_vm0, %v202_v29 }
 0x1fe   :  { %v1486_v39 = vadd.f32 %v1320_v46, %v911_v58  ;;  %v1911_v45 = vpop.f32.mrf.mxu0 }
 0x200   :  { %v1780_v19 = vadd.f32 %v1614_v61, %v1486_v39 }
 0x201   :  { %8992 = vmatmul.msk.f32.gmra.mxu0 %vm260_vm0, %v131_v36  ;;  %v204_v36 = vld [vmem:[%s18201_s0 + $0x18a] sm:$0xff] }
 0x202   :  { %8848 = vmatmul.msk.f32.gmra.mxu2 %vm260_vm0, %v201_v21  ;;  %8920 = vmatmul.msk.f32.gmra.mxu3 %vm260_vm0, %v59_v20  ;;  %v2074_v32 = vadd.f32 %v1908_v27, %v1780_v19  ;;  %v2205_v22 = vpop.f32.mrf.mxu1  ;;  %v132_v21 = vld [vmem:[%s18201_s0 + $0x189] sm:$0xff]  ;;  %v18371_v20 = vld [vmem:[#allocation54_spill] sm:$0xff] }
 0x203   :  { %v60_v27 = vld [vmem:[%s18201_s0 + $0x188] sm:$0xff] }
 0x204   :  { %v12281_v7 = vadd.f32 %v2202_v42, %v2074_v32  ;;  %v9385_v42 = vld [vmem:[%s18205_s4 + $0x78] sm:$0xff]  ;;  %v18372_v19 = vld [vmem:[#allocation55_spill] sm:$0xff] }
 0x205   :  { %v1323_v49 = vpop.f32.mrf.mxu2  ;;  %v1617_v51 = vpop.f32.mrf.mxu3  ;;  %9064 = vmatmul.msk.f32.gmra.mxu1 %vm260_vm0, %v203_v24  ;;  %v917_v32 = vadd.f32 %v18372_v19, %v18371_v20 }
 0x206   :  { %v1487_v58 = vadd.f32 %v1323_v49, %v914_v14  ;;  %v1914_v50 = vpop.f32.mrf.mxu0  ;;  %5552 = vmatpush.msra.mxu1 %v9385_v42 }
 0x208   :  { %v1781_v46 = vadd.f32 %v1617_v51, %v1487_v58  ;;  %v10299_v51 = vld [vmem:[%s18201_s0 + $0x1c9] sm:$0xff] }
 0x209   :  { %8993 = vmatmul.msk.f32.gmra.mxu0 %vm260_vm0, %v132_v21 }
 0x20a   :  { %8849 = vmatmul.msk.f32.gmra.mxu2 %vm260_vm0, %v202_v29  ;;  %8921 = vmatmul.msk.f32.gmra.mxu3 %vm260_vm0, %v60_v27  ;;  %v2075_v61 = vadd.f32 %v1911_v45, %v1781_v46  ;;  %v2208_v39 = vpop.f32.mrf.mxu1  ;;  %v207_v29 = vld [vmem:[%s18201_s0 + $0x1b2] sm:$0xff]  ;;  %v209_v27 = vld [vmem:[%s18201_s0 + $0x1ca] sm:$0xff] }
 0x20b   :  { %v18373_v46 = vld [vmem:[#allocation57_spill] sm:$0xff] }
 0x20c   :  { %v12301_v24 = vadd.f32 %v2205_v22, %v2075_v61  ;;  %v10300_v22 = vld [vmem:[%s18201_s0 + $0x1c8] sm:$0xff]  ;;  %v920_v42 = vadd.f32 %v11815_v55, %v18373_v46  ;;  %v10302_v55 = vld [vmem:[%s18201_s0 + $0x1d0] sm:$0xff] }
 0x20d   :  { %v1326_v17 = vpop.f32.mrf.mxu2  ;;  %v1620_v5 = vpop.f32.mrf.mxu3  ;;  %9065 = vmatmul.msk.f32.gmra.mxu1 %vm260_vm0, %v204_v36 }
 0x20e   :  { %v1488_v14 = vadd.f32 %v1326_v17, %v917_v32  ;;  %v1917_v49 = vpop.f32.mrf.mxu0 }
 0x210   :  { %v1782_v45 = vadd.f32 %v1620_v5, %v1488_v14  ;;  %v10301_v5 = vld [vmem:[%s18201_s0 + $0x1d1] sm:$0xff] }
 0x211   :  { %8994 = vmatmul.msk.f32.gmra.mxu0 %vm260_vm0, %v10299_v51  ;;  %v18375_v51 = vld [vmem:[#allocation60_spill] sm:$0xff] }
 0x212   :  { %8850 = vmatmul.msk.f32.gmra.mxu2 %vm260_vm0, %v207_v29  ;;  %8922 = vmatmul.msk.f32.gmra.mxu3 %vm260_vm0, %v10300_v22  ;;  %v2076_v58 = vadd.f32 %v1914_v50, %v1782_v45  ;;  %v2211_v21 = vpop.f32.mrf.mxu1  ;;  %v208_v50 = vld [vmem:[%s18201_s0 + $0x1ba] sm:$0xff]  ;;  %v210_v29 = vld [vmem:[%s18201_s0 + $0x1d2] sm:$0xff]  ;;  %v18374_v45 = vld [vmem:[#allocation59_spill] sm:$0xff] }
 0x213   :  { %v923_v22 = vadd.f32 %v18375_v51, %v18374_v45 }
 0x214   :  { %v12321_v61 = vadd.f32 %v2208_v39, %v2076_v58 }
 0x215   :  { %v1329_v36 = vpop.f32.mrf.mxu2  ;;  %v1623_v20 = vpop.f32.mrf.mxu3  ;;  %9066 = vmatmul.msk.f32.gmra.mxu1 %vm260_vm0, %v209_v27 }
 0x216   :  { %v1489_v19 = vadd.f32 %v1329_v36, %v920_v42  ;;  %v1920_v32 = vpop.f32.mrf.mxu0 }
 0x218   :  { %v1783_v17 = vadd.f32 %v1623_v20, %v1489_v19 }
 0x219   :  { %8995 = vmatmul.msk.f32.gmra.mxu0 %vm260_vm0, %v10301_v5  ;;  %v211_v5 = vld [vmem:[%s18201_s0 + $0x1e2] sm:$0xff] }
 0x21a   :  { %8851 = vmatmul.msk.f32.gmra.mxu2 %vm260_vm0, %v208_v50  ;;  %8923 = vmatmul.msk.f32.gmra.mxu3 %vm260_vm0, %v10302_v55  ;;  %v2077_v39 = vadd.f32 %v1917_v49, %v1783_v17  ;;  %v2214_v14 = vpop.f32.mrf.mxu1  ;;  %v10303_v49 = vld [vmem:[%s18201_s0 + $0x1e1] sm:$0xff]  ;;  %v926_v55 = vadd.f32 %v11848_v34, %v11841_v43 }
 0x21b   :  { %v10306_v43 = vld [vmem:[%s18201_s0 + $0x1e8] sm:$0xff] }
 0x21c   :  { %v12341_v58 = vadd.f32 %v2211_v21, %v2077_v39  ;;  %v10304_v21 = vld [vmem:[%s18201_s0 + $0x1e0] sm:$0xff] }
 0x21d   :  { %v1332_v46 = vpop.f32.mrf.mxu2  ;;  %v1626_v42 = vpop.f32.mrf.mxu3  ;;  %9067 = vmatmul.msk.f32.gmra.mxu1 %vm260_vm0, %v210_v29 }
 0x21e   :  { %v1490_v36 = vadd.f32 %v1332_v46, %v923_v22  ;;  %v1923_v20 = vpop.f32.mrf.mxu0 }
 0x220   :  { %v1784_v19 = vadd.f32 %v1626_v42, %v1490_v36  ;;  %v212_v42 = vld [vmem:[%s18201_s0 + $0x1ea] sm:$0xff]  ;;  %v929_v36 = vadd.f32 %v11863_v38, %v11856_v16  ;;  %v10308_v16 = vld [vmem:[%s18201_s0 + $0x1f8] sm:$0xff] }
 0x221   :  { %8996 = vmatmul.msk.f32.gmra.mxu0 %vm260_vm0, %v10303_v49 }
 0x222   :  { %8852 = vmatmul.msk.f32.gmra.mxu2 %vm260_vm0, %v209_v27  ;;  %8924 = vmatmul.msk.f32.gmra.mxu3 %vm260_vm0, %v10304_v21  ;;  %v2078_v50 = vadd.f32 %v1920_v32, %v1784_v19  ;;  %v2217_v17 = vpop.f32.mrf.mxu1  ;;  %v10305_v32 = vld [vmem:[%s18201_s0 + $0x1e9] sm:$0xff] }
 0x224   :  { %v12358_v39 = vadd.f32 %v2214_v14, %v2078_v50 }
 0x225   :  { %v1335_v45 = vpop.f32.mrf.mxu2  ;;  %v1629_v51 = vpop.f32.mrf.mxu3  ;;  %9068 = vmatmul.msk.f32.gmra.mxu1 %vm260_vm0, %v211_v5 }
 0x226   :  { %v1491_v27 = vadd.f32 %v1335_v45, %v926_v55  ;;  %v1926_v22 = vpop.f32.mrf.mxu0  ;;  %v213_v45 = vld [vmem:[%s18201_s0 + $0x1fa] sm:$0xff] }
 0x228   :  { %v1785_v46 = vadd.f32 %v1629_v51, %v1491_v27  ;;  %v9100_v51 = vld [vmem:[%s18202_s1 + $0x190] sm:$0xff] }
 0x229   :  { %8997 = vmatmul.msk.f32.gmra.mxu0 %vm260_vm0, %v10305_v32  ;;  %2453 = vmatpush.msra.mxu2 %v9100_v51 }
 0x22a   :  { %8853 = vmatmul.msk.f32.gmra.mxu2 %vm260_vm0, %v210_v29  ;;  %8925 = vmatmul.msk.f32.gmra.mxu3 %vm260_vm0, %v10306_v43  ;;  %v2079_v34 = vadd.f32 %v1923_v20, %v1785_v46  ;;  %v2220_v14 = vpop.f32.mrf.mxu1  ;;  %v10307_v20 = vld [vmem:[%s18201_s0 + $0x1f9] sm:$0xff]  ;;  %v9172_v46 = vld [vmem:[%s18202_s1 + $0x1d0] sm:$0xff] }
 0x22b   :  { %2747 = vmatpush.msra.mxu3 %v9172_v46  ;;  %v215_v46 = vld [vmem:[%s18201_s0 + $0x212] sm:$0xff] }
 0x22c   :  { %v12375_v19 = vadd.f32 %v2217_v17, %v2079_v34 }
 0x22d   :  { %v1338_v49 = vpop.f32.mrf.mxu2  ;;  %v1632_v21 = vpop.f32.mrf.mxu3  ;;  %9069 = vmatmul.msk.f32.gmra.mxu1 %vm260_vm0, %v212_v42 }
 0x22e   :  { %v1492_v29 = vadd.f32 %v1338_v49, %v929_v36  ;;  %v1929_v50 = vpop.f32.mrf.mxu0  ;;  %v10309_v49 = vld [vmem:[%s18201_s0 + $0x201] sm:$0xff] }
 0x230   :  { %v1786_v55 = vadd.f32 %v1632_v21, %v1492_v29  ;;  %v214_v21 = vld [vmem:[%s18201_s0 + $0x202] sm:$0xff]  ;;  %v935_v29 = vadd.f32 %v11899_v33, %v11892_v10  ;;  %v10312_v33 = vld [vmem:[%s18201_s0 + $0x210] sm:$0xff] }
 0x231   :  { %8998 = vmatmul.msk.f32.gmra.mxu0 %vm260_vm0, %v10307_v20 }
 0x232   :  { %8854 = vmatmul.msk.f32.gmra.mxu2 %vm260_vm0, %v211_v5  ;;  %8926 = vmatmul.msk.f32.gmra.mxu3 %vm260_vm0, %v10308_v16  ;;  %v2080_v38 = vadd.f32 %v1926_v22, %v1786_v55  ;;  %v2223_v17 = vpop.f32.mrf.mxu1  ;;  %v932_v5 = vadd.f32 %v11878_v44, %v11871_v30  ;;  %v10310_v30 = vld [vmem:[%s18201_s0 + $0x200] sm:$0xff] }
 0x234   :  { %v12395_v27 = vadd.f32 %v2220_v14, %v2080_v38 }
 0x235   :  { %v1341_v22 = vpop.f32.mrf.mxu2  ;;  %v1635_v32 = vpop.f32.mrf.mxu3  ;;  %9070 = vmatmul.msk.f32.gmra.mxu1 %vm260_vm0, %v213_v45 }
 0x236   :  { %v1493_v43 = vadd.f32 %v1341_v22, %v932_v5  ;;  %v1932_v34 = vpop.f32.mrf.mxu0  ;;  %v10311_v5 = vld [vmem:[%s18201_s0 + $0x211] sm:$0xff]  ;;  %v938_v22 = vadd.f32 %v11917_v56, %v11910_v41 }
 0x237   :  { %v10314_v41 = vld [vmem:[%s18201_s0 + $0x218] sm:$0xff] }
 0x238   :  { %v1787_v36 = vadd.f32 %v1635_v32, %v1493_v43 }
 0x239   :  { %8999 = vmatmul.msk.f32.gmra.mxu0 %vm260_vm0, %v10309_v49 }
 0x23a   :  { %8855 = vmatmul.msk.f32.gmra.mxu2 %vm260_vm0, %v212_v42  ;;  %8927 = vmatmul.msk.f32.gmra.mxu3 %vm260_vm0, %v10310_v30  ;;  %v2081_v44 = vadd.f32 %v1929_v50, %v1787_v36  ;;  %v2226_v14 = vpop.f32.mrf.mxu1  ;;  %v9244_v42 = vld [vmem:[%s18202_s1 + $0x210] sm:$0xff] }
 0x23b   :  { %3041 = vmatpush.msra.mxu0 %v9244_v42  ;;  %v941_v42 = vadd.f32 %v11932_v57, %v11925_v37  ;;  %v10316_v37 = vld [vmem:[%s18201_s0 + $0x228] sm:$0xff] }
 0x23c   :  { %v12415_v55 = vadd.f32 %v2223_v17, %v2081_v44  ;;  %v10313_v44 = vld [vmem:[%s18201_s0 + $0x219] sm:$0xff] }
 0x23d   :  { %v1344_v20 = vpop.f32.mrf.mxu2  ;;  %v1638_v16 = vpop.f32.mrf.mxu3  ;;  %9071 = vmatmul.msk.f32.gmra.mxu1 %vm260_vm0, %v214_v21 }
 0x23e   :  { %v1494_v50 = vadd.f32 %v1344_v20, %v935_v29  ;;  %v1935_v38 = vpop.f32.mrf.mxu0  ;;  %v216_v29 = vld [vmem:[%s18201_s0 + $0x21a] sm:$0xff] }
 0x240   :  { %v1788_v51 = vadd.f32 %v1638_v16, %v1494_v50 }
 0x241   :  { %9000 = vmatmul.msk.f32.gmra.mxu0 %vm260_vm0, %v10311_v5 }
 0x242   :  { %8856 = vmatmul.msk.f32.gmra.mxu2 %vm260_vm0, %v213_v45  ;;  %8928 = vmatmul.msk.f32.gmra.mxu3 %vm260_vm0, %v10312_v33  ;;  %v2082_v10 = vadd.f32 %v1932_v34, %v1788_v51  ;;  %v2229_v17 = vpop.f32.mrf.mxu1  ;;  %v9384_v34 = vld [vmem:[%s18205_s4 + $0x70] sm:$0xff] }
 0x243   :  { %5553 = vmatpush.msra.mxu1 %v9384_v34 }
 0x244   :  { %v12435_v32 = vadd.f32 %v2226_v14, %v2082_v10  ;;  %v217_v10 = vld [vmem:[%s18201_s0 + $0x22a] sm:$0xff] }
 0x245   :  { %v1347_v43 = vpop.f32.mrf.mxu2  ;;  %v1641_v36 = vpop.f32.mrf.mxu3  ;;  %9072 = vmatmul.msk.f32.gmra.mxu1 %vm260_vm0, %v215_v46 }
 0x246   :  { %v1495_v45 = vadd.f32 %v1347_v43, %v938_v22  ;;  %v1938_v49 = vpop.f32.mrf.mxu0 }
 0x248   :  { %v1789_v30 = vadd.f32 %v1641_v36, %v1495_v45 }
 0x249   :  { %9001 = vmatmul.msk.f32.gmra.mxu0 %vm260_vm0, %v10313_v44  ;;  %v218_v44 = vld [vmem:[%s18201_s0 + $0x232] sm:$0xff] }
 0x24a   :  { %8857 = vmatmul.msk.f32.gmra.mxu2 %vm260_vm0, %v214_v21  ;;  %8929 = vmatmul.msk.f32.gmra.mxu3 %vm260_vm0, %v10314_v41  ;;  %v2083_v56 = vadd.f32 %v1935_v38, %v1789_v30  ;;  %v2232_v14 = vpop.f32.mrf.mxu1  ;;  %v10315_v38 = vld [vmem:[%s18201_s0 + $0x229] sm:$0xff]  ;;  %v947_v41 = vadd.f32 %v11962_v4, %v11955_v47  ;;  %v10320_v47 = vld [vmem:[%s18201_s0 + $0x240] sm:$0xff] }
 0x24c   :  { %v12455_v20 = vadd.f32 %v2229_v17, %v2083_v56  ;;  %v944_v17 = vadd.f32 %v11947_v63, %v11940_v52  ;;  %v10318_v52 = vld [vmem:[%s18201_s0 + $0x230] sm:$0xff] }
 0x24d   :  { %v1350_v16 = vpop.f32.mrf.mxu2  ;;  %v1644_v50 = vpop.f32.mrf.mxu3  ;;  %9073 = vmatmul.msk.f32.gmra.mxu1 %vm260_vm0, %v216_v29 }
 0x24e   :  { %v1496_v21 = vadd.f32 %v1350_v16, %v941_v42  ;;  %v1941_v51 = vpop.f32.mrf.mxu0 }
 0x250   :  { %v1790_v5 = vadd.f32 %v1644_v50, %v1496_v21  ;;  %v10319_v21 = vld [vmem:[%s18201_s0 + $0x241] sm:$0xff] }
 0x251   :  { %9002 = vmatmul.msk.f32.gmra.mxu0 %vm260_vm0, %v10315_v38  ;;  %v950_v38 = vadd.f32 %v11977_v8, %v11970_v0  ;;  %v10322_v0 = vld [vmem:[%s18201_s0 + $0x248] sm:$0xff] }
 0x252   :  { %8858 = vmatmul.msk.f32.gmra.mxu2 %vm260_vm0, %v215_v46  ;;  %8930 = vmatmul.msk.f32.gmra.mxu3 %vm260_vm0, %v10316_v37  ;;  %v2084_v57 = vadd.f32 %v1938_v49, %v1790_v5  ;;  %v2235_v33 = vpop.f32.mrf.mxu1  ;;  %v10317_v49 = vld [vmem:[%s18201_s0 + $0x231] sm:$0xff]  ;;  %v219_v5 = vld [vmem:[%s18201_s0 + $0x242] sm:$0xff] }
 0x254   :  { %v12472_v22 = vadd.f32 %v2232_v14, %v2084_v57 }
 0x255   :  { %v1353_v43 = vpop.f32.mrf.mxu2  ;;  %v1647_v36 = vpop.f32.mrf.mxu3  ;;  %9074 = vmatmul.msk.f32.gmra.mxu1 %vm260_vm0, %v217_v10 }
 0x256   :  { %v1497_v46 = vadd.f32 %v1353_v43, %v944_v17  ;;  %v1944_v45 = vpop.f32.mrf.mxu0 }
 0x258   :  { %v1791_v30 = vadd.f32 %v1647_v36, %v1497_v46  ;;  %v10321_v36 = vld [vmem:[%s18201_s0 + $0x249] sm:$0xff] }
 0x259   :  { %9003 = vmatmul.msk.f32.gmra.mxu0 %vm260_vm0, %v10317_v49 }
 0x25a   :  { %8859 = vmatmul.msk.f32.gmra.mxu2 %vm260_vm0, %v216_v29  ;;  %8931 = vmatmul.msk.f32.gmra.mxu3 %vm260_vm0, %v10318_v52  ;;  %v2085_v63 = vadd.f32 %v1941_v51, %v1791_v30  ;;  %v2238_v34 = vpop.f32.mrf.mxu1  ;;  %v953_v30 = vadd.f32 %v11992_v12, %v11985_v3  ;;  %v10324_v3 = vld [vmem:[%s18201_s0 + $0x258] sm:$0xff] }
 0x25c   :  { %v12489_v56 = vadd.f32 %v2235_v33, %v2085_v63 }
 0x25d   :  { %v1356_v14 = vpop.f32.mrf.mxu2  ;;  %v1650_v42 = vpop.f32.mrf.mxu3  ;;  %9075 = vmatmul.msk.f32.gmra.mxu1 %vm260_vm0, %v218_v44 }
 0x25e   :  { %v1498_v29 = vadd.f32 %v1356_v14, %v947_v41  ;;  %v1947_v16 = vpop.f32.mrf.mxu0  ;;  %v10323_v14 = vld [vmem:[%s18201_s0 + $0x259] sm:$0xff] }
 0x260   :  { %v1792_v50 = vadd.f32 %v1650_v42, %v1498_v29  ;;  %v221_v29 = vld [vmem:[%s18201_s0 + $0x25a] sm:$0xff] }
 0x261   :  { %9004 = vmatmul.msk.f32.gmra.mxu0 %vm260_vm0, %v10319_v21 }
 0x262   :  { %8860 = vmatmul.msk.f32.gmra.mxu2 %vm260_vm0, %v217_v10  ;;  %8932 = vmatmul.msk.f32.gmra.mxu3 %vm260_vm0, %v10320_v47  ;;  %v2086_v4 = vadd.f32 %v1944_v45, %v1792_v50  ;;  %v2241_v51 = vpop.f32.mrf.mxu1  ;;  %v220_v45 = vld [vmem:[%s18201_s0 + $0x24a] sm:$0xff]  ;;  %v956_v50 = vadd.f32 %v12007_v18, %v12000_v60  ;;  %v10326_v60 = vld [vmem:[%s18201_s0 + $0x260] sm:$0xff] }
 0x263   :  { %v9171_v47 = vld [vmem:[%s18202_s1 + $0x1c8] sm:$0xff] }
 0x264   :  { %v12506_v37 = vadd.f32 %v2238_v34, %v2086_v4  ;;  %2748 = vmatpush.msra.mxu3 %v9171_v47  ;;  %v10329_v47 = vld [vmem:[%s18201_s0 + $0x279] sm:$0xff] }
 0x265   :  { %v1359_v57 = vpop.f32.mrf.mxu2  ;;  %v1653_v33 = vpop.f32.mrf.mxu3  ;;  %9076 = vmatmul.msk.f32.gmra.mxu1 %vm260_vm0, %v219_v5 }
 0x266   :  { %v1499_v10 = vadd.f32 %v1359_v57, %v950_v38  ;;  %v1950_v17 = vpop.f32.mrf.mxu0 }
 0x268   :  { %v1793_v43 = vadd.f32 %v1653_v33, %v1499_v10  ;;  %v10325_v33 = vld [vmem:[%s18201_s0 + $0x261] sm:$0xff] }
 0x269   :  { %9005 = vmatmul.msk.f32.gmra.mxu0 %vm260_vm0, %v10321_v36 }
 0x26a   :  { %8861 = vmatmul.msk.f32.gmra.mxu2 %vm260_vm0, %v218_v44  ;;  %8933 = vmatmul.msk.f32.gmra.mxu3 %vm260_vm0, %v10322_v0  ;;  %v2087_v8 = vadd.f32 %v1947_v16, %v1793_v43  ;;  %v2244_v46 = vpop.f32.mrf.mxu1  ;;  %v9099_v16 = vld [vmem:[%s18202_s1 + $0x188] sm:$0xff]  ;;  %v959_v43 = vadd.f32 %v12028_v53, %v12021_v2  ;;  %v10328_v53 = vld [vmem:[%s18201_s0 + $0x270] sm:$0xff] }
 0x26b   :  { %2454 = vmatpush.msra.mxu2 %v9099_v16  ;;  %v9243_v0 = vld [vmem:[%s18202_s1 + $0x208] sm:$0xff] }
 0x26c   :  { %v12523_v49 = vadd.f32 %v2241_v51, %v2087_v8  ;;  %3042 = vmatpush.msra.mxu0 %v9243_v0  ;;  %v225_v0 = vld [vmem:[%s18201_s0 + $0x28a] sm:$0xff] }
 0x26d   :  { %v1362_v52 = vpop.f32.mrf.mxu2  ;;  %v1656_v63 = vpop.f32.mrf.mxu3  ;;  %9077 = vmatmul.msk.f32.gmra.mxu1 %vm260_vm0, %v220_v45 }
 0x26e   :  { %v1500_v34 = vadd.f32 %v1362_v52, %v953_v30  ;;  %v1953_v44 = vpop.f32.mrf.mxu0 }
 0x270   :  { %v1794_v41 = vadd.f32 %v1656_v63, %v1500_v34  ;;  %v10327_v63 = vld [vmem:[%s18201_s0 + $0x271] sm:$0xff] }
 0x271   :  { %9006 = vmatmul.msk.f32.gmra.mxu0 %vm260_vm0, %v10323_v14 }
 0x272   :  { %8862 = vmatmul.msk.f32.gmra.mxu2 %vm260_vm0, %v219_v5  ;;  %8934 = vmatmul.msk.f32.gmra.mxu3 %vm260_vm0, %v10324_v3  ;;  %v2088_v12 = vadd.f32 %v1950_v17, %v1794_v41  ;;  %v2247_v42 = vpop.f32.mrf.mxu1  ;;  %v222_v17 = vld [vmem:[%s18201_s0 + $0x262] sm:$0xff]  ;;  %v962_v41 = vadd.f32 %v12046_v31, %v12039_v15  ;;  %v10330_v15 = vld [vmem:[%s18201_s0 + $0x278] sm:$0xff] }
 0x274   :  { %v12543_v21 = vadd.f32 %v2244_v46, %v2088_v12 }
 0x275   :  { %v1365_v4 = vpop.f32.mrf.mxu2  ;;  %v1659_v51 = vpop.f32.mrf.mxu3  ;;  %9078 = vmatmul.msk.f32.gmra.mxu1 %vm260_vm0, %v221_v29 }
 0x276   :  { %v1501_v5 = vadd.f32 %v1365_v4, %v956_v50  ;;  %v1956_v38 = vpop.f32.mrf.mxu0  ;;  %v9383_v50 = vld [vmem:[%s18205_s4 + $0x68] sm:$0xff] }
 0x277   :  { %5554 = vmatpush.msra.mxu1 %v9383_v50 }
 0x278   :  { %v1795_v57 = vadd.f32 %v1659_v51, %v1501_v5  ;;  %v224_v51 = vld [vmem:[%s18201_s0 + $0x27a] sm:$0xff]  ;;  %v965_v5 = vadd.f32 %v12061_v35, %v12054_v11  ;;  %v10332_v11 = vld [vmem:[%s18201_s0 + $0x288] sm:$0xff] }
 0x279   :  { %9007 = vmatmul.msk.f32.gmra.mxu0 %vm260_vm0, %v10325_v33 }
 0x27a   :  { %8863 = vmatmul.msk.f32.gmra.mxu2 %vm260_vm0, %v220_v45  ;;  %8935 = vmatmul.msk.f32.gmra.mxu3 %vm260_vm0, %v10326_v60  ;;  %v2089_v18 = vadd.f32 %v1953_v44, %v1795_v57  ;;  %v2250_v10 = vpop.f32.mrf.mxu1  ;;  %v223_v44 = vld [vmem:[%s18201_s0 + $0x272] sm:$0xff] }
 0x27c   :  { %v12563_v36 = vadd.f32 %v2247_v42, %v2089_v18 }
 0x27d   :  { %v1368_v8 = vpop.f32.mrf.mxu2  ;;  %v1662_v46 = vpop.f32.mrf.mxu3  ;;  %9079 = vmatmul.msk.f32.gmra.mxu1 %vm260_vm0, %v222_v17 }
 0x27e   :  { %v1502_v45 = vadd.f32 %v1368_v8, %v959_v43  ;;  %v1959_v30 = vpop.f32.mrf.mxu0 }
 0x280   :  { %v1796_v52 = vadd.f32 %v1662_v46, %v1502_v45 }
 0x281   :  { %9008 = vmatmul.msk.f32.gmra.mxu0 %vm260_vm0, %v10327_v63 }
 0x282   :  { %8864 = vmatmul.msk.f32.gmra.mxu2 %vm260_vm0, %v221_v29  ;;  %8936 = vmatmul.msk.f32.gmra.mxu3 %vm260_vm0, %v10328_v53  ;;  %v2090_v2 = vadd.f32 %v1956_v38, %v1796_v52  ;;  %v2253_v34 = vpop.f32.mrf.mxu1 }
 0x284   :  { %v12583_v14 = vadd.f32 %v2250_v10, %v2090_v2  ;;  %v10333_v2 = vld [vmem:[%s18201_s0 + $0x291] sm:$0xff] }
 0x285   :  { %v1371_v3 = vpop.f32.mrf.mxu2  ;;  %v1665_v12 = vpop.f32.mrf.mxu3  ;;  %9080 = vmatmul.msk.f32.gmra.mxu1 %vm260_vm0, %v223_v44 }
 0x286   :  { %v1503_v42 = vadd.f32 %v1371_v3, %v962_v41  ;;  %v1962_v29 = vpop.f32.mrf.mxu0  ;;  %v226_v3 = vld [vmem:[%s18201_s0 + $0x292] sm:$0xff] }
 0x288   :  { %v1797_v16 = vadd.f32 %v1665_v12, %v1503_v42 }
 0x289   :  { %9009 = vmatmul.msk.f32.gmra.mxu0 %vm260_vm0, %v10329_v47 }
 0x28a   :  { %8865 = vmatmul.msk.f32.gmra.mxu2 %vm260_vm0, %v222_v17  ;;  %8937 = vmatmul.msk.f32.gmra.mxu3 %vm260_vm0, %v10330_v15  ;;  %v2091_v31 = vadd.f32 %v1959_v30, %v1797_v16  ;;  %v2256_v4 = vpop.f32.mrf.mxu1  ;;  %v10331_v17 = vld [vmem:[%s18201_s0 + $0x289] sm:$0xff]  ;;  %v18376_v30 = vld [vmem:[#allocation6_spill] sm:$0xff] }
 0x28b   :  { %v18377_v16 = vld [vmem:[#allocation7_spill] sm:$0xff] }
 0x28c   :  { %v12603_v38 = vadd.f32 %v2253_v34, %v2091_v31  ;;  %v10334_v34 = vld [vmem:[%s18201_s0 + $0x290] sm:$0xff]  ;;  %v10335_v31 = vld [vmem:[%s18201_s0 + $0x2a1] sm:$0xff] }
 0x28d   :  { %v1374_v57 = vpop.f32.mrf.mxu2  ;;  %v1668_v33 = vpop.f32.mrf.mxu3  ;;  %9081 = vmatmul.msk.f32.gmra.mxu1 %vm260_vm0, %v224_v51 }
 0x28e   :  { %v1504_v60 = vadd.f32 %v1374_v57, %v965_v5  ;;  %v1965_v18 = vpop.f32.mrf.mxu0  ;;  %v227_v57 = vld [vmem:[%s18201_s0 + $0x2a2] sm:$0xff] }
 0x290   :  { %v1798_v10 = vadd.f32 %v1668_v33, %v1504_v60 }
 0x291   :  { %9010 = vmatmul.msk.f32.gmra.mxu0 %vm260_vm0, %v10331_v17 }
 0x292   :  { %8866 = vmatmul.msk.f32.gmra.mxu2 %vm260_vm0, %v223_v44  ;;  %8938 = vmatmul.msk.f32.gmra.mxu3 %vm260_vm0, %v10332_v11  ;;  %v2092_v35 = vadd.f32 %v1962_v29, %v1798_v10  ;;  %v2259_v43 = vpop.f32.mrf.mxu1  ;;  %v18378_v10 = vld [vmem:[#allocation8_spill] sm:$0xff] }
 0x294   :  { %v12618_v8 = vadd.f32 %v2256_v4, %v2092_v35  ;;  %v10336_v4 = vld [vmem:[%s18201_s0 + $0x2a0] sm:$0xff] }
 0x295   :  { %v1377_v46 = vpop.f32.mrf.mxu2  ;;  %v1671_v45 = vpop.f32.mrf.mxu3  ;;  %9082 = vmatmul.msk.f32.gmra.mxu1 %vm260_vm0, %v225_v0 }
 0x296   :  { %v1505_v52 = vadd.f32 %v1377_v46, %v18376_v30  ;;  %v1968_v63 = vpop.f32.mrf.mxu0  ;;  %v228_v30 = vld [vmem:[%s18201_s0 + $0x2aa] sm:$0xff] }
 0x298   :  { %v1799_v53 = vadd.f32 %v1671_v45, %v1505_v52 }
 0x299   :  { %9011 = vmatmul.msk.f32.gmra.mxu0 %vm260_vm0, %v10333_v2  ;;  %v18379_v2 = vld [vmem:[#allocation9_spill] sm:$0xff] }
 0x29a   :  { %8867 = vmatmul.msk.f32.gmra.mxu2 %vm260_vm0, %v224_v51  ;;  %8939 = vmatmul.msk.f32.gmra.mxu3 %vm260_vm0, %v10334_v34  ;;  %v2093_v44 = vadd.f32 %v1965_v18, %v1799_v53  ;;  %v2262_v41 = vpop.f32.mrf.mxu1 }
 0x29c   :  { %v12634_v12 = vadd.f32 %v2259_v43, %v2093_v44  ;;  %v10337_v43 = vld [vmem:[%s18201_s0 + $0x2a9] sm:$0xff] }
 0x29d   :  { %v1380_v42 = vpop.f32.mrf.mxu2  ;;  %v1674_v29 = vpop.f32.mrf.mxu3  ;;  %9083 = vmatmul.msk.f32.gmra.mxu1 %vm260_vm0, %v226_v3 }
 0x29e   :  { %v1506_v50 = vadd.f32 %v1380_v42, %v18377_v16  ;;  %v1971_v47 = vpop.f32.mrf.mxu0  ;;  %v10340_v42 = vld [vmem:[%s18201_s0 + $0x2b8] sm:$0xff] }
 0x2a0   :  { %v1800_v15 = vadd.f32 %v1674_v29, %v1506_v50  ;;  %v229_v50 = vld [vmem:[%s18201_s0 + $0x2ba] sm:$0xff] }
 0x2a1   :  { %9012 = vmatmul.msk.f32.gmra.mxu0 %vm260_vm0, %v10335_v31  ;;  %v9170_v31 = vld [vmem:[%s18202_s1 + $0x1c0] sm:$0xff] }
 0x2a2   :  { %8868 = vmatmul.msk.f32.gmra.mxu2 %vm260_vm0, %v225_v0  ;;  %8940 = vmatmul.msk.f32.gmra.mxu3 %vm260_vm0, %v10336_v4  ;;  %v2094_v51 = vadd.f32 %v1968_v63, %v1800_v15  ;;  %v2265_v5 = vpop.f32.mrf.mxu1  ;;  %v10338_v0 = vld [vmem:[%s18201_s0 + $0x2a8] sm:$0xff] }
 0x2a3   :  { %2749 = vmatpush.msra.mxu3 %v9170_v31  ;;  %v18382_v31 = vld [vmem:[#allocation15_spill] sm:$0xff] }
 0x2a4   :  { %v12650_v33 = vadd.f32 %v2262_v41, %v2094_v51 }
 0x2a5   :  { %v1383_v60 = vpop.f32.mrf.mxu2  ;;  %v1677_v18 = vpop.f32.mrf.mxu3  ;;  %9084 = vmatmul.msk.f32.gmra.mxu1 %vm260_vm0, %v227_v57 }
 0x2a6   :  { %v1507_v17 = vadd.f32 %v1383_v60, %v18378_v10  ;;  %v1974_v11 = vpop.f32.mrf.mxu0  ;;  %v10341_v10 = vld [vmem:[%s18201_s0 + $0x2c1] sm:$0xff] }
 0x2a8   :  { %v1801_v35 = vadd.f32 %v1677_v18, %v1507_v17  ;;  %v10342_v17 = vld [vmem:[%s18201_s0 + $0x2c0] sm:$0xff] }
 0x2a9   :  { %9013 = vmatmul.msk.f32.gmra.mxu0 %vm260_vm0, %v10337_v43 }
 0x2aa   :  { %8869 = vmatmul.msk.f32.gmra.mxu2 %vm260_vm0, %v226_v3  ;;  %8941 = vmatmul.msk.f32.gmra.mxu3 %vm260_vm0, %v10338_v0  ;;  %v2095_v46 = vadd.f32 %v1971_v47, %v1801_v35  ;;  %v2268_v45 = vpop.f32.mrf.mxu1  ;;  %v10339_v3 = vld [vmem:[%s18201_s0 + $0x2b9] sm:$0xff]  ;;  %v230_v35 = vld [vmem:[%s18201_s0 + $0x2c2] sm:$0xff] }
 0x2ab   :  { %v9098_v47 = vld [vmem:[%s18202_s1 + $0x180] sm:$0xff] }
 0x2ac   :  { %v12666_v52 = vadd.f32 %v2265_v5, %v2095_v46  ;;  %2455 = vmatpush.msra.mxu2 %v9098_v47  ;;  %v18380_v5 = vld [vmem:[#allocation10_spill] sm:$0xff] }
 0x2ad   :  { %v1386_v63 = vpop.f32.mrf.mxu2  ;;  %v1680_v53 = vpop.f32.mrf.mxu3  ;;  %9085 = vmatmul.msk.f32.gmra.mxu1 %vm260_vm0, %v228_v30  ;;  %v9242_v46 = vld [vmem:[%s18202_s1 + $0x200] sm:$0xff] }
 0x2ae   :  { %v1508_v34 = vadd.f32 %v1386_v63, %v18379_v2  ;;  %v1977_v44 = vpop.f32.mrf.mxu0  ;;  %3043 = vmatpush.msra.mxu0 %v9242_v46  ;;  %v18381_v63 = vld [vmem:[#allocation12_spill] sm:$0xff] }
 0x2b0   :  { %v1802_v41 = vadd.f32 %v1680_v53, %v1508_v34 }
 0x2b1   :  { %9014 = vmatmul.msk.f32.gmra.mxu0 %vm260_vm0, %v10339_v3 }
 0x2b2   :  { %8870 = vmatmul.msk.f32.gmra.mxu2 %vm260_vm0, %v227_v57  ;;  %8942 = vmatmul.msk.f32.gmra.mxu3 %vm260_vm0, %v10340_v42  ;;  %v2096_v29 = vadd.f32 %v1974_v11, %v1802_v41  ;;  %v2271_v16 = vpop.f32.mrf.mxu1  ;;  %v10344_v41 = vld [vmem:[%s18201_s0 + $0x2d0] sm:$0xff] }
 0x2b3   :  { %v231_v42 = vld [vmem:[%s18201_s0 + $0x2d2] sm:$0xff] }
 0x2b4   :  { %v12685_v15 = vadd.f32 %v2268_v45, %v2096_v29 }
 0x2b5   :  { %v1389_v4 = vpop.f32.mrf.mxu2  ;;  %v1683_v51 = vpop.f32.mrf.mxu3  ;;  %9086 = vmatmul.msk.f32.gmra.mxu1 %vm260_vm0, %v229_v50 }
 0x2b6   :  { %v1509_v57 = vadd.f32 %v1389_v4, %v18380_v5  ;;  %v1980_v60 = vpop.f32.mrf.mxu0 }
 0x2b8   :  { %v1803_v18 = vadd.f32 %v1683_v51, %v1509_v57  ;;  %v9382_v57 = vld [vmem:[%s18205_s4 + $0x60] sm:$0xff] }
 0x2b9   :  { %9015 = vmatmul.msk.f32.gmra.mxu0 %vm260_vm0, %v10341_v10  ;;  %5555 = vmatpush.msra.mxu1 %v9382_v57 }
 0x2ba   :  { %8871 = vmatmul.msk.f32.gmra.mxu2 %vm260_vm0, %v228_v30  ;;  %8943 = vmatmul.msk.f32.gmra.mxu3 %vm260_vm0, %v10342_v17  ;;  %v2097_v11 = vadd.f32 %v1977_v44, %v1803_v18  ;;  %v2274_v0 = vpop.f32.mrf.mxu1  ;;  %v10343_v44 = vld [vmem:[%s18201_s0 + $0x2d1] sm:$0xff]  ;;  %v232_v17 = vld [vmem:[%s18201_s0 + $0x2da] sm:$0xff] }
 0x2bb   :  { %v10346_v18 = vld [vmem:[%s18201_s0 + $0x2d8] sm:$0xff] }
 0x2bc   :  { %v12704_v43 = vadd.f32 %v2271_v16, %v2097_v11 }
 0x2bd   :  { %v1392_v45 = vpop.f32.mrf.mxu2  ;;  %v1686_v30 = vpop.f32.mrf.mxu3  ;;  %9087 = vmatmul.msk.f32.gmra.mxu1 %vm260_vm0, %v230_v35 }
 0x2be   :  { %v1510_v53 = vadd.f32 %v1392_v45, %v18381_v63  ;;  %v1983_v2 = vpop.f32.mrf.mxu0  ;;  %v18383_v45 = vld [vmem:[#allocation18_spill] sm:$0xff] }
 0x2c0   :  { %v1804_v34 = vadd.f32 %v1686_v30, %v1510_v53  ;;  %v10347_v53 = vld [vmem:[%s18201_s0 + $0x2e9] sm:$0xff] }
 0x2c1   :  { %9016 = vmatmul.msk.f32.gmra.mxu0 %vm260_vm0, %v10343_v44 }
 0x2c2   :  { %8872 = vmatmul.msk.f32.gmra.mxu2 %vm260_vm0, %v229_v50  ;;  %8944 = vmatmul.msk.f32.gmra.mxu3 %vm260_vm0, %v10344_v41  ;;  %v2098_v3 = vadd.f32 %v1980_v60, %v1804_v34  ;;  %v2277_v51 = vpop.f32.mrf.mxu1  ;;  %v10345_v60 = vld [vmem:[%s18201_s0 + $0x2d9] sm:$0xff]  ;;  %v10348_v34 = vld [vmem:[%s18201_s0 + $0x2e8] sm:$0xff] }
 0x2c3   :  { %v233_v41 = vld [vmem:[%s18201_s0 + $0x2ea] sm:$0xff] }
 0x2c4   :  { %v12723_v29 = vadd.f32 %v2274_v0, %v2098_v3 }
 0x2c5   :  { %v1395_v16 = vpop.f32.mrf.mxu2  ;;  %v1689_v47 = vpop.f32.mrf.mxu3  ;;  %9088 = vmatmul.msk.f32.gmra.mxu1 %vm260_vm0, %v231_v42 }
 0x2c6   :  { %v1511_v4 = vadd.f32 %v1395_v16, %v18382_v31  ;;  %v1986_v50 = vpop.f32.mrf.mxu0  ;;  %v18384_v31 = vld [vmem:[#allocation23_spill] sm:$0xff] }
 0x2c8   :  { %v1805_v5 = vadd.f32 %v1689_v47, %v1511_v4 }
 0x2c9   :  { %9017 = vmatmul.msk.f32.gmra.mxu0 %vm260_vm0, %v10345_v60  ;;  %v234_v60 = vld [vmem:[%s18201_s0 + $0x2f2] sm:$0xff] }
 0x2ca   :  { %8873 = vmatmul.msk.f32.gmra.mxu2 %vm260_vm0, %v230_v35  ;;  %8945 = vmatmul.msk.f32.gmra.mxu3 %vm260_vm0, %v10346_v18  ;;  %v2099_v10 = vadd.f32 %v1983_v2, %v1805_v5  ;;  %v2280_v2 = vpop.f32.mrf.mxu1  ;;  %v10349_v5 = vld [vmem:[%s18201_s0 + $0x2f1] sm:$0xff] }
 0x2cc   :  { %v12742_v11 = vadd.f32 %v2277_v51, %v2099_v10 }
 0x2cd   :  { %v1398_v0 = vpop.f32.mrf.mxu2  ;;  %v1692_v46 = vpop.f32.mrf.mxu3  ;;  %9089 = vmatmul.msk.f32.gmra.mxu1 %vm260_vm0, %v232_v17 }
 0x2ce   :  { %v1512_v30 = vadd.f32 %v1398_v0, %v18383_v45  ;;  %v1989_v35 = vpop.f32.mrf.mxu0  ;;  %v18385_v0 = vld [vmem:[#allocation28_spill] sm:$0xff] }
 0x2d0   :  { %v1806_v63 = vadd.f32 %v1692_v46, %v1512_v30  ;;  %v10351_v30 = vld [vmem:[%s18201_s0 + $0x301] sm:$0xff] }
 0x2d1   :  { %9018 = vmatmul.msk.f32.gmra.mxu0 %vm260_vm0, %v10347_v53  ;;  %v235_v53 = vld [vmem:[%s18201_s0 + $0x302] sm:$0xff] }
 0x2d2   :  { %8874 = vmatmul.msk.f32.gmra.mxu2 %vm260_vm0, %v231_v42  ;;  %8946 = vmatmul.msk.f32.gmra.mxu3 %vm260_vm0, %v10348_v34  ;;  %v2100_v44 = vadd.f32 %v1986_v50, %v1806_v63  ;;  %v10350_v50 = vld [vmem:[%s18201_s0 + $0x2f0] sm:$0xff] }
 0x2d4   :  { %v12758_v3 = vadd.f32 %v2280_v2, %v2100_v44  ;;  %v18387_v44 = vld [vmem:[#allocation33_spill] sm:$0xff] }
 0x2d5   :  { %v1401_v16 = vpop.f32.mrf.mxu2  ;;  %v1695_v47 = vpop.f32.mrf.mxu3  ;;  %9090 = vmatmul.msk.f32.gmra.mxu1 %vm260_vm0, %v233_v41 }
 0x2d6   :  { %v1513_v4 = vadd.f32 %v1401_v16, %v18384_v31  ;;  %v1992_v42 = vpop.f32.mrf.mxu0  ;;  %v10353_v31 = vld [vmem:[%s18201_s0 + $0x309] sm:$0xff] }
 0x2d8   :  { %v1807_v51 = vadd.f32 %v1695_v47, %v1513_v4  ;;  %v10354_v4 = vld [vmem:[%s18201_s0 + $0x308] sm:$0xff] }
 0x2d9   :  { %9019 = vmatmul.msk.f32.gmra.mxu0 %vm260_vm0, %v10349_v5 }
 0x2da   :  { %8875 = vmatmul.msk.f32.gmra.mxu2 %vm260_vm0, %v232_v17  ;;  %8947 = vmatmul.msk.f32.gmra.mxu3 %vm260_vm0, %v10350_v50  ;;  %v12771_v57 = vadd.f32 %v1989_v35, %v1807_v51  ;;  %v10352_v35 = vld [vmem:[%s18201_s0 + $0x300] sm:$0xff]  ;;  %v236_v51 = vld [vmem:[%s18201_s0 + $0x30a] sm:$0xff] }
 0x2dd   :  { %v1404_v18 = vpop.f32.mrf.mxu2  ;;  %v1698_v10 = vpop.f32.mrf.mxu3  ;;  %9091 = vmatmul.msk.f32.gmra.mxu1 %vm260_vm0, %v234_v60 }
 0x2de   :  { %v1514_v46 = vadd.f32 %v1404_v18, %v18385_v0  ;;  %v1995_v45 = vpop.f32.mrf.mxu0  ;;  %v18389_v18 = vld [vmem:[#allocation38_spill] sm:$0xff] }
 0x2e0   :  { %v1808_v17 = vadd.f32 %v1698_v10, %v1514_v46  ;;  %v10355_v46 = vld [vmem:[%s18201_s0 + $0x319] sm:$0xff] }
 0x2e1   :  { %9020 = vmatmul.msk.f32.gmra.mxu0 %vm260_vm0, %v10351_v30  ;;  %v237_v30 = vld [vmem:[%s18201_s0 + $0x31a] sm:$0xff] }
 0x2e2   :  { %8876 = vmatmul.msk.f32.gmra.mxu2 %vm260_vm0, %v233_v41  ;;  %8948 = vmatmul.msk.f32.gmra.mxu3 %vm260_vm0, %v10352_v35  ;;  %v12787_v63 = vadd.f32 %v1992_v42, %v1808_v17 }
 0x2e4   :  { %18386 = vst [vmem:[#allocation11_spill] sm:$0xff] %v12787_v63 }
 0x2e5   :  { %v1407_v2 = vpop.f32.mrf.mxu2  ;;  %v1701_v34 = vpop.f32.mrf.mxu3  ;;  %9092 = vmatmul.msk.f32.gmra.mxu1 %vm260_vm0, %v235_v53 }
 0x2e6   :  { %v1515_v16 = vadd.f32 %v1407_v2, %v18387_v44  ;;  %v1998_v47 = vpop.f32.mrf.mxu0 }
 0x2e8   :  { %v1809_v41 = vadd.f32 %v1701_v34, %v1515_v16  ;;  %v18391_v34 = vld [vmem:[#allocation43_spill] sm:$0xff] }
 0x2e9   :  { %9021 = vmatmul.msk.f32.gmra.mxu0 %vm260_vm0, %v10353_v31 }
 0x2ea   :  { %8877 = vmatmul.msk.f32.gmra.mxu2 %vm260_vm0, %v234_v60  ;;  %8949 = vmatmul.msk.f32.gmra.mxu3 %vm260_vm0, %v10354_v4  ;;  %v12803_v42 = vadd.f32 %v1995_v45, %v1809_v41  ;;  %v10356_v45 = vld [vmem:[%s18201_s0 + $0x318] sm:$0xff]  ;;  %v10357_v41 = vld [vmem:[%s18201_s0 + $0x321] sm:$0xff] }
 0x2eb   :  { %v238_v4 = vld [vmem:[%s18201_s0 + $0x322] sm:$0xff] }
 0x2ec   :  { %18388 = vst [vmem:[#allocation20_spill] sm:$0xff] %v12803_v42  ;;  %v10422_v42 = vld [vmem:[%s18201_s0 + $0x12a] sm:$0xff] }
 0x2ed   :  { %v1410_v5 = vpop.f32.mrf.mxu2  ;;  %v1704_v50 = vpop.f32.mrf.mxu3  ;;  %9093 = vmatmul.msk.f32.gmra.mxu1 %vm260_vm0, %v236_v51 }
 0x2ee   :  { %v1516_v10 = vadd.f32 %v1410_v5, %v18389_v18  ;;  %v2001_v0 = vpop.f32.mrf.mxu0  ;;  %v18393_v18 = vld [vmem:[#allocation48_spill] sm:$0xff] }
 0x2f0   :  { %v1810_v60 = vadd.f32 %v1704_v50, %v1516_v10 }
 0x2f1   :  { %9022 = vmatmul.msk.f32.gmra.mxu0 %vm260_vm0, %v10355_v46 }
 0x2f2   :  { %8878 = vmatmul.msk.f32.gmra.mxu2 %vm260_vm0, %v235_v53  ;;  %8950 = vmatmul.msk.f32.gmra.mxu3 %vm260_vm0, %v10356_v45  ;;  %v12819_v17 = vadd.f32 %v1998_v47, %v1810_v60  ;;  %v10358_v47 = vld [vmem:[%s18201_s0 + $0x320] sm:$0xff] }
 0x2f4   :  { %18390 = vst [vmem:[#allocation22_spill] sm:$0xff] %v12819_v17 }
 0x2f5   :  { %v1413_v35 = vpop.f32.mrf.mxu2  ;;  %v1707_v2 = vpop.f32.mrf.mxu3  ;;  %9094 = vmatmul.msk.f32.gmra.mxu1 %vm260_vm0, %v237_v30 }
 0x2f6   :  { %v1517_v44 = vadd.f32 %v1413_v35, %v18391_v34  ;;  %v2004_v16 = vpop.f32.mrf.mxu0  ;;  %v239_v35 = vld [vmem:[%s18201_s0 + $0x332] sm:$0xff] }
 0x2f8   :  { %v1811_v53 = vadd.f32 %v1707_v2, %v1517_v44  ;;  %v18395_v44 = vld [vmem:[#allocation53_spill] sm:$0xff] }
 0x2f9   :  { %9023 = vmatmul.msk.f32.gmra.mxu0 %vm260_vm0, %v10357_v41 }
 0x2fa   :  { %8879 = vmatmul.msk.f32.gmra.mxu2 %vm260_vm0, %v236_v51  ;;  %8951 = vmatmul.msk.f32.gmra.mxu3 %vm260_vm0, %v10358_v47  ;;  %v12835_v31 = vadd.f32 %v2001_v0, %v1811_v53  ;;  %v167_v51 = vld [vmem:[%s18201_s0 + $0x331] sm:$0xff]  ;;  %v168_v47 = vld [vmem:[%s18201_s0 + $0x339] sm:$0xff] }
 0x2fb   :  { %v95_v0 = vld [vmem:[%s18201_s0 + $0x330] sm:$0xff] }
 0x2fc   :  { %18392 = vst [vmem:[#allocation13_spill] sm:$0xff] %v12835_v31 }
 0x2fd   :  { %v1416_v5 = vpop.f32.mrf.mxu2  ;;  %v1710_v50 = vpop.f32.mrf.mxu3  ;;  %9095 = vmatmul.msk.f32.gmra.mxu1 %vm260_vm0, %v238_v4 }
 0x2fe   :  { %v1518_v10 = vadd.f32 %v1416_v5, %v18393_v18  ;;  %v2007_v60 = vpop.f32.mrf.mxu0  ;;  %v9381_v5 = vld [vmem:[%s18205_s4 + $0x58] sm:$0xff] }
 0x2ff   :  { %5556 = vmatpush.msra.mxu1 %v9381_v5  ;;  %v240_v18 = vld [vmem:[%s18201_s0 + $0x33a] sm:$0xff] }
 0x300   :  { %v1812_v46 = vadd.f32 %v1710_v50, %v1518_v10 }
 0x301   :  { %9024 = vmatmul.msk.f32.gmra.mxu0 %vm260_vm0, %v167_v51 }
 0x302   :  { %8880 = vmatmul.msk.f32.gmra.mxu2 %vm260_vm0, %v237_v30  ;;  %8952 = vmatmul.msk.f32.gmra.mxu3 %vm260_vm0, %v95_v0  ;;  %v12851_v45 = vadd.f32 %v2004_v16, %v1812_v46  ;;  %v96_v30 = vld [vmem:[%s18201_s0 + $0x338] sm:$0xff]  ;;  %v18397_v0 = vld [vmem:[#allocation56_spill] sm:$0xff] }
 0x304   :  { %18394 = vst [vmem:[#allocation14_spill] sm:$0xff] %v12851_v45 }
 0x305   :  { %v1419_v2 = vpop.f32.mrf.mxu2  ;;  %v1713_v34 = vpop.f32.mrf.mxu3  ;;  %9096 = vmatmul.msk.f32.gmra.mxu1 %vm260_vm0, %v239_v35 }
 0x306   :  { %v1519_v53 = vadd.f32 %v1419_v2, %v18395_v44  ;;  %v2010_v41 = vpop.f32.mrf.mxu0 }
 0x308   :  { %v1813_v16 = vadd.f32 %v1713_v34, %v1519_v53  ;;  %v10361_v34 = vld [vmem:[%s18201_s0 + $0x31] sm:$0xff] }
 0x309   :  { %9025 = vmatmul.msk.f32.gmra.mxu0 %vm260_vm0, %v168_v47 }
 0x30a   :  { %8881 = vmatmul.msk.f32.gmra.mxu2 %vm260_vm0, %v238_v4  ;;  %8953 = vmatmul.msk.f32.gmra.mxu3 %vm260_vm0, %v96_v30  ;;  %v12870_v50 = vadd.f32 %v2007_v60, %v1813_v16  ;;  %v10359_v4 = vld [vmem:[%s18201_s0 + $0x32] sm:$0xff]  ;;  %v18399_v30 = vld [vmem:[#allocation58_spill] sm:$0xff] }
 0x30b   :  { %v10360_v60 = vld [vmem:[%s18201_s0 + $0x30] sm:$0xff] }
 0x30c   :  { %18396 = vst [vmem:[#allocation25_spill] sm:$0xff] %v12870_v50 }
 0x30d   :  { %v1422_v10 = vpop.f32.mrf.mxu2  ;;  %v1716_v51 = vpop.f32.mrf.mxu3  ;;  %9097 = vmatmul.msk.f32.gmra.mxu1 %vm260_vm0, %v240_v18 }
 0x30e   :  { %v1520_v46 = vadd.f32 %v1422_v10, %v18397_v0  ;;  %v2013_v35 = vpop.f32.mrf.mxu0  ;;  %v10362_v10 = vld [vmem:[%s18201_s0 + $0x3a] sm:$0xff] }
 0x310   :  { %v1814_v2 = vadd.f32 %v1716_v51, %v1520_v46  ;;  %v10363_v51 = vld [vmem:[%s18201_s0 + $0x38] sm:$0xff] }
 0x311   :  { %9250 = vmatmul.msk.f32.vlgmr.msra.gmra.mxu0 %vm260_vm0, %v10359_v4  ;;  %v18401_v4 = vld [vmem:[#allocation61_spill] sm:$0xff] }
 0x312   :  { %9106 = vmatmul.msk.f32.vlgmr.msra.gmra.mxu2 %vm260_vm0, %v10360_v60  ;;  %9178 = vmatmul.msk.f32.vlgmr.msra.gmra.mxu3 %vm260_vm0, %v10361_v34  ;;  %v12889_v44 = vadd.f32 %v2010_v41, %v1814_v2  ;;  %v10364_v41 = vld [vmem:[%s18201_s0 + $0x39] sm:$0xff] }
 0x314   :  { %18398 = vst [vmem:[#allocation27_spill] sm:$0xff] %v12889_v44 }
 0x315   :  { %v1425_v53 = vpop.f32.mrf.mxu2  ;;  %v1719_v47 = vpop.f32.mrf.mxu3 }
 0x316   :  { %v1521_v16 = vadd.f32 %v1425_v53, %v18399_v30  ;;  %v2016_v5 = vpop.f32.mrf.mxu0  ;;  %v10366_v30 = vld [vmem:[%s18201_s0 + $0x48] sm:$0xff] }
 0x318   :  { %v1815_v18 = vadd.f32 %v1719_v47, %v1521_v16  ;;  %v10365_v47 = vld [vmem:[%s18201_s0 + $0x4a] sm:$0xff] }
 0x319   :  { %9251 = vmatmul.msk.f32.gmra.mxu0 %vm260_vm0, %v10362_v10 }
 0x31a   :  { %9107 = vmatmul.msk.f32.gmra.mxu2 %vm260_vm0, %v10363_v51  ;;  %9179 = vmatmul.msk.f32.gmra.mxu3 %vm260_vm0, %v10364_v41  ;;  %v12904_v0 = vadd.f32 %v2013_v35, %v1815_v18  ;;  %v10367_v35 = vld [vmem:[%s18201_s0 + $0x49] sm:$0xff]  ;;  %v18403_v51 = vld [vmem:[#allocation62_spill] sm:$0xff] }
 0x31c   :  { %18400 = vst [vmem:[#allocation16_spill] sm:$0xff] %v12904_v0 }
 0x31d   :  { %v1428_v46 = vpop.f32.mrf.mxu2  ;;  %v1722_v2 = vpop.f32.mrf.mxu3 }
 0x31e   :  { %v1522_v60 = vadd.f32 %v1428_v46, %v18401_v4  ;;  %v2019_v34 = vpop.f32.mrf.mxu0  ;;  %v10368_v4 = vld [vmem:[%s18201_s0 + $0x52] sm:$0xff] }
 0x320   :  { %v1816_v53 = vadd.f32 %v1722_v2, %v1522_v60  ;;  %v10369_v60 = vld [vmem:[%s18201_s0 + $0x50] sm:$0xff] }
 0x321   :  { %9252 = vmatmul.msk.f32.gmra.mxu0 %vm260_vm0, %v10365_v47 }
 0x322   :  { %9108 = vmatmul.msk.f32.gmra.mxu2 %vm260_vm0, %v10366_v30  ;;  %9180 = vmatmul.msk.f32.gmra.mxu3 %vm260_vm0, %v10367_v35  ;;  %v12919_v16 = vadd.f32 %v2016_v5, %v1816_v53  ;;  %v10370_v5 = vld [vmem:[%s18201_s0 + $0x51] sm:$0xff]  ;;  %v18405_v35 = vld [vmem:[#allocation63_spill] sm:$0xff] }
 0x324   :  { %18402 = vst [vmem:[#allocation17_spill] sm:$0xff] %v12919_v16  ;;  %v10416_v16 = vld [vmem:[%s18201_s0 + $0x112] sm:$0xff] }
 0x325   :  { %v1431_v18 = vpop.f32.mrf.mxu2  ;;  %v1725_v10 = vpop.f32.mrf.mxu3 }
 0x326   :  { %v1523_v41 = vadd.f32 %v1431_v18, %v18403_v51  ;;  %v2022_v46 = vpop.f32.mrf.mxu0 }
 0x328   :  { %v1817_v2 = vadd.f32 %v1725_v10, %v1523_v41  ;;  %v10371_v41 = vld [vmem:[%s18201_s0 + $0x62] sm:$0xff] }
 0x329   :  { %9253 = vmatmul.msk.f32.gmra.mxu0 %vm260_vm0, %v10368_v4  ;;  %v10372_v4 = vld [vmem:[%s18201_s0 + $0x60] sm:$0xff] }
 0x32a   :  { %9109 = vmatmul.msk.f32.gmra.mxu2 %vm260_vm0, %v10369_v60  ;;  %9181 = vmatmul.msk.f32.gmra.mxu3 %vm260_vm0, %v10370_v5  ;;  %v12934_v53 = vadd.f32 %v2019_v34, %v1817_v2  ;;  %v10373_v34 = vld [vmem:[%s18201_s0 + $0x61] sm:$0xff] }
 0x32c   :  { %18404 = vst [vmem:[#allocation30_spill] sm:$0xff] %v12934_v53 }
 0x32d   :  { %v1434_v47 = vpop.f32.mrf.mxu2  ;;  %v1728_v30 = vpop.f32.mrf.mxu3 }
 0x32e   :  { %v1524_v18 = vadd.f32 %v1434_v47, %v18405_v35  ;;  %v2025_v10 = vpop.f32.mrf.mxu0  ;;  %v18407_v47 = vld [vmem:[#allocation64_spill] sm:$0xff] }
 0x330   :  { %v1818_v51 = vadd.f32 %v1728_v30, %v1524_v18 }
 0x331   :  { %9254 = vmatmul.msk.f32.gmra.mxu0 %vm260_vm0, %v10371_v41  ;;  %v10374_v41 = vld [vmem:[%s18201_s0 + $0x6a] sm:$0xff] }
 0x332   :  { %9110 = vmatmul.msk.f32.gmra.mxu2 %vm260_vm0, %v10372_v4  ;;  %9182 = vmatmul.msk.f32.gmra.mxu3 %vm260_vm0, %v10373_v34  ;;  %v12949_v2 = vadd.f32 %v2022_v46, %v1818_v51  ;;  %v10375_v4 = vld [vmem:[%s18201_s0 + $0x68] sm:$0xff] }
 0x333   :  { %v10376_v46 = vld [vmem:[%s18201_s0 + $0x69] sm:$0xff] }
 0x334   :  { %18406 = vst [vmem:[#allocation32_spill] sm:$0xff] %v12949_v2  ;;  %v10377_v2 = vld [vmem:[%s18201_s0 + $0x7a] sm:$0xff] }
 0x335   :  { %v1437_v60 = vpop.f32.mrf.mxu2  ;;  %v1731_v5 = vpop.f32.mrf.mxu3 }
 0x336   :  { %v1525_v30 = vadd.f32 %v1437_v60, %v18407_v47  ;;  %v2028_v35 = vpop.f32.mrf.mxu0 }
 0x338   :  { %v1819_v18 = vadd.f32 %v1731_v5, %v1525_v30  ;;  %v18409_v5 = vld [vmem:[#allocation65_spill] sm:$0xff] }
 0x339   :  { %9255 = vmatmul.msk.f32.gmra.mxu0 %vm260_vm0, %v10374_v41 }
 0x33a   :  { %9111 = vmatmul.msk.f32.gmra.mxu2 %vm260_vm0, %v10375_v4  ;;  %9183 = vmatmul.msk.f32.gmra.mxu3 %vm260_vm0, %v10376_v46  ;;  %v12964_v51 = vadd.f32 %v2025_v10, %v1819_v18  ;;  %v10378_v4 = vld [vmem:[%s18201_s0 + $0x78] sm:$0xff] }
 0x33b   :  { %v10379_v10 = vld [vmem:[%s18201_s0 + $0x79] sm:$0xff] }
 0x33c   :  { %18408 = vst [vmem:[#allocation19_spill] sm:$0xff] %v12964_v51  ;;  %v9380_v51 = vld [vmem:[%s18205_s4 + $0x50] sm:$0xff] }
 0x33d   :  { %v1440_v34 = vpop.f32.mrf.mxu2  ;;  %v1734_v60 = vpop.f32.mrf.mxu3  ;;  %5557 = vmatpush.msra.mxu1 %v9380_v51 }
 0x33e   :  { %v1526_v47 = vadd.f32 %v1440_v34, %v18409_v5  ;;  %v2031_v30 = vpop.f32.mrf.mxu0 }
 0x340   :  { %v1820_v41 = vadd.f32 %v1734_v60, %v1526_v47  ;;  %v18411_v60 = vld [vmem:[#allocation66_spill] sm:$0xff] }
 0x341   :  { %9256 = vmatmul.msk.f32.gmra.mxu0 %vm260_vm0, %v10377_v2 }
 0x342   :  { %9112 = vmatmul.msk.f32.gmra.mxu2 %vm260_vm0, %v10378_v4  ;;  %9184 = vmatmul.msk.f32.gmra.mxu3 %vm260_vm0, %v10379_v10  ;;  %v12979_v18 = vadd.f32 %v2028_v35, %v1820_v41  ;;  %v10380_v4 = vld [vmem:[%s18201_s0 + $0x82] sm:$0xff] }
 0x343   :  { %v10381_v35 = vld [vmem:[%s18201_s0 + $0x80] sm:$0xff] }
 0x344   :  { %18410 = vst [vmem:[#allocation21_spill] sm:$0xff] %v12979_v18  ;;  %v10382_v41 = vld [vmem:[%s18201_s0 + $0x81] sm:$0xff]  ;;  %v10383_v18 = vld [vmem:[%s18201_s0 + $0x92] sm:$0xff] }
 0x345   :  { %v1443_v46 = vpop.f32.mrf.mxu2  ;;  %v1737_v34 = vpop.f32.mrf.mxu3 }
 0x346   :  { %v1527_v5 = vadd.f32 %v1443_v46, %v18411_v60  ;;  %v2034_v47 = vpop.f32.mrf.mxu0  ;;  %v18413_v60 = vld [vmem:[#allocation67_spill] sm:$0xff] }
 0x348   :  { %v1821_v2 = vadd.f32 %v1737_v34, %v1527_v5 }
 0x349   :  { %9257 = vmatmul.msk.f32.gmra.mxu0 %vm260_vm0, %v10380_v4 }
 0x34a   :  { %9113 = vmatmul.msk.f32.gmra.mxu2 %vm260_vm0, %v10381_v35  ;;  %9185 = vmatmul.msk.f32.gmra.mxu3 %vm260_vm0, %v10382_v41  ;;  %v12997_v10 = vadd.f32 %v2031_v30, %v1821_v2  ;;  %v10384_v35 = vld [vmem:[%s18201_s0 + $0x90] sm:$0xff] }
 0x34b   :  { %v10385_v30 = vld [vmem:[%s18201_s0 + $0x91] sm:$0xff] }
 0x34c   :  { %18412 = vst [vmem:[#allocation35_spill] sm:$0xff] %v12997_v10  ;;  %v10386_v10 = vld [vmem:[%s18201_s0 + $0x9a] sm:$0xff] }
 0x34d   :  { %v1446_v46 = vpop.f32.mrf.mxu2  ;;  %v1740_v34 = vpop.f32.mrf.mxu3 }
 0x34e   :  { %v1528_v5 = vadd.f32 %v1446_v46, %v18413_v60  ;;  %v2037_v4 = vpop.f32.mrf.mxu0 }
 0x350   :  { %v1822_v51 = vadd.f32 %v1740_v34, %v1528_v5  ;;  %v18415_v34 = vld [vmem:[#allocation68_spill] sm:$0xff] }
 0x351   :  { %9258 = vmatmul.msk.f32.gmra.mxu0 %vm260_vm0, %v10383_v18 }
 0x352   :  { %9114 = vmatmul.msk.f32.gmra.mxu2 %vm260_vm0, %v10384_v35  ;;  %9186 = vmatmul.msk.f32.gmra.mxu3 %vm260_vm0, %v10385_v30  ;;  %v13012_v2 = vadd.f32 %v2034_v47, %v1822_v51  ;;  %v10387_v35 = vld [vmem:[%s18201_s0 + $0x98] sm:$0xff] }
 0x353   :  { %v10388_v47 = vld [vmem:[%s18201_s0 + $0x99] sm:$0xff] }
 0x354   :  { %18414 = vst [vmem:[#allocation37_spill] sm:$0xff] %v13012_v2  ;;  %v10389_v2 = vld [vmem:[%s18201_s0 + $0xaa] sm:$0xff] }
 0x355   :  { %v1449_v41 = vpop.f32.mrf.mxu2  ;;  %v1743_v46 = vpop.f32.mrf.mxu3 }
 0x356   :  { %v1529_v60 = vadd.f32 %v1449_v41, %v18415_v34  ;;  %v2040_v5 = vpop.f32.mrf.mxu0 }
 0x358   :  { %v1823_v18 = vadd.f32 %v1743_v46, %v1529_v60  ;;  %v18417_v46 = vld [vmem:[#allocation69_spill] sm:$0xff] }
 0x359   :  { %9259 = vmatmul.msk.f32.gmra.mxu0 %vm260_vm0, %v10386_v10 }
 0x35a   :  { %9115 = vmatmul.msk.f32.gmra.mxu2 %vm260_vm0, %v10387_v35  ;;  %9187 = vmatmul.msk.f32.gmra.mxu3 %vm260_vm0, %v10388_v47  ;;  %v13027_v51 = vadd.f32 %v2037_v4, %v1823_v18  ;;  %v10390_v35 = vld [vmem:[%s18201_s0 + $0xa8] sm:$0xff] }
 0x35b   :  { %v10391_v4 = vld [vmem:[%s18201_s0 + $0xa9] sm:$0xff] }
 0x35c   :  { %18416 = vst [vmem:[#allocation24_spill] sm:$0xff] %v13027_v51  ;;  %v10392_v51 = vld [vmem:[%s18201_s0 + $0xb2] sm:$0xff] }
 0x35d   :  { %v1452_v30 = vpop.f32.mrf.mxu2  ;;  %v1746_v41 = vpop.f32.mrf.mxu3 }
 0x35e   :  { %v1530_v34 = vadd.f32 %v1452_v30, %v18417_v46  ;;  %v2043_v60 = vpop.f32.mrf.mxu0 }
 0x360   :  { %v1824_v10 = vadd.f32 %v1746_v41, %v1530_v34  ;;  %v18419_v41 = vld [vmem:[#allocation70_spill] sm:$0xff] }
 0x361   :  { %9260 = vmatmul.msk.f32.gmra.mxu0 %vm260_vm0, %v10389_v2 }
 0x362   :  { %9116 = vmatmul.msk.f32.gmra.mxu2 %vm260_vm0, %v10390_v35  ;;  %9188 = vmatmul.msk.f32.gmra.mxu3 %vm260_vm0, %v10391_v4  ;;  %v13042_v18 = vadd.f32 %v2040_v5, %v1824_v10  ;;  %v10393_v35 = vld [vmem:[%s18201_s0 + $0xb0] sm:$0xff] }
 0x363   :  { %v10394_v5 = vld [vmem:[%s18201_s0 + $0xb1] sm:$0xff] }
 0x364   :  { %18418 = vst [vmem:[#allocation26_spill] sm:$0xff] %v13042_v18  ;;  %v10395_v18 = vld [vmem:[%s18201_s0 + $0xc2] sm:$0xff] }
 0x365   :  { %v1455_v47 = vpop.f32.mrf.mxu2  ;;  %v1749_v30 = vpop.f32.mrf.mxu3 }
 0x366   :  { %v1531_v46 = vadd.f32 %v1455_v47, %v18419_v41  ;;  %v2046_v34 = vpop.f32.mrf.mxu0 }
 0x368   :  { %v1825_v2 = vadd.f32 %v1749_v30, %v1531_v46  ;;  %v18421_v30 = vld [vmem:[#allocation71_spill] sm:$0xff] }
 0x369   :  { %9261 = vmatmul.msk.f32.gmra.mxu0 %vm260_vm0, %v10392_v51 }
 0x36a   :  { %9117 = vmatmul.msk.f32.gmra.mxu2 %vm260_vm0, %v10393_v35  ;;  %9189 = vmatmul.msk.f32.gmra.mxu3 %vm260_vm0, %v10394_v5  ;;  %v13057_v10 = vadd.f32 %v2043_v60, %v1825_v2  ;;  %v10396_v35 = vld [vmem:[%s18201_s0 + $0xc0] sm:$0xff] }
 0x36b   :  { %v10397_v60 = vld [vmem:[%s18201_s0 + $0xc1] sm:$0xff] }
 0x36c   :  { %18420 = vst [vmem:[#allocation40_spill] sm:$0xff] %v13057_v10  ;;  %v10398_v10 = vld [vmem:[%s18201_s0 + $0xca] sm:$0xff] }
 0x36d   :  { %v1458_v4 = vpop.f32.mrf.mxu2  ;;  %v1752_v47 = vpop.f32.mrf.mxu3 }
 0x36e   :  { %v1532_v41 = vadd.f32 %v1458_v4, %v18421_v30  ;;  %v2049_v46 = vpop.f32.mrf.mxu0 }
 0x370   :  { %v1826_v51 = vadd.f32 %v1752_v47, %v1532_v41  ;;  %v18423_v47 = vld [vmem:[#allocation72_spill] sm:$0xff] }
 0x371   :  { %9262 = vmatmul.msk.f32.gmra.mxu0 %vm260_vm0, %v10395_v18 }
 0x372   :  { %9118 = vmatmul.msk.f32.gmra.mxu2 %vm260_vm0, %v10396_v35  ;;  %9190 = vmatmul.msk.f32.gmra.mxu3 %vm260_vm0, %v10397_v60  ;;  %v13072_v2 = vadd.f32 %v2046_v34, %v1826_v51  ;;  %v10399_v35 = vld [vmem:[%s18201_s0 + $0xc8] sm:$0xff] }
 0x373   :  { %v10400_v34 = vld [vmem:[%s18201_s0 + $0xc9] sm:$0xff] }
 0x374   :  { %18422 = vst [vmem:[#allocation42_spill] sm:$0xff] %v13072_v2  ;;  %v10401_v2 = vld [vmem:[%s18201_s0 + $0xda] sm:$0xff] }
 0x375   :  { %v1461_v5 = vpop.f32.mrf.mxu2  ;;  %v1755_v4 = vpop.f32.mrf.mxu3 }
 0x376   :  { %v1533_v30 = vadd.f32 %v1461_v5, %v18423_v47  ;;  %v2052_v41 = vpop.f32.mrf.mxu0 }
 0x378   :  { %v1827_v18 = vadd.f32 %v1755_v4, %v1533_v30  ;;  %v18425_v4 = vld [vmem:[#allocation73_spill] sm:$0xff] }
 0x379   :  { %9263 = vmatmul.msk.f32.gmra.mxu0 %vm260_vm0, %v10398_v10 }
 0x37a   :  { %9119 = vmatmul.msk.f32.gmra.mxu2 %vm260_vm0, %v10399_v35  ;;  %9191 = vmatmul.msk.f32.gmra.mxu3 %vm260_vm0, %v10400_v34  ;;  %v13087_v51 = vadd.f32 %v2049_v46, %v1827_v18  ;;  %v10402_v35 = vld [vmem:[%s18201_s0 + $0xd8] sm:$0xff] }
 0x37b   :  { %v10403_v46 = vld [vmem:[%s18201_s0 + $0xd9] sm:$0xff] }
 0x37c   :  { %18424 = vst [vmem:[#allocation29_spill] sm:$0xff] %v13087_v51  ;;  %v10404_v51 = vld [vmem:[%s18201_s0 + $0xe2] sm:$0xff] }
 0x37d   :  { %v1464_v60 = vpop.f32.mrf.mxu2  ;;  %v1758_v5 = vpop.f32.mrf.mxu3 }
 0x37e   :  { %v1534_v47 = vadd.f32 %v1464_v60, %v18425_v4  ;;  %v2055_v30 = vpop.f32.mrf.mxu0 }
 0x380   :  { %v1828_v10 = vadd.f32 %v1758_v5, %v1534_v47  ;;  %v18427_v5 = vld [vmem:[#allocation74_spill] sm:$0xff] }
 0x381   :  { %9264 = vmatmul.msk.f32.gmra.mxu0 %vm260_vm0, %v10401_v2 }
 0x382   :  { %9120 = vmatmul.msk.f32.gmra.mxu2 %vm260_vm0, %v10402_v35  ;;  %9192 = vmatmul.msk.f32.gmra.mxu3 %vm260_vm0, %v10403_v46  ;;  %v13102_v18 = vadd.f32 %v2052_v41, %v1828_v10  ;;  %v10405_v35 = vld [vmem:[%s18201_s0 + $0xe0] sm:$0xff] }
 0x383   :  { %v10406_v41 = vld [vmem:[%s18201_s0 + $0xe1] sm:$0xff] }
 0x384   :  { %18426 = vst [vmem:[#allocation31_spill] sm:$0xff] %v13102_v18  ;;  %v10407_v18 = vld [vmem:[%s18201_s0 + $0xf2] sm:$0xff] }
 0x385   :  { %v1467_v34 = vpop.f32.mrf.mxu2  ;;  %v1761_v60 = vpop.f32.mrf.mxu3 }
 0x386   :  { %v1535_v4 = vadd.f32 %v1467_v34, %v18427_v5  ;;  %v2058_v47 = vpop.f32.mrf.mxu0 }
 0x388   :  { %v1829_v2 = vadd.f32 %v1761_v60, %v1535_v4  ;;  %v18429_v60 = vld [vmem:[#allocation75_spill] sm:$0xff] }
 0x389   :  { %9265 = vmatmul.msk.f32.gmra.mxu0 %vm260_vm0, %v10404_v51 }
 0x38a   :  { %9121 = vmatmul.msk.f32.gmra.mxu2 %vm260_vm0, %v10405_v35  ;;  %9193 = vmatmul.msk.f32.gmra.mxu3 %vm260_vm0, %v10406_v41  ;;  %v13117_v10 = vadd.f32 %v2055_v30, %v1829_v2  ;;  %v10408_v35 = vld [vmem:[%s18201_s0 + $0xf0] sm:$0xff] }
 0x38b   :  { %v10409_v30 = vld [vmem:[%s18201_s0 + $0xf1] sm:$0xff] }
 0x38c   :  { %18428 = vst [vmem:[#allocation45_spill] sm:$0xff] %v13117_v10 }
 0x38d   :  { %v1470_v46 = vpop.f32.mrf.mxu2  ;;  %v1764_v34 = vpop.f32.mrf.mxu3 }
 0x38e   :  { %v1536_v5 = vadd.f32 %v1470_v46, %v18429_v60  ;;  %v3045_v4 = vpop.f32.mrf.mxu0 }
 0x390   :  { %v1830_v51 = vadd.f32 %v1764_v34, %v1536_v5  ;;  %v13138_v5 = vld [vmem:[%s18203_s2] ss:$0 sm:$0xff] }
 0x391   :  { %9266 = vmatmul.msk.f32.gmra.mxu0 %vm260_vm0, %v10407_v18 }
 0x392   :  { %9122 = vmatmul.msk.f32.gmra.mxu2 %vm260_vm0, %v10408_v35  ;;  %9194 = vmatmul.msk.f32.gmra.mxu3 %vm260_vm0, %v10409_v30  ;;  %v13132_v2 = vadd.f32 %v2058_v47, %v1830_v51  ;;  %v10410_v35 = vld [vmem:[%s18201_s0 + $0xfa] sm:$0xff] }
 0x393   :  { %v13147_v47 = vld [vmem:[%s18204_s3] ss:$0 sm:$0xff] }
 0x394   :  { %18430 = vst [vmem:[#allocation47_spill] sm:$0xff] %v13132_v2  ;;  %v10412_v51 = vld [vmem:[%s18201_s0 + $0xf9] sm:$0xff] }
 0x395   :  { %v2457_v41 = vpop.f32.mrf.mxu2  ;;  %v2751_v46 = vpop.f32.mrf.mxu3 }
 0x396   :  { %v2649_v34 = vadd.f32 %v2457_v41, %v12090_v23  ;;  %v3048_v60 = vpop.f32.mrf.mxu0  ;;  %v10411_v23 = vld [vmem:[%s18201_s0 + $0xf8] sm:$0xff] }
 0x398   :  { %v2943_v18 = vadd.f32 %v2751_v46, %v2649_v34 }
 0x399   :  { %9267 = vmatmul.msk.f32.gmra.mxu0 %vm260_vm0, %v10410_v35 }
 0x39a   :  { %v3237_v30 = vadd.f32 %v3045_v4, %v2943_v18  ;;  %9123 = vmatmul.msk.f32.gmra.mxu2 %vm260_vm0, %v10411_v23  ;;  %9195 = vmatmul.msk.f32.gmra.mxu3 %vm260_vm0, %v10412_v51  ;;  %v9379_v4 = vld [vmem:[%s18205_s4 + $0x48] sm:$0xff] }
 0x39b   :  { %5558 = vmatpush.msra.mxu1 %v9379_v4  ;;  %v10413_v51 = vld [vmem:[%s18201_s0 + $0x10a] sm:$0xff] }
 0x39c   :  { %v3305_v41 = vmul.f32 %v13138_v5, %v3237_v30  ;;  %v10414_v4 = vld [vmem:[%s18201_s0 + $0x108] sm:$0xff] }
 0x39d   :  { %v2460_v46 = vpop.f32.mrf.mxu2  ;;  %v2754_v34 = vpop.f32.mrf.mxu3 }
 0x39e   :  { %v13162_v18 = vadd.f32 %v13147_v47, %v3305_v41  ;;  %v2650_v35 = vadd.f32 %v2460_v46, %v12103_v54  ;;  %v3051_v23 = vpop.f32.mrf.mxu0  ;;  %v10415_v54 = vld [vmem:[%s18201_s0 + $0x109] sm:$0xff] }
 0x3a0   :  { %v9314_v2 = vmul.f32 -1.442695, %v13162_v18  ;;  %v2944_v10 = vadd.f32 %v2754_v34, %v2650_v35 }
 0x3a1   :  { %9268 = vmatmul.msk.f32.gmra.mxu0 %vm260_vm0, %v10413_v51 }
 0x3a2   :  { %10043 = vpow2.f32 %v9314_v2  ;;  %v3238_v30 = vadd.f32 %v3048_v60, %v2944_v10  ;;  %9124 = vmatmul.msk.f32.gmra.mxu2 %vm260_vm0, %v10414_v4  ;;  %9196 = vmatmul.msk.f32.gmra.mxu3 %vm260_vm0, %v10415_v54  ;;  %v10417_v54 = vld [vmem:[%s18201_s0 + $0x110] sm:$0xff] }
 0x3a4   :  { %v3306_v41 = vmul.f32 %v13138_v5, %v3238_v30 }
 0x3a5   :  { %v2463_v46 = vpop.f32.mrf.mxu2  ;;  %v2757_v34 = vpop.f32.mrf.mxu3 }
 0x3a6   :  { %v13180_v35 = vadd.f32 %v13147_v47, %v3306_v41  ;;  %v2651_v10 = vadd.f32 %v2463_v46, %v12116_v26  ;;  %v3054_v2 = vpop.f32.mrf.mxu0  ;;  %v10418_v26 = vld [vmem:[%s18201_s0 + $0x111] sm:$0xff] }
 0x3a8   :  { %v10044_v60 = vpop.eup %10043  ;;  %v9315_v51 = vmul.f32 -1.442695, %v13180_v35  ;;  %v2945_v4 = vadd.f32 %v2757_v34, %v2651_v10 }
 0x3a9   :  { %v3629_v53 = vadd.f32 1.0, %v10044_v60  ;;  %9269 = vmatmul.msk.f32.gmra.mxu0 %vm260_vm0, %v10416_v16 }
 0x3aa   :  { %10045 = vpow2.f32 %v9315_v51  ;;  %v3239_v30 = vadd.f32 %v3051_v23, %v2945_v4  ;;  %9125 = vmatmul.msk.f32.gmra.mxu2 %vm260_vm0, %v10417_v54  ;;  %9197 = vmatmul.msk.f32.gmra.mxu3 %vm260_vm0, %v10418_v26  ;;  %v10419_v26 = vld [vmem:[%s18201_s0 + $0x122] sm:$0xff] }
 0x3ab   :  { %10047 = vrcp.f32 %v3629_v53  ;;  %vm3698_vm2 = vweird.f32 %v3629_v53 }
 0x3ac   :  { %v3307_v41 = vmul.f32 %v13138_v5, %v3239_v30 }
 0x3ad   :  { %v2466_v46 = vpop.f32.mrf.mxu2  ;;  %v2760_v34 = vpop.f32.mrf.mxu3 }
 0x3ae   :  { %v13198_v16 = vadd.f32 %v13147_v47, %v3307_v41  ;;  %v2652_v23 = vadd.f32 %v2466_v46, %v12132_v25  ;;  %v3057_v10 = vpop.f32.mrf.mxu0  ;;  %v10420_v25 = vld [vmem:[%s18201_s0 + $0x120] sm:$0xff] }
 0x3af   :  { %v10421_v41 = vld [vmem:[%s18201_s0 + $0x121] sm:$0xff] }
 0x3b0   :  { %v10046_v60 = vpop.eup %10045  ;;  %v9316_v51 = vmul.f32 -1.442695, %v13198_v16  ;;  %v2946_v4 = vadd.f32 %v2760_v34, %v2652_v23 }
 0x3b1   :  { %v10048_v54 = vpop.eup %10047  ;;  %v13202_v0 = vadd.f32 1.0, %v10046_v60  ;;  %9270 = vmatmul.msk.f32.gmra.mxu0 %vm260_vm0, %v10419_v26 }
 0x3b2   :  { %10049 = vpow2.f32 %v9316_v51  ;;  %v3240_v30 = vadd.f32 %v3054_v2, %v2946_v4  ;;  %9126 = vmatmul.msk.f32.gmra.mxu2 %vm260_vm0, %v10420_v25  ;;  %9198 = vmatmul.msk.f32.gmra.mxu3 %vm260_vm0, %v10421_v41  ;;  %v3694_v46 = vmul.f32 %v10048_v54, %v3629_v53  ;;  %v3702_v51 = vand.u32 2147483647, %v3629_v53 }
 0x3b3   :  { %10051 = vrcp.f32 %v13202_v0  ;;  %v3704_v4 = vand.u32 2147483648, %v3629_v53  ;;  %vm3699_vm1 = vweird.f32 %v10048_v54  ;;  %vm3713_vm6 = vweird.f32 %v13202_v0 }
 0x3b4   :  { %v3308_v34 = vmul.f32 %v13138_v5, %v3240_v30  ;;  %v3695_v23 = vsub.f32 1.0, %v3694_v46  ;;  %vm3700_vm3 = vmor %vm3698_vm2, %vm3699_vm1  ;;  %vm3703_vm4 = vcmp.eq.f32.partialorder %v3702_v51, 8.507059e+37  ;;  %v3717_v51 = vand.u32 2147483647, %v13202_v0 }
 0x3b5   :  { %v2469_v60 = vpop.f32.mrf.mxu2  ;;  %v2763_v2 = vpop.f32.mrf.mxu3 }
 0x3b6   :  { %v13219_v26 = vadd.f32 %v13147_v47, %v3308_v34  ;;  %v2653_v25 = vadd.f32 %v2469_v60, %v12148_v40  ;;  %v3060_v44 = vpop.f32.mrf.mxu0  ;;  %v3696_v50 = vmul.f32 %v10048_v54, %v3695_v23  ;;  %v3705_v40 = vor.u32 1.1754944e-38, %v3704_v4  ;;  %v10423_v23 = vld [vmem:[%s18201_s0 + $0x128] sm:$0xff] }
 0x3b7   :  { %v3719_v4 = vand.u32 2147483648, %v13202_v0  ;;  %vm3718_vm8 = vcmp.eq.f32.partialorder %v3717_v51, 8.507059e+37 }
 0x3b8   :  { %v10050_v45 = vpop.eup %10049  ;;  %v9317_v41 = vmul.f32 -1.442695, %v13219_v26  ;;  %v2947_v31 = vadd.f32 %v2763_v2, %v2653_v25  ;;  %v3697_v17 = vadd.f32 %v10048_v54, %v3696_v50 }
 0x3b9   :  { %v10052_v30 = vpop.eup %10051  ;;  %v13223_v46 = vadd.f32 1.0, %v10050_v45  ;;  %9271 = vmatmul.msk.f32.gmra.mxu0 %vm260_vm0, %v10422_v42  ;;  %v10424_v45 = vld [vmem:[%s18201_s0 + $0x129] sm:$0xff] }
 0x3ba   :  { %10053 = vpow2.f32 %v9317_v41  ;;  %v3241_v34 = vadd.f32 %v3057_v10, %v2947_v31  ;;  %9127 = vmatmul.msk.f32.gmra.mxu2 %vm260_vm0, %v10423_v23  ;;  %9199 = vmatmul.msk.f32.gmra.mxu3 %vm260_vm0, %v10424_v45  ;;  %v3701_v50 = vsel %vm3700_vm3, %v10048_v54, %v3697_v17  ;;  %v3709_v42 = vmul.f32 %v10052_v30, %v13202_v0  ;;  %v10427_v0 = vld [vmem:[%s18201_s0 + $0x139] sm:$0xff] }
 0x3bb   :  { %10055 = vrcp.f32 %v13223_v46  ;;  %v3706_v53 = vsel %vm3703_vm4, %v3705_v40, %v3701_v50  ;;  %vm3714_vm5 = vweird.f32 %v10052_v30  ;;  %vm3728_vm10 = vweird.f32 %v13223_v46 }
 0x3bc   :  { %v3309_v31 = vmul.f32 %v13138_v5, %v3241_v34  ;;  %4717 = vrot.lane.b32.xlu0 %v3706_v53, %s10819_s9  ;;  %v3710_v10 = vsub.f32 1.0, %v3709_v42  ;;  %v10425_v53 = vld [vmem:[%s18201_s0 + $0x13a] sm:$0xff]  ;;  %vm3715_vm7 = vmor %vm3713_vm6, %vm3714_vm5 }
 0x3bd   :  { %v2472_v60 = vpop.f32.mrf.mxu2  ;;  %v2766_v2 = vpop.f32.mrf.mxu3 }
 0x3be   :  { %v13244_v25 = vadd.f32 %v13147_v47, %v3309_v31  ;;  %v2654_v17 = vadd.f32 %v2472_v60, %v12164_v28  ;;  %v3063_v54 = vpop.f32.mrf.mxu0  ;;  %v3711_v41 = vmul.f32 %v10052_v30, %v3710_v10  ;;  %v3720_v28 = vor.u32 1.1754944e-38, %v3719_v4  ;;  %v10426_v10 = vld [vmem:[%s18201_s0 + $0x138] sm:$0xff] }
 0x3c0   :  { %v10054_v40 = vpop.eup %10053  ;;  %v9318_v34 = vmul.f32 -1.442695, %v13244_v25  ;;  %v2948_v23 = vadd.f32 %v2766_v2, %v2654_v17  ;;  %v3712_v45 = vadd.f32 %v10052_v30, %v3711_v41 }
 0x3c1   :  { %v10056_v50 = vpop.eup %10055  ;;  %v13249_v42 = vadd.f32 1.0, %v10054_v40  ;;  %9272 = vmatmul.msk.f32.gmra.mxu0 %vm260_vm0, %v10425_v53  ;;  %v3732_v40 = vand.u32 2147483647, %v13223_v46 }
 0x3c2   :  { %10057 = vpow2.f32 %v9318_v34  ;;  %v3242_v31 = vadd.f32 %v3060_v44, %v2948_v23  ;;  %9128 = vmatmul.msk.f32.gmra.mxu2 %vm260_vm0, %v10426_v10  ;;  %9200 = vmatmul.msk.f32.gmra.mxu3 %vm260_vm0, %v10427_v0  ;;  %v3716_v60 = vsel %vm3715_vm7, %v10052_v30, %v3712_v45  ;;  %v3724_v2 = vmul.f32 %v10056_v50, %v13223_v46 }
 0x3c3   :  { %10059 = vrcp.f32 %v13249_v42  ;;  %v3721_v51 = vsel %vm3718_vm8, %v3720_v28, %v3716_v60  ;;  %v3734_v34 = vand.u32 2147483648, %v13223_v46  ;;  %vm3729_vm9 = vweird.f32 %v10056_v50  ;;  %v10430_v46 = vld [vmem:[%s18201_s0 + $0x141] sm:$0xff] }
 0x3c4   :  { %v3310_v44 = vmul.f32 %v13138_v5, %v3242_v31  ;;  %4719 = vrot.lane.b32.xlu0 %v3721_v51, %s10819_s9  ;;  %v3725_v4 = vsub.f32 1.0, %v3724_v2  ;;  %v10428_v51 = vld [vmem:[%s18201_s0 + $0x142] sm:$0xff]  ;;  %vm3730_vm11 = vmor %vm3728_vm10, %vm3729_vm9  ;;  %vm3733_vm12 = vcmp.eq.f32.partialorder %v3732_v40, 8.507059e+37  ;;  %vm3743_vm14 = vweird.f32 %v13249_v42 }
 0x3c5   :  { %v2475_v17 = vpop.f32.mrf.mxu2  ;;  %v2769_v41 = vpop.f32.mrf.mxu3 }
 0x3c6   :  { %v13270_v23 = vadd.f32 %v13147_v47, %v3310_v44  ;;  %v2655_v30 = vadd.f32 %v2475_v17, %v12177_v62  ;;  %v3066_v45 = vpop.f32.mrf.mxu0  ;;  %v3726_v53 = vmul.f32 %v10056_v50, %v3725_v4  ;;  %v3735_v62 = vor.u32 1.1754944e-38, %v3734_v34  ;;  %v10429_v4 = vld [vmem:[%s18201_s0 + $0x140] sm:$0xff] }
 0x3c8   :  { %v10058_v28 = vpop.eup %10057  ;;  %v9319_v31 = vmul.f32 -1.442695, %v13270_v23  ;;  %v2949_v10 = vadd.f32 %v2769_v41, %v2655_v30  ;;  %v3727_v0 = vadd.f32 %v10056_v50, %v3726_v53 }
 0x3c9   :  { %v10060_v60 = vpop.eup %10059  ;;  %v13275_v2 = vadd.f32 1.0, %v10058_v28  ;;  %9273 = vmatmul.msk.f32.gmra.mxu0 %vm260_vm0, %v10428_v51  ;;  %v3747_v28 = vand.u32 2147483647, %v13249_v42 }
 0x3ca   :  { %10061 = vpow2.f32 %v9319_v31  ;;  %v3243_v44 = vadd.f32 %v3063_v54, %v2949_v10  ;;  %9129 = vmatmul.msk.f32.gmra.mxu2 %vm260_vm0, %v10429_v4  ;;  %9201 = vmatmul.msk.f32.gmra.mxu3 %vm260_vm0, %v10430_v46  ;;  %v3731_v17 = vsel %vm3730_vm11, %v10056_v50, %v3727_v0  ;;  %v3739_v41 = vmul.f32 %v10060_v60, %v13249_v42 }
 0x3cb   :  { %10063 = vrcp.f32 %v13275_v2  ;;  %v3736_v40 = vsel %vm3733_vm12, %v3735_v62, %v3731_v17  ;;  %v3749_v31 = vand.u32 2147483648, %v13249_v42  ;;  %vm3744_vm13 = vweird.f32 %v10060_v60  ;;  %v10433_v42 = vld [vmem:[%s18201_s0 + $0x151] sm:$0xff] }
 0x3cc   :  { %v3311_v54 = vmul.f32 %v13138_v5, %v3243_v44  ;;  %4721 = vrot.lane.b32.xlu1 %v3736_v40, %s10819_s9  ;;  %v3740_v34 = vsub.f32 1.0, %v3739_v41  ;;  %v10431_v40 = vld [vmem:[%s18201_s0 + $0x152] sm:$0xff]  ;;  %vm3745_vm15 = vmor %vm3743_vm14, %vm3744_vm13  ;;  %vm3748_vm1 = vcmp.eq.f32.partialorder %v3747_v28, 8.507059e+37  ;;  %vm3758_vm3 = vweird.f32 %v13275_v2 }
 0x3cd   :  { %v2478_v30 = vpop.f32.mrf.mxu2  ;;  %v2772_v53 = vpop.f32.mrf.mxu3 }
 0x3ce   :  { %v13296_v10 = vadd.f32 %v13147_v47, %v3311_v54  ;;  %v2656_v50 = vadd.f32 %v2478_v30, %v12190_v1  ;;  %v3069_v0 = vpop.f32.mrf.mxu0  ;;  %v3741_v51 = vmul.f32 %v10060_v60, %v3740_v34  ;;  %v3750_v1 = vor.u32 1.1754944e-38, %v3749_v31  ;;  %v10432_v34 = vld [vmem:[%s18201_s0 + $0x150] sm:$0xff] }
 0x3d0   :  { %v10062_v62 = vpop.eup %10061  ;;  %v9320_v44 = vmul.f32 -1.442695, %v13296_v10  ;;  %v2950_v4 = vadd.f32 %v2772_v53, %v2656_v50  ;;  %v3742_v46 = vadd.f32 %v10060_v60, %v3741_v51 }
 0x3d1   :  { %v10064_v17 = vpop.eup %10063  ;;  %v13301_v41 = vadd.f32 1.0, %v10062_v62  ;;  %9274 = vmatmul.msk.f32.gmra.mxu0 %vm260_vm0, %v10431_v40  ;;  %v3762_v62 = vand.u32 2147483647, %v13275_v2 }
 0x3d2   :  { %10065 = vpow2.f32 %v9320_v44  ;;  %v3244_v54 = vadd.f32 %v3066_v45, %v2950_v4  ;;  %9130 = vmatmul.msk.f32.gmra.mxu2 %vm260_vm0, %v10432_v34  ;;  %9202 = vmatmul.msk.f32.gmra.mxu3 %vm260_vm0, %v10433_v42  ;;  %v3746_v30 = vsel %vm3745_vm15, %v10060_v60, %v3742_v46  ;;  %v3754_v53 = vmul.f32 %v10064_v17, %v13275_v2 }
 0x3d3   :  { %10067 = vrcp.f32 %v13301_v41  ;;  %v3751_v28 = vsel %vm3748_vm1, %v3750_v1, %v3746_v30  ;;  %v3764_v44 = vand.u32 2147483648, %v13275_v2  ;;  %vm3759_vm2 = vweird.f32 %v10064_v17  ;;  %v10436_v2 = vld [vmem:[%s18201_s0 + $0x159] sm:$0xff] }
 0x3d4   :  { %v3312_v45 = vmul.f32 %v13138_v5, %v3244_v54  ;;  %4723 = vrot.lane.b32.xlu1 %v3751_v28, %s10819_s9  ;;  %v3755_v31 = vsub.f32 1.0, %v3754_v53  ;;  %v10434_v28 = vld [vmem:[%s18201_s0 + $0x15a] sm:$0xff]  ;;  %vm3760_vm4 = vmor %vm3758_vm3, %vm3759_vm2  ;;  %vm3763_vm5 = vcmp.eq.f32.partialorder %v3762_v62, 8.507059e+37  ;;  %vm3773_vm7 = vweird.f32 %v13301_v41 }
 0x3d5   :  { %v2481_v50 = vpop.f32.mrf.mxu2  ;;  %v2775_v51 = vpop.f32.mrf.mxu3 }
 0x3d6   :  { %v13322_v4 = vadd.f32 %v13147_v47, %v3312_v45  ;;  %v2657_v60 = vadd.f32 %v2481_v50, %v12203_v13  ;;  %v3072_v46 = vpop.f32.mrf.mxu0  ;;  %v3756_v40 = vmul.f32 %v10064_v17, %v3755_v31  ;;  %v3765_v13 = vor.u32 1.1754944e-38, %v3764_v44  ;;  %v10435_v31 = vld [vmem:[%s18201_s0 + $0x158] sm:$0xff]  ;;  %v13346_v44 = vpop.f32.mrf.mxu1 }
 0x3d7   :  { %18431 = vst [vmem:[#allocation34_spill] sm:$0xff] %v13346_v44 }
 0x3d8   :  { %v10066_v1 = vpop.eup %10065  ;;  %v9321_v54 = vmul.f32 -1.442695, %v13322_v4  ;;  %v2951_v34 = vadd.f32 %v2775_v51, %v2657_v60  ;;  %v3757_v42 = vadd.f32 %v10064_v17, %v3756_v40 }
 0x3d9   :  { %v10068_v30 = vpop.eup %10067  ;;  %v13327_v53 = vadd.f32 1.0, %v10066_v1  ;;  %9275 = vmatmul.msk.f32.gmra.mxu0 %vm260_vm0, %v10434_v28 }
 0x3da   :  { %10069 = vpow2.f32 %v9321_v54  ;;  %v3245_v45 = vadd.f32 %v3069_v0, %v2951_v34  ;;  %9131 = vmatmul.msk.f32.gmra.mxu2 %vm260_vm0, %v10435_v31  ;;  %9203 = vmatmul.msk.f32.gmra.mxu3 %vm260_vm0, %v10436_v2  ;;  %v3761_v50 = vsel %vm3760_vm4, %v10064_v17, %v3757_v42  ;;  %v3769_v51 = vmul.f32 %v10068_v30, %v13301_v41  ;;  %v9378_v0 = vld [vmem:[%s18205_s4 + $0x40] sm:$0xff] }
 0x3db   :  { %10071 = vrcp.f32 %v13327_v53  ;;  %v3766_v62 = vsel %vm3763_vm5, %v3765_v13, %v3761_v50  ;;  %5559 = vmatpush.msra.mxu1 %v9378_v0  ;;  %v3777_v17 = vand.u32 2147483647, %v13301_v41  ;;  %v3779_v34 = vand.u32 2147483648, %v13301_v41  ;;  %v10439_v41 = vld [vmem:[%s18201_s0 + $0x169] sm:$0xff] }
 0x3dc   :  { %v3313_v60 = vmul.f32 %v13138_v5, %v3245_v45  ;;  %4725 = vrot.lane.b32.xlu2 %v3766_v62, %s10819_s9  ;;  %v3770_v40 = vsub.f32 1.0, %v3769_v51  ;;  %vm3774_vm6 = vweird.f32 %v10068_v30  ;;  %vm3788_vm11 = vweird.f32 %v13327_v53 }
 0x3dd   :  { %v2484_v1 = vpop.f32.mrf.mxu2  ;;  %v2778_v54 = vpop.f32.mrf.mxu3  ;;  %vm3775_vm8 = vmor %vm3773_vm7, %vm3774_vm6  ;;  %vm3778_vm9 = vcmp.eq.f32.partialorder %v3777_v17, 8.507059e+37 }
 0x3de   :  { %v13353_v42 = vadd.f32 %v13147_v47, %v3313_v60  ;;  %v2658_v28 = vadd.f32 %v2484_v1, %v12216_v59  ;;  %v3075_v13 = vpop.f32.mrf.mxu0  ;;  %v3771_v31 = vmul.f32 %v10068_v30, %v3770_v40  ;;  %v10437_v60 = vld [vmem:[%s18201_s0 + $0x16a] sm:$0xff]  ;;  %v3780_v59 = vor.u32 1.1754944e-38, %v3779_v34 }
 0x3df   :  { %v10438_v1 = vld [vmem:[%s18201_s0 + $0x168] sm:$0xff] }
 0x3e0   :  { %v10070_v2 = vpop.eup %10069  ;;  %v9322_v45 = vmul.f32 -1.442695, %v13353_v42  ;;  %v2952_v50 = vadd.f32 %v2778_v54, %v2658_v28  ;;  %v3772_v51 = vadd.f32 %v10068_v30, %v3771_v31 }
 0x3e1   :  { %v10072_v62 = vpop.eup %10071  ;;  %v13358_v0 = vadd.f32 1.0, %v10070_v2  ;;  %9276 = vmatmul.msk.f32.gmra.mxu0 %vm260_vm0, %v10437_v60  ;;  %v13378_v60 = vpop.f32.mrf.mxu1 }
 0x3e2   :  { %10073 = vpow2.f32 %v9322_v45  ;;  %v3246_v40 = vadd.f32 %v3072_v46, %v2952_v50  ;;  %9132 = vmatmul.msk.f32.gmra.mxu2 %vm260_vm0, %v10438_v1  ;;  %9204 = vmatmul.msk.f32.gmra.mxu3 %vm260_vm0, %v10439_v41  ;;  %v3776_v54 = vsel %vm3775_vm8, %v10068_v30, %v3772_v51  ;;  %v3784_v28 = vmul.f32 %v10072_v62, %v13327_v53 }
 0x3e3   :  { %10075 = vrcp.f32 %v13358_v0  ;;  %v3781_v17 = vsel %vm3778_vm9, %v3780_v59, %v3776_v54  ;;  %v3792_v45 = vand.u32 2147483647, %v13327_v53  ;;  %v3794_v50 = vand.u32 2147483648, %v13327_v53  ;;  %18432 = vst [vmem:[#allocation36_spill] sm:$0xff] %v13378_v60  ;;  %v10442_v53 = vld [vmem:[%s18201_s0 + $0x171] sm:$0xff] }
 0x3e4   :  { %v3314_v46 = vmul.f32 %v13138_v5, %v3246_v40  ;;  %4727 = vrot.lane.b32.xlu2 %v3781_v17, %s10819_s9  ;;  %v3785_v34 = vsub.f32 1.0, %v3784_v28  ;;  %vm3789_vm10 = vweird.f32 %v10072_v62  ;;  %vm3803_vm15 = vweird.f32 %v13358_v0 }
 0x3e5   :  { %v2487_v31 = vpop.f32.mrf.mxu2  ;;  %v2781_v2 = vpop.f32.mrf.mxu3  ;;  %vm3790_vm12 = vmor %vm3788_vm11, %vm3789_vm10  ;;  %vm3793_vm13 = vcmp.eq.f32.partialorder %v3792_v45, 8.507059e+37 }
 0x3e6   :  { %v13381_v30 = vadd.f32 %v13147_v47, %v3314_v46  ;;  %v2659_v51 = vadd.f32 %v2487_v31, %v12229_v48  ;;  %v3078_v1 = vpop.f32.mrf.mxu0  ;;  %v3786_v59 = vmul.f32 %v10072_v62, %v3785_v34  ;;  %v10440_v46 = vld [vmem:[%s18201_s0 + $0x172] sm:$0xff]  ;;  %v3795_v48 = vor.u32 1.1754944e-38, %v3794_v50 }
 0x3e7   :  { %v10441_v31 = vld [vmem:[%s18201_s0 + $0x170] sm:$0xff] }
 0x3e8   :  { %v10074_v40 = vpop.eup %10073  ;;  %v9323_v41 = vmul.f32 -1.442695, %v13381_v30  ;;  %v2953_v54 = vadd.f32 %v2781_v2, %v2659_v51  ;;  %v3787_v28 = vadd.f32 %v10072_v62, %v3786_v59 }
 0x3e9   :  { %v10076_v17 = vpop.eup %10075  ;;  %v13386_v63 = vadd.f32 1.0, %v10074_v40  ;;  %9277 = vmatmul.msk.f32.gmra.mxu0 %vm260_vm0, %v10440_v46 }
 0x3ea   :  { %10077 = vpow2.f32 %v9323_v41  ;;  %v3247_v34 = vadd.f32 %v3075_v13, %v2953_v54  ;;  %9133 = vmatmul.msk.f32.gmra.mxu2 %vm260_vm0, %v10441_v31  ;;  %9205 = vmatmul.msk.f32.gmra.mxu3 %vm260_vm0, %v10442_v53  ;;  %v3791_v2 = vsel %vm3790_vm12, %v10072_v62, %v3787_v28  ;;  %v3799_v51 = vmul.f32 %v10076_v17, %v13358_v0  ;;  %v13410_v53 = vpop.f32.mrf.mxu1 }
 0x3eb   :  { %10079 = vrcp.f32 %v13386_v63  ;;  %v3796_v45 = vsel %vm3793_vm13, %v3795_v48, %v3791_v2  ;;  %v3807_v41 = vand.u32 2147483647, %v13358_v0  ;;  %v3809_v54 = vand.u32 2147483648, %v13358_v0  ;;  %18433 = vst [vmem:[#allocation50_spill] sm:$0xff] %v13410_v53  ;;  %v10445_v0 = vld [vmem:[%s18201_s0 + $0x181] sm:$0xff] }
 0x3ec   :  { %v3315_v13 = vmul.f32 %v13138_v5, %v3247_v34  ;;  %4729 = vrot.lane.b32.xlu0 %v3796_v45, %s10819_s9  ;;  %v3800_v50 = vsub.f32 1.0, %v3799_v51  ;;  %vm3804_vm14 = vweird.f32 %v10076_v17  ;;  %vm3818_vm4 = vweird.f32 %v13386_v63 }
 0x3ed   :  { %v2490_v59 = vpop.f32.mrf.mxu2  ;;  %v2784_v40 = vpop.f32.mrf.mxu3  ;;  %vm3805_vm1 = vmor %vm3803_vm15, %vm3804_vm14  ;;  %vm3808_vm2 = vcmp.eq.f32.partialorder %v3807_v41, 8.507059e+37 }
 0x3ee   :  { %v13407_v46 = vadd.f32 %v13147_v47, %v3315_v13  ;;  %v2660_v62 = vadd.f32 %v2490_v59, %v12245_v9  ;;  %v3081_v28 = vpop.f32.mrf.mxu0  ;;  %v3801_v31 = vmul.f32 %v10076_v17, %v3800_v50  ;;  %v10443_v13 = vld [vmem:[%s18201_s0 + $0x182] sm:$0xff]  ;;  %v3810_v9 = vor.u32 1.1754944e-38, %v3809_v54 }
 0x3ef   :  { %v10444_v59 = vld [vmem:[%s18201_s0 + $0x180] sm:$0xff] }
 0x3f0   :  { %v10078_v48 = vpop.eup %10077  ;;  %v9324_v34 = vmul.f32 -1.442695, %v13407_v46  ;;  %v2954_v2 = vadd.f32 %v2784_v40, %v2660_v62  ;;  %v3802_v51 = vadd.f32 %v10076_v17, %v3801_v31 }
 0x3f1   :  { %v10080_v45 = vpop.eup %10079  ;;  %v13414_v60 = vadd.f32 1.0, %v10078_v48  ;;  %9278 = vmatmul.msk.f32.gmra.mxu0 %vm260_vm0, %v10443_v13 }
 0x3f2   :  { %10081 = vpow2.f32 %v9324_v34  ;;  %v3248_v50 = vadd.f32 %v3078_v1, %v2954_v2  ;;  %9134 = vmatmul.msk.f32.gmra.mxu2 %vm260_vm0, %v10444_v59  ;;  %9206 = vmatmul.msk.f32.gmra.mxu3 %vm260_vm0, %v10445_v0  ;;  %v3806_v40 = vsel %vm3805_vm1, %v10076_v17, %v3802_v51  ;;  %v3814_v62 = vmul.f32 %v10080_v45, %v13386_v63 }
 0x3f3   :  { %10083 = vrcp.f32 %v13414_v60  ;;  %v3811_v41 = vsel %vm3808_vm2, %v3810_v9, %v3806_v40  ;;  %v3822_v34 = vand.u32 2147483647, %v13386_v63  ;;  %v3824_v2 = vand.u32 2147483648, %v13386_v63  ;;  %v10447_v63 = vld [vmem:[%s18201_s0 + $0x188] sm:$0xff] }
 0x3f4   :  { %v3316_v1 = vmul.f32 %v13138_v5, %v3248_v50  ;;  %4731 = vrot.lane.b32.xlu1 %v3811_v41, %s10819_s9  ;;  %v3815_v54 = vsub.f32 1.0, %v3814_v62  ;;  %vm3819_vm3 = vweird.f32 %v10080_v45  ;;  %vm3833_vm8 = vweird.f32 %v13414_v60 }
 0x3f5   :  { %v2493_v31 = vpop.f32.mrf.mxu2  ;;  %v2787_v48 = vpop.f32.mrf.mxu3  ;;  %vm3820_vm5 = vmor %vm3818_vm4, %vm3819_vm3  ;;  %vm3823_vm6 = vcmp.eq.f32.partialorder %v3822_v34, 8.507059e+37 }
 0x3f6   :  { %v13435_v13 = vadd.f32 %v13147_v47, %v3316_v1  ;;  %v2661_v17 = vadd.f32 %v2493_v31, %v12261_v6  ;;  %v3084_v51 = vpop.f32.mrf.mxu0  ;;  %v3816_v59 = vmul.f32 %v10080_v45, %v3815_v54  ;;  %v10446_v1 = vld [vmem:[%s18201_s0 + $0x18a] sm:$0xff]  ;;  %v3825_v6 = vor.u32 1.1754944e-38, %v3824_v2  ;;  %v13446_v54 = vpop.f32.mrf.mxu1 }
 0x3f7   :  { %18434 = vst [vmem:[#allocation52_spill] sm:$0xff] %v13446_v54 }
 0x3f8   :  { %v10082_v9 = vpop.eup %10081  ;;  %v9325_v50 = vmul.f32 -1.442695, %v13435_v13  ;;  %v2955_v0 = vadd.f32 %v2787_v48, %v2661_v17  ;;  %v3817_v40 = vadd.f32 %v10080_v45, %v3816_v59  ;;  %v10448_v48 = vld [vmem:[%s18201_s0 + $0x189] sm:$0xff] }
 0x3f9   :  { %v10084_v62 = vpop.eup %10083  ;;  %v13440_v41 = vadd.f32 1.0, %v10082_v9  ;;  %9279 = vmatmul.msk.f32.gmra.mxu0 %vm260_vm0, %v10446_v1  ;;  %v3839_v1 = vand.u32 2147483648, %v13414_v60 }
 0x3fa   :  { %10085 = vpow2.f32 %v9325_v50  ;;  %v3249_v31 = vadd.f32 %v3081_v28, %v2955_v0  ;;  %9135 = vmatmul.msk.f32.gmra.mxu2 %vm260_vm0, %v10447_v63  ;;  %9207 = vmatmul.msk.f32.gmra.mxu3 %vm260_vm0, %v10448_v48  ;;  %v3821_v17 = vsel %vm3820_vm5, %v10080_v45, %v3817_v40  ;;  %v3829_v34 = vmul.f32 %v10084_v62, %v13414_v60  ;;  %v61_v48 = vld [vmem:[%s18201_s0 + $0x198] sm:$0xff] }
 0x3fb   :  { %10087 = vrcp.f32 %v13440_v41  ;;  %v3826_v2 = vsel %vm3823_vm6, %v3825_v6, %v3821_v17  ;;  %v3837_v0 = vand.u32 2147483647, %v13414_v60  ;;  %v205_v6 = vld [vmem:[%s18201_s0 + $0x19a] sm:$0xff]  ;;  %vm3834_vm7 = vweird.f32 %v10084_v62 }
 0x3fc   :  { %v3317_v28 = vmul.f32 %v13138_v5, %v3249_v31  ;;  %4733 = vrot.lane.b32.xlu2 %v3826_v2, %s10819_s9  ;;  %v3830_v59 = vsub.f32 1.0, %v3829_v34  ;;  %v133_v17 = vld [vmem:[%s18201_s0 + $0x199] sm:$0xff]  ;;  %vm3835_vm9 = vmor %vm3833_vm8, %vm3834_vm7  ;;  %vm3848_vm12 = vweird.f32 %v13440_v41 }
 0x3fd   :  { %v2496_v9 = vpop.f32.mrf.mxu2  ;;  %v2790_v50 = vpop.f32.mrf.mxu3  ;;  %vm3838_vm10 = vcmp.eq.f32.partialorder %v3837_v0, 8.507059e+37 }
 0x3fe   :  { %v13463_v63 = vadd.f32 %v13147_v47, %v3317_v28  ;;  %v2662_v45 = vadd.f32 %v2496_v9, %v12281_v7  ;;  %v3087_v40 = vpop.f32.mrf.mxu0  ;;  %v3831_v31 = vmul.f32 %v10084_v62, %v3830_v59  ;;  %v3840_v59 = vor.u32 1.1754944e-38, %v3839_v1 }
 0x400   :  { %v10086_v34 = vpop.eup %10085  ;;  %v9326_v2 = vmul.f32 -1.442695, %v13463_v63  ;;  %v2956_v28 = vadd.f32 %v2790_v50, %v2662_v45  ;;  %v3832_v7 = vadd.f32 %v10084_v62, %v3831_v31  ;;  %v13484_v45 = vpop.f32.mrf.mxu1 }
 0x401   :  { %v10088_v9 = vpop.eup %10087  ;;  %v13477_v54 = vadd.f32 1.0, %v10086_v34  ;;  %9280 = vmatmul.msk.f32.gmra.mxu0 %vm260_vm0, %v205_v6  ;;  %18435 = vst [vmem:[#allocation39_spill] sm:$0xff] %v13484_v45 }
 0x402   :  { %10089 = vpow2.f32 %v9326_v2  ;;  %v3250_v53 = vadd.f32 %v3084_v51, %v2956_v28  ;;  %9136 = vmatmul.msk.f32.gmra.mxu2 %vm260_vm0, %v61_v48  ;;  %9208 = vmatmul.msk.f32.gmra.mxu3 %vm260_vm0, %v133_v17  ;;  %v3836_v44 = vsel %vm3835_vm9, %v10084_v62, %v3832_v7  ;;  %v3844_v50 = vmul.f32 %v10088_v9, %v13440_v41  ;;  %v62_v28 = vld [vmem:[%s18201_s0 + $0x1a0] sm:$0xff] }
 0x403   :  { %10091 = vrcp.f32 %v13477_v54  ;;  %v3841_v60 = vsel %vm3838_vm10, %v3840_v59, %v3836_v44  ;;  %v3852_v51 = vand.u32 2147483647, %v13440_v41  ;;  %v3854_v48 = vand.u32 2147483648, %v13440_v41  ;;  %v206_v44 = vld [vmem:[%s18201_s0 + $0x1a2] sm:$0xff] }
 0x404   :  { %v3318_v31 = vmul.f32 %v13138_v5, %v3250_v53  ;;  %4735 = vrot.lane.b32.xlu0 %v3841_v60, %s10819_s9  ;;  %v3845_v0 = vsub.f32 1.0, %v3844_v50  ;;  %vm3849_vm11 = vweird.f32 %v10088_v9  ;;  %v10820_v2 = vmov 0.0  }
 0x405   :  { %v2499_v1 = vpop.f32.mrf.mxu2  ;;  %v2793_v6 = vpop.f32.mrf.mxu3  ;;  %4974 = vst.msk [vmem:[#allocation2 + $0x8] sm:$0xff] %vm260_vm0, %v10820_v2  ;;  %vm3850_vm13 = vmor %vm3848_vm12, %vm3849_vm11  ;;  %vm3853_vm14 = vcmp.eq.f32.partialorder %v3852_v51, 8.507059e+37  ;;  %vm3863_vm1 = vweird.f32 %v13477_v54 }
 0x406   :  { %v13491_v62 = vadd.f32 %v13147_v47, %v3318_v31  ;;  %v2663_v17 = vadd.f32 %v2499_v1, %v12301_v24  ;;  %v13494_v34 = vpop.f32.mrf.mxu0  ;;  %v3846_v53 = vmul.f32 %v10088_v9, %v3845_v0  ;;  %v134_v24 = vld [vmem:[%s18201_s0 + $0x1a1] sm:$0xff]  ;;  %4973 = vst.msk [vmem:[#allocation2] sm:$0xff] %vm260_vm0, %v10820_v2  ;;  %v3855_v1 = vor.u32 1.1754944e-38, %v3854_v48 }
 0x407   :  { %4975 = vst.msk [vmem:[#allocation2 + $0x10] sm:$0xff] %vm260_vm0, %v10820_v2 }
 0x408   :  { %v10090_v7 = vpop.eup %10089  ;;  %v9327_v59 = vmul.f32 -1.442695, %v13491_v62  ;;  %v2957_v50 = vadd.f32 %v2793_v6, %v2663_v17  ;;  %v3847_v60 = vadd.f32 %v10088_v9, %v3846_v53  ;;  %4976 = vst.msk [vmem:[#allocation2 + $0x18] sm:$0xff] %vm260_vm0, %v10820_v2 }
 0x409   :  { %v10092_v31 = vpop.eup %10091  ;;  %v13513_v0 = vadd.f32 1.0, %v10090_v7  ;;  %9281 = vmatmul.msk.f32.gmra.mxu0 %vm260_vm0, %v206_v44  ;;  %4977 = vst.msk [vmem:[#allocation2 + $0x240] sm:$0xff] %vm260_vm0, %v10820_v2  ;;  %v13533_v7 = vpop.f32.mrf.mxu1 }
 0x40a   :  { %10093 = vpow2.f32 %v9327_v59  ;;  %v3251_v6 = vadd.f32 %v3087_v40, %v2957_v50  ;;  %9137 = vmatmul.msk.f32.gmra.mxu2 %vm260_vm0, %v62_v28  ;;  %9209 = vmatmul.msk.f32.gmra.mxu3 %vm260_vm0, %v134_v24  ;;  %v3851_v41 = vsel %vm3850_vm13, %v10088_v9, %v3847_v60  ;;  %v3859_v17 = vmul.f32 %v10092_v31, %v13477_v54 }
 0x40b   :  { %10095 = vrcp.f32 %v13513_v0  ;;  %v3856_v53 = vsel %vm3853_vm14, %v3855_v1, %v3851_v41  ;;  %4978 = vst.msk [vmem:[#allocation2 + $0x248] sm:$0xff] %vm260_vm0, %v10820_v2  ;;  %v3867_v9 = vand.u32 2147483647, %v13477_v54  ;;  %v3869_v28 = vand.u32 2147483648, %v13477_v54 }
 0x40c   :  { %v3319_v51 = vmul.f32 %v13138_v5, %v3251_v6  ;;  %4737 = vrot.lane.b32.xlu1 %v3856_v53, %s10819_s9  ;;  %v3860_v48 = vsub.f32 1.0, %v3859_v17  ;;  %v5191_v24 = vld [vmem:[#allocation2 + $0x8] sm:$0xff]  ;;  %4979 = vst.msk [vmem:[#allocation2 + $0x250] sm:$0xff] %vm260_vm0, %v10820_v2  ;;  %vm3864_vm15 = vweird.f32 %v10092_v31  ;;  %vm3878_vm5 = vweird.f32 %v13513_v0 }
 0x40d   :  { %v2502_v40 = vpop.f32.mrf.mxu2  ;;  %v2796_v44 = vpop.f32.mrf.mxu3  ;;  %18436 = vst [vmem:[#allocation41_spill] sm:$0xff] %v13533_v7  ;;  %9386 = vmatmul.msk.f32.vlgmr.msra.gmra.mxu1 %vm260_vm0, %v5191_v24  ;;  %vm3865_vm2 = vmor %vm3863_vm1, %vm3864_vm15  ;;  %vm3868_vm3 = vcmp.eq.f32.partialorder %v3867_v9, 8.507059e+37  ;;  %v10451_v24 = vld [vmem:[%s18201_s0 + $0x1e1] sm:$0xff] }
 0x40e   :  { %v13536_v59 = vadd.f32 %v13147_v47, %v3319_v51  ;;  %v2664_v50 = vadd.f32 %v2502_v40, %v12321_v61  ;;  %v3861_v60 = vmul.f32 %v10092_v31, %v3860_v48  ;;  %4980 = vst.msk [vmem:[#allocation2 + $0x258] sm:$0xff] %vm260_vm0, %v10820_v2  ;;  %v3093_v1 = vpop.f32.mrf.mxu0  ;;  %v10449_v48 = vld [vmem:[%s18201_s0 + $0x1e2] sm:$0xff]  ;;  %v3870_v40 = vor.u32 1.1754944e-38, %v3869_v28 }
 0x40f   :  { %4982 = vst.msk [vmem:[#allocation2 + $0x220] sm:$0xff] %vm260_vm0, %v10820_v2 }
 0x410   :  { %v10094_v6 = vpop.eup %10093  ;;  %v9328_v41 = vmul.f32 -1.442695, %v13536_v59  ;;  %v2958_v17 = vadd.f32 %v2796_v44, %v2664_v50  ;;  %v3862_v53 = vadd.f32 %v10092_v31, %v3861_v60  ;;  %4983 = vst.msk [vmem:[#allocation2 + $0x228] sm:$0xff] %vm260_vm0, %v10820_v2  ;;  %v10450_v44 = vld [vmem:[%s18201_s0 + $0x1e0] sm:$0xff]  ;;  %v9521_v60 = vld [vmem:[%s18205_s4 + $0xb8] sm:$0xff] }
 0x411   :  { %v13548_v61 = vpop.eup %10095  ;;  %v13550_v51 = vadd.f32 1.0, %v10094_v6  ;;  %9282 = vmatmul.msk.f32.gmra.mxu0 %vm260_vm0, %v10449_v48  ;;  %4984 = vst.msk [vmem:[#allocation2 + $0x230] sm:$0xff] %vm260_vm0, %v10820_v2  ;;  %v3884_v48 = vand.u32 2147483648, %v13513_v0  ;;  %6363 = vmatpush.msrb.mxu3 %v9521_v60 }
 0x412   :  { %10097 = vpow2.f32 %v9328_v41  ;;  %v3252_v54 = vadd.f32 %v13494_v34, %v2958_v17  ;;  %9138 = vmatmul.msk.f32.gmra.mxu2 %vm260_vm0, %v10450_v44  ;;  %9210 = vmatmul.msk.f32.gmra.mxu3 %vm260_vm0, %v10451_v24  ;;  %v3866_v9 = vsel %vm3865_vm2, %v10092_v31, %v3862_v53  ;;  %v3874_v28 = vmul.f32 %v13548_v61, %v13513_v0  ;;  %v5342_v34 = vld [vmem:[%s18205_s4 + $0x38] sm:$0xff] }
 0x413   :  { %10099 = vrcp.f32 %v13550_v51  ;;  %v3871_v50 = vsel %vm3868_vm3, %v3870_v40, %v3866_v9  ;;  %4985 = vst.msk [vmem:[#allocation2 + $0x238] sm:$0xff] %vm260_vm0, %v10820_v2  ;;  %5953 = vmatpush.msrb.mxu2 %v5342_v34  ;;  %v3882_v53 = vand.u32 2147483647, %v13513_v0  ;;  %vm3879_vm4 = vweird.f32 %v13548_v61  ;;  %v13597_v9 = vpop.f32.mrf.mxu1 }
 0x414   :  { %v3320_v6 = vmul.f32 %v13138_v5, %v3252_v54  ;;  %4739 = vrot.lane.b32.xlu2 %v3871_v50, %s10819_s9  ;;  %v3875_v31 = vsub.f32 1.0, %v3874_v28  ;;  %4986 = vst.msk [vmem:[#allocation2 + $0x460] sm:$0xff] %vm260_vm0, %v10820_v2  ;;  %vm3880_vm6 = vmor %vm3878_vm5, %vm3879_vm4  ;;  %vm3893_vm9 = vweird.f32 %v13550_v51 }
 0x415   :  { %v2505_v41 = vpop.f32.mrf.mxu2  ;;  %v2799_v17 = vpop.f32.mrf.mxu3  ;;  %4987 = vst.msk [vmem:[#allocation2 + $0x468] sm:$0xff] %vm260_vm0, %v10820_v2  ;;  %vm3883_vm7 = vcmp.eq.f32.partialorder %v3882_v53, 8.507059e+37 }
 0x416   :  { %v13588_v40 = vadd.f32 %v13147_v47, %v3320_v6  ;;  %v2665_v54 = vadd.f32 %v2505_v41, %v12341_v58  ;;  %v3876_v44 = vmul.f32 %v13548_v61, %v3875_v31  ;;  %4988 = vst.msk [vmem:[#allocation2 + $0x470] sm:$0xff] %vm260_vm0, %v10820_v2  ;;  %v3096_v6 = vpop.f32.mrf.mxu0  ;;  %v10452_v31 = vld [vmem:[%s18201_s0 + $0x1ea] sm:$0xff]  ;;  %v3885_v41 = vor.u32 1.1754944e-38, %v3884_v48 }
 0x417   :  { %4989 = vst.msk [vmem:[#allocation2 + $0x478] sm:$0xff] %vm260_vm0, %v10820_v2 }
 0x418   :  { %v10098_v24 = vpop.eup %10097  ;;  %18437 = vst [vmem:[#allocation44_spill] sm:$0xff] %v13597_v9  ;;  %v9329_v28 = vmul.f32 -1.442695, %v13588_v40  ;;  %v2959_v50 = vadd.f32 %v2799_v17, %v2665_v54  ;;  %v3877_v34 = vadd.f32 %v13548_v61, %v3876_v44  ;;  %v10453_v17 = vld [vmem:[%s18201_s0 + $0x1e8] sm:$0xff]  ;;  %v10467_v9 = vld [vmem:[%s18201_s0 + $0x218] sm:$0xff] }
 0x419   :  { %4991 = vst.msk [vmem:[#allocation2 + $0x20] sm:$0xff] %vm260_vm0, %v10820_v2  ;;  %v10100_v58 = vpop.eup %10099  ;;  %v13604_v60 = vadd.f32 1.0, %v10098_v24  ;;  %9283 = vmatmul.msk.f32.gmra.mxu0 %vm260_vm0, %v10452_v31  ;;  %v10454_v54 = vld [vmem:[%s18201_s0 + $0x1e9] sm:$0xff]  ;;  %v9593_v24 = vld [vmem:[%s18205_s4 + $0xf8] sm:$0xff] }
 0x41a   :  { %4992 = vst.msk [vmem:[#allocation2 + $0x40] sm:$0xff] %vm260_vm0, %v10820_v2  ;;  %v3253_v0 = vadd.f32 %v3093_v1, %v2959_v50  ;;  %9139 = vmatmul.msk.f32.gmra.mxu2 %vm260_vm0, %v10453_v17  ;;  %9211 = vmatmul.msk.f32.gmra.mxu3 %vm260_vm0, %v10454_v54  ;;  %v3881_v44 = vsel %vm3880_vm6, %v13548_v61, %v3877_v34  ;;  %v3897_v34 = vand.u32 2147483647, %v13550_v51  ;;  %vm3894_vm8 = vweird.f32 %v10100_v58 }
 0x41b   :  { %v3889_v48 = vmul.f32 %v10100_v58, %v13550_v51  ;;  %10101 = vrcp.f32 %v13604_v60  ;;  %v3886_v1 = vsel %vm3883_vm7, %v3885_v41, %v3881_v44  ;;  %4993 = vst.msk [vmem:[#allocation2 + $0x60] sm:$0xff] %vm260_vm0, %v10820_v2  ;;  %6657 = vmatpush.msrb.mxu0 %v9593_v24  ;;  %v3899_v41 = vand.u32 2147483648, %v13550_v51  ;;  %vm13655_vm10 = vmor %vm3893_vm9, %vm3894_vm8 }
 0x41c   :  { %10103 = vpow2.f32 %v9329_v28  ;;  %v3321_v50 = vmul.f32 %v13138_v5, %v3253_v0  ;;  %4741 = vrot.lane.b32.xlu0 %v3886_v1, %s10819_s9  ;;  %4994 = vst.msk [vmem:[#allocation2 + $0x80] sm:$0xff] %vm260_vm0, %v10820_v2  ;;  %v13661_v1 = vpop.f32.mrf.mxu1  ;;  %vm3898_vm11 = vcmp.eq.f32.partialorder %v3897_v34, 8.507059e+37  ;;  %vm3908_vm13 = vweird.f32 %v13604_v60 }
 0x41d   :  { %v3890_v31 = vsub.f32 1.0, %v3889_v48  ;;  %v2508_v61 = vpop.f32.mrf.mxu2  ;;  %v2802_v53 = vpop.f32.mrf.mxu3  ;;  %4995 = vst.msk [vmem:[#allocation2 + $0xa0] sm:$0xff] %vm260_vm0, %v10820_v2  ;;  %v3900_v48 = vor.u32 1.1754944e-38, %v3899_v41 }
 0x41e   :  { %v13639_v28 = vadd.f32 %v13147_v47, %v3321_v50  ;;  %v2666_v5 = vadd.f32 %v2508_v61, %v12358_v39  ;;  %4996 = vst.msk [vmem:[#allocation2 + $0xc0] sm:$0xff] %vm260_vm0, %v10820_v2  ;;  %v10455_v39 = vld [vmem:[%s18201_s0 + $0x1fa] sm:$0xff] }
 0x41f   :  { %v3891_v0 = vmul.f32 %v10100_v58, %v3890_v31  ;;  %4997 = vst.msk [vmem:[#allocation2 + $0xe0] sm:$0xff] %vm260_vm0, %v10820_v2  ;;  %v10456_v31 = vld [vmem:[%s18201_s0 + $0x1f8] sm:$0xff]  ;;  %v13696_v47 = vld [vmem:[%s18204_s3] ss:$0 sm:$0xff] }
 0x420   :  { %v2960_v17 = vadd.f32 %v2802_v53, %v2666_v5  ;;  %4998 = vst.msk [vmem:[#allocation2 + $0x100] sm:$0xff] %vm260_vm0, %v10820_v2  ;;  %v9330_v24 = vmul.f32 -1.442695, %v13639_v28  ;;  %v10457_v61 = vld [vmem:[%s18201_s0 + $0x1f9] sm:$0xff] }
 0x421   :  { %v3892_v54 = vadd.f32 %v10100_v58, %v3891_v0  ;;  %v13649_v44 = vpop.eup %10101  ;;  %9284 = vmatmul.msk.f32.gmra.mxu0 %vm260_vm0, %v10455_v39  ;;  %4999 = vst.msk [vmem:[#allocation2 + $0x120] sm:$0xff] %vm260_vm0, %v10820_v2  ;;  %v13683_v0 = vld [vmem:[%s18203_s2] ss:$0 sm:$0xff] }
 0x422   :  { %v10104_v51 = vpop.eup %10103  ;;  %18440 = vst [vmem:[#allocation46_spill] sm:$0xff] %v13661_v1  ;;  %v3254_v50 = vadd.f32 %v3096_v6, %v2960_v17  ;;  %9140 = vmatmul.msk.f32.gmra.mxu2 %vm260_vm0, %v10456_v31  ;;  %9212 = vmatmul.msk.f32.gmra.mxu3 %vm260_vm0, %v10457_v61  ;;  %v3099_v6 = vpop.f32.mrf.mxu0  ;;  %v3904_v5 = vmul.f32 %v13649_v44, %v13604_v60  ;;  %10105 = vpow2.f32 %v9330_v24  ;;  %vm3909_vm12 = vweird.f32 %v13649_v44 }
 0x423   :  { %v3896_v53 = vsel %vm13655_vm10, %v10100_v58, %v3892_v54  ;;  %5000 = vst.msk [vmem:[#allocation2 + $0x140] sm:$0xff] %vm260_vm0, %v10820_v2  ;;  %v13689_v58 = vadd.f32 1.0, %v10104_v51  ;;  %v3914_v51 = vand.u32 2147483648, %v13604_v60  ;;  %v3912_v31 = vand.u32 2147483647, %v13604_v60  ;;  %vm3910_vm14 = vmor %vm3908_vm13, %vm3909_vm12 }
 0x424   :  { %v3901_v41 = vsel %vm3898_vm11, %v3900_v48, %v3896_v53  ;;  %5001 = vst.msk [vmem:[#allocation2 + $0x160] sm:$0xff] %vm260_vm0, %v10820_v2  ;;  %v3322_v17 = vmul.f32 %v13683_v0, %v3254_v50  ;;  %v3905_v39 = vsub.f32 1.0, %v3904_v5  ;;  %v10460_v53 = vld [vmem:[%s18201_s0 + $0x202] sm:$0xff] }
 0x425   :  { %4743 = vrot.lane.b32.xlu1 %v3901_v41, %s10819_s9  ;;  %5002 = vst.msk [vmem:[#allocation2 + $0x180] sm:$0xff] %vm260_vm0, %v10820_v2  ;;  %v2511_v34 = vpop.f32.mrf.mxu2  ;;  %v2805_v54 = vpop.f32.mrf.mxu3  ;;  %10107 = vrcp.f32 %v13689_v58  ;;  %v3915_v60 = vor.u32 1.1754944e-38, %v3914_v51  ;;  %vm3913_vm15 = vcmp.eq.f32.partialorder %v3912_v31, 8.507059e+37  ;;  %vm3923_vm2 = vweird.f32 %v13689_v58 }
 0x426   :  { %5003 = vst.msk [vmem:[#allocation2 + $0x1a0] sm:$0xff] %vm260_vm0, %v10820_v2  ;;  %v13699_v48 = vadd.f32 %v13696_v47, %v3322_v17  ;;  %v2667_v50 = vadd.f32 %v2511_v34, %v12375_v19  ;;  %v3906_v24 = vmul.f32 %v13649_v44, %v3905_v39  ;;  %v10461_v17 = vld [vmem:[%s18201_s0 + $0x200] sm:$0xff]  ;;  %v13737_v39 = vpop.f32.mrf.mxu1 }
 0x427   :  { %5004 = vst.msk [vmem:[#allocation2 + $0x1c0] sm:$0xff] %vm260_vm0, %v10820_v2  ;;  %v10462_v34 = vld [vmem:[%s18201_s0 + $0x201] sm:$0xff] }
 0x428   :  { %5005 = vst.msk [vmem:[#allocation2 + $0x1e0] sm:$0xff] %vm260_vm0, %v10820_v2  ;;  %v2961_v61 = vadd.f32 %v2805_v54, %v2667_v50  ;;  %v9331_v19 = vmul.f32 -1.442695, %v13699_v48  ;;  %v3907_v41 = vadd.f32 %v13649_v44, %v3906_v24  ;;  %v10106_v54 = vpop.eup %10105 }
 0x429   :  { %5006 = vst.msk [vmem:[#allocation2 + $0x200] sm:$0xff] %vm260_vm0, %v10820_v2  ;;  %9285 = vmatmul.msk.f32.gmra.mxu0 %vm260_vm0, %v10460_v53 }
 0x42a   :  { %5007 = vst.msk [vmem:[#allocation2 + $0x260] sm:$0xff] %vm260_vm0, %v10820_v2  ;;  %v3255_v5 = vadd.f32 %v3099_v6, %v2961_v61  ;;  %9141 = vmatmul.msk.f32.gmra.mxu2 %vm260_vm0, %v10461_v17  ;;  %9213 = vmatmul.msk.f32.gmra.mxu3 %vm260_vm0, %v10462_v34  ;;  %v3911_v6 = vsel %vm3910_vm14, %v13649_v44, %v3907_v41  ;;  %10109 = vpow2.f32 %v9331_v19  ;;  %v3102_v61 = vpop.f32.mrf.mxu0  ;;  %v13751_v41 = vadd.f32 1.0, %v10106_v54 }
 0x42b   :  { %5008 = vst.msk [vmem:[#allocation2 + $0x280] sm:$0xff] %vm260_vm0, %v10820_v2  ;;  %v3916_v24 = vsel %vm3913_vm15, %v3915_v60, %v3911_v6  ;;  %v10108_v53 = vpop.eup %10107  ;;  %v10464_v60 = vld [vmem:[%s18201_s0 + $0x210] sm:$0xff] }
 0x42c   :  { %5009 = vst.msk [vmem:[#allocation2 + $0x2a0] sm:$0xff] %vm260_vm0, %v10820_v2  ;;  %v3323_v50 = vmul.f32 %v13683_v0, %v3255_v5  ;;  %4745 = vrot.lane.b32.xlu2 %v3916_v24, %s10819_s9  ;;  %v10465_v6 = vld [vmem:[%s18201_s0 + $0x211] sm:$0xff]  ;;  %v3919_v54 = vmul.f32 %v10108_v53, %v13689_v58  ;;  %10111 = vrcp.f32 %v13751_v41  ;;  %vm3924_vm1 = vweird.f32 %v10108_v53 }
 0x42d   :  { %18441 = vst [vmem:[#allocation49_spill] sm:$0xff] %v13737_v39  ;;  %v2514_v51 = vpop.f32.mrf.mxu2  ;;  %v2808_v19 = vpop.f32.mrf.mxu3  ;;  %vm13807_vm3 = vmor %vm3923_vm2, %vm3924_vm1  ;;  %vm3938_vm6 = vweird.f32 %v13751_v41 }
 0x42e   :  { %5010 = vst.msk [vmem:[#allocation2 + $0x2c0] sm:$0xff] %vm260_vm0, %v10820_v2  ;;  %v13746_v44 = vadd.f32 %v13696_v47, %v3323_v50  ;;  %v2668_v31 = vadd.f32 %v2514_v51, %v12395_v27  ;;  %v10463_v27 = vld [vmem:[%s18201_s0 + $0x212] sm:$0xff]  ;;  %v3927_v51 = vand.u32 2147483647, %v13689_v58 }
 0x42f   :  { %5011 = vst.msk [vmem:[#allocation2 + $0x2e0] sm:$0xff] %vm260_vm0, %v10820_v2 }
 0x430   :  { %5012 = vst.msk [vmem:[#allocation2 + $0x300] sm:$0xff] %vm260_vm0, %v10820_v2  ;;  %v9332_v5 = vmul.f32 -1.442695, %v13746_v44  ;;  %v2962_v17 = vadd.f32 %v2808_v19, %v2668_v31  ;;  %v10110_v50 = vpop.eup %10109  ;;  %v3929_v31 = vand.u32 2147483648, %v13689_v58  ;;  %v13785_v19 = vpop.f32.mrf.mxu1  ;;  %vm3928_vm4 = vcmp.eq.f32.partialorder %v3927_v51, 8.507059e+37 }
 0x431   :  { %5013 = vst.msk [vmem:[#allocation2 + $0x320] sm:$0xff] %vm260_vm0, %v10820_v2  ;;  %9286 = vmatmul.msk.f32.gmra.mxu0 %vm260_vm0, %v10463_v27 }
 0x432   :  { %5014 = vst.msk [vmem:[#allocation2 + $0x340] sm:$0xff] %vm260_vm0, %v10820_v2  ;;  %v3256_v34 = vadd.f32 %v3102_v61, %v2962_v17  ;;  %9142 = vmatmul.msk.f32.gmra.mxu2 %vm260_vm0, %v10464_v60  ;;  %9214 = vmatmul.msk.f32.gmra.mxu3 %vm260_vm0, %v10465_v6  ;;  %10113 = vpow2.f32 %v9332_v5  ;;  %v3920_v61 = vsub.f32 1.0, %v3919_v54  ;;  %v13787_v17 = vadd.f32 1.0, %v10110_v50  ;;  %v9665_v60 = vld [vmem:[%s18205_s4 + $0x138] sm:$0xff]  ;;  %v5192_v6 = vld [vmem:[#allocation2 + $0x10] sm:$0xff]  ;;  %v13802_v50 = vpop.eup %10111 }
 0x433   :  { %5015 = vst.msk [vmem:[#allocation2 + $0x360] sm:$0xff] %vm260_vm0, %v10820_v2  ;;  %6951 = vmatpush.msrb.mxu1 %v9665_v60  ;;  %vm3939_vm5 = vweird.f32 %v13802_v50 }
 0x434   :  { %5016 = vst.msk [vmem:[#allocation2 + $0x380] sm:$0xff] %vm260_vm0, %v10820_v2  ;;  %v3324_v24 = vmul.f32 %v13683_v0, %v3256_v34  ;;  %v3921_v27 = vmul.f32 %v10108_v53, %v3920_v61  ;;  %v3105_v34 = vpop.f32.mrf.mxu0  ;;  %10115 = vrcp.f32 %v13787_v17  ;;  %9387 = vmatmul.msk.f32.gmra.mxu1 %vm260_vm0, %v5192_v6  ;;  %v10468_v6 = vld [vmem:[%s18201_s0 + $0x219] sm:$0xff]  ;;  %vm3940_vm7 = vmor %vm3938_vm6, %vm3939_vm5  ;;  %vm3953_vm10 = vweird.f32 %v13787_v17 }
 0x435   :  { %5017 = vst.msk [vmem:[#allocation2 + $0x3a0] sm:$0xff] %vm260_vm0, %v10820_v2  ;;  %v2517_v39 = vpop.f32.mrf.mxu2  ;;  %v2811_v1 = vpop.f32.mrf.mxu3 }
 0x436   :  { %5018 = vst.msk [vmem:[#allocation2 + $0x3c0] sm:$0xff] %vm260_vm0, %v10820_v2  ;;  %v13792_v5 = vadd.f32 %v13696_v47, %v3324_v24  ;;  %v3922_v54 = vadd.f32 %v10108_v53, %v3921_v27  ;;  %v10466_v27 = vld [vmem:[%s18201_s0 + $0x21a] sm:$0xff] }
 0x437   :  { %5019 = vst.msk [vmem:[#allocation2 + $0x3e0] sm:$0xff] %vm260_vm0, %v10820_v2 }
 0x438   :  { %18442 = vst [vmem:[#allocation51_spill] sm:$0xff] %v13785_v19  ;;  %v9333_v24 = vmul.f32 -1.442695, %v13792_v5  ;;  %v3930_v19 = vor.u32 1.1754944e-38, %v3929_v31  ;;  %v10114_v58 = vpop.eup %10113  ;;  %v3926_v60 = vsel %vm13807_vm3, %v10108_v53, %v3922_v54  ;;  %v2669_v31 = vadd.f32 %v2517_v39, %v12415_v55  ;;  %v13848_v61 = vpop.f32.mrf.mxu1 }
 0x439   :  { %5020 = vst.msk [vmem:[#allocation2 + $0x400] sm:$0xff] %vm260_vm0, %v10820_v2  ;;  %9287 = vmatmul.msk.f32.gmra.mxu0 %vm260_vm0, %v10466_v27  ;;  %v3934_v39 = vmul.f32 %v13802_v50, %v13751_v41 }
 0x43a   :  { %5021 = vst.msk [vmem:[#allocation2 + $0x420] sm:$0xff] %vm260_vm0, %v10820_v2  ;;  %9143 = vmatmul.msk.f32.gmra.mxu2 %vm260_vm0, %v10467_v9  ;;  %v3931_v27 = vsel %vm3928_vm4, %v3930_v19, %v3926_v60  ;;  %9215 = vmatmul.msk.f32.gmra.mxu3 %vm260_vm0, %v10468_v6  ;;  %v2963_v55 = vadd.f32 %v2811_v1, %v2669_v31  ;;  %v13837_v9 = vadd.f32 1.0, %v10114_v58  ;;  %10117 = vpow2.f32 %v9333_v24  ;;  %v13846_v54 = vpop.eup %10115 }
 0x43b   :  { %5022 = vst.msk [vmem:[#allocation2 + $0x440] sm:$0xff] %vm260_vm0, %v10820_v2  ;;  %4747 = vrot.lane.b32.xlu0 %v3931_v27, %s10819_s9  ;;  %v3935_v51 = vsub.f32 1.0, %v3934_v39  ;;  %v3944_v1 = vand.u32 2147483648, %v13751_v41  ;;  %v10469_v27 = vld [vmem:[%s18201_s0 + $0x22a] sm:$0xff]  ;;  %vm3954_vm9 = vweird.f32 %v13846_v54 }
 0x43c   :  { %5023 = vst.msk [vmem:[#allocation2 + $0x38] sm:$0xff] %vm260_vm0, %v10820_v2  ;;  %v3257_v53 = vadd.f32 %v3105_v34, %v2963_v55  ;;  %v3108_v19 = vpop.f32.mrf.mxu0  ;;  %v3942_v34 = vand.u32 2147483647, %v13751_v41  ;;  %10119 = vrcp.f32 %v13837_v9  ;;  %v10471_v41 = vld [vmem:[%s18201_s0 + $0x229] sm:$0xff]  ;;  %vm3955_vm11 = vmor %vm3953_vm10, %vm3954_vm9  ;;  %vm3968_vm14 = vweird.f32 %v13837_v9 }
 0x43d   :  { %5024 = vst.msk [vmem:[#allocation2 + $0x58] sm:$0xff] %vm260_vm0, %v10820_v2  ;;  %v3936_v58 = vmul.f32 %v13802_v50, %v3935_v51  ;;  %v2520_v60 = vpop.f32.mrf.mxu2  ;;  %v2814_v31 = vpop.f32.mrf.mxu3 }
 0x43e   :  { %5025 = vst.msk [vmem:[#allocation2 + $0x78] sm:$0xff] %vm260_vm0, %v10820_v2  ;;  %v3325_v24 = vmul.f32 %v13683_v0, %v3257_v53  ;;  %v2670_v39 = vadd.f32 %v2520_v60, %v12435_v32  ;;  %v10470_v53 = vld [vmem:[%s18201_s0 + $0x228] sm:$0xff]  ;;  %v3949_v32 = vmul.f32 %v13846_v54, %v13787_v17  ;;  %vm3943_vm8 = vcmp.eq.f32.partialorder %v3942_v34, 8.507059e+37 }
 0x43f   :  { %5026 = vst.msk [vmem:[#allocation2 + $0x98] sm:$0xff] %vm260_vm0, %v10820_v2  ;;  %v3937_v55 = vadd.f32 %v13802_v50, %v3936_v58 }
 0x440   :  { %5027 = vst.msk [vmem:[#allocation2 + $0xb8] sm:$0xff] %vm260_vm0, %v10820_v2  ;;  %v13866_v6 = vadd.f32 %v13696_v47, %v3325_v24  ;;  %v10118_v51 = vpop.eup %10117  ;;  %v3945_v24 = vor.u32 1.1754944e-38, %v3944_v1 }
 0x441   :  { %5028 = vst.msk [vmem:[#allocation2 + $0xd8] sm:$0xff] %vm260_vm0, %v10820_v2  ;;  %9288 = vmatmul.msk.f32.gmra.mxu0 %vm260_vm0, %v10469_v27  ;;  %v3941_v60 = vsel %vm3940_vm7, %v13802_v50, %v3937_v55  ;;  %v2964_v27 = vadd.f32 %v2814_v31, %v2670_v39  ;;  %v3957_v31 = vand.u32 2147483647, %v13787_v17  ;;  %v13906_v55 = vpop.permute.xlu2 %4725 }
 0x442   :  { %5029 = vst.msk [vmem:[#allocation2 + $0xf8] sm:$0xff] %vm260_vm0, %v10820_v2  ;;  %9144 = vmatmul.msk.f32.gmra.mxu2 %vm260_vm0, %v10470_v53  ;;  %9216 = vmatmul.msk.f32.gmra.mxu3 %vm260_vm0, %v10471_v41  ;;  %v9334_v58 = vmul.f32 -1.442695, %v13866_v6  ;;  %v3946_v1 = vsel %vm3943_vm8, %v3945_v24, %v3941_v60  ;;  %v3950_v53 = vsub.f32 1.0, %v3949_v32  ;;  %v13894_v41 = vadd.f32 1.0, %v10118_v51  ;;  %v13897_v45 = vpop.eup %10119  ;;  %v13917_v60 = vpop.f32.mrf.mxu1 }
 0x443   :  { %18445 = vst [vmem:[#allocation54_spill] sm:$0xff] %v13848_v61  ;;  %v3959_v61 = vand.u32 2147483648, %v13787_v17  ;;  %4749 = vrot.lane.b32.xlu1 %v3946_v1, %s10819_s9  ;;  %v3258_v7 = vadd.f32 %v3108_v19, %v2964_v27  ;;  %v10473_v27 = vld [vmem:[%s18201_s0 + $0x230] sm:$0xff]  ;;  %v3964_v1 = vmul.f32 %v13897_v45, %v13837_v9  ;;  %vm3958_vm12 = vcmp.eq.f32.partialorder %v3957_v31, 8.507059e+37 }
 0x444   :  { %5030 = vst.msk [vmem:[#allocation2 + $0x118] sm:$0xff] %vm260_vm0, %v10820_v2  ;;  %10121 = vpow2.f32 %v9334_v58  ;;  %v3111_v50 = vpop.f32.mrf.mxu0  ;;  %v3951_v34 = vmul.f32 %v13846_v54, %v3950_v53  ;;  %v10472_v58 = vld [vmem:[%s18201_s0 + $0x232] sm:$0xff]  ;;  %v3972_v31 = vand.u32 2147483647, %v13837_v9  ;;  %vm3969_vm13 = vweird.f32 %v13897_v45 }
 0x445   :  { %5031 = vst.msk [vmem:[#allocation2 + $0x138] sm:$0xff] %vm260_vm0, %v10820_v2  ;;  %v3326_v39 = vmul.f32 %v13683_v0, %v3258_v7  ;;  %v3960_v51 = vor.u32 1.1754944e-38, %v3959_v61  ;;  %v2523_v24 = vpop.f32.mrf.mxu2  ;;  %v2817_v32 = vpop.f32.mrf.mxu3  ;;  %10123 = vrcp.f32 %v13894_v41  ;;  %vm13971_vm15 = vmor %vm3968_vm14, %vm3969_vm13  ;;  %vm3983_vm3 = vweird.f32 %v13894_v41 }
 0x446   :  { %5032 = vst.msk [vmem:[#allocation2 + $0x158] sm:$0xff] %vm260_vm0, %v10820_v2  ;;  %v3952_v19 = vadd.f32 %v13846_v54, %v3951_v34  ;;  %v13922_v7 = vpop.permute.xlu0 %4717  ;;  %v2671_v61 = vadd.f32 %v2523_v24, %v12455_v20  ;;  %v10474_v34 = vld [vmem:[%s18201_s0 + $0x231] sm:$0xff]  ;;  %v13946_v24 = vpop.permute.xlu1 %4721  ;;  %vm3973_vm1 = vcmp.eq.f32.partialorder %v3972_v31, 8.507059e+37 }
 0x447   :  { %5033 = vst.msk [vmem:[#allocation2 + $0x178] sm:$0xff] %vm260_vm0, %v10820_v2  ;;  %v13925_v17 = vadd.f32 %v13696_v47, %v3326_v39 }
 0x448   :  { %5034 = vst.msk [vmem:[#allocation2 + $0x198] sm:$0xff] %vm260_vm0, %v10820_v2  ;;  %v3956_v53 = vsel %vm3955_vm11, %v13846_v54, %v3952_v19  ;;  %v3974_v19 = vand.u32 2147483648, %v13837_v9 }
 0x449   :  { %5035 = vst.msk [vmem:[#allocation2 + $0x1b8] sm:$0xff] %vm260_vm0, %v10820_v2  ;;  %9289 = vmatmul.msk.f32.gmra.mxu0 %vm260_vm0, %v10472_v58  ;;  %v9335_v39 = vmul.f32 -1.442695, %v13925_v17  ;;  %v3961_v58 = vsel %vm3958_vm12, %v3960_v51, %v3956_v53  ;;  %v4728_v9 = vpop.permute.xlu2 %4727 }
 0x44a   :  { %5036 = vst.msk [vmem:[#allocation2 + $0x1d8] sm:$0xff] %vm260_vm0, %v10820_v2  ;;  %9145 = vmatmul.msk.f32.gmra.mxu2 %vm260_vm0, %v10473_v27  ;;  %9217 = vmatmul.msk.f32.gmra.mxu3 %vm260_vm0, %v10474_v34  ;;  %v10122_v20 = vpop.eup %10121  ;;  %v2965_v27 = vadd.f32 %v2817_v32, %v2671_v61  ;;  %v14000_v31 = vpop.f32.mrf.mxu1 }
 0x44b   :  { %5037 = vst.msk [vmem:[#allocation2 + $0x1f8] sm:$0xff] %vm260_vm0, %v10820_v2  ;;  %v13950_v54 = vadd.f32 1.0, %v10122_v20  ;;  %4751 = vrot.lane.b32.xlu2 %v3961_v58, %s10819_s9  ;;  %10125 = vpow2.f32 %v9335_v39  ;;  %v13961_v61 = vpop.eup %10123  ;;  %v10475_v58 = vld [vmem:[%s18201_s0 + $0x242] sm:$0xff] }
 0x44c   :  { %5038 = vst.msk [vmem:[#allocation2 + $0x218] sm:$0xff] %vm260_vm0, %v10820_v2  ;;  %v3259_v34 = vadd.f32 %v3111_v50, %v2965_v27  ;;  %v3114_v32 = vpop.f32.mrf.mxu0  ;;  %vm3984_vm2 = vweird.f32 %v13961_v61 }
 0x44d   :  { %5039 = vst.msk [vmem:[#allocation2 + $0x278] sm:$0xff] %vm260_vm0, %v10820_v2  ;;  %10127 = vrcp.f32 %v13950_v54  ;;  %v2526_v20 = vpop.f32.mrf.mxu2  ;;  %v2820_v39 = vpop.f32.mrf.mxu3  ;;  %vm14046_vm4 = vmor %vm3983_vm3, %vm3984_vm2  ;;  %vm3998_vm7 = vweird.f32 %v13950_v54 }
 0x44e   :  { %18446 = vst [vmem:[#allocation55_spill] sm:$0xff] %v13917_v60  ;;  %v3965_v60 = vsub.f32 1.0, %v3964_v1  ;;  %v3327_v1 = vmul.f32 %v13683_v0, %v3259_v34 }
 0x44f   :  { %5040 = vst.msk [vmem:[#allocation2 + $0x298] sm:$0xff] %vm260_vm0, %v10820_v2 }
 0x450   :  { %5041 = vst.msk [vmem:[#allocation2 + $0x2b8] sm:$0xff] %vm260_vm0, %v10820_v2  ;;  %v3966_v51 = vmul.f32 %v13897_v45, %v3965_v60  ;;  %v3975_v60 = vor.u32 1.1754944e-38, %v3974_v19  ;;  %v13982_v27 = vadd.f32 %v13696_v47, %v3327_v1  ;;  %v2672_v19 = vadd.f32 %v2526_v20, %v12472_v22  ;;  %v10477_v1 = vld [vmem:[%s18201_s0 + $0x241] sm:$0xff] }
 0x451   :  { %5042 = vst.msk [vmem:[#allocation2 + $0x2d8] sm:$0xff] %vm260_vm0, %v10820_v2  ;;  %9290 = vmatmul.msk.f32.gmra.mxu0 %vm260_vm0, %v10475_v58  ;;  %v10126_v22 = vpop.eup %10125  ;;  %v4909_v20 = vmul.f32 %v13922_v7, %v13162_v18 }
 0x452   :  { %5043 = vst.msk [vmem:[#allocation2 + $0x2f8] sm:$0xff] %vm260_vm0, %v10820_v2  ;;  %v3967_v53 = vadd.f32 %v13897_v45, %v3966_v51  ;;  %v10476_v51 = vld [vmem:[%s18201_s0 + $0x240] sm:$0xff]  ;;  %9218 = vmatmul.msk.f32.gmra.mxu3 %vm260_vm0, %v10477_v1  ;;  %v9336_v50 = vmul.f32 -1.442695, %v13982_v27  ;;  %v4913_v1 = vmul.f32 %v13906_v55, %v13244_v25  ;;  %v4914_v25 = vmul.f32 %v4728_v9, %v13270_v23  ;;  %v10478_v23 = vld [vmem:[%s18201_s0 + $0x24a] sm:$0xff] }
 0x453   :  { %5044 = vst.msk [vmem:[#allocation2 + $0x318] sm:$0xff] %vm260_vm0, %v10820_v2  ;;  %9146 = vmatmul.msk.f32.gmra.mxu2 %vm260_vm0, %v10476_v51  ;;  %v3989_v51 = vand.u32 2147483648, %v13894_v41  ;;  %v4911_v55 = vmul.f32 %v13946_v24, %v13198_v16  ;;  %v10479_v24 = vld [vmem:[%s18201_s0 + $0x248] sm:$0xff] }
 0x454   :  { %5045 = vst.msk [vmem:[#allocation2 + $0x338] sm:$0xff] %vm260_vm0, %v10820_v2  ;;  %v3971_v34 = vsel %vm13971_vm15, %v13897_v45, %v3967_v53  ;;  %v3979_v45 = vmul.f32 %v13961_v61, %v13894_v41  ;;  %v4720_v53 = vpop.permute.xlu0 %4719  ;;  %10129 = vpow2.f32 %v9336_v50  ;;  %v3117_v7 = vpop.f32.mrf.mxu0 }
 0x455   :  { %5046 = vst.msk [vmem:[#allocation2 + $0x358] sm:$0xff] %vm260_vm0, %v10820_v2  ;;  %v3976_v58 = vsel %vm3973_vm1, %v3975_v60, %v3971_v34  ;;  %v2966_v60 = vadd.f32 %v2820_v39, %v2672_v19  ;;  %v14017_v19 = vpop.eup %10127  ;;  %v4910_v18 = vmul.f32 %v4720_v53, %v13180_v35  ;;  %v3990_v53 = vor.u32 1.1754944e-38, %v3989_v51  ;;  %v2529_v50 = vpop.f32.mrf.mxu2 }
 0x456   :  { %5047 = vst.msk [vmem:[#allocation2 + $0x378] sm:$0xff] %vm260_vm0, %v10820_v2  ;;  %4753 = vrot.lane.b32.xlu0 %v3976_v58, %s10819_s9  ;;  %v3980_v34 = vsub.f32 1.0, %v3979_v45  ;;  %v4724_v58 = vpop.permute.xlu1 %4723  ;;  %v3994_v9 = vmul.f32 %v14017_v19, %v13950_v54  ;;  %vm3999_vm6 = vweird.f32 %v14017_v19 }
 0x457   :  { %5048 = vst.msk [vmem:[#allocation2 + $0x398] sm:$0xff] %vm260_vm0, %v10820_v2  ;;  %v3260_v39 = vadd.f32 %v3114_v32, %v2966_v60  ;;  %v4912_v35 = vmul.f32 %v4724_v58, %v13219_v26  ;;  %v2823_v60 = vpop.f32.mrf.mxu3  ;;  %vm14087_vm8 = vmor %vm3998_vm7, %vm3999_vm6 }
 0x458   :  { %18449 = vst [vmem:[#allocation57_spill] sm:$0xff] %v13982_v27  ;;  %v3981_v45 = vmul.f32 %v13961_v61, %v3980_v34  ;;  %v3987_v27 = vand.u32 2147483647, %v13894_v41  ;;  %v4734_v41 = vpop.permute.xlu2 %4733 }
 0x459   :  { %5049 = vst.msk [vmem:[#allocation2 + $0x3b8] sm:$0xff] %vm260_vm0, %v10820_v2  ;;  %v3328_v32 = vmul.f32 %v13683_v0, %v3260_v39  ;;  %9291 = vmatmul.msk.f32.gmra.mxu0 %vm260_vm0, %v10478_v23  ;;  %v4917_v34 = vmul.f32 %v4734_v41, %v13353_v42  ;;  %v4002_v42 = vand.u32 2147483647, %v13950_v54  ;;  %v9520_v41 = vld [vmem:[%s18205_s4 + $0xb0] sm:$0xff] }
 0x45a   :  { %18450 = vst [vmem:[#allocation59_spill] sm:$0xff] %v14000_v31  ;;  %v14015_v31 = vadd.f32 1.0, %v10126_v22  ;;  %v3982_v22 = vadd.f32 %v13961_v61, %v3981_v45  ;;  %vm3988_vm5 = vcmp.eq.f32.partialorder %v3987_v27, 8.507059e+37  ;;  %v10130_v51 = vpop.eup %10129  ;;  %v4004_v27 = vand.u32 2147483648, %v13950_v54  ;;  %v14074_v45 = vpop.f32.mrf.mxu1  ;;  %v10481_v54 = vld [vmem:[%s18201_s0 + $0x25a] sm:$0xff]  ;;  %6364 = vmatpush.msrb.mxu3 %v9520_v41  ;;  %v9592_v41 = vld [vmem:[%s18205_s4 + $0xf0] sm:$0xff] }
 0x45b   :  { %5050 = vst.msk [vmem:[#allocation2 + $0x3d8] sm:$0xff] %vm260_vm0, %v10820_v2  ;;  %v14042_v16 = vadd.f32 %v13696_v47, %v3328_v32  ;;  %9147 = vmatmul.msk.f32.gmra.mxu2 %vm260_vm0, %v10479_v24  ;;  %vm4003_vm9 = vcmp.eq.f32.partialorder %v4002_v42, 8.507059e+37  ;;  %6658 = vmatpush.msrb.mxu0 %v9592_v41 }
 0x45c   :  { %5051 = vst.msk [vmem:[#allocation2 + $0x3f8] sm:$0xff] %vm260_vm0, %v10820_v2  ;;  %10131 = vrcp.f32 %v14015_v31  ;;  %vm4013_vm11 = vweird.f32 %v14015_v31 }
 0x45d   :  { %5052 = vst.msk [vmem:[#allocation2 + $0x418] sm:$0xff] %vm260_vm0, %v10820_v2  ;;  %v2532_v23 = vpop.f32.mrf.mxu2 }
 0x45e   :  { %5053 = vst.msk [vmem:[#allocation2 + $0x438] sm:$0xff] %vm260_vm0, %v10820_v2 }
 0x45f   :  { %5054 = vst.msk [vmem:[#allocation2 + $0x458] sm:$0xff] %vm260_vm0, %v10820_v2  ;;  %v2673_v2 = vadd.f32 %v2529_v50, %v12489_v56  ;;  %v10480_v56 = vld [vmem:[%s18201_s0 + $0x249] sm:$0xff]  ;;  %v2826_v26 = vpop.f32.mrf.mxu3 }
 0x460   :  { %5055 = vst.msk [vmem:[#allocation2 + $0x28] sm:$0xff] %vm260_vm0, %v4909_v20  ;;  %v3986_v20 = vsel %vm14046_vm4, %v13961_v61, %v3982_v22  ;;  %9219 = vmatmul.msk.f32.gmra.mxu3 %vm260_vm0, %v10480_v56  ;;  %v14069_v61 = vadd.f32 1.0, %v10130_v51 }
 0x461   :  { %5059 = vst.msk [vmem:[#allocation2 + $0x68] sm:$0xff] %vm260_vm0, %v4913_v1  ;;  %v9337_v1 = vmul.f32 -1.442695, %v14042_v16  ;;  %v3991_v58 = vsel %vm3988_vm5, %v3990_v53, %v3986_v20  ;;  %v2967_v39 = vadd.f32 %v2823_v60, %v2673_v2  ;;  %v5341_v2 = vld [vmem:[%s18205_s4 + $0x30] sm:$0xff]  ;;  %9292 = vmatmul.msk.f32.gmra.mxu0 %vm260_vm0, %v10481_v54  ;;  %v2674_v20 = vadd.f32 %v2532_v23, %v12506_v37  ;;  %v10484_v54 = vld [vmem:[%s18201_s0 + $0x262] sm:$0xff] }
 0x462   :  { %5056 = vst.msk [vmem:[#allocation2 + $0x30] sm:$0xff] %vm260_vm0, %v4910_v18  ;;  %v3995_v18 = vsub.f32 1.0, %v3994_v9  ;;  %4755 = vrot.lane.b32.xlu1 %v3991_v58, %s10819_s9  ;;  %v14080_v22 = vpop.eup %10131  ;;  %5954 = vmatpush.msrb.mxu2 %v5341_v2  ;;  %v10483_v58 = vld [vmem:[%s18201_s0 + $0x259] sm:$0xff]  ;;  %vm4028_vm15 = vweird.f32 %v14069_v61 }
 0x463   :  { %5060 = vst.msk [vmem:[#allocation2 + $0x70] sm:$0xff] %vm260_vm0, %v4914_v25  ;;  %10133 = vpow2.f32 %v9337_v1  ;;  %v3261_v25 = vadd.f32 %v3117_v7, %v2967_v39  ;;  %v10482_v1 = vld [vmem:[%s18201_s0 + $0x258] sm:$0xff]  ;;  %v4009_v37 = vmul.f32 %v14080_v22, %v14015_v31  ;;  %vm4014_vm10 = vweird.f32 %v14080_v22 }
 0x464   :  { %5057 = vst.msk [vmem:[#allocation2 + $0x48] sm:$0xff] %vm260_vm0, %v4911_v55  ;;  %v3996_v32 = vmul.f32 %v14017_v19, %v3995_v18  ;;  %v3120_v55 = vpop.f32.mrf.mxu0  ;;  %10135 = vrcp.f32 %v14069_v61  ;;  %9148 = vmatmul.msk.f32.gmra.mxu2 %vm260_vm0, %v10482_v1  ;;  %v4017_v7 = vand.u32 2147483647, %v14015_v31  ;;  %vm14147_vm12 = vmor %vm4013_vm11, %vm4014_vm10 }
 0x465   :  { %5058 = vst.msk [vmem:[#allocation2 + $0x50] sm:$0xff] %vm260_vm0, %v4912_v35  ;;  %v3329_v50 = vmul.f32 %v13683_v0, %v3261_v25  ;;  %v4005_v35 = vor.u32 1.1754944e-38, %v4004_v27  ;;  %v4010_v42 = vsub.f32 1.0, %v4009_v37  ;;  %v10485_v37 = vld [vmem:[%s18201_s0 + $0x260] sm:$0xff] }
 0x466   :  { %5063 = vst.msk [vmem:[#allocation2 + $0xa8] sm:$0xff] %vm260_vm0, %v4917_v34  ;;  %v3997_v60 = vadd.f32 %v14017_v19, %v3996_v32  ;;  %v4730_v34 = vpop.permute.xlu0 %4729  ;;  %v4019_v32 = vand.u32 2147483648, %v14015_v31  ;;  %vm4018_vm13 = vcmp.eq.f32.partialorder %v4017_v7, 8.507059e+37 }
 0x467   :  { %v5193_v53 = vld [vmem:[#allocation2 + $0x28] sm:$0xff]  ;;  %v14102_v24 = vadd.f32 %v13696_v47, %v3329_v50  ;;  %v4915_v51 = vmul.f32 %v4730_v34, %v13296_v10  ;;  %v2968_v10 = vadd.f32 %v2826_v26, %v2674_v20  ;;  %v2535_v26 = vpop.f32.mrf.mxu2  ;;  %v2829_v2 = vpop.f32.mrf.mxu3 }
 0x468   :  { %9388 = vmatmul.msk.f32.gmra.mxu1 %vm260_vm0, %v5193_v53  ;;  %v4001_v9 = vsel %vm14087_vm8, %v14017_v19, %v3997_v60  ;;  %9220 = vmatmul.msk.f32.gmra.mxu3 %vm260_vm0, %v10483_v58  ;;  %v4011_v60 = vmul.f32 %v14080_v22, %v4010_v42  ;;  %v4020_v31 = vor.u32 1.1754944e-38, %v4019_v32  ;;  %v2675_v34 = vadd.f32 %v2535_v26, %v12523_v49  ;;  %v10486_v49 = vld [vmem:[%s18201_s0 + $0x261] sm:$0xff] }
 0x469   :  { %v4006_v56 = vsel %vm4003_vm9, %v4005_v35, %v4001_v9  ;;  %v10134_v19 = vpop.eup %10133  ;;  %v9338_v39 = vmul.f32 -1.442695, %v14102_v24  ;;  %5061 = vst.msk [vmem:[#allocation2 + $0x88] sm:$0xff] %vm260_vm0, %v4915_v51  ;;  %v5194_v27 = vld [vmem:[#allocation2 + $0x30] sm:$0xff]  ;;  %v3262_v25 = vadd.f32 %v3120_v55, %v2968_v10  ;;  %v14130_v35 = vpop.f32.mrf.mxu1  ;;  %9293 = vmatmul.msk.f32.gmra.mxu0 %vm260_vm0, %v10484_v54 }
 0x46a   :  { %4757 = vrot.lane.b32.xlu2 %v4006_v56, %s10819_s9  ;;  %v14121_v18 = vadd.f32 1.0, %v10134_v19  ;;  %v14125_v53 = vpop.eup %10135  ;;  %v4012_v55 = vadd.f32 %v14080_v22, %v4011_v60  ;;  %v4732_v56 = vpop.permute.xlu1 %4731 }
 0x46b   :  { %10137 = vpow2.f32 %v9338_v39  ;;  %v3330_v23 = vmul.f32 %v13683_v0, %v3262_v25  ;;  %v4024_v51 = vmul.f32 %v14125_v53, %v14069_v61  ;;  %v4916_v58 = vmul.f32 %v4732_v56, %v13322_v4  ;;  %v5195_v32 = vld [vmem:[#allocation2 + $0x48] sm:$0xff] }
 0x46c   :  { %v3123_v50 = vpop.f32.mrf.mxu0  ;;  %10139 = vrcp.f32 %v14121_v18  ;;  %v4016_v1 = vsel %vm14147_vm12, %v14080_v22, %v4012_v55  ;;  %9149 = vmatmul.msk.f32.gmra.mxu2 %vm260_vm0, %v10485_v37  ;;  %v2969_v22 = vadd.f32 %v2829_v2, %v2675_v34  ;;  %v4032_v4 = vand.u32 2147483647, %v14069_v61 }
 0x46d   :  { %v14145_v9 = vadd.f32 %v13696_v47, %v3330_v23  ;;  %v4021_v10 = vsel %vm4018_vm13, %v4020_v31, %v4016_v1  ;;  %v4025_v42 = vsub.f32 1.0, %v4024_v51  ;;  %5062 = vst.msk [vmem:[#allocation2 + $0x90] sm:$0xff] %vm260_vm0, %v4916_v58  ;;  %v4034_v25 = vand.u32 2147483648, %v14069_v61  ;;  %v10487_v31 = vld [vmem:[%s18201_s0 + $0x272] sm:$0xff] }
 0x46e   :  { %4759 = vrot.lane.b32.xlu0 %v4021_v10, %s10819_s9  ;;  %v3263_v60 = vadd.f32 %v3123_v50, %v2969_v22  ;;  %vm4029_vm14 = vweird.f32 %v14125_v53  ;;  %v9664_v50 = vld [vmem:[%s18205_s4 + $0x130] sm:$0xff]  ;;  %vm4033_vm2 = vcmp.eq.f32.partialorder %v4032_v4, 8.507059e+37  ;;  %v4740_v1 = vpop.permute.xlu2 %4739  ;;  %v4049_v4 = vand.u32 2147483648, %v14121_v18 }
 0x46f   :  { %v9339_v39 = vmul.f32 -1.442695, %v14145_v9  ;;  %v4026_v7 = vmul.f32 %v14125_v53, %v4025_v42  ;;  %vm4030_vm1 = vmor %vm4028_vm15, %vm4029_vm14  ;;  %v4035_v41 = vor.u32 1.1754944e-38, %v4034_v25  ;;  %v2538_v54 = vpop.f32.mrf.mxu2  ;;  %v2832_v20 = vpop.f32.mrf.mxu3  ;;  %6952 = vmatpush.msrb.mxu1 %v9664_v50  ;;  %v4047_v42 = vand.u32 2147483647, %v14121_v18  ;;  %v5196_v25 = vld [vmem:[#allocation2 + $0x50] sm:$0xff] }
 0x470   :  { %9389 = vmatmul.msk.f32.gmra.mxu1 %vm260_vm0, %v5194_v27  ;;  %9221 = vmatmul.msk.f32.gmra.mxu3 %vm260_vm0, %v10486_v49  ;;  %v3331_v26 = vmul.f32 %v13683_v0, %v3263_v60  ;;  %v2676_v51 = vadd.f32 %v2538_v54, %v12543_v21  ;;  %v4920_v49 = vmul.f32 %v4740_v1, %v13435_v13  ;;  %vm4043_vm4 = vweird.f32 %v14121_v18 }
 0x471   :  { %v10138_v19 = vpop.eup %10137  ;;  %10141 = vpow2.f32 %v9339_v39  ;;  %v4027_v2 = vadd.f32 %v14125_v53, %v4026_v7  ;;  %9294 = vmatmul.msk.f32.gmra.mxu0 %vm260_vm0, %v10487_v31  ;;  %v14189_v61 = vpop.f32.mrf.mxu1  ;;  %v10489_v39 = vld [vmem:[%s18201_s0 + $0x271] sm:$0xff]  ;;  %vm4048_vm6 = vcmp.eq.f32.partialorder %v4047_v42, 8.507059e+37 }
 0x472   :  { %v14167_v27 = vadd.f32 1.0, %v10138_v19  ;;  %v14175_v23 = vpop.eup %10139  ;;  %v14192_v34 = vadd.f32 %v13696_v47, %v3331_v26  ;;  %v10488_v19 = vld [vmem:[%s18201_s0 + $0x270] sm:$0xff]  ;;  %v2970_v10 = vadd.f32 %v2832_v20, %v2676_v51  ;;  %5066 = vst.msk [vmem:[#allocation2 + $0xd0] sm:$0xff] %vm260_vm0, %v4920_v49  ;;  %v10490_v20 = vld [vmem:[%s18201_s0 + $0x27a] sm:$0xff] }
 0x473   :  { %v4031_v56 = vsel %vm4030_vm1, %v14125_v53, %v4027_v2  ;;  %v4039_v58 = vmul.f32 %v14175_v23, %v14121_v18  ;;  %vm4044_vm3 = vweird.f32 %v14175_v23  ;;  %v10491_v49 = vld [vmem:[%s18201_s0 + $0x278] sm:$0xff] }
 0x474   :  { %v3126_v55 = vpop.f32.mrf.mxu0  ;;  %10143 = vrcp.f32 %v14167_v27  ;;  %v4036_v37 = vsel %vm4033_vm2, %v4035_v41, %v4031_v56  ;;  %9150 = vmatmul.msk.f32.gmra.mxu2 %vm260_vm0, %v10488_v19  ;;  %v9340_v53 = vmul.f32 -1.442695, %v14192_v34  ;;  %vm4045_vm5 = vmor %vm4043_vm4, %vm4044_vm3  ;;  %v4050_v41 = vor.u32 1.1754944e-38, %v4049_v4  ;;  %v10492_v19 = vld [vmem:[%s18201_s0 + $0x279] sm:$0xff] }
 0x475   :  { %4761 = vrot.lane.b32.xlu1 %v4036_v37, %s10819_s9  ;;  %v4040_v22 = vsub.f32 1.0, %v4039_v58  ;;  %vm4058_vm8 = vweird.f32 %v14167_v27 }
 0x476   :  { %10145 = vpow2.f32 %v9340_v53  ;;  %v4736_v51 = vpop.permute.xlu0 %4735 }
 0x477   :  { %v10142_v21 = vpop.eup %10141  ;;  %v4041_v60 = vmul.f32 %v14175_v23, %v4040_v22  ;;  %v2835_v54 = vpop.f32.mrf.mxu3  ;;  %v4918_v37 = vmul.f32 %v4736_v51, %v13381_v30  ;;  %v4064_v22 = vand.u32 2147483648, %v14167_v27 }
 0x478   :  { %9390 = vmatmul.msk.f32.gmra.mxu1 %vm260_vm0, %v5195_v32  ;;  %9222 = vmatmul.msk.f32.gmra.mxu3 %vm260_vm0, %v10489_v39  ;;  %v14209_v13 = vadd.f32 1.0, %v10142_v21  ;;  %v3264_v32 = vadd.f32 %v3126_v55, %v2970_v10  ;;  %v2541_v55 = vpop.f32.mrf.mxu2  ;;  %v4062_v10 = vand.u32 2147483647, %v14167_v27 }
 0x479   :  { %v4042_v50 = vadd.f32 %v14175_v23, %v4041_v60  ;;  %9295 = vmatmul.msk.f32.gmra.mxu0 %vm260_vm0, %v10490_v20  ;;  %v2677_v56 = vadd.f32 %v2541_v55, %v12563_v36  ;;  %v14240_v36 = vpop.f32.mrf.mxu1  ;;  %5064 = vst.msk [vmem:[#allocation2 + $0xb0] sm:$0xff] %vm260_vm0, %v4918_v37  ;;  %v5197_v60 = vld [vmem:[#allocation2 + $0x68] sm:$0xff] }
 0x47a   :  { %v10144_v7 = vpop.eup %10143  ;;  %v3332_v2 = vmul.f32 %v13683_v0, %v3264_v32  ;;  %10147 = vrcp.f32 %v14209_v13  ;;  %vm4063_vm10 = vcmp.eq.f32.partialorder %v4062_v10, 8.507059e+37  ;;  %v10494_v37 = vld [vmem:[%s18201_s0 + $0x288] sm:$0xff]  ;;  %vm4073_vm12 = vweird.f32 %v14209_v13 }
 0x47b   :  { %v4046_v18 = vsel %vm4045_vm5, %v14175_v23, %v4042_v50  ;;  %v4054_v1 = vmul.f32 %v10144_v7, %v14167_v27  ;;  %v2971_v30 = vadd.f32 %v2835_v54, %v2677_v56  ;;  %vm4059_vm7 = vweird.f32 %v10144_v7 }
 0x47c   :  { %v3129_v26 = vpop.f32.mrf.mxu0  ;;  %v14226_v31 = vadd.f32 %v13696_v47, %v3332_v2  ;;  %v4051_v58 = vsel %vm4048_vm6, %v4050_v41, %v4046_v18  ;;  %9151 = vmatmul.msk.f32.gmra.mxu2 %vm260_vm0, %v10491_v49  ;;  %v10146_v23 = vpop.eup %10145  ;;  %vm4060_vm9 = vmor %vm4058_vm8, %vm4059_vm7  ;;  %v4065_v41 = vor.u32 1.1754944e-38, %v4064_v22  ;;  %v10495_v49 = vld [vmem:[%s18201_s0 + $0x289] sm:$0xff] }
 0x47d   :  { %4763 = vrot.lane.b32.xlu2 %v4051_v58, %s10819_s9  ;;  %v4055_v21 = vsub.f32 1.0, %v4054_v1  ;;  %v14244_v53 = vadd.f32 1.0, %v10146_v23  ;;  %v3265_v42 = vadd.f32 %v3129_v26, %v2971_v30  ;;  %v10493_v26 = vld [vmem:[%s18201_s0 + $0x28a] sm:$0xff]  ;;  %v4079_v30 = vand.u32 2147483648, %v14209_v13 }
 0x47e   :  { %v9341_v39 = vmul.f32 -1.442695, %v14226_v31  ;;  %v4738_v56 = vpop.permute.xlu1 %4737 }
 0x47f   :  { %v4056_v4 = vmul.f32 %v10144_v7, %v4055_v21  ;;  %v3333_v2 = vmul.f32 %v13683_v0, %v3265_v42  ;;  %v2838_v54 = vpop.f32.mrf.mxu3  ;;  %v4919_v58 = vmul.f32 %v4738_v56, %v13407_v46  ;;  %vm4088_vm1 = vweird.f32 %v14244_v53 }
 0x480   :  { %9391 = vmatmul.msk.f32.gmra.mxu1 %vm260_vm0, %v5196_v25  ;;  %9223 = vmatmul.msk.f32.gmra.mxu3 %vm260_vm0, %v10492_v19  ;;  %10149 = vpow2.f32 %v9341_v39  ;;  %v10148_v25 = vpop.eup %10147  ;;  %v2544_v55 = vpop.f32.mrf.mxu2  ;;  %v4077_v39 = vand.u32 2147483647, %v14209_v13 }
 0x481   :  { %v4057_v50 = vadd.f32 %v10144_v7, %v4056_v4  ;;  %10151 = vrcp.f32 %v14244_v53  ;;  %9296 = vmatmul.msk.f32.gmra.mxu0 %vm260_vm0, %v10493_v26  ;;  %v14258_v20 = vadd.f32 %v13696_v47, %v3333_v2  ;;  %v2678_v27 = vadd.f32 %v2544_v55, %v12583_v14  ;;  %5065 = vst.msk [vmem:[#allocation2 + $0xc8] sm:$0xff] %vm260_vm0, %v4919_v58  ;;  %v14278_v21 = vpop.f32.mrf.mxu1 }
 0x482   :  { %v4069_v51 = vmul.f32 %v10148_v25, %v14209_v13  ;;  %vm4074_vm11 = vweird.f32 %v10148_v25  ;;  %vm4078_vm14 = vcmp.eq.f32.partialorder %v4077_v39, 8.507059e+37 }
 0x483   :  { %v4061_v18 = vsel %vm4060_vm9, %v10144_v7, %v4057_v50  ;;  %v9342_v14 = vmul.f32 -1.442695, %v14258_v20  ;;  %v2972_v19 = vadd.f32 %v2838_v54, %v2678_v27  ;;  %vm4075_vm13 = vmor %vm4073_vm12, %vm4074_vm11 }
 0x484   :  { %v3132_v32 = vpop.f32.mrf.mxu0  ;;  %v4066_v1 = vsel %vm4063_vm10, %v4065_v41, %v4061_v18  ;;  %9152 = vmatmul.msk.f32.gmra.mxu2 %vm260_vm0, %v10494_v37  ;;  %v4070_v23 = vsub.f32 1.0, %v4069_v51  ;;  %v4080_v41 = vor.u32 1.1754944e-38, %v4079_v30 }
 0x485   :  { %4765 = vrot.lane.b32.xlu0 %v4066_v1, %s10819_s9  ;;  %10153 = vpow2.f32 %v9342_v14  ;;  %v3266_v10 = vadd.f32 %v3132_v32, %v2972_v19  ;;  %v10496_v32 = vld [vmem:[%s18201_s0 + $0x292] sm:$0xff]  ;;  %v5199_v14 = vld [vmem:[#allocation2 + $0x88] sm:$0xff] }
 0x486   :  { %v10150_v7 = vpop.eup %10149  ;;  %v4071_v22 = vmul.f32 %v10148_v25, %v4070_v23  ;;  %v4746_v18 = vpop.permute.xlu2 %4745  ;;  %v10497_v1 = vld [vmem:[%s18201_s0 + $0x290] sm:$0xff] }
 0x487   :  { %v14273_v46 = vadd.f32 1.0, %v10150_v7  ;;  %v10152_v42 = vpop.eup %10151  ;;  %v3334_v2 = vmul.f32 %v13683_v0, %v3266_v10  ;;  %v2841_v54 = vpop.f32.mrf.mxu3  ;;  %v4923_v51 = vmul.f32 %v4746_v18, %v13536_v59  ;;  %v4094_v7 = vand.u32 2147483648, %v14244_v53  ;;  %v10501_v18 = vld [vmem:[%s18201_s0 + $0x2a1] sm:$0xff] }
 0x488   :  { %9392 = vmatmul.msk.f32.gmra.mxu1 %vm260_vm0, %v5197_v60  ;;  %9224 = vmatmul.msk.f32.gmra.mxu3 %vm260_vm0, %v10495_v49  ;;  %v5198_v60 = vld [vmem:[#allocation2 + $0x70] sm:$0xff]  ;;  %v4072_v50 = vadd.f32 %v10148_v25, %v4071_v22  ;;  %v2547_v55 = vpop.f32.mrf.mxu2  ;;  %v4084_v27 = vmul.f32 %v10152_v42, %v14244_v53  ;;  %v4092_v49 = vand.u32 2147483647, %v14244_v53  ;;  %vm4089_vm15 = vweird.f32 %v10152_v42 }
 0x489   :  { %10155 = vrcp.f32 %v14273_v46  ;;  %9297 = vmatmul.msk.f32.gmra.mxu0 %vm260_vm0, %v10496_v32  ;;  %v14289_v0 = vadd.f32 %v13696_v47, %v3334_v2  ;;  %v2679_v13 = vadd.f32 %v2547_v55, %v12603_v38  ;;  %v10498_v47 = vld [vmem:[%s18201_s0 + $0x291] sm:$0xff]  ;;  %5069 = vst.msk [vmem:[#allocation2 + $0x108] sm:$0xff] %vm260_vm0, %v4923_v51  ;;  %v14311_v10 = vpop.f32.mrf.mxu1  ;;  %vm4090_vm2 = vmor %vm4088_vm1, %vm4089_vm15  ;;  %vm4103_vm5 = vweird.f32 %v14273_v46 }
 0x48a   :  { %v4076_v26 = vsel %vm4075_vm13, %v10148_v25, %v4072_v50  ;;  %v4085_v37 = vsub.f32 1.0, %v4084_v27  ;;  %vm4093_vm3 = vcmp.eq.f32.partialorder %v4092_v49, 8.507059e+37  ;;  %v5200_v51 = vld [vmem:[#allocation2 + $0x90] sm:$0xff] }
 0x48b   :  { %v4081_v56 = vsel %vm4078_vm14, %v4080_v41, %v4076_v26  ;;  %v10154_v25 = vpop.eup %10153  ;;  %v9343_v38 = vmul.f32 -1.442695, %v14289_v0  ;;  %v2973_v58 = vadd.f32 %v2841_v54, %v2679_v13  ;;  %v10500_v13 = vld [vmem:[%s18201_s0 + $0x2a0] sm:$0xff] }
 0x48c   :  { %v3135_v4 = vpop.f32.mrf.mxu0  ;;  %9153 = vmatmul.msk.f32.gmra.mxu2 %vm260_vm0, %v10497_v1  ;;  %4767 = vrot.lane.b32.xlu1 %v4081_v56, %s10819_s9  ;;  %v14304_v59 = vadd.f32 1.0, %v10154_v25  ;;  %v4086_v23 = vmul.f32 %v10152_v42, %v4085_v37  ;;  %v4109_v56 = vand.u32 2147483648, %v14273_v46 }
 0x48d   :  { %10157 = vpow2.f32 %v9343_v38  ;;  %v14309_v19 = vadd.f32 %v3135_v4, %v2973_v58  ;;  %v10499_v4 = vld [vmem:[%s18201_s0 + $0x2a2] sm:$0xff] }
 0x48e   :  { %v4087_v22 = vadd.f32 %v10152_v42, %v4086_v23  ;;  %10159 = vrcp.f32 %v14304_v59  ;;  %v4742_v54 = vpop.permute.xlu0 %4741  ;;  %v4110_v49 = vor.u32 1.1754944e-38, %v4109_v56  ;;  %v10502_v23 = vld [vmem:[%s18201_s0 + $0x2aa] sm:$0xff]  ;;  %vm4118_vm9 = vweird.f32 %v14304_v59 }
 0x48f   :  { %v10156_v39 = vpop.eup %10155  ;;  %v2844_v50 = vpop.f32.mrf.mxu3  ;;  %v4921_v26 = vmul.f32 %v4742_v54, %v13463_v63  ;;  %v4107_v63 = vand.u32 2147483647, %v14273_v46 }
 0x490   :  { %9393 = vmatmul.msk.f32.gmra.mxu1 %vm260_vm0, %v5198_v60  ;;  %9225 = vmatmul.msk.f32.gmra.mxu3 %vm260_vm0, %v10498_v47  ;;  %v4095_v60 = vor.u32 1.1754944e-38, %v4094_v7  ;;  %v2550_v2 = vpop.f32.mrf.mxu2  ;;  %v4091_v41 = vsel %vm4090_vm2, %v10152_v42, %v4087_v22  ;;  %v4099_v53 = vmul.f32 %v10156_v39, %v14273_v46  ;;  %vm4104_vm4 = vweird.f32 %v10156_v39 }
 0x491   :  { %9298 = vmatmul.msk.f32.gmra.mxu0 %vm260_vm0, %v10499_v4  ;;  %v2680_v55 = vadd.f32 %v2550_v2, %v12618_v8  ;;  %5067 = vst.msk [vmem:[#allocation2 + $0xe8] sm:$0xff] %vm260_vm0, %v4921_v26  ;;  %vm4105_vm6 = vmor %vm4103_vm5, %vm4104_vm4  ;;  %vm4108_vm7 = vcmp.eq.f32.partialorder %v4107_v63, 8.507059e+37  ;;  %v9591_v63 = vld [vmem:[%s18205_s4 + $0xe8] sm:$0xff] }
 0x492   :  { %v4096_v32 = vsel %vm4093_vm3, %v4095_v60, %v4091_v41  ;;  %v4100_v27 = vsub.f32 1.0, %v4099_v53  ;;  %v10503_v41 = vld [vmem:[%s18201_s0 + $0x2a8] sm:$0xff]  ;;  %6659 = vmatpush.msrb.mxu0 %v9591_v63 }
 0x493   :  { %v10158_v42 = vpop.eup %10157  ;;  %4769 = vrot.lane.b32.xlu2 %v4096_v32, %s10819_s9  ;;  %v2974_v8 = vadd.f32 %v2844_v50, %v2680_v55  ;;  %v10504_v55 = vld [vmem:[%s18201_s0 + $0x2a9] sm:$0xff]  ;;  %v4122_v32 = vand.u32 2147483647, %v14304_v59 }
 0x494   :  { %v3138_v30 = vpop.f32.mrf.mxu0  ;;  %9154 = vmatmul.msk.f32.gmra.mxu2 %vm260_vm0, %v10500_v13  ;;  %v14335_v1 = vadd.f32 1.0, %v10158_v42  ;;  %v4101_v25 = vmul.f32 %v10156_v39, %v4100_v27  ;;  %v10160_v38 = vpop.eup %10159  ;;  %v14368_v42 = vld [vmem:[%s18203_s2] ss:$0 sm:$0xff] }
 0x495   :  { %v14337_v47 = vadd.f32 %v3138_v30, %v2974_v8  ;;  %v14345_v30 = vpop.f32.mrf.mxu1  ;;  %v4114_v2 = vmul.f32 %v10160_v38, %v14304_v59  ;;  %vm4119_vm8 = vweird.f32 %v10160_v38  ;;  %vm4123_vm11 = vcmp.eq.f32.partialorder %v4122_v32, 8.507059e+37 }
 0x496   :  { %v4102_v37 = vadd.f32 %v10156_v39, %v4101_v25  ;;  %10161 = vrcp.f32 %v14335_v1  ;;  %vm14373_vm10 = vmor %vm4118_vm9, %vm4119_vm8  ;;  %vm4133_vm13 = vweird.f32 %v14335_v1 }
 0x497   :  { %v4744_v60 = vpop.permute.xlu1 %4743 }
 0x498   :  { %9394 = vmatmul.msk.f32.gmra.mxu1 %vm260_vm0, %v5199_v14  ;;  %9226 = vmatmul.msk.f32.gmra.mxu3 %vm260_vm0, %v10501_v18  ;;  %v2553_v7 = vpop.f32.mrf.mxu2  ;;  %v2847_v14 = vpop.f32.mrf.mxu3  ;;  %v4106_v22 = vsel %vm4105_vm6, %v10156_v39, %v4102_v37  ;;  %v4922_v4 = vmul.f32 %v4744_v60, %v13491_v62  ;;  %v4115_v39 = vsub.f32 1.0, %v4114_v2  ;;  %v4124_v62 = vand.u32 2147483648, %v14304_v59  ;;  %v5201_v18 = vld [vmem:[#allocation2 + $0xa8] sm:$0xff]  ;;  %v10506_v59 = vld [vmem:[%s18201_s0 + $0x2ba] sm:$0xff] }
 0x499   :  { %9299 = vmatmul.msk.f32.gmra.mxu0 %vm260_vm0, %v10502_v23  ;;  %v2681_v46 = vadd.f32 %v2553_v7, %v12634_v12  ;;  %v4111_v50 = vsel %vm4108_vm7, %v4110_v49, %v4106_v22  ;;  %v9519_v37 = vld [vmem:[%s18205_s4 + $0xa8] sm:$0xff]  ;;  %v14390_v49 = vld [vmem:[%s18204_s3] ss:$0 sm:$0xff] }
 0x49a   :  { %4771 = vrot.lane.b32.xlu0 %v4111_v50, %s10819_s9  ;;  %5068 = vst.msk [vmem:[#allocation2 + $0xf0] sm:$0xff] %vm260_vm0, %v4922_v4  ;;  %v4116_v53 = vmul.f32 %v10160_v38, %v4115_v39  ;;  %v4125_v56 = vor.u32 1.1754944e-38, %v4124_v62  ;;  %6365 = vmatpush.msrb.mxu3 %v9519_v37  ;;  %v10509_v60 = vld [vmem:[%s18201_s0 + $0x2b9] sm:$0xff]  ;;  %v10512_v37 = vld [vmem:[%s18201_s0 + $0x2c1] sm:$0xff] }
 0x49b   :  { %v2975_v12 = vadd.f32 %v2847_v14, %v2681_v46  ;;  %v10508_v46 = vld [vmem:[%s18201_s0 + $0x2b8] sm:$0xff] }
 0x49c   :  { %v3141_v58 = vpop.f32.mrf.mxu0  ;;  %9155 = vmatmul.msk.f32.gmra.mxu2 %vm260_vm0, %v10503_v41  ;;  %v14363_v13 = vpop.eup %10161  ;;  %v4117_v27 = vadd.f32 %v10160_v38, %v4116_v53  ;;  %v5202_v41 = vld [vmem:[#allocation2 + $0xb0] sm:$0xff]  ;;  %v4137_v53 = vand.u32 2147483647, %v14335_v1 }
 0x49d   :  { %v3269_v54 = vadd.f32 %v3141_v58, %v2975_v12  ;;  %v5340_v58 = vld [vmem:[%s18205_s4 + $0x28] sm:$0xff]  ;;  %v14408_v2 = vpop.f32.mrf.mxu1  ;;  %v4139_v12 = vand.u32 2147483648, %v14335_v1  ;;  %vm4134_vm12 = vweird.f32 %v14363_v13 }
 0x49e   :  { %v4121_v14 = vsel %vm14373_vm10, %v10160_v38, %v4117_v27  ;;  %5955 = vmatpush.msrb.mxu2 %v5340_v58  ;;  %v4129_v38 = vmul.f32 %v14363_v13, %v14335_v1  ;;  %vm4135_vm14 = vmor %vm4133_vm13, %vm4134_vm12  ;;  %vm4138_vm15 = vcmp.eq.f32.partialorder %v4137_v53, 8.507059e+37  ;;  %v10511_v58 = vld [vmem:[%s18201_s0 + $0x2c0] sm:$0xff]  ;;  %v10515_v53 = vld [vmem:[%s18201_s0 + $0x2d1] sm:$0xff] }
 0x49f   :  { %v3337_v8 = vmul.f32 %v14368_v42, %v3269_v54  ;;  %v4126_v22 = vsel %vm4123_vm11, %v4125_v56, %v4121_v14  ;;  %v10510_v56 = vld [vmem:[%s18201_s0 + $0x2c2] sm:$0xff] }
 0x4a0   :  { %9395 = vmatmul.msk.f32.gmra.mxu1 %vm260_vm0, %v5200_v51  ;;  %9227 = vmatmul.msk.f32.gmra.mxu3 %vm260_vm0, %v10504_v55  ;;  %v2556_v51 = vpop.f32.mrf.mxu2  ;;  %v2850_v25 = vpop.f32.mrf.mxu3  ;;  %v4130_v4 = vsub.f32 1.0, %v4129_v38 }
 0x4a1   :  { %9300 = vmatmul.msk.f32.gmra.mxu0 %vm260_vm0, %v10506_v59  ;;  %v14393_v7 = vadd.f32 %v14390_v49, %v3337_v8  ;;  %v2682_v23 = vadd.f32 %v2556_v51, %v12650_v33  ;;  %4773 = vrot.lane.b32.xlu1 %v4126_v22, %s10819_s9  ;;  %v4140_v51 = vor.u32 1.1754944e-38, %v4139_v12 }
 0x4a2   :  { %v4131_v54 = vmul.f32 %v14363_v13, %v4130_v4 }
 0x4a3   :  { %v9346_v33 = vmul.f32 -1.442695, %v14393_v7  ;;  %v2976_v50 = vadd.f32 %v2850_v25, %v2682_v23 }
 0x4a4   :  { %v3144_v26 = vpop.f32.mrf.mxu0  ;;  %9156 = vmatmul.msk.f32.gmra.mxu2 %vm260_vm0, %v10508_v46  ;;  %v4132_v8 = vadd.f32 %v14363_v13, %v4131_v54  ;;  %v5203_v46 = vld [vmem:[#allocation2 + $0xc8] sm:$0xff]  ;;  %v10514_v54 = vld [vmem:[%s18201_s0 + $0x2d0] sm:$0xff] }
 0x4a5   :  { %10163 = vpow2.f32 %v9346_v33  ;;  %v3270_v55 = vadd.f32 %v3144_v26, %v2976_v50  ;;  %v4752_v39 = vpop.permute.xlu2 %4751 }
 0x4a6   :  { %v4136_v25 = vsel %vm4135_vm14, %v14363_v13, %v4132_v8  ;;  %v14446_v13 = vpop.f32.mrf.mxu1 }
 0x4a7   :  { %v3338_v32 = vmul.f32 %v14368_v42, %v3270_v55 }
 0x4a8   :  { %9396 = vmatmul.msk.f32.gmra.mxu1 %vm260_vm0, %v5201_v18  ;;  %9228 = vmatmul.msk.f32.gmra.mxu3 %vm260_vm0, %v10509_v60  ;;  %v4926_v18 = vmul.f32 %v4752_v39, %v13699_v48  ;;  %v2559_v26 = vpop.f32.mrf.mxu2  ;;  %v2853_v27 = vpop.f32.mrf.mxu3  ;;  %v10513_v39 = vld [vmem:[%s18201_s0 + $0x2d2] sm:$0xff] }
 0x4a9   :  { %9301 = vmatmul.msk.f32.gmra.mxu0 %vm260_vm0, %v10510_v56  ;;  %v14429_v48 = vadd.f32 %v14390_v49, %v3338_v32  ;;  %v2683_v1 = vadd.f32 %v2559_v26, %v12666_v52  ;;  %v4141_v52 = vsel %vm4138_vm15, %v4140_v51, %v4136_v25  ;;  %v5204_v51 = vld [vmem:[#allocation2 + $0xd0] sm:$0xff] }
 0x4aa   :  { %5072 = vst.msk [vmem:[#allocation2 + $0x130] sm:$0xff] %vm260_vm0, %v4926_v18  ;;  %4775 = vrot.lane.b32.xlu2 %v4141_v52, %s10819_s9 }
 0x4ab   :  { %v10164_v59 = vpop.eup %10163  ;;  %v9347_v14 = vmul.f32 -1.442695, %v14429_v48  ;;  %v2977_v23 = vadd.f32 %v2853_v27, %v2683_v1 }
 0x4ac   :  { %v3147_v62 = vpop.f32.mrf.mxu0  ;;  %9157 = vmatmul.msk.f32.gmra.mxu2 %vm260_vm0, %v10511_v58  ;;  %v14443_v22 = vadd.f32 1.0, %v10164_v59 }
 0x4ad   :  { %10165 = vpow2.f32 %v9347_v14  ;;  %v3271_v60 = vadd.f32 %v3147_v62, %v2977_v23  ;;  %v4748_v38 = vpop.permute.xlu0 %4747  ;;  %v10516_v14 = vld [vmem:[%s18201_s0 + $0x2da] sm:$0xff] }
 0x4ae   :  { %v4924_v33 = vmul.f32 %v4748_v38, %v13588_v40  ;;  %10167 = vrcp.f32 %v14443_v22  ;;  %v14475_v56 = vpop.f32.mrf.mxu1  ;;  %vm4178_vm2 = vweird.f32 %v14443_v22 }
 0x4af   :  { %v3339_v4 = vmul.f32 %v14368_v42, %v3271_v60  ;;  %v10518_v60 = vld [vmem:[%s18201_s0 + $0x2d9] sm:$0xff] }
 0x4b0   :  { %9397 = vmatmul.msk.f32.gmra.mxu1 %vm260_vm0, %v5202_v41  ;;  %9229 = vmatmul.msk.f32.gmra.mxu3 %vm260_vm0, %v10512_v37  ;;  %5070 = vst.msk [vmem:[#allocation2 + $0x110] sm:$0xff] %vm260_vm0, %v4924_v33  ;;  %v9663_v41 = vld [vmem:[%s18205_s4 + $0x128] sm:$0xff]  ;;  %v2562_v55 = vpop.f32.mrf.mxu2  ;;  %v2856_v12 = vpop.f32.mrf.mxu3 }
 0x4b1   :  { %9302 = vmatmul.msk.f32.gmra.mxu0 %vm260_vm0, %v10513_v39  ;;  %v14461_v40 = vadd.f32 %v14390_v49, %v3339_v4  ;;  %6953 = vmatpush.msrb.mxu1 %v9663_v41  ;;  %v2684_v62 = vadd.f32 %v2562_v55, %v12685_v15  ;;  %v4182_v41 = vand.u32 2147483647, %v14443_v22  ;;  %v4184_v55 = vand.u32 2147483648, %v14443_v22 }
 0x4b3   :  { %v10166_v32 = vpop.eup %10165  ;;  %v9348_v18 = vmul.f32 -1.442695, %v14461_v40  ;;  %v2978_v8 = vadd.f32 %v2856_v12, %v2684_v62  ;;  %v5205_v12 = vld [vmem:[#allocation2 + $0xe8] sm:$0xff]  ;;  %vm4183_vm4 = vcmp.eq.f32.partialorder %v4182_v41, 8.507059e+37 }
 0x4b4   :  { %v3150_v50 = vpop.f32.mrf.mxu0  ;;  %9158 = vmatmul.msk.f32.gmra.mxu2 %vm260_vm0, %v10514_v54  ;;  %v14473_v26 = vadd.f32 1.0, %v10166_v32  ;;  %v10168_v27 = vpop.eup %10167 }
 0x4b5   :  { %10169 = vpow2.f32 %v9348_v18  ;;  %v3272_v15 = vadd.f32 %v3150_v50, %v2978_v8  ;;  %v4750_v25 = vpop.permute.xlu1 %4749  ;;  %vm4179_vm1 = vweird.f32 %v10168_v27 }
 0x4b6   :  { %10171 = vrcp.f32 %v14473_v26  ;;  %v4925_v58 = vmul.f32 %v4750_v25, %v13639_v28  ;;  %v10517_v28 = vld [vmem:[%s18201_s0 + $0x2d8] sm:$0xff]  ;;  %vm4180_vm3 = vmor %vm4178_vm2, %vm4179_vm1  ;;  %v14516_v25 = vpop.f32.mrf.mxu1  ;;  %vm4193_vm6 = vweird.f32 %v14473_v26 }
 0x4b7   :  { %v3340_v1 = vmul.f32 %v14368_v42, %v3272_v15 }
 0x4b8   :  { %9398 = vmatmul.msk.f32.gmra.mxu1 %vm260_vm0, %v5203_v46  ;;  %9230 = vmatmul.msk.f32.gmra.mxu3 %vm260_vm0, %v10515_v53  ;;  %v2565_v37 = vpop.f32.mrf.mxu2  ;;  %v2859_v59 = vpop.f32.mrf.mxu3  ;;  %v4174_v46 = vmul.f32 %v10168_v27, %v14443_v22  ;;  %5071 = vst.msk [vmem:[#allocation2 + $0x128] sm:$0xff] %vm260_vm0, %v4925_v58 }
 0x4b9   :  { %9303 = vmatmul.msk.f32.gmra.mxu0 %vm260_vm0, %v10516_v14  ;;  %v14486_v52 = vadd.f32 %v14390_v49, %v3340_v1  ;;  %v2685_v23 = vadd.f32 %v2565_v37, %v12704_v43 }
 0x4ba   :  { %v4175_v50 = vsub.f32 1.0, %v4174_v46  ;;  %v10521_v46 = vld [vmem:[%s18201_s0 + $0x2e9] sm:$0xff] }
 0x4bb   :  { %v10170_v38 = vpop.eup %10169  ;;  %v9349_v33 = vmul.f32 -1.442695, %v14486_v52  ;;  %v2979_v43 = vadd.f32 %v2859_v59, %v2685_v23  ;;  %v10520_v23 = vld [vmem:[%s18201_s0 + $0x2e8] sm:$0xff] }
 0x4bc   :  { %v3153_v63 = vpop.f32.mrf.mxu0  ;;  %9159 = vmatmul.msk.f32.gmra.mxu2 %vm260_vm0, %v10517_v28  ;;  %v14500_v4 = vadd.f32 1.0, %v10170_v38  ;;  %v4176_v54 = vmul.f32 %v10168_v27, %v4175_v50  ;;  %v14504_v53 = vpop.eup %10171  ;;  %v5206_v50 = vld [vmem:[#allocation2 + $0xf0] sm:$0xff] }
 0x4bd   :  { %10173 = vpow2.f32 %v9349_v33  ;;  %v3273_v39 = vadd.f32 %v3153_v63, %v2979_v43  ;;  %v4185_v63 = vor.u32 1.1754944e-38, %v4184_v55  ;;  %v4189_v59 = vmul.f32 %v14504_v53, %v14473_v26 }
 0x4be   :  { %v4177_v15 = vadd.f32 %v10168_v27, %v4176_v54  ;;  %10175 = vrcp.f32 %v14500_v4  ;;  %v4197_v33 = vand.u32 2147483647, %v14473_v26  ;;  %v4199_v43 = vand.u32 2147483648, %v14473_v26 }
 0x4bf   :  { %v3341_v8 = vmul.f32 %v14368_v42, %v3273_v39  ;;  %vm4194_vm5 = vweird.f32 %v14504_v53  ;;  %vm4208_vm10 = vweird.f32 %v14500_v4 }
 0x4c0   :  { %9399 = vmatmul.msk.f32.gmra.mxu1 %vm260_vm0, %v5204_v51  ;;  %9231 = vmatmul.msk.f32.gmra.mxu3 %vm260_vm0, %v10518_v60  ;;  %v2568_v51 = vpop.f32.mrf.mxu2  ;;  %v2862_v1 = vpop.f32.mrf.mxu3  ;;  %v4181_v58 = vsel %vm4180_vm3, %v10168_v27, %v4177_v15  ;;  %v4190_v60 = vsub.f32 1.0, %v4189_v59  ;;  %vm4195_vm7 = vmor %vm4193_vm6, %vm4194_vm5  ;;  %vm4198_vm8 = vcmp.eq.f32.partialorder %v4197_v33, 8.507059e+37  ;;  %v10523_v59 = vld [vmem:[%s18201_s0 + $0x2f0] sm:$0xff] }
 0x4c1   :  { %v14519_v22 = vadd.f32 %v14390_v49, %v3341_v8  ;;  %v2686_v37 = vadd.f32 %v2568_v51, %v12723_v29  ;;  %v4186_v14 = vsel %vm4183_vm4, %v4185_v63, %v4181_v58  ;;  %v14551_v51 = vpop.f32.mrf.mxu1 }
 0x4c2   :  { %4781 = vrot.lane.b32.xlu0 %v4186_v14, %s10819_s9  ;;  %v10524_v14 = vld [vmem:[%s18201_s0 + $0x2f1] sm:$0xff] }
 0x4c3   :  { %v10174_v28 = vpop.eup %10173  ;;  %v9350_v27 = vmul.f32 -1.442695, %v14519_v22  ;;  %v2980_v29 = vadd.f32 %v2862_v1, %v2686_v37 }
 0x4c4   :  { %v4758_v62 = vpop.permute.xlu2 %4757  ;;  %v3156_v18 = vpop.f32.mrf.mxu0  ;;  %9160 = vmatmul.msk.f32.gmra.mxu2 %vm260_vm0, %v10520_v23  ;;  %v14534_v38 = vadd.f32 1.0, %v10174_v28 }
 0x4c5   :  { %v4929_v32 = vmul.f32 %v4758_v62, %v13866_v6  ;;  %v10519_v6 = vld [vmem:[%s18201_s0 + $0x2ea] sm:$0xff]  ;;  %10177 = vpow2.f32 %v9350_v27  ;;  %v3274_v41 = vadd.f32 %v3156_v18, %v2980_v29  ;;  %v10176_v39 = vpop.eup %10175  ;;  %v4200_v18 = vor.u32 1.1754944e-38, %v4199_v43 }
 0x4c6   :  { %9304 = vmatmul.msk.f32.gmra.mxu0 %vm260_vm0, %v10519_v6  ;;  %10179 = vrcp.f32 %v14534_v38  ;;  %v4204_v58 = vmul.f32 %v10176_v39, %v14500_v4  ;;  %v4212_v27 = vand.u32 2147483647, %v14500_v4  ;;  %v4214_v29 = vand.u32 2147483648, %v14500_v4 }
 0x4c7   :  { %5075 = vst.msk [vmem:[#allocation2 + $0x168] sm:$0xff] %vm260_vm0, %v4929_v32  ;;  %v3342_v32 = vmul.f32 %v14368_v42, %v3274_v41  ;;  %vm4209_vm9 = vweird.f32 %v10176_v39  ;;  %vm4223_vm14 = vweird.f32 %v14534_v38 }
 0x4c8   :  { %9400 = vmatmul.msk.f32.gmra.mxu1 %vm260_vm0, %v5205_v12  ;;  %9232 = vmatmul.msk.f32.gmra.mxu3 %vm260_vm0, %v10521_v46  ;;  %v4754_v55 = vpop.permute.xlu0 %4753  ;;  %v4191_v12 = vmul.f32 %v14504_v53, %v4190_v60  ;;  %v2571_v15 = vpop.f32.mrf.mxu2  ;;  %v4205_v46 = vsub.f32 1.0, %v4204_v58  ;;  %vm4210_vm11 = vmor %vm4208_vm10, %vm4209_vm9  ;;  %vm4213_vm12 = vcmp.eq.f32.partialorder %v4212_v27, 8.507059e+37  ;;  %v10527_v58 = vld [vmem:[%s18201_s0 + $0x301] sm:$0xff] }
 0x4c9   :  { %v4927_v62 = vmul.f32 %v4754_v55, %v13746_v44  ;;  %v2865_v63 = vpop.f32.mrf.mxu3  ;;  %v10522_v44 = vld [vmem:[%s18201_s0 + $0x2f2] sm:$0xff]  ;;  %v14554_v26 = vadd.f32 %v14390_v49, %v3342_v32  ;;  %v2687_v6 = vadd.f32 %v2571_v15, %v12742_v11  ;;  %v5207_v55 = vld [vmem:[#allocation2 + $0x108] sm:$0xff] }
 0x4ca   :  { %v4192_v8 = vadd.f32 %v14504_v53, %v4191_v12  ;;  %v4206_v33 = vmul.f32 %v10176_v39, %v4205_v46  ;;  %v10525_v15 = vld [vmem:[%s18201_s0 + $0x302] sm:$0xff]  ;;  %v5208_v46 = vld [vmem:[#allocation2 + $0x110] sm:$0xff] }
 0x4cb   :  { %5073 = vst.msk [vmem:[#allocation2 + $0x148] sm:$0xff] %vm260_vm0, %v4927_v62  ;;  %v10178_v23 = vpop.eup %10177  ;;  %v2981_v11 = vadd.f32 %v2865_v63, %v2687_v6  ;;  %v10526_v6 = vld [vmem:[%s18201_s0 + $0x300] sm:$0xff] }
 0x4cc   :  { %v3159_v54 = vpop.f32.mrf.mxu0  ;;  %v4196_v1 = vsel %vm4195_vm7, %v14504_v53, %v4192_v8  ;;  %9161 = vmatmul.msk.f32.gmra.mxu2 %vm260_vm0, %v10523_v59  ;;  %v9351_v53 = vmul.f32 -1.442695, %v14554_v26  ;;  %v14569_v28 = vadd.f32 1.0, %v10178_v23  ;;  %v14573_v43 = vpop.eup %10179  ;;  %v4207_v32 = vadd.f32 %v10176_v39, %v4206_v33 }
 0x4cd   :  { %v4201_v37 = vsel %vm4198_vm8, %v4200_v18, %v4196_v1  ;;  %v3275_v60 = vadd.f32 %v3159_v54, %v2981_v11  ;;  %v4215_v54 = vor.u32 1.1754944e-38, %v4214_v29  ;;  %v4229_v11 = vand.u32 2147483648, %v14534_v38 }
 0x4ce   :  { %9305 = vmatmul.msk.f32.gmra.mxu0 %vm260_vm0, %v10522_v44  ;;  %4783 = vrot.lane.b32.xlu1 %v4201_v37, %s10819_s9  ;;  %10181 = vpow2.f32 %v9351_v53  ;;  %v4211_v4 = vsel %vm4210_vm11, %v10176_v39, %v4207_v32  ;;  %v4219_v44 = vmul.f32 %v14573_v43, %v14534_v38  ;;  %v14599_v39 = vpop.f32.mrf.mxu1  ;;  %v4227_v53 = vand.u32 2147483647, %v14534_v38 }
 0x4cf   :  { %v3343_v12 = vmul.f32 %v14368_v42, %v3275_v60  ;;  %10183 = vrcp.f32 %v14569_v28  ;;  %v4216_v1 = vsel %vm4213_vm12, %v4215_v54, %v4211_v4  ;;  %vm4224_vm13 = vweird.f32 %v14573_v43 }
 0x4d0   :  { %9401 = vmatmul.msk.f32.gmra.mxu1 %vm260_vm0, %v5206_v50  ;;  %9233 = vmatmul.msk.f32.gmra.mxu3 %vm260_vm0, %v10524_v14  ;;  %v2574_v8 = vpop.f32.mrf.mxu2  ;;  %v4220_v14 = vsub.f32 1.0, %v4219_v44  ;;  %vm4225_vm15 = vmor %vm4223_vm14, %vm4224_vm13  ;;  %vm4228_vm1 = vcmp.eq.f32.partialorder %v4227_v53, 8.507059e+37  ;;  %v10529_v44 = vld [vmem:[%s18201_s0 + $0x308] sm:$0xff]  ;;  %vm4238_vm3 = vweird.f32 %v14569_v28 }
 0x4d1   :  { %v2868_v18 = vpop.f32.mrf.mxu3  ;;  %v2688_v63 = vadd.f32 %v2574_v8, %v12758_v3  ;;  %4785 = vrot.lane.b32.xlu2 %v4216_v1, %s10819_s9  ;;  %v10530_v1 = vld [vmem:[%s18201_s0 + $0x309] sm:$0xff] }
 0x4d2   :  { %v4221_v60 = vmul.f32 %v14573_v43, %v4220_v14  ;;  %v4244_v14 = vand.u32 2147483648, %v14569_v28 }
 0x4d3   :  { %v2982_v59 = vadd.f32 %v2868_v18, %v2688_v63 }
 0x4d4   :  { %v4756_v50 = vpop.permute.xlu1 %4755  ;;  %v3162_v41 = vpop.f32.mrf.mxu0  ;;  %9162 = vmatmul.msk.f32.gmra.mxu2 %vm260_vm0, %v10526_v6  ;;  %v4222_v54 = vadd.f32 %v14573_v43, %v4221_v60  ;;  %v18460_v60 = vld [vmem:[#allocation11_spill] sm:$0xff] }
 0x4d5   :  { %v4928_v62 = vmul.f32 %v4756_v50, %v13792_v5  ;;  %v14585_v5 = vadd.f32 %v14390_v49, %v3343_v12  ;;  %v10182_v37 = vpop.eup %10181  ;;  %v3276_v27 = vadd.f32 %v3162_v41, %v2982_v59  ;;  %v18459_v12 = vld [vmem:[#allocation34_spill] sm:$0xff]  ;;  %v4230_v41 = vor.u32 1.1754944e-38, %v4229_v11  ;;  %v5209_v11 = vld [vmem:[#allocation2 + $0x128] sm:$0xff] }
 0x4d6   :  { %9306 = vmatmul.msk.f32.gmra.mxu0 %vm260_vm0, %v10525_v15  ;;  %v14603_v23 = vadd.f32 1.0, %v10182_v37  ;;  %v14609_v33 = vpop.eup %10183  ;;  %v4226_v38 = vsel %vm4225_vm15, %v14573_v43, %v4222_v54  ;;  %v4242_v59 = vand.u32 2147483647, %v14569_v28 }
 0x4d7   :  { %5074 = vst.msk [vmem:[#allocation2 + $0x150] sm:$0xff] %vm260_vm0, %v4928_v62  ;;  %v9352_v3 = vmul.f32 -1.442695, %v14585_v5  ;;  %v4764_v29 = vpop.permute.xlu2 %4763  ;;  %v2395_v62 = vadd.f32 %v18459_v12, %v12771_v57  ;;  %v3344_v32 = vmul.f32 %v14368_v42, %v3276_v27  ;;  %v10528_v57 = vld [vmem:[%s18201_s0 + $0x30a] sm:$0xff]  ;;  %v4234_v4 = vmul.f32 %v14609_v33, %v14569_v28 }
 0x4d8   :  { %9402 = vmatmul.msk.f32.gmra.mxu1 %vm260_vm0, %v5207_v55  ;;  %9234 = vmatmul.msk.f32.gmra.mxu3 %vm260_vm0, %v10527_v58  ;;  %v4932_v50 = vmul.f32 %v4764_v29, %v14042_v16  ;;  %v2577_v16 = vpop.f32.mrf.mxu2  ;;  %v4231_v63 = vsel %vm4228_vm1, %v4230_v41, %v4226_v38  ;;  %vm4239_vm2 = vweird.f32 %v14609_v33  ;;  %v5339_v38 = vld [vmem:[%s18205_s4 + $0x20] sm:$0xff]  ;;  %vm4243_vm5 = vcmp.eq.f32.partialorder %v4242_v59, 8.507059e+37 }
 0x4d9   :  { %10185 = vpow2.f32 %v9352_v3  ;;  %v2871_v8 = vpop.f32.mrf.mxu3  ;;  %v14625_v18 = vadd.f32 %v14390_v49, %v3344_v32  ;;  %v2689_v15 = vadd.f32 %v2577_v16, %v2395_v62  ;;  %4787 = vrot.lane.b32.xlu0 %v4231_v63, %s10819_s9  ;;  %v4235_v37 = vsub.f32 1.0, %v4234_v4  ;;  %vm4240_vm4 = vmor %vm4238_vm3, %vm4239_vm2  ;;  %5956 = vmatpush.msrb.mxu2 %v5339_v38 }
 0x4da   :  { %10187 = vrcp.f32 %v14603_v23  ;;  %5078 = vst.msk [vmem:[#allocation2 + $0x190] sm:$0xff] %vm260_vm0, %v4932_v50  ;;  %v18461_v50 = vld [vmem:[#allocation36_spill] sm:$0xff]  ;;  %vm4253_vm7 = vweird.f32 %v14603_v23 }
 0x4db   :  { %v9353_v43 = vmul.f32 -1.442695, %v14625_v18  ;;  %v2983_v58 = vadd.f32 %v2871_v8, %v2689_v15  ;;  %v4236_v27 = vmul.f32 %v14609_v33, %v4235_v37  ;;  %v2396_v12 = vadd.f32 %v18461_v50, %v18460_v60 }
 0x4dc   :  { %v3165_v55 = vpop.f32.mrf.mxu0  ;;  %9163 = vmatmul.msk.f32.gmra.mxu2 %vm260_vm0, %v10529_v44  ;;  %v10532_v44 = vld [vmem:[%s18201_s0 + $0x318] sm:$0xff]  ;;  %v4259_v60 = vand.u32 2147483648, %v14603_v23 }
 0x4dd   :  { %10189 = vpow2.f32 %v9353_v43  ;;  %v4237_v16 = vadd.f32 %v14609_v33, %v4236_v27  ;;  %v9518_v27 = vld [vmem:[%s18205_s4 + $0xa0] sm:$0xff] }
 0x4de   :  { %9307 = vmatmul.msk.f32.gmra.mxu0 %vm260_vm0, %v10528_v57  ;;  %6366 = vmatpush.msrb.mxu3 %v9518_v27 }
 0x4df   :  { %v10186_v6 = vpop.eup %10185  ;;  %v4241_v15 = vsel %vm4240_vm4, %v14609_v33, %v4237_v16  ;;  %v4257_v16 = vand.u32 2147483647, %v14603_v23 }
 0x4e0   :  { %9403 = vmatmul.msk.f32.gmra.mxu1 %vm260_vm0, %v5208_v46  ;;  %9235 = vmatmul.msk.f32.gmra.mxu3 %vm260_vm0, %v10530_v1  ;;  %v14640_v3 = vadd.f32 1.0, %v10186_v6  ;;  %v3277_v46 = vadd.f32 %v3165_v55, %v2983_v58  ;;  %v14648_v29 = vpop.eup %10187  ;;  %v4760_v62 = vpop.permute.xlu0 %4759  ;;  %v4245_v55 = vor.u32 1.1754944e-38, %v4244_v14  ;;  %v10533_v1 = vld [vmem:[%s18201_s0 + $0x319] sm:$0xff] }
 0x4e1   :  { %v4930_v41 = vmul.f32 %v4760_v62, %v13925_v17  ;;  %v2580_v8 = vpop.f32.mrf.mxu2  ;;  %v10531_v17 = vld [vmem:[%s18201_s0 + $0x31a] sm:$0xff]  ;;  %v4249_v6 = vmul.f32 %v14648_v29, %v14603_v23  ;;  %vm4254_vm6 = vweird.f32 %v14648_v29  ;;  %vm4258_vm9 = vcmp.eq.f32.partialorder %v4257_v16, 8.507059e+37  ;;  %v5211_v16 = vld [vmem:[#allocation2 + $0x148] sm:$0xff] }
 0x4e2   :  { %v3345_v54 = vmul.f32 %v14368_v42, %v3277_v46  ;;  %10191 = vrcp.f32 %v14640_v3  ;;  %v2690_v4 = vadd.f32 %v2580_v8, %v2396_v12  ;;  %v4246_v63 = vsel %vm4243_vm5, %v4245_v55, %v4241_v15  ;;  %v18462_v12 = vld [vmem:[#allocation57_spill] sm:$0xff]  ;;  %v18464_v55 = vld [vmem:[#allocation50_spill] sm:$0xff]  ;;  %vm4255_vm8 = vmor %vm4253_vm7, %vm4254_vm6 }
 0x4e3   :  { %v2874_v57 = vpop.f32.mrf.mxu3  ;;  %5076 = vst.msk [vmem:[#allocation2 + $0x170] sm:$0xff] %vm260_vm0, %v4930_v41  ;;  %v10190_v33 = vpop.eup %10189  ;;  %4789 = vrot.lane.b32.xlu1 %v4246_v63, %s10819_s9  ;;  %v4250_v59 = vsub.f32 1.0, %v4249_v6  ;;  %v10534_v63 = vld [vmem:[%s18201_s0 + $0x322] sm:$0xff]  ;;  %vm4268_vm11 = vweird.f32 %v14640_v3 }
 0x4e4   :  { %v3168_v32 = vpop.f32.mrf.mxu0  ;;  %v14666_v28 = vadd.f32 %v14390_v49, %v3345_v54  ;;  %9164 = vmatmul.msk.f32.gmra.mxu2 %vm260_vm0, %v10532_v44  ;;  %v2984_v58 = vadd.f32 %v2874_v57, %v2690_v4  ;;  %v14682_v37 = vadd.f32 1.0, %v10190_v33  ;;  %v5210_v57 = vld [vmem:[#allocation2 + $0x130] sm:$0xff] }
 0x4e5   :  { %v14644_v53 = vpop.f32.mrf.mxu1  ;;  %v4251_v41 = vmul.f32 %v14648_v29, %v4250_v59 }
 0x4e6   :  { %9308 = vmatmul.msk.f32.gmra.mxu0 %vm260_vm0, %v10531_v17  ;;  %v9354_v43 = vmul.f32 -1.442695, %v14666_v28  ;;  %vm4283_vm15 = vweird.f32 %v14682_v37 }
 0x4e7   :  { %v4762_v46 = vpop.permute.xlu1 %4761  ;;  %v4252_v17 = vadd.f32 %v14648_v29, %v4251_v41 }
 0x4e8   :  { %9404 = vmatmul.msk.f32.gmra.mxu1 %vm260_vm0, %v5209_v11  ;;  %9236 = vmatmul.msk.f32.gmra.mxu3 %vm260_vm0, %v10533_v1  ;;  %10193 = vpow2.f32 %v9354_v43  ;;  %v3278_v11 = vadd.f32 %v3168_v32, %v2984_v58  ;;  %v14690_v50 = vpop.eup %10191  ;;  %v4931_v62 = vmul.f32 %v4762_v46, %v18462_v12  ;;  %v18463_v32 = vld [vmem:[#allocation20_spill] sm:$0xff]  ;;  %v4260_v1 = vor.u32 1.1754944e-38, %v4259_v60  ;;  %v10535_v43 = vld [vmem:[%s18201_s0 + $0x320] sm:$0xff] }
 0x4e9   :  { %v2397_v8 = vadd.f32 %v18464_v55, %v18463_v32  ;;  %10195 = vrcp.f32 %v14682_v37  ;;  %v2583_v15 = vpop.f32.mrf.mxu2  ;;  %v4264_v33 = vmul.f32 %v14690_v50, %v14640_v3  ;;  %v4256_v23 = vsel %vm4255_vm8, %v14648_v29, %v4252_v17  ;;  %v10536_v58 = vld [vmem:[%s18201_s0 + $0x321] sm:$0xff] }
 0x4ea   :  { %v3346_v38 = vmul.f32 %v14368_v42, %v3278_v11  ;;  %5077 = vst.msk [vmem:[#allocation2 + $0x188] sm:$0xff] %vm260_vm0, %v4931_v62  ;;  %v4261_v46 = vsel %vm4258_vm9, %v4260_v1, %v4256_v23  ;;  %v4272_v12 = vand.u32 2147483647, %v14640_v3  ;;  %v4274_v62 = vand.u32 2147483648, %v14640_v3 }
 0x4eb   :  { %v2877_v4 = vpop.f32.mrf.mxu3  ;;  %v2691_v6 = vadd.f32 %v2583_v15, %v2397_v8  ;;  %v4265_v60 = vsub.f32 1.0, %v4264_v33  ;;  %4791 = vrot.lane.b32.xlu2 %v4261_v46, %s10819_s9  ;;  %v9590_v8 = vld [vmem:[%s18205_s4 + $0xe0] sm:$0xff]  ;;  %vm4269_vm10 = vweird.f32 %v14690_v50 }
 0x4ec   :  { %v3171_v54 = vpop.f32.mrf.mxu0  ;;  %v14709_v44 = vadd.f32 %v14390_v49, %v3346_v38  ;;  %9165 = vmatmul.msk.f32.gmra.mxu2 %vm260_vm0, %v10535_v43  ;;  %6660 = vmatpush.msrb.mxu0 %v9590_v8  ;;  %vm4270_vm12 = vmor %vm4268_vm11, %vm4269_vm10  ;;  %vm4273_vm13 = vcmp.eq.f32.partialorder %v4272_v12, 8.507059e+37  ;;  %v4275_v33 = vor.u32 1.1754944e-38, %v4274_v62  ;;  %v10539_v12 = vld [vmem:[%s18201_s0 + $0x331] sm:$0xff]  ;;  %v4287_v8 = vand.u32 2147483647, %v14682_v37 }
 0x4ed   :  { %v14684_v14 = vpop.f32.mrf.mxu1  ;;  %v2985_v27 = vadd.f32 %v2877_v4, %v2691_v6  ;;  %v4770_v55 = vpop.permute.xlu2 %4769  ;;  %v18465_v4 = vld [vmem:[#allocation22_spill] sm:$0xff] }
 0x4ee   :  { %9309 = vmatmul.msk.f32.gmra.mxu0 %vm260_vm0, %v10534_v63  ;;  %v10194_v59 = vpop.eup %10193  ;;  %v9355_v11 = vmul.f32 -1.442695, %v14709_v44  ;;  %v4935_v17 = vmul.f32 %v4770_v55, %v14192_v34  ;;  %v18466_v63 = vld [vmem:[#allocation52_spill] sm:$0xff]  ;;  %v9662_v34 = vld [vmem:[%s18205_s4 + $0x120] sm:$0xff]  ;;  %vm4288_vm2 = vcmp.eq.f32.partialorder %v4287_v8, 8.507059e+37 }
 0x4ef   :  { %v14725_v29 = vadd.f32 1.0, %v10194_v59  ;;  %v3279_v32 = vadd.f32 %v3171_v54, %v2985_v27  ;;  %v14737_v38 = vpop.eup %10195  ;;  %v2398_v1 = vadd.f32 %v18466_v63, %v18465_v4  ;;  %6954 = vmatpush.msrb.mxu1 %v9662_v34  ;;  %v5212_v4 = vld [vmem:[#allocation2 + $0x150] sm:$0xff] }
 0x4f0   :  { %9405 = vmatmul.msk.f32.gmra.mxu1 %vm260_vm0, %v5210_v57  ;;  %9237 = vmatmul.msk.f32.gmra.mxu3 %vm260_vm0, %v10536_v58  ;;  %10197 = vpow2.f32 %v9355_v11  ;;  %v4266_v57 = vmul.f32 %v14690_v50, %v4265_v60  ;;  %5081 = vst.msk [vmem:[#allocation2 + $0x1c8] sm:$0xff] %vm260_vm0, %v4935_v17  ;;  %v10537_v58 = vld [vmem:[%s18201_s0 + $0x332] sm:$0xff]  ;;  %v4279_v46 = vmul.f32 %v14737_v38, %v14682_v37  ;;  %vm4284_vm14 = vweird.f32 %v14737_v38 }
 0x4f1   :  { %v3347_v54 = vmul.f32 %v14368_v42, %v3279_v32  ;;  %10199 = vrcp.f32 %v14725_v29  ;;  %v2586_v23 = vpop.f32.mrf.mxu2  ;;  %v10538_v60 = vld [vmem:[%s18201_s0 + $0x330] sm:$0xff]  ;;  %vm4285_vm1 = vmor %vm4283_vm15, %vm4284_vm14  ;;  %vm4298_vm4 = vweird.f32 %v14725_v29 }
 0x4f2   :  { %v4267_v6 = vadd.f32 %v14690_v50, %v4266_v57  ;;  %v2692_v11 = vadd.f32 %v2586_v23, %v2398_v1  ;;  %v4280_v32 = vsub.f32 1.0, %v4279_v46  ;;  %v4289_v57 = vand.u32 2147483648, %v14682_v37  ;;  %v18467_v23 = vld [vmem:[#allocation13_spill] sm:$0xff] }
 0x4f3   :  { %v2880_v43 = vpop.f32.mrf.mxu3  ;;  %v14756_v3 = vadd.f32 %v14390_v49, %v3347_v54 }
 0x4f4   :  { %v3174_v15 = vpop.f32.mrf.mxu0  ;;  %v4271_v59 = vsel %vm4270_vm12, %v14690_v50, %v4267_v6  ;;  %9166 = vmatmul.msk.f32.gmra.mxu2 %vm260_vm0, %v10538_v60  ;;  %v4281_v54 = vmul.f32 %v14737_v38, %v4280_v32  ;;  %v10542_v32 = vld [vmem:[%s18201_s0 + $0x339] sm:$0xff] }
 0x4f5   :  { %v14730_v41 = vpop.f32.mrf.mxu1  ;;  %v4276_v27 = vsel %vm4273_vm13, %v4275_v33, %v4271_v59  ;;  %v9356_v50 = vmul.f32 -1.442695, %v14756_v3 }
 0x4f6   :  { %9310 = vmatmul.msk.f32.gmra.mxu0 %vm260_vm0, %v10537_v58  ;;  %v10198_v62 = vpop.eup %10197  ;;  %4793 = vrot.lane.b32.xlu0 %v4276_v27, %s10819_s9  ;;  %v10540_v27 = vld [vmem:[%s18201_s0 + $0x33a] sm:$0xff] }
 0x4f7   :  { %v14771_v55 = vadd.f32 1.0, %v10198_v62  ;;  %10201 = vpow2.f32 %v9356_v50  ;;  %v4766_v1 = vpop.permute.xlu0 %4765  ;;  %v10200_v6 = vpop.eup %10199 }
 0x4f8   :  { %9406 = vmatmul.msk.f32.gmra.mxu1 %vm260_vm0, %v5211_v16  ;;  %9238 = vmatmul.msk.f32.gmra.mxu3 %vm260_vm0, %v10539_v12  ;;  %v2986_v16 = vadd.f32 %v2880_v43, %v2692_v11  ;;  %v4933_v34 = vmul.f32 %v4766_v1, %v14102_v24  ;;  %v18468_v43 = vld [vmem:[#allocation39_spill] sm:$0xff]  ;;  %v4282_v11 = vadd.f32 %v14737_v38, %v4281_v54  ;;  %v4302_v1 = vand.u32 2147483647, %v14725_v29 }
 0x4f9   :  { %v2399_v58 = vadd.f32 %v18468_v43, %v18467_v23  ;;  %10203 = vrcp.f32 %v14771_v55  ;;  %v2589_v24 = vpop.f32.mrf.mxu2  ;;  %v4294_v62 = vmul.f32 %v10200_v6, %v14725_v29  ;;  %v4304_v54 = vand.u32 2147483648, %v14725_v29 }
 0x4fa   :  { %v3280_v63 = vadd.f32 %v3174_v15, %v2986_v16  ;;  %5079 = vst.msk [vmem:[#allocation2 + $0x1a8] sm:$0xff] %vm260_vm0, %v4933_v34  ;;  %v4290_v15 = vor.u32 1.1754944e-38, %v4289_v57  ;;  %v4286_v37 = vsel %vm4285_vm1, %v14737_v38, %v4282_v11  ;;  %v10541_v16 = vld [vmem:[%s18201_s0 + $0x338] sm:$0xff]  ;;  %vm4299_vm3 = vweird.f32 %v10200_v6 }
 0x4fb   :  { %v2883_v46 = vpop.f32.mrf.mxu3  ;;  %v2693_v12 = vadd.f32 %v2589_v24, %v2399_v58  ;;  %v18469_v24 = vld [vmem:[#allocation14_spill] sm:$0xff]  ;;  %vm4300_vm5 = vmor %vm4298_vm4, %vm4299_vm3  ;;  %vm4303_vm6 = vcmp.eq.f32.partialorder %v4302_v1, 8.507059e+37  ;;  %v4317_v1 = vand.u32 2147483647, %v14771_v55  ;;  %vm4313_vm8 = vweird.f32 %v14771_v55 }
 0x4fc   :  { %v3177_v33 = vpop.f32.mrf.mxu0  ;;  %v3348_v59 = vmul.f32 %v14368_v42, %v3280_v63  ;;  %v4291_v50 = vsel %vm4288_vm2, %v4290_v15, %v4286_v37  ;;  %9167 = vmatmul.msk.f32.gmra.mxu2 %vm260_vm0, %v10541_v16  ;;  %v5213_v37 = vld [vmem:[#allocation2 + $0x168] sm:$0xff] }
 0x4fd   :  { %v14775_v17 = vpop.f32.mrf.mxu1  ;;  %v10202_v8 = vpop.eup %10201  ;;  %4795 = vrot.lane.b32.xlu1 %v4291_v50, %s10819_s9  ;;  %v2987_v38 = vadd.f32 %v2883_v46, %v2693_v12  ;;  %v18470_v46 = vld [vmem:[#allocation41_spill] sm:$0xff]  ;;  %vm4318_vm10 = vcmp.eq.f32.partialorder %v4317_v1, 8.507059e+37 }
 0x4fe   :  { %9311 = vmatmul.msk.f32.gmra.mxu0 %vm260_vm0, %v10540_v27  ;;  %v14793_v60 = vadd.f32 %v14390_v49, %v3348_v59  ;;  %v14807_v63 = vadd.f32 1.0, %v10202_v8  ;;  %v4768_v43 = vpop.permute.xlu1 %4767  ;;  %v2400_v27 = vadd.f32 %v18470_v46, %v18469_v24 }
 0x4ff   :  { %v3281_v23 = vadd.f32 %v3177_v33, %v2987_v38  ;;  %v10204_v59 = vpop.eup %10203  ;;  %v4934_v11 = vmul.f32 %v4768_v43, %v14145_v9  ;;  %v4305_v33 = vor.u32 1.1754944e-38, %v4304_v54  ;;  %v4319_v54 = vand.u32 2147483648, %v14771_v55 }
 0x500   :  { %9407 = vmatmul.msk.f32.gmra.mxu1 %vm260_vm0, %v5212_v4  ;;  %9239 = vmatmul.msk.f32.gmra.mxu3 %vm260_vm0, %v10542_v32  ;;  %v9357_v57 = vmul.f32 -1.442695, %v14793_v60  ;;  %v4295_v4 = vsub.f32 1.0, %v4294_v62  ;;  %vm4314_vm7 = vweird.f32 %v10204_v59  ;;  %vm4328_vm12 = vweird.f32 %v14807_v63 }
 0x501   :  { %v3349_v12 = vmul.f32 %v14368_v42, %v3281_v23  ;;  %5080 = vst.msk [vmem:[#allocation2 + $0x1b0] sm:$0xff] %vm260_vm0, %v4934_v11  ;;  %v2592_v9 = vpop.f32.mrf.mxu2  ;;  %vm14841_vm9 = vmor %vm4313_vm8, %vm4314_vm7 }
 0x502   :  { %10205 = vpow2.f32 %v9357_v57  ;;  %v4296_v58 = vmul.f32 %v10200_v6, %v4295_v4  ;;  %v2694_v8 = vadd.f32 %v2592_v9, %v2400_v27  ;;  %v4309_v57 = vmul.f32 %v10204_v59, %v14771_v55  ;;  %v97_v55 = vld [vmem:[%s18201_s0 + $0x348] sm:$0xff] }
 0x503   :  { %10207 = vrcp.f32 %v14807_v63  ;;  %v2886_v50 = vpop.f32.mrf.mxu3  ;;  %v14822_v16 = vadd.f32 %v14390_v49, %v3349_v12 }
 0x504   :  { %v3180_v15 = vpop.f32.mrf.mxu0  ;;  %v4297_v62 = vadd.f32 %v10200_v6, %v4296_v58  ;;  %v2988_v23 = vadd.f32 %v2886_v50, %v2694_v8  ;;  %v4310_v43 = vsub.f32 1.0, %v4309_v57  ;;  %9168 = vmatmul.msk.f32.gmra.mxu2 %vm260_vm0, %v97_v55 }
 0x505   :  { %v14811_v34 = vpop.f32.mrf.mxu1  ;;  %v9358_v4 = vmul.f32 -1.442695, %v14822_v16 }
 0x506   :  { %v4301_v32 = vsel %vm4300_vm5, %v10200_v6, %v4297_v62  ;;  %v5214_v6 = vld [vmem:[#allocation2 + $0x170] sm:$0xff]  ;;  %v3282_v24 = vadd.f32 %v3180_v15, %v2988_v23  ;;  %v4311_v46 = vmul.f32 %v10204_v59, %v4310_v43  ;;  %v18472_v62 = vld [vmem:[#allocation25_spill] sm:$0xff] }
 0x507   :  { %v4306_v38 = vsel %vm4303_vm6, %v4305_v33, %v4301_v32  ;;  %10209 = vpow2.f32 %v9358_v4  ;;  %v18473_v33 = vld [vmem:[#allocation44_spill] sm:$0xff] }
 0x508   :  { %9408 = vmatmul.msk.f32.gmra.mxu1 %vm260_vm0, %v5213_v37  ;;  %v10206_v29 = vpop.eup %10205  ;;  %4797 = vrot.lane.b32.xlu2 %v4306_v38, %s10819_s9  ;;  %v4776_v37 = vpop.permute.xlu2 %4775  ;;  %v2401_v9 = vadd.f32 %v18473_v33, %v18472_v62  ;;  %v3350_v50 = vmul.f32 %v14368_v42, %v3282_v24  ;;  %v4312_v8 = vadd.f32 %v10204_v59, %v4311_v46  ;;  %v169_v15 = vld [vmem:[%s18201_s0 + $0x349] sm:$0xff]  ;;  %v4320_v38 = vor.u32 1.1754944e-38, %v4319_v54 }
 0x509   :  { %v14827_v58 = vadd.f32 1.0, %v10206_v29  ;;  %v14833_v27 = vpop.eup %10207  ;;  %v4938_v32 = vmul.f32 %v4776_v37, %v14289_v0  ;;  %v241_v0 = vld [vmem:[%s18201_s0 + $0x34a] sm:$0xff]  ;;  %v2595_v29 = vpop.f32.mrf.mxu2  ;;  %9240 = vmatmul.msk.f32.gmra.mxu3 %vm260_vm0, %v169_v15  ;;  %v4334_v33 = vand.u32 2147483648, %v14807_v63 }
 0x50a   :  { %v14857_v23 = vadd.f32 %v14390_v49, %v3350_v50  ;;  %v4316_v43 = vsel %vm14841_vm9, %v10204_v59, %v4312_v8  ;;  %9312 = vmatmul.msk.f32.gmra.mxu0 %vm260_vm0, %v241_v0  ;;  %v4324_v1 = vmul.f32 %v14833_v27, %v14807_v63  ;;  %vm4329_vm11 = vweird.f32 %v14833_v27  ;;  %v5215_v59 = vld [vmem:[#allocation2 + $0x188] sm:$0xff] }
 0x50b   :  { %10211 = vrcp.f32 %v14827_v58  ;;  %v2889_v4 = vpop.f32.mrf.mxu3  ;;  %5084 = vst.msk [vmem:[#allocation2 + $0x1f0] sm:$0xff] %vm260_vm0, %v4938_v32  ;;  %v4321_v24 = vsel %vm4318_vm10, %v4320_v38, %v4316_v43  ;;  %v4332_v38 = vand.u32 2147483647, %v14807_v63  ;;  %vm14886_vm13 = vmor %vm4328_vm12, %vm4329_vm11  ;;  %v170_v63 = vld [vmem:[%s18201_s0 + $0x351] sm:$0xff]  ;;  %vm4343_vm1 = vweird.f32 %v14827_v58 }
 0x50c   :  { %v3183_v12 = vpop.f32.mrf.mxu0  ;;  %v9359_v46 = vmul.f32 -1.442695, %v14857_v23  ;;  %4799 = vrot.lane.b32.xlu0 %v4321_v24, %s10819_s9  ;;  %v4325_v62 = vsub.f32 1.0, %v4324_v1  ;;  %v4772_v8 = vpop.permute.xlu0 %4771  ;;  %v4335_v1 = vor.u32 1.1754944e-38, %v4334_v33  ;;  %v9589_v33 = vld [vmem:[%s18205_s4 + $0xd8] sm:$0xff] }
 0x50d   :  { %v14831_v11 = vpop.f32.mrf.mxu1  ;;  %v10210_v54 = vpop.eup %10209  ;;  %v4936_v55 = vmul.f32 %v4772_v8, %v14226_v31  ;;  %v98_v31 = vld [vmem:[%s18201_s0 + $0x350] sm:$0xff]  ;;  %vm4333_vm14 = vcmp.eq.f32.partialorder %v4332_v38, 8.507059e+37  ;;  %6661 = vmatpush.msrb.mxu0 %v9589_v33 }
 0x50e   :  { %18471 = vst [vmem:[#allocation60_spill] sm:$0xff] %v14831_v11  ;;  %10213 = vpow2.f32 %v9359_v46  ;;  %v4326_v0 = vmul.f32 %v14833_v27, %v4325_v62  ;;  %9169 = vmatmul.msk.f32.gmra.mxu2 %vm260_vm0, %v98_v31  ;;  %v5338_v62 = vld [vmem:[%s18205_s4 + $0x18] sm:$0xff]  ;;  %v4349_v31 = vand.u32 2147483648, %v14827_v58 }
 0x50f   :  { %5082 = vst.msk [vmem:[#allocation2 + $0x1d0] sm:$0xff] %vm260_vm0, %v4936_v55  ;;  %5957 = vmatpush.msrb.mxu2 %v5338_v62  ;;  %v5337_v55 = vld [vmem:[%s18205_s4 + $0x10] sm:$0xff] }
 0x510   :  { %9409 = vmatmul.msk.f32.gmra.mxu1 %vm260_vm0, %v5214_v6  ;;  %v2695_v6 = vadd.f32 %v2595_v29, %v2401_v9  ;;  %v14873_v9 = vadd.f32 1.0, %v10210_v54  ;;  %v18477_v29 = vld [vmem:[#allocation27_spill] sm:$0xff]  ;;  %v4327_v24 = vadd.f32 %v14833_v27, %v4326_v0  ;;  %v9516_v0 = vld [vmem:[%s18205_s4 + $0x90] sm:$0xff] }
 0x511   :  { %v14875_v57 = vpop.eup %10211  ;;  %v2598_v54 = vpop.f32.mrf.mxu2  ;;  %9241 = vmatmul.msk.f32.gmra.mxu3 %vm260_vm0, %v170_v63  ;;  %5958 = vmatpush.msrb.mxu2 %v5337_v55  ;;  %v18483_v55 = vld [vmem:[#allocation49_spill] sm:$0xff] }
 0x512   :  { %v2989_v37 = vadd.f32 %v2889_v4, %v2695_v6  ;;  %v18478_v4 = vld [vmem:[#allocation46_spill] sm:$0xff]  ;;  %10215 = vrcp.f32 %v14873_v9  ;;  %v4331_v8 = vsel %vm14886_vm13, %v14833_v27, %v4327_v24  ;;  %vm4344_vm15 = vweird.f32 %v14875_v57 }
 0x513   :  { %v2402_v43 = vadd.f32 %v18478_v4, %v18477_v29  ;;  %v2892_v46 = vpop.f32.mrf.mxu3  ;;  %v9588_v29 = vld [vmem:[%s18205_s4 + $0xd0] sm:$0xff]  ;;  %v4774_v24 = vpop.permute.xlu1 %4773  ;;  %vm14972_vm2 = vmor %vm4343_vm1, %vm4344_vm15  ;;  %vm4358_vm5 = vweird.f32 %v14873_v9 }
 0x514   :  { %v3283_v32 = vadd.f32 %v3183_v12, %v2989_v37  ;;  %v3186_v15 = vpop.f32.mrf.mxu0  ;;  %v10214_v4 = vpop.eup %10213  ;;  %6662 = vmatpush.msrb.mxu0 %v9588_v29  ;;  %v4937_v33 = vmul.f32 %v4774_v24, %v14258_v20  ;;  %v14960_v29 = vld [vmem:[%s18203_s2] ss:$0 sm:$0xff]  ;;  %v4350_v24 = vor.u32 1.1754944e-38, %v4349_v31  ;;  %v14995_v31 = vld [vmem:[#allocation2 + $0x27] sm:$0xff] }
 0x515   :  { %v14871_v50 = vpop.f32.mrf.mxu1  ;;  %v14933_v12 = vadd.f32 1.0, %v10214_v4  ;;  %v5335_v20 = vld [vmem:[%s18205_s4] sm:$0xff] }
 0x516   :  { %18476 = vst [vmem:[#allocation6_spill] sm:$0xff] %v14871_v50  ;;  %v3351_v6 = vmul.f32 %v14368_v42, %v3283_v32  ;;  %v242_v42 = vld [vmem:[%s18201_s0 + $0x352] sm:$0xff]  ;;  %v2696_v32 = vadd.f32 %v2598_v54, %v2402_v43  ;;  %v9515_v54 = vld [vmem:[%s18205_s4 + $0x88] sm:$0xff] }
 0x517   :  { %9313 = vmatmul.msk.f32.gmra.mxu0 %vm260_vm0, %v242_v42  ;;  %5083 = vst.msk [vmem:[#allocation2 + $0x1e8] sm:$0xff] %vm260_vm0, %v4937_v33  ;;  %vm4373_vm9 = vweird.f32 %v14933_v12  ;;  %v5219_v50 = vld [vmem:[#allocation2 + $0x1c8] sm:$0xff] }
 0x518   :  { %9410 = vmatmul.msk.f32.gmra.mxu1 %vm260_vm0, %v5215_v59  ;;  %v14904_v37 = vadd.f32 %v14390_v49, %v3351_v6  ;;  %v9517_v59 = vld [vmem:[%s18205_s4 + $0x98] sm:$0xff]  ;;  %v4339_v49 = vmul.f32 %v14875_v57, %v14827_v58  ;;  %v4336_v6 = vsel %vm4333_vm14, %v4335_v1, %v4331_v8  ;;  %v2990_v27 = vadd.f32 %v2892_v46, %v2696_v32  ;;  %v5336_v1 = vld [vmem:[%s18205_s4 + $0x8] sm:$0xff]  ;;  %v18482_v8 = vld [vmem:[#allocation16_spill] sm:$0xff] }
 0x519   :  { %6367 = vmatpush.msrb.mxu3 %v9517_v59  ;;  %4801 = vrot.lane.b32.xlu1 %v4336_v6, %s10819_s9  ;;  %v9587_v46 = vld [vmem:[%s18205_s4 + $0xc8] sm:$0xff]  ;;  %v4347_v59 = vand.u32 2147483647, %v14827_v58  ;;  %v9514_v58 = vld [vmem:[%s18205_s4 + $0x80] sm:$0xff] }
 0x51a   :  { %v9360_v43 = vmul.f32 -1.442695, %v14904_v37  ;;  %v4340_v38 = vsub.f32 1.0, %v4339_v49  ;;  %v3284_v42 = vadd.f32 %v3186_v15, %v2990_v27  ;;  %v5216_v15 = vld [vmem:[#allocation2 + $0x190] sm:$0xff]  ;;  %5959 = vmatpush.msrb.mxu2 %v5336_v1  ;;  %v14953_v49 = vpop.eup %10215  ;;  %6663 = vmatpush.msrb.mxu0 %v9587_v46  ;;  %v9586_v27 = vld [vmem:[%s18205_s4 + $0xc0] sm:$0xff]  ;;  %v2601_v1 = vpop.f32.mrf.mxu2 }
 0x51b   :  { %6368 = vmatpush.msrb.mxu3 %v9516_v0  ;;  %v2403_v0 = vadd.f32 %v18483_v55, %v18482_v8  ;;  %v14985_v46 = vld [vmem:[%s18204_s3] ss:$0 sm:$0xff]  ;;  %vm4348_vm3 = vcmp.eq.f32.partialorder %v4347_v59, 8.507059e+37  ;;  %v4354_v55 = vmul.f32 %v14953_v49, %v14873_v9  ;;  %vm4359_vm4 = vweird.f32 %v14953_v49 }
 0x51c   :  { %10217 = vpow2.f32 %v9360_v43  ;;  %v4341_v62 = vmul.f32 %v14875_v57, %v4340_v38  ;;  %v3189_v32 = vpop.f32.mrf.mxu0  ;;  %v3352_v4 = vmul.f32 %v14960_v29, %v3284_v42  ;;  %5960 = vmatpush.msrb.mxu2 %v5335_v20  ;;  %v5119_v38 = vld [vmem:[#allocation2 + $0x7] sm:$0xff]  ;;  %6664 = vmatpush.msrb.mxu0 %v9586_v27  ;;  %v4364_v27 = vand.u32 2147483648, %v14873_v9  ;;  %vm4360_vm6 = vmor %vm4358_vm5, %vm4359_vm4 }
 0x51d   :  { %v14938_v63 = vpop.f32.mrf.mxu1  ;;  %6369 = vmatpush.msrb.mxu3 %v9515_v54  ;;  %10219 = vrcp.f32 %v14933_v12  ;;  %v5263_v42 = vld [vmem:[#allocation2 + $0x9] sm:$0xff]  ;;  %v2895_v54 = vpop.f32.mrf.mxu3  ;;  %v2697_v33 = vadd.f32 %v2601_v1, %v2403_v0  ;;  %9450 = vmatmul.msk.f32.vlgmr.msrb.gmra.mxu2 %vm260_vm0, %v5119_v38  ;;  %v4355_v0 = vsub.f32 1.0, %v4354_v55  ;;  %v4362_v1 = vand.u32 2147483647, %v14873_v9  ;;  %v5264_v55 = vld [vmem:[#allocation2 + $0x11] sm:$0xff] }
 0x51e   :  { %18481 = vst [vmem:[#allocation7_spill] sm:$0xff] %v14938_v63  ;;  %v4342_v43 = vadd.f32 %v14875_v57, %v4341_v62  ;;  %v14988_v62 = vadd.f32 %v14985_v46, %v3352_v4 }
 0x51f   :  { %6370 = vmatpush.msrb.mxu3 %v9514_v58  ;;  %9594 = vmatmul.msk.f32.vlgmr.msrb.gmra.mxu0 %vm260_vm0, %v14995_v31  ;;  %vm4363_vm7 = vcmp.eq.f32.partialorder %v4362_v1, 8.507059e+37 }
 0x520   :  { %9411 = vmatmul.msk.f32.gmra.mxu1 %vm260_vm0, %v5216_v15  ;;  %v4346_v15 = vsel %vm14972_vm2, %v14875_v57, %v4342_v43  ;;  %9522 = vmatmul.msk.f32.vlgmr.msrb.gmra.mxu3 %vm260_vm0, %v5263_v42  ;;  %v9361_v20 = vmul.f32 -1.442695, %v14988_v62  ;;  %v2991_v57 = vadd.f32 %v2895_v54, %v2697_v33  ;;  %v5217_v43 = vld [vmem:[#allocation2 + $0x1a8] sm:$0xff]  ;;  %v18487_v54 = vld [vmem:[#allocation17_spill] sm:$0xff] }
 0x521   :  { %v4351_v8 = vsel %vm4348_vm3, %v4350_v24, %v4346_v15  ;;  %v4356_v24 = vmul.f32 %v14953_v49, %v4355_v0  ;;  %v18488_v15 = vld [vmem:[#allocation51_spill] sm:$0xff] }
 0x522   :  { %v10218_v4 = vpop.eup %10217  ;;  %4803 = vrot.lane.b32.xlu2 %v4351_v8, %s10819_s9  ;;  %10221 = vpow2.f32 %v9361_v20  ;;  %v3285_v6 = vadd.f32 %v3189_v32, %v2991_v57  ;;  %v2404_v33 = vadd.f32 %v18488_v15, %v18487_v54  ;;  %v5120_v32 = vld [vmem:[#allocation2 + $0xf] sm:$0xff]  ;;  %v2604_v20 = vpop.f32.mrf.mxu2 }
 0x523   :  { %v15003_v59 = vadd.f32 1.0, %v10218_v4  ;;  %v15008_v38 = vpop.eup %10219  ;;  %v4357_v4 = vadd.f32 %v14953_v49, %v4356_v24 }
 0x524   :  { %v3192_v42 = vpop.f32.mrf.mxu0  ;;  %v3353_v8 = vmul.f32 %v14960_v29, %v3285_v6  ;;  %v2698_v54 = vadd.f32 %v2604_v20, %v2404_v33  ;;  %v4369_v6 = vmul.f32 %v15008_v38, %v14933_v12  ;;  %vm4374_vm8 = vweird.f32 %v15008_v38 }
 0x525   :  { %v15005_v58 = vpop.f32.mrf.mxu1  ;;  %10223 = vrcp.f32 %v15003_v59  ;;  %v2898_v57 = vpop.f32.mrf.mxu3  ;;  %9451 = vmatmul.msk.f32.gmra.mxu2 %vm260_vm0, %v5120_v32  ;;  %v4361_v24 = vsel %vm4360_vm6, %v14953_v49, %v4357_v4  ;;  %v4377_v32 = vand.u32 2147483647, %v14933_v12  ;;  %v5218_v49 = vld [vmem:[#allocation2 + $0x1b0] sm:$0xff]  ;;  %vm4375_vm10 = vmor %vm4373_vm9, %vm4374_vm8  ;;  %vm4388_vm13 = vweird.f32 %v15003_v59 }
 0x526   :  { %18486 = vst [vmem:[#allocation8_spill] sm:$0xff] %v15005_v58  ;;  %v15021_v0 = vadd.f32 %v14985_v46, %v3353_v8  ;;  %v4365_v58 = vor.u32 1.1754944e-38, %v4364_v27  ;;  %v2992_v33 = vadd.f32 %v2898_v57, %v2698_v54  ;;  %v4370_v8 = vsub.f32 1.0, %v4369_v6  ;;  %v18490_v54 = vld [vmem:[#allocation30_spill] sm:$0xff] }
 0x527   :  { %v18491_v6 = vld [vmem:[#allocation54_spill] sm:$0xff]  ;;  %vm4378_vm11 = vcmp.eq.f32.partialorder %v4377_v32, 8.507059e+37 }
 0x528   :  { %9412 = vmatmul.msk.f32.gmra.mxu1 %vm260_vm0, %v5217_v43  ;;  %9523 = vmatmul.msk.f32.gmra.mxu3 %vm260_vm0, %v5264_v55  ;;  %v15027_v43 = vld [vmem:[#allocation2 + $0x2f] sm:$0xff]  ;;  %v10222_v9 = vpop.eup %10221  ;;  %v9362_v15 = vmul.f32 -1.442695, %v15021_v0  ;;  %v4366_v27 = vsel %vm4363_vm7, %v4365_v58, %v4361_v24  ;;  %v4379_v55 = vand.u32 2147483648, %v14933_v12  ;;  %v3286_v1 = vadd.f32 %v3192_v42, %v2992_v33  ;;  %v15060_v12 = vld [vmem:[#allocation2 + $0x47] sm:$0xff] }
 0x529   :  { %9595 = vmatmul.msk.f32.gmra.mxu0 %vm260_vm0, %v15027_v43  ;;  %v15033_v20 = vadd.f32 1.0, %v10222_v9  ;;  %4805 = vrot.lane.b32.xlu0 %v4366_v27, %s10819_s9  ;;  %v4371_v4 = vmul.f32 %v15008_v38, %v4370_v8  ;;  %v2405_v24 = vadd.f32 %v18491_v6, %v18490_v54 }
 0x52a   :  { %10225 = vpow2.f32 %v9362_v15  ;;  %v3354_v9 = vmul.f32 %v14960_v29, %v3286_v1  ;;  %v4380_v42 = vor.u32 1.1754944e-38, %v4379_v55  ;;  %v2607_v15 = vpop.f32.mrf.mxu2 }
 0x52b   :  { %v15042_v58 = vpop.eup %10223  ;;  %v4372_v27 = vadd.f32 %v15008_v38, %v4371_v4  ;;  %10227 = vrcp.f32 %v15033_v20  ;;  %v2699_v1 = vadd.f32 %v2607_v15, %v2405_v24  ;;  %vm4403_vm2 = vweird.f32 %v15033_v20 }
 0x52c   :  { %v3195_v57 = vpop.f32.mrf.mxu0  ;;  %v15052_v8 = vadd.f32 %v14985_v46, %v3354_v9  ;;  %v4384_v4 = vmul.f32 %v15042_v58, %v15003_v59  ;;  %v4392_v9 = vand.u32 2147483647, %v15003_v59  ;;  %vm4389_vm12 = vweird.f32 %v15042_v58 }
 0x52d   :  { %v15038_v63 = vpop.f32.mrf.mxu1  ;;  %v2901_v33 = vpop.f32.mrf.mxu3  ;;  %v4376_v54 = vsel %vm4375_vm10, %v15008_v38, %v4372_v27  ;;  %9452 = vmatmul.msk.f32.gmra.mxu2 %vm260_vm0, %v14995_v31  ;;  %v4394_v31 = vand.u32 2147483648, %v15003_v59  ;;  %vm4390_vm14 = vmor %vm4388_vm13, %vm4389_vm12  ;;  %v5266_v59 = vld [vmem:[#allocation2 + $0x31] sm:$0xff] }
 0x52e   :  { %18489 = vst [vmem:[#allocation9_spill] sm:$0xff] %v15038_v63  ;;  %v5265_v63 = vld [vmem:[#allocation2 + $0x29] sm:$0xff]  ;;  %v4381_v32 = vsel %vm4378_vm11, %v4380_v42, %v4376_v54  ;;  %v2993_v38 = vadd.f32 %v2901_v33, %v2699_v1  ;;  %v4385_v6 = vsub.f32 1.0, %v4384_v4  ;;  %v4786_v42 = vpop.permute.xlu2 %4785  ;;  %vm4393_vm15 = vcmp.eq.f32.partialorder %v4392_v9, 8.507059e+37 }
 0x52f   :  { %4807 = vrot.lane.b32.xlu1 %v4381_v32, %s10819_s9  ;;  %v4943_v33 = vmul.f32 %v4786_v42, %v14461_v40  ;;  %v18493_v4 = vld [vmem:[#allocation32_spill] sm:$0xff]  ;;  %v18494_v32 = vld [vmem:[#allocation55_spill] sm:$0xff]  ;;  %v9661_v40 = vld [vmem:[%s18205_s4 + $0x118] sm:$0xff] }
 0x530   :  { %9413 = vmatmul.msk.f32.gmra.mxu1 %vm260_vm0, %v5218_v49  ;;  %9524 = vmatmul.msk.f32.gmra.mxu3 %vm260_vm0, %v5265_v63  ;;  %v10226_v55 = vpop.eup %10225  ;;  %v9363_v49 = vmul.f32 -1.442695, %v15052_v8  ;;  %v3287_v27 = vadd.f32 %v3195_v57, %v2993_v38  ;;  %v4386_v15 = vmul.f32 %v15042_v58, %v4385_v6  ;;  %v4395_v57 = vor.u32 1.1754944e-38, %v4394_v31  ;;  %v15097_v9 = vld [vmem:[#allocation2 + $0x4f] sm:$0xff] }
 0x531   :  { %9596 = vmatmul.msk.f32.gmra.mxu0 %vm260_vm0, %v15060_v12  ;;  %v15066_v24 = vadd.f32 1.0, %v10226_v55  ;;  %v15074_v54 = vpop.eup %10227  ;;  %v2406_v55 = vadd.f32 %v18494_v32, %v18493_v4  ;;  %5089 = vst.msk [vmem:[#allocation2 + $0x288] sm:$0xff] %vm260_vm0, %v4943_v33  ;;  %6955 = vmatpush.msrb.mxu1 %v9661_v40  ;;  %v4407_v4 = vand.u32 2147483647, %v15033_v20 }
 0x532   :  { %10229 = vpow2.f32 %v9363_v49  ;;  %v3355_v11 = vmul.f32 %v14960_v29, %v3287_v27  ;;  %v2610_v49 = vpop.f32.mrf.mxu2  ;;  %v4399_v42 = vmul.f32 %v15074_v54, %v15033_v20  ;;  %vm4404_vm1 = vweird.f32 %v15074_v54 }
 0x533   :  { %10231 = vrcp.f32 %v15066_v24  ;;  %v2700_v27 = vadd.f32 %v2610_v49, %v2406_v55  ;;  %v5220_v55 = vld [vmem:[#allocation2 + $0x1d0] sm:$0xff]  ;;  %vm4405_vm3 = vmor %vm4403_vm2, %vm4404_vm1  ;;  %vm4408_vm4 = vcmp.eq.f32.partialorder %v4407_v4, 8.507059e+37  ;;  %vm4418_vm6 = vweird.f32 %v15066_v24 }
 0x534   :  { %v3198_v1 = vpop.f32.mrf.mxu0  ;;  %v15089_v6 = vadd.f32 %v14985_v46, %v3355_v11 }
 0x535   :  { %v15070_v63 = vpop.f32.mrf.mxu1  ;;  %v2904_v38 = vpop.f32.mrf.mxu3  ;;  %9453 = vmatmul.msk.f32.gmra.mxu2 %vm260_vm0, %v15027_v43  ;;  %v4409_v43 = vand.u32 2147483648, %v15033_v20 }
 0x536   :  { %18492 = vst [vmem:[#allocation10_spill] sm:$0xff] %v15070_v63  ;;  %v4387_v63 = vadd.f32 %v15042_v58, %v4386_v15  ;;  %v9364_v11 = vmul.f32 -1.442695, %v15089_v6 }
 0x538   :  { %9414 = vmatmul.msk.f32.gmra.mxu1 %vm260_vm0, %v5219_v50  ;;  %v4391_v50 = vsel %vm4390_vm14, %v15042_v58, %v4387_v63  ;;  %9525 = vmatmul.msk.f32.gmra.mxu3 %vm260_vm0, %v5266_v59  ;;  %v10230_v15 = vpop.eup %10229  ;;  %v2994_v58 = vadd.f32 %v2904_v38, %v2700_v27  ;;  %v4400_v63 = vsub.f32 1.0, %v4399_v42  ;;  %10233 = vpow2.f32 %v9364_v11  ;;  %v18496_v27 = vld [vmem:[#allocation19_spill] sm:$0xff] }
 0x539   :  { %v4396_v31 = vsel %vm4393_vm15, %v4395_v57, %v4391_v50  ;;  %9597 = vmatmul.msk.f32.gmra.mxu0 %vm260_vm0, %v15097_v9  ;;  %v15103_v33 = vadd.f32 1.0, %v10230_v15  ;;  %v4782_v57 = vpop.permute.xlu0 %4781  ;;  %v15111_v59 = vpop.eup %10231  ;;  %v18497_v42 = vld [vmem:[#allocation59_spill] sm:$0xff] }
 0x53a   :  { %4809 = vrot.lane.b32.xlu2 %v4396_v31, %s10819_s9  ;;  %v3288_v40 = vadd.f32 %v3198_v1, %v2994_v58  ;;  %v4401_v49 = vmul.f32 %v15074_v54, %v4400_v63  ;;  %v4941_v38 = vmul.f32 %v4782_v57, %v14393_v7  ;;  %v2407_v31 = vadd.f32 %v18497_v42, %v18496_v27  ;;  %v2613_v7 = vpop.f32.mrf.mxu2  ;;  %v5267_v63 = vld [vmem:[#allocation2 + $0x49] sm:$0xff] }
 0x53b   :  { %10235 = vrcp.f32 %v15103_v33  ;;  %v4410_v1 = vor.u32 1.1754944e-38, %v4409_v43  ;;  %v4414_v20 = vmul.f32 %v15111_v59, %v15066_v24  ;;  %v4422_v27 = vand.u32 2147483647, %v15066_v24 }
 0x53c   :  { %v3201_v50 = vpop.f32.mrf.mxu0  ;;  %v3356_v15 = vmul.f32 %v14960_v29, %v3288_v40  ;;  %5087 = vst.msk [vmem:[#allocation2 + $0x268] sm:$0xff] %vm260_vm0, %v4941_v38  ;;  %v2701_v57 = vadd.f32 %v2613_v7, %v2407_v31  ;;  %v5221_v31 = vld [vmem:[#allocation2 + $0x1e8] sm:$0xff]  ;;  %vm4419_vm5 = vweird.f32 %v15111_v59  ;;  %vm4433_vm10 = vweird.f32 %v15103_v33 }
 0x53d   :  { %v15107_v32 = vpop.f32.mrf.mxu1  ;;  %v2907_v11 = vpop.f32.mrf.mxu3  ;;  %9454 = vmatmul.msk.f32.gmra.mxu2 %vm260_vm0, %v15060_v12  ;;  %v4424_v12 = vand.u32 2147483648, %v15066_v24  ;;  %vm4420_vm7 = vmor %vm4418_vm6, %vm4419_vm5  ;;  %vm4423_vm8 = vcmp.eq.f32.partialorder %v4422_v27, 8.507059e+37 }
 0x53e   :  { %18495 = vst [vmem:[#allocation12_spill] sm:$0xff] %v15107_v32  ;;  %v4402_v32 = vadd.f32 %v15074_v54, %v4401_v49  ;;  %v15123_v58 = vadd.f32 %v14985_v46, %v3356_v15  ;;  %v10234_v43 = vpop.eup %10233 }
 0x53f   :  { %v15137_v38 = vadd.f32 1.0, %v10234_v43 }
 0x540   :  { %9415 = vmatmul.msk.f32.gmra.mxu1 %vm260_vm0, %v5220_v55  ;;  %v4406_v40 = vsel %vm4405_vm3, %v15074_v54, %v4402_v32  ;;  %9526 = vmatmul.msk.f32.gmra.mxu3 %vm260_vm0, %v5267_v63  ;;  %v15131_v55 = vld [vmem:[#allocation2 + $0x67] sm:$0xff]  ;;  %v9365_v49 = vmul.f32 -1.442695, %v15123_v58  ;;  %v2995_v54 = vadd.f32 %v2907_v11, %v2701_v57  ;;  %v4415_v32 = vsub.f32 1.0, %v4414_v20  ;;  %v18498_v57 = vld [vmem:[#allocation21_spill] sm:$0xff] }
 0x541   :  { %v4411_v4 = vsel %vm4408_vm4, %v4410_v1, %v4406_v40  ;;  %9598 = vmatmul.msk.f32.gmra.mxu0 %vm260_vm0, %v15131_v55  ;;  %v4784_v1 = vpop.permute.xlu1 %4783  ;;  %v15145_v63 = vpop.eup %10235  ;;  %v2408_v20 = vadd.f32 %v14074_v45, %v18498_v57  ;;  %v5268_v45 = vld [vmem:[#allocation2 + $0x51] sm:$0xff]  ;;  %v4437_v57 = vand.u32 2147483647, %v15103_v33  ;;  %vm4448_vm14 = vweird.f32 %v15137_v38 }
 0x542   :  { %4811 = vrot.lane.b32.xlu0 %v4411_v4, %s10819_s9  ;;  %10237 = vpow2.f32 %v9365_v49  ;;  %v3289_v15 = vadd.f32 %v3201_v50, %v2995_v54  ;;  %v4416_v7 = vmul.f32 %v15111_v59, %v4415_v32  ;;  %v4942_v11 = vmul.f32 %v4784_v1, %v14429_v48  ;;  %v2616_v48 = vpop.f32.mrf.mxu2 }
 0x543   :  { %10239 = vrcp.f32 %v15137_v38  ;;  %v4425_v50 = vor.u32 1.1754944e-38, %v4424_v12  ;;  %v4429_v24 = vmul.f32 %v15145_v63, %v15103_v33  ;;  %vm4434_vm9 = vweird.f32 %v15145_v63 }
 0x544   :  { %v3204_v40 = vpop.f32.mrf.mxu0  ;;  %v3357_v4 = vmul.f32 %v14960_v29, %v3289_v15  ;;  %v4417_v43 = vadd.f32 %v15111_v59, %v4416_v7  ;;  %5088 = vst.msk [vmem:[#allocation2 + $0x270] sm:$0xff] %vm260_vm0, %v4942_v11  ;;  %v2702_v15 = vadd.f32 %v2616_v48, %v2408_v20  ;;  %v18499_v48 = vld [vmem:[#allocation35_spill] sm:$0xff]  ;;  %vm4435_vm11 = vmor %vm4433_vm10, %vm4434_vm9  ;;  %vm4438_vm12 = vcmp.eq.f32.partialorder %v4437_v57, 8.507059e+37 }
 0x545   :  { %v15141_v42 = vpop.f32.mrf.mxu1  ;;  %v2910_v49 = vpop.f32.mrf.mxu3  ;;  %9455 = vmatmul.msk.f32.gmra.mxu2 %vm260_vm0, %v15097_v9  ;;  %v4430_v7 = vsub.f32 1.0, %v4429_v24  ;;  %v4439_v9 = vand.u32 2147483648, %v15103_v33  ;;  %v15199_v57 = vld [vmem:[#allocation2 + $0x87] sm:$0xff] }
 0x546   :  { %v15157_v54 = vadd.f32 %v14985_v46, %v3357_v4  ;;  %v4421_v32 = vsel %vm4420_vm7, %v15111_v59, %v4417_v43  ;;  %v2996_v59 = vadd.f32 %v2910_v49, %v2702_v15  ;;  %v2409_v49 = vadd.f32 %v14130_v35, %v18499_v48  ;;  %v5222_v15 = vld [vmem:[#allocation2 + $0x1f0] sm:$0xff] }
 0x547   :  { %v4426_v27 = vsel %vm4423_vm8, %v4425_v50, %v4421_v32  ;;  %v4431_v43 = vmul.f32 %v15145_v63, %v4430_v7  ;;  %v5269_v7 = vld [vmem:[#allocation2 + $0x69] sm:$0xff] }
 0x548   :  { %9416 = vmatmul.msk.f32.gmra.mxu1 %vm260_vm0, %v5221_v31  ;;  %9527 = vmatmul.msk.f32.gmra.mxu3 %vm260_vm0, %v5268_v45  ;;  %v15165_v31 = vld [vmem:[#allocation2 + $0x6f] sm:$0xff]  ;;  %v10238_v12 = vpop.eup %10237  ;;  %v9366_v1 = vmul.f32 -1.442695, %v15157_v54  ;;  %v3290_v4 = vadd.f32 %v3204_v40, %v2996_v59  ;;  %v4792_v45 = vpop.permute.xlu2 %4791  ;;  %v4440_v40 = vor.u32 1.1754944e-38, %v4439_v9 }
 0x549   :  { %9599 = vmatmul.msk.f32.gmra.mxu0 %vm260_vm0, %v15165_v31  ;;  %4813 = vrot.lane.b32.xlu1 %v4426_v27, %s10819_s9  ;;  %v15171_v11 = vadd.f32 1.0, %v10238_v12  ;;  %v15179_v50 = vpop.eup %10239  ;;  %v4946_v27 = vmul.f32 %v4792_v45, %v14554_v26  ;;  %v4432_v12 = vadd.f32 %v15145_v63, %v4431_v43 }
 0x54a   :  { %10241 = vpow2.f32 %v9366_v1  ;;  %v3358_v24 = vmul.f32 %v14960_v29, %v3290_v4  ;;  %v2619_v1 = vpop.f32.mrf.mxu2  ;;  %v4444_v33 = vmul.f32 %v15179_v50, %v15137_v38  ;;  %vm4449_vm13 = vweird.f32 %v15179_v50 }
 0x54b   :  { %10243 = vrcp.f32 %v15171_v11  ;;  %5092 = vst.msk [vmem:[#allocation2 + $0x2b0] sm:$0xff] %vm260_vm0, %v4946_v27  ;;  %v4436_v26 = vsel %vm4435_vm11, %v15145_v63, %v4432_v12  ;;  %v2703_v4 = vadd.f32 %v2619_v1, %v2409_v49  ;;  %v5227_v27 = vld [vmem:[#allocation2 + $0x248] sm:$0xff]  ;;  %vm4450_vm15 = vmor %vm4448_vm14, %vm4449_vm13  ;;  %vm4463_vm3 = vweird.f32 %v15171_v11 }
 0x54c   :  { %v3207_v32 = vpop.f32.mrf.mxu0  ;;  %v15190_v59 = vadd.f32 %v14985_v46, %v3358_v24  ;;  %v4441_v9 = vsel %vm4438_vm12, %v4440_v40, %v4436_v26  ;;  %v4445_v49 = vsub.f32 1.0, %v4444_v33  ;;  %v4788_v40 = vpop.permute.xlu0 %4787 }
 0x54d   :  { %v15175_v20 = vpop.f32.mrf.mxu1  ;;  %v2913_v35 = vpop.f32.mrf.mxu3  ;;  %9456 = vmatmul.msk.f32.gmra.mxu2 %vm260_vm0, %v15131_v55  ;;  %4815 = vrot.lane.b32.xlu2 %v4441_v9, %s10819_s9  ;;  %v4454_v55 = vand.u32 2147483648, %v15137_v38 }
 0x54e   :  { %v9367_v48 = vmul.f32 -1.442695, %v15190_v59  ;;  %v2997_v63 = vadd.f32 %v2913_v35, %v2703_v4  ;;  %v4446_v1 = vmul.f32 %v15179_v50, %v4445_v49  ;;  %v4944_v35 = vmul.f32 %v4788_v40, %v14486_v52  ;;  %v18500_v4 = vld [vmem:[#allocation37_spill] sm:$0xff] }
 0x54f   :  { %v2410_v33 = vadd.f32 %v14189_v61, %v18500_v4  ;;  %v5270_v61 = vld [vmem:[#allocation2 + $0x71] sm:$0xff]  ;;  %v4467_v4 = vand.u32 2147483647, %v15171_v11 }
 0x550   :  { %9417 = vmatmul.msk.f32.gmra.mxu1 %vm260_vm0, %v5222_v15  ;;  %9528 = vmatmul.msk.f32.gmra.mxu3 %vm260_vm0, %v5269_v7  ;;  %v10242_v43 = vpop.eup %10241  ;;  %v4452_v15 = vand.u32 2147483647, %v15137_v38  ;;  %10245 = vpow2.f32 %v9367_v48  ;;  %v3291_v12 = vadd.f32 %v3207_v32, %v2997_v63  ;;  %5090 = vst.msk [vmem:[#allocation2 + $0x290] sm:$0xff] %vm260_vm0, %v4944_v35  ;;  %v4455_v32 = vor.u32 1.1754944e-38, %v4454_v55 }
 0x551   :  { %9600 = vmatmul.msk.f32.gmra.mxu0 %vm260_vm0, %v15199_v57  ;;  %v15205_v45 = vadd.f32 1.0, %v10242_v43  ;;  %v15213_v7 = vpop.eup %10243  ;;  %v4447_v43 = vadd.f32 %v15179_v50, %v4446_v1  ;;  %vm4468_vm5 = vcmp.eq.f32.partialorder %v4467_v4, 8.507059e+37 }
 0x552   :  { %v3359_v9 = vmul.f32 %v14960_v29, %v3291_v12  ;;  %vm4453_vm1 = vcmp.eq.f32.partialorder %v4452_v15, 8.507059e+37  ;;  %v2622_v52 = vpop.f32.mrf.mxu2  ;;  %v4459_v38 = vmul.f32 %v15213_v7, %v15171_v11  ;;  %vm4464_vm2 = vweird.f32 %v15213_v7 }
 0x553   :  { %10247 = vrcp.f32 %v15205_v45  ;;  %v4451_v49 = vsel %vm4450_vm15, %v15179_v50, %v4447_v43  ;;  %v2704_v12 = vadd.f32 %v2622_v52, %v2410_v33  ;;  %vm4465_vm4 = vmor %vm4463_vm3, %vm4464_vm2  ;;  %vm4478_vm7 = vweird.f32 %v15205_v45 }
 0x554   :  { %v3210_v26 = vpop.f32.mrf.mxu0  ;;  %v15225_v63 = vadd.f32 %v14985_v46, %v3359_v9  ;;  %v4456_v15 = vsel %vm4453_vm1, %v4455_v32, %v4451_v49  ;;  %v4460_v1 = vsub.f32 1.0, %v4459_v38  ;;  %v5228_v9 = vld [vmem:[#allocation2 + $0x250] sm:$0xff] }
 0x555   :  { %v15209_v24 = vpop.f32.mrf.mxu1  ;;  %v2916_v48 = vpop.f32.mrf.mxu3  ;;  %9457 = vmatmul.msk.f32.gmra.mxu2 %vm260_vm0, %v15165_v31  ;;  %4817 = vrot.lane.b32.xlu0 %v4456_v15, %s10819_s9  ;;  %v4469_v31 = vand.u32 2147483648, %v15171_v11 }
 0x556   :  { %v10246_v55 = vpop.eup %10245  ;;  %v9368_v40 = vmul.f32 -1.442695, %v15225_v63  ;;  %v2998_v50 = vadd.f32 %v2916_v48, %v2704_v12  ;;  %v4790_v32 = vpop.permute.xlu1 %4789  ;;  %v4461_v52 = vmul.f32 %v15213_v7, %v4460_v1  ;;  %v18501_v12 = vld [vmem:[#allocation24_spill] sm:$0xff] }
 0x557   :  { %v15239_v35 = vadd.f32 1.0, %v10246_v55  ;;  %v4945_v48 = vmul.f32 %v4790_v32, %v14519_v22  ;;  %v2411_v38 = vadd.f32 %v14240_v36, %v18501_v12  ;;  %v5271_v36 = vld [vmem:[#allocation2 + $0x89] sm:$0xff]  ;;  %v4482_v12 = vand.u32 2147483647, %v15205_v45 }
 0x558   :  { %9418 = vmatmul.msk.f32.gmra.mxu1 %vm260_vm0, %v5227_v27  ;;  %9529 = vmatmul.msk.f32.gmra.mxu3 %vm260_vm0, %v5270_v61  ;;  %v15233_v27 = vld [vmem:[#allocation2 + $0x8f] sm:$0xff]  ;;  %10249 = vpow2.f32 %v9368_v40  ;;  %v3292_v43 = vadd.f32 %v3210_v26, %v2998_v50  ;;  %v4462_v55 = vadd.f32 %v15213_v7, %v4461_v52  ;;  %v4470_v26 = vor.u32 1.1754944e-38, %v4469_v31 }
 0x559   :  { %9601 = vmatmul.msk.f32.gmra.mxu0 %vm260_vm0, %v15233_v27  ;;  %v15247_v61 = vpop.eup %10247  ;;  %10251 = vrcp.f32 %v15239_v35  ;;  %5091 = vst.msk [vmem:[#allocation2 + $0x2a8] sm:$0xff] %vm260_vm0, %v4945_v48  ;;  %vm4483_vm9 = vcmp.eq.f32.partialorder %v4482_v12, 8.507059e+37  ;;  %vm4493_vm11 = vweird.f32 %v15239_v35 }
 0x55a   :  { %v3360_v15 = vmul.f32 %v14960_v29, %v3292_v43  ;;  %v2625_v22 = vpop.f32.mrf.mxu2  ;;  %v4466_v1 = vsel %vm4465_vm4, %v15213_v7, %v4462_v55  ;;  %v4474_v11 = vmul.f32 %v15247_v61, %v15205_v45  ;;  %vm4479_vm6 = vweird.f32 %v15247_v61 }
 0x55b   :  { %v2705_v43 = vadd.f32 %v2625_v22, %v2411_v38  ;;  %v4471_v4 = vsel %vm4468_vm5, %v4470_v26, %v4466_v1  ;;  %vm4480_vm8 = vmor %vm4478_vm7, %vm4479_vm6 }
 0x55c   :  { %v3213_v49 = vpop.f32.mrf.mxu0  ;;  %v15259_v50 = vadd.f32 %v14985_v46, %v3360_v15  ;;  %4819 = vrot.lane.b32.xlu1 %v4471_v4, %s10819_s9  ;;  %v4475_v52 = vsub.f32 1.0, %v4474_v11  ;;  %v5229_v15 = vld [vmem:[#allocation2 + $0x268] sm:$0xff] }
 0x55d   :  { %v15243_v33 = vpop.f32.mrf.mxu1  ;;  %v2919_v40 = vpop.f32.mrf.mxu3  ;;  %9458 = vmatmul.msk.f32.gmra.mxu2 %vm260_vm0, %v15199_v57  ;;  %v4484_v57 = vand.u32 2147483648, %v15205_v45 }
 0x55e   :  { %v10250_v31 = vpop.eup %10249  ;;  %v9369_v32 = vmul.f32 -1.442695, %v15259_v50  ;;  %v2999_v7 = vadd.f32 %v2919_v40, %v2705_v43  ;;  %v4476_v22 = vmul.f32 %v15247_v61, %v4475_v52  ;;  %v18502_v43 = vld [vmem:[#allocation26_spill] sm:$0xff] }
 0x55f   :  { %v15273_v48 = vadd.f32 1.0, %v10250_v31  ;;  %v2412_v11 = vadd.f32 %v14278_v21, %v18502_v43  ;;  %v5272_v21 = vld [vmem:[#allocation2 + $0x91] sm:$0xff]  ;;  %v4497_v43 = vand.u32 2147483647, %v15239_v35 }
 0x560   :  { %9419 = vmatmul.msk.f32.gmra.mxu1 %vm260_vm0, %v5228_v9  ;;  %9530 = vmatmul.msk.f32.gmra.mxu3 %vm260_vm0, %v5271_v36  ;;  %v15267_v9 = vld [vmem:[#allocation2 + $0xa7] sm:$0xff]  ;;  %10253 = vpow2.f32 %v9369_v32  ;;  %v3293_v55 = vadd.f32 %v3213_v49, %v2999_v7  ;;  %v15281_v36 = vpop.eup %10251  ;;  %v4477_v31 = vadd.f32 %v15247_v61, %v4476_v22  ;;  %v4485_v49 = vor.u32 1.1754944e-38, %v4484_v57 }
 0x561   :  { %9602 = vmatmul.msk.f32.gmra.mxu0 %vm260_vm0, %v15267_v9  ;;  %10255 = vrcp.f32 %v15273_v48  ;;  %v4489_v45 = vmul.f32 %v15281_v36, %v15239_v35  ;;  %vm4494_vm10 = vweird.f32 %v15281_v36  ;;  %vm4498_vm13 = vcmp.eq.f32.partialorder %v4497_v43, 8.507059e+37 }
 0x562   :  { %v4798_v26 = vpop.permute.xlu2 %4797  ;;  %v3361_v4 = vmul.f32 %v14960_v29, %v3293_v55  ;;  %v4481_v52 = vsel %vm4480_vm8, %v15247_v61, %v4477_v31  ;;  %vm4495_vm12 = vmor %vm4493_vm11, %vm4494_vm10  ;;  %vm4508_vm15 = vweird.f32 %v15273_v48 }
 0x563   :  { %v4949_v40 = vmul.f32 %v4798_v26, %v14666_v28  ;;  %v2628_v28 = vpop.f32.mrf.mxu2  ;;  %v4486_v12 = vsel %vm4483_vm9, %v4485_v49, %v4481_v52  ;;  %v4490_v22 = vsub.f32 1.0, %v4489_v45 }
 0x564   :  { %v3216_v1 = vpop.f32.mrf.mxu0  ;;  %v15293_v7 = vadd.f32 %v14985_v46, %v3361_v4  ;;  %v2706_v55 = vadd.f32 %v2628_v28, %v2412_v11  ;;  %4821 = vrot.lane.b32.xlu2 %v4486_v12, %s10819_s9  ;;  %v5230_v4 = vld [vmem:[#allocation2 + $0x270] sm:$0xff] }
 0x565   :  { %v15277_v38 = vpop.f32.mrf.mxu1  ;;  %5095 = vst.msk [vmem:[#allocation2 + $0x2e8] sm:$0xff] %vm260_vm0, %v4949_v40  ;;  %v2922_v32 = vpop.f32.mrf.mxu3  ;;  %9459 = vmatmul.msk.f32.gmra.mxu2 %vm260_vm0, %v15233_v27  ;;  %v4499_v27 = vand.u32 2147483648, %v15239_v35  ;;  %v4491_v28 = vmul.f32 %v15281_v36, %v4490_v22 }
 0x566   :  { %v10254_v57 = vpop.eup %10253  ;;  %v9370_v26 = vmul.f32 -1.442695, %v15293_v7  ;;  %v3000_v61 = vadd.f32 %v2922_v32, %v2706_v55  ;;  %v18503_v55 = vld [vmem:[#allocation40_spill] sm:$0xff] }
 0x567   :  { %v15307_v40 = vadd.f32 1.0, %v10254_v57  ;;  %v2413_v45 = vadd.f32 %v14311_v10, %v18503_v55  ;;  %v4492_v57 = vadd.f32 %v15281_v36, %v4491_v28  ;;  %v5273_v10 = vld [vmem:[#allocation2 + $0xa9] sm:$0xff] }
 0x568   :  { %9420 = vmatmul.msk.f32.gmra.mxu1 %vm260_vm0, %v5229_v15  ;;  %9531 = vmatmul.msk.f32.gmra.mxu3 %vm260_vm0, %v5272_v21  ;;  %v15301_v15 = vld [vmem:[#allocation2 + $0xaf] sm:$0xff]  ;;  %10257 = vpow2.f32 %v9370_v26  ;;  %v3294_v31 = vadd.f32 %v3216_v1, %v3000_v61  ;;  %v4794_v49 = vpop.permute.xlu0 %4793  ;;  %v15315_v21 = vpop.eup %10255  ;;  %v4500_v1 = vor.u32 1.1754944e-38, %v4499_v27 }
 0x569   :  { %9603 = vmatmul.msk.f32.gmra.mxu0 %vm260_vm0, %v15301_v15  ;;  %v4947_v32 = vmul.f32 %v4794_v49, %v14585_v5  ;;  %10259 = vrcp.f32 %v15307_v40  ;;  %v4496_v22 = vsel %vm4495_vm12, %v15281_v36, %v4492_v57  ;;  %v4504_v35 = vmul.f32 %v15315_v21, %v15273_v48 }
 0x56a   :  { %v3362_v12 = vmul.f32 %v14960_v29, %v3294_v31  ;;  %v4501_v43 = vsel %vm4498_vm13, %v4500_v1, %v4496_v22  ;;  %v3335_v49 = vmul.f32 %v14960_v29, %v14309_v19  ;;  %vm4509_vm14 = vweird.f32 %v15315_v21 }
 0x56b   :  { %5093 = vst.msk [vmem:[#allocation2 + $0x2c8] sm:$0xff] %vm260_vm0, %v4947_v32  ;;  %v2631_v5 = vpop.f32.mrf.mxu2  ;;  %4823 = vrot.lane.b32.xlu0 %v4501_v43, %s10819_s9  ;;  %v4505_v32 = vsub.f32 1.0, %v4504_v35  ;;  %v5231_v43 = vld [vmem:[#allocation2 + $0x288] sm:$0xff]  ;;  %vm4510_vm1 = vmor %vm4508_vm15, %vm4509_vm14  ;;  %vm4523_vm4 = vweird.f32 %v15307_v40 }
 0x56c   :  { %v3219_v52 = vpop.f32.mrf.mxu0  ;;  %v15327_v61 = vadd.f32 %v14985_v46, %v3362_v12  ;;  %v2707_v31 = vadd.f32 %v2631_v5, %v2413_v45  ;;  %v4514_v45 = vand.u32 2147483648, %v15273_v48  ;;  %v15357_v35 = vadd.f32 %v14985_v46, %v3335_v49 }
 0x56d   :  { %v15311_v11 = vpop.f32.mrf.mxu1  ;;  %v2925_v26 = vpop.f32.mrf.mxu3  ;;  %9460 = vmatmul.msk.f32.gmra.mxu2 %vm260_vm0, %v15267_v9  ;;  %v4512_v9 = vand.u32 2147483647, %v15273_v48  ;;  %v4506_v1 = vmul.f32 %v15315_v21, %v4505_v32  ;;  %v5274_v48 = vld [vmem:[#allocation2 + $0xb1] sm:$0xff] }
 0x56e   :  { %v10258_v27 = vpop.eup %10257  ;;  %v9371_v28 = vmul.f32 -1.442695, %v15327_v61  ;;  %v3001_v36 = vadd.f32 %v2925_v26, %v2707_v31 }
 0x56f   :  { %v15343_v55 = vadd.f32 1.0, %v10258_v27  ;;  %v4796_v19 = vpop.permute.xlu1 %4795  ;;  %v15351_v5 = vpop.eup %10259  ;;  %vm4513_vm2 = vcmp.eq.f32.partialorder %v4512_v9, 8.507059e+37  ;;  %v15377_v9 = vld [vmem:[#allocation2 + $0xcf] sm:$0xff] }
 0x570   :  { %9421 = vmatmul.msk.f32.gmra.mxu1 %vm260_vm0, %v5230_v4  ;;  %9532 = vmatmul.msk.f32.gmra.mxu3 %vm260_vm0, %v5273_v10  ;;  %v15335_v4 = vld [vmem:[#allocation2 + $0xc7] sm:$0xff]  ;;  %10261 = vpow2.f32 %v9371_v28  ;;  %v3295_v57 = vadd.f32 %v3219_v52, %v3001_v36  ;;  %v4948_v22 = vmul.f32 %v4796_v19, %v14625_v18  ;;  %v4507_v52 = vadd.f32 %v15315_v21, %v4506_v1 }
 0x571   :  { %9604 = vmatmul.msk.f32.gmra.mxu0 %vm260_vm0, %v15335_v4  ;;  %v18504_v10 = vld [vmem:[#allocation42_spill] sm:$0xff]  ;;  %10263 = vrcp.f32 %v15343_v55  ;;  %v4515_v18 = vor.u32 1.1754944e-38, %v4514_v45  ;;  %v4519_v19 = vmul.f32 %v15351_v5, %v15307_v40  ;;  %vm4524_vm3 = vweird.f32 %v15351_v5 }
 0x572   :  { %v2414_v26 = vadd.f32 %v14345_v30, %v18504_v10  ;;  %v3363_v27 = vmul.f32 %v14960_v29, %v3295_v57  ;;  %5094 = vst.msk [vmem:[#allocation2 + $0x2d0] sm:$0xff] %vm260_vm0, %v4948_v22  ;;  %v9660_v30 = vld [vmem:[%s18205_s4 + $0x110] sm:$0xff]  ;;  %v4511_v32 = vsel %vm4510_vm1, %v15315_v21, %v4507_v52  ;;  %v9344_v10 = vmul.f32 -1.442695, %v15357_v35  ;;  %vm4525_vm5 = vmor %vm4523_vm4, %vm4524_vm3 }
 0x573   :  { %v2634_v49 = vpop.f32.mrf.mxu2  ;;  %6956 = vmatpush.msrb.mxu1 %v9660_v30  ;;  %v4516_v45 = vsel %vm4513_vm2, %v4515_v18, %v4511_v32  ;;  %v5232_v30 = vld [vmem:[#allocation2 + $0x290] sm:$0xff]  ;;  %vm4538_vm8 = vweird.f32 %v15343_v55 }
 0x574   :  { %v3222_v31 = vpop.f32.mrf.mxu0  ;;  %v15369_v36 = vadd.f32 %v14985_v46, %v3363_v27  ;;  %v2708_v57 = vadd.f32 %v2634_v49, %v2414_v26  ;;  %4825 = vrot.lane.b32.xlu1 %v4516_v45, %s10819_s9  ;;  %v4520_v26 = vsub.f32 1.0, %v4519_v19  ;;  %v4529_v27 = vand.u32 2147483648, %v15307_v40 }
 0x575   :  { %v15347_v12 = vpop.f32.mrf.mxu1  ;;  %v2928_v28 = vpop.f32.mrf.mxu3  ;;  %9461 = vmatmul.msk.f32.gmra.mxu2 %vm260_vm0, %v15301_v15  ;;  %v4527_v15 = vand.u32 2147483647, %v15307_v40  ;;  %v3336_v19 = vmul.f32 %v14960_v29, %v14337_v47 }
 0x576   :  { %v10262_v1 = vpop.eup %10261  ;;  %v9372_v22 = vmul.f32 -1.442695, %v15369_v36  ;;  %v3002_v21 = vadd.f32 %v2928_v28, %v2708_v57  ;;  %v18506_v28 = vld [vmem:[#allocation29_spill] sm:$0xff] }
 0x577   :  { %v15392_v32 = vpop.eup %10263  ;;  %v2415_v57 = vadd.f32 %v14408_v2, %v18506_v28  ;;  %vm4528_vm6 = vcmp.eq.f32.partialorder %v4527_v15, 8.507059e+37  ;;  %v4530_v2 = vor.u32 1.1754944e-38, %v4529_v27  ;;  %v15417_v15 = vld [vmem:[#allocation2 + $0xe7] sm:$0xff]  ;;  %v4542_v28 = vand.u32 2147483647, %v15343_v55 }
 0x578   :  { %9422 = vmatmul.msk.f32.gmra.mxu1 %vm260_vm0, %v5231_v43  ;;  %9533 = vmatmul.msk.f32.gmra.mxu3 %vm260_vm0, %v5274_v48  ;;  %v15384_v43 = vadd.f32 1.0, %v10262_v1  ;;  %10265 = vpow2.f32 %v9372_v22  ;;  %v3296_v18 = vadd.f32 %v3222_v31, %v3002_v21  ;;  %v4521_v48 = vmul.f32 %v15351_v5, %v4520_v26 }
 0x579   :  { %9605 = vmatmul.msk.f32.gmra.mxu0 %vm260_vm0, %v15377_v9  ;;  %10267 = vpow2.f32 %v9344_v10  ;;  %v5275_v10 = vld [vmem:[#allocation2 + $0xc9] sm:$0xff]  ;;  %v4534_v40 = vmul.f32 %v15392_v32, %v15343_v55  ;;  %vm4539_vm7 = vweird.f32 %v15392_v32  ;;  %vm4543_vm10 = vcmp.eq.f32.partialorder %v4542_v28, 8.507059e+37 }
 0x57a   :  { %v3364_v22 = vmul.f32 %v14960_v29, %v3296_v18  ;;  %v4522_v31 = vadd.f32 %v15351_v5, %v4521_v48  ;;  %10269 = vrcp.f32 %v15384_v43  ;;  %vm4540_vm9 = vmor %vm4538_vm8, %vm4539_vm7  ;;  %v15464_v28 = vld [vmem:[#allocation2 + $0xef] sm:$0xff]  ;;  %vm4553_vm12 = vweird.f32 %v15384_v43 }
 0x57b   :  { %v2637_v47 = vpop.f32.mrf.mxu2  ;;  %v4535_v48 = vsub.f32 1.0, %v4534_v40 }
 0x57c   :  { %v4804_v49 = vpop.permute.xlu2 %4803  ;;  %v3225_v1 = vpop.f32.mrf.mxu0  ;;  %v4526_v29 = vsel %vm4525_vm5, %v15351_v5, %v4522_v31  ;;  %v2709_v26 = vadd.f32 %v2637_v47, %v2415_v57 }
 0x57d   :  { %v15388_v52 = vpop.f32.mrf.mxu1  ;;  %v4952_v45 = vmul.f32 %v4804_v49, %v14793_v60  ;;  %v2931_v21 = vpop.f32.mrf.mxu3  ;;  %v15406_v60 = vadd.f32 %v14985_v46, %v3364_v22  ;;  %9462 = vmatmul.msk.f32.gmra.mxu2 %vm260_vm0, %v15335_v4  ;;  %v4531_v27 = vsel %vm4528_vm6, %v4530_v2, %v4526_v29  ;;  %v4544_v4 = vand.u32 2147483648, %v15343_v55  ;;  %v5276_v55 = vld [vmem:[#allocation2 + $0xd1] sm:$0xff] }
 0x57e   :  { %18505 = vst [vmem:[#allocation15_spill] sm:$0xff] %v15388_v52  ;;  %v10266_v18 = vpop.eup %10265  ;;  %4827 = vrot.lane.b32.xlu2 %v4531_v27, %s10819_s9  ;;  %v3003_v5 = vadd.f32 %v2931_v21, %v2709_v26  ;;  %v4800_v31 = vpop.permute.xlu0 %4799  ;;  %v4536_v2 = vmul.f32 %v15392_v32, %v4535_v48  ;;  %v18508_v26 = vld [vmem:[#allocation31_spill] sm:$0xff]  ;;  %v15440_v27 = vld [vmem:[%s18203_s2] ss:$0 sm:$0xff] }
 0x57f   :  { %5098 = vst.msk [vmem:[#allocation2 + $0x310] sm:$0xff] %vm260_vm0, %v4952_v45  ;;  %v9373_v49 = vmul.f32 -1.442695, %v15406_v60  ;;  %v10268_v57 = vpop.eup %10267  ;;  %v5233_v45 = vld [vmem:[#allocation2 + $0x2a8] sm:$0xff]  ;;  %v2416_v40 = vadd.f32 %v14446_v13, %v18508_v26  ;;  %v4545_v13 = vor.u32 1.1754944e-38, %v4544_v4 }
 0x580   :  { %9423 = vmatmul.msk.f32.gmra.mxu1 %vm260_vm0, %v5232_v30  ;;  %v15412_v30 = vadd.f32 %v14985_v46, %v3336_v19  ;;  %9534 = vmatmul.msk.f32.gmra.mxu3 %vm260_vm0, %v5275_v10  ;;  %v15423_v46 = vadd.f32 1.0, %v10266_v18  ;;  %v3297_v22 = vadd.f32 %v3225_v1, %v3003_v5  ;;  %v15431_v47 = vpop.eup %10269  ;;  %v4950_v10 = vmul.f32 %v4800_v31, %v14709_v44  ;;  %v15453_v5 = vld [vmem:[%s18204_s3] ss:$0 sm:$0xff] }
 0x581   :  { %9606 = vmatmul.msk.f32.gmra.mxu0 %vm260_vm0, %v15417_v15  ;;  %10271 = vpow2.f32 %v9373_v49  ;;  %v4537_v18 = vadd.f32 %v15392_v32, %v4536_v2  ;;  %v15445_v49 = vadd.f32 1.0, %v10268_v57  ;;  %vm4554_vm11 = vweird.f32 %v15431_v47 }
 0x582   :  { %v9345_v21 = vmul.f32 -1.442695, %v15412_v30  ;;  %v3365_v1 = vmul.f32 %v15440_v27, %v3297_v22  ;;  %10273 = vrcp.f32 %v15423_v46  ;;  %5096 = vst.msk [vmem:[#allocation2 + $0x2f0] sm:$0xff] %vm260_vm0, %v4950_v10  ;;  %v4549_v22 = vmul.f32 %v15431_v47, %v15384_v43  ;;  %vm4555_vm13 = vmor %vm4553_vm12, %vm4554_vm11 }
 0x583   :  { %v2640_v44 = vpop.f32.mrf.mxu2  ;;  %v4541_v57 = vsel %vm4540_vm9, %v15392_v32, %v4537_v18  ;;  %vm4568_vm1 = vweird.f32 %v15423_v46  ;;  %vm4148_vm9 = vweird.f32 %v15445_v49 }
 0x584   :  { %v3228_v29 = vpop.f32.mrf.mxu0  ;;  %v15456_v48 = vadd.f32 %v15453_v5, %v3365_v1  ;;  %10275 = vpow2.f32 %v9345_v21  ;;  %v4546_v4 = vsel %vm4543_vm10, %v4545_v13, %v4541_v57  ;;  %v4550_v26 = vsub.f32 1.0, %v4549_v22  ;;  %v5234_v57 = vld [vmem:[#allocation2 + $0x2b0] sm:$0xff] }
 0x585   :  { %v15427_v19 = vpop.f32.mrf.mxu1  ;;  %9463 = vmatmul.msk.f32.gmra.mxu2 %vm260_vm0, %v15377_v9  ;;  %v2934_v31 = vpop.f32.mrf.mxu3  ;;  %4829 = vrot.lane.b32.xlu0 %v4546_v4, %s10819_s9  ;;  %10277 = vrcp.f32 %v15445_v49  ;;  %v4557_v9 = vand.u32 2147483647, %v15384_v43 }
 0x586   :  { %18507 = vst [vmem:[#allocation18_spill] sm:$0xff] %v15427_v19  ;;  %v9374_v10 = vmul.f32 -1.442695, %v15456_v48  ;;  %v4551_v13 = vmul.f32 %v15431_v47, %v4550_v26 }
 0x587   :  { %v10272_v2 = vpop.eup %10271  ;;  %vm4558_vm14 = vcmp.eq.f32.partialorder %v4557_v9, 8.507059e+37 }
 0x588   :  { %9424 = vmatmul.msk.f32.gmra.mxu1 %vm260_vm0, %v5233_v45  ;;  %v2710_v45 = vadd.f32 %v2640_v44, %v2416_v40  ;;  %9535 = vmatmul.msk.f32.gmra.mxu3 %vm260_vm0, %v5276_v55  ;;  %v15471_v21 = vadd.f32 1.0, %v10272_v2  ;;  %v4559_v40 = vand.u32 2147483648, %v15384_v43  ;;  %10279 = vpow2.f32 %v9374_v10  ;;  %v15479_v44 = vpop.eup %10273 }
 0x589   :  { %9607 = vmatmul.msk.f32.gmra.mxu0 %vm260_vm0, %v15464_v28  ;;  %v4564_v26 = vmul.f32 %v15479_v44, %v15423_v46  ;;  %vm4569_vm15 = vweird.f32 %v15479_v44 }
 0x58a   :  { %v3004_v32 = vadd.f32 %v2934_v31, %v2710_v45  ;;  %v4552_v31 = vadd.f32 %v15431_v47, %v4551_v13  ;;  %v10276_v2 = vpop.eup %10275  ;;  %10281 = vrcp.f32 %v15471_v21  ;;  %vm4570_vm2 = vmor %vm4568_vm1, %vm4569_vm15  ;;  %vm4583_vm5 = vweird.f32 %v15471_v21 }
 0x58b   :  { %v4802_v55 = vpop.permute.xlu1 %4801  ;;  %v15494_v43 = vpop.eup %10277  ;;  %v4565_v9 = vsub.f32 1.0, %v4564_v26 }
 0x58c   :  { %v3298_v18 = vadd.f32 %v3228_v29, %v3004_v32  ;;  %v4951_v22 = vmul.f32 %v4802_v55, %v14756_v3  ;;  %v3231_v4 = vpop.f32.mrf.mxu0  ;;  %v4560_v29 = vor.u32 1.1754944e-38, %v4559_v40  ;;  %v5277_v32 = vld [vmem:[#allocation2 + $0xe9] sm:$0xff]  ;;  %v4556_v3 = vsel %vm4555_vm13, %v15431_v47, %v4552_v31  ;;  %v18510_v55 = vld [vmem:[#allocation45_spill] sm:$0xff] }
 0x58d   :  { %v15475_v1 = vpop.f32.mrf.mxu1  ;;  %9464 = vmatmul.msk.f32.gmra.mxu2 %vm260_vm0, %v15417_v15  ;;  %v15499_v40 = vld [vmem:[#allocation2 + $0x107] sm:$0xff]  ;;  %v2937_v31 = vpop.f32.mrf.mxu3  ;;  %vm4149_vm8 = vweird.f32 %v15494_v43 }
 0x58e   :  { %18509 = vst [vmem:[#allocation23_spill] sm:$0xff] %v15475_v1  ;;  %v3366_v45 = vmul.f32 %v15440_v27, %v3298_v18  ;;  %v4561_v18 = vsel %vm4558_vm14, %v4560_v29, %v4556_v3  ;;  %v10280_v13 = vpop.eup %10279  ;;  %v4572_v29 = vand.u32 2147483647, %v15423_v46  ;;  %v4566_v1 = vmul.f32 %v15479_v44, %v4565_v9  ;;  %vm15596_vm11 = vmor %vm4148_vm9, %vm4149_vm8 }
 0x58f   :  { %5097 = vst.msk [vmem:[#allocation2 + $0x308] sm:$0xff] %vm260_vm0, %v4951_v22  ;;  %4831 = vrot.lane.b32.xlu1 %v4561_v18, %s10819_s9  ;;  %v15509_v15 = vadd.f32 1.0, %v10280_v13  ;;  %v2643_v22 = vpop.f32.mrf.mxu2  ;;  %v4144_v13 = vmul.f32 %v15494_v43, %v15445_v49 }
 0x590   :  { %9425 = vmatmul.msk.f32.gmra.mxu1 %vm260_vm0, %v5234_v57  ;;  %v15488_v10 = vadd.f32 %v15453_v5, %v3366_v45  ;;  %9536 = vmatmul.msk.f32.gmra.mxu3 %vm260_vm0, %v5277_v32  ;;  %v2417_v57 = vadd.f32 %v14475_v56, %v18510_v55  ;;  %v15503_v45 = vadd.f32 1.0, %v10276_v2  ;;  %v4574_v32 = vand.u32 2147483648, %v15423_v46  ;;  %v5235_v56 = vld [vmem:[#allocation2 + $0x2c8] sm:$0xff]  ;;  %v15517_v18 = vpop.eup %10281 }
 0x591   :  { %9608 = vmatmul.msk.f32.gmra.mxu0 %vm260_vm0, %v15499_v40  ;;  %vm4573_vm3 = vcmp.eq.f32.partialorder %v4572_v29, 8.507059e+37  ;;  %v15534_v46 = vld [vmem:[#allocation2 + $0x10f] sm:$0xff]  ;;  %vm4584_vm4 = vweird.f32 %v15517_v18  ;;  %vm4598_vm12 = vweird.f32 %v15509_v15 }
 0x592   :  { %v9375_v47 = vmul.f32 -1.442695, %v15488_v10  ;;  %v2711_v2 = vadd.f32 %v2643_v22, %v2417_v57  ;;  %v4575_v57 = vor.u32 1.1754944e-38, %v4574_v32  ;;  %v4579_v22 = vmul.f32 %v15517_v18, %v15471_v21  ;;  %vm4585_vm6 = vmor %vm4583_vm5, %vm4584_vm4 }
 0x594   :  { %10283 = vpow2.f32 %v9375_v47  ;;  %v4810_v55 = vpop.permute.xlu2 %4809  ;;  %v3005_v19 = vadd.f32 %v2937_v31, %v2711_v2  ;;  %v3234_v52 = vpop.f32.mrf.mxu0  ;;  %v5278_v47 = vld [vmem:[#allocation2 + $0xf1] sm:$0xff]  ;;  %v4145_v31 = vsub.f32 1.0, %v4144_v13  ;;  %v18512_v2 = vld [vmem:[#allocation47_spill] sm:$0xff] }
 0x595   :  { %v15513_v3 = vpop.f32.mrf.mxu1  ;;  %v4955_v26 = vmul.f32 %v4810_v55, %v14904_v37  ;;  %10285 = vrcp.f32 %v15503_v45  ;;  %9465 = vmatmul.msk.f32.gmra.mxu2 %vm260_vm0, %v15464_v28  ;;  %v2940_v32 = vpop.f32.mrf.mxu3  ;;  %v4589_v55 = vand.u32 2147483648, %v15471_v21 }
 0x596   :  { %18511 = vst [vmem:[#allocation28_spill] sm:$0xff] %v15513_v3  ;;  %v4567_v3 = vadd.f32 %v15479_v44, %v4566_v1  ;;  %10287 = vrcp.f32 %v15509_v15  ;;  %v3299_v37 = vadd.f32 %v3231_v4, %v3005_v19  ;;  %v2418_v19 = vadd.f32 %v14516_v25, %v18512_v2  ;;  %v5236_v25 = vld [vmem:[#allocation2 + $0x2d0] sm:$0xff] }
 0x597   :  { %5101 = vst.msk [vmem:[#allocation2 + $0x348] sm:$0xff] %vm260_vm0, %v4955_v26  ;;  %v2646_v28 = vpop.f32.mrf.mxu2 }
 0x598   :  { %9426 = vmatmul.msk.f32.gmra.mxu1 %vm260_vm0, %v5235_v56  ;;  %v4571_v9 = vsel %vm4570_vm2, %v15479_v44, %v4567_v3  ;;  %9537 = vmatmul.msk.f32.gmra.mxu3 %vm260_vm0, %v5278_v47  ;;  %v3367_v4 = vmul.f32 %v15440_v27, %v3299_v37  ;;  %v4580_v44 = vsub.f32 1.0, %v4579_v22  ;;  %v4587_v3 = vand.u32 2147483647, %v15471_v21 }
 0x599   :  { %v4576_v1 = vsel %vm4573_vm3, %v4575_v57, %v4571_v9  ;;  %9609 = vmatmul.msk.f32.gmra.mxu0 %vm260_vm0, %v15534_v46  ;;  %v2712_v37 = vadd.f32 %v2646_v28, %v2418_v19  ;;  %v5279_v28 = vld [vmem:[#allocation2 + $0x109] sm:$0xff]  ;;  %vm4163_vm3 = vweird.f32 %v15503_v45 }
 0x59a   :  { %v10284_v56 = vpop.eup %10283  ;;  %4833 = vrot.lane.b32.xlu2 %v4576_v1, %s10819_s9  ;;  %v15551_v57 = vadd.f32 %v15453_v5, %v3367_v4  ;;  %v4581_v47 = vmul.f32 %v15517_v18, %v4580_v44  ;;  %v4146_v1 = vmul.f32 %v15494_v43, %v4145_v31  ;;  %vm4588_vm7 = vcmp.eq.f32.partialorder %v4587_v3, 8.507059e+37  ;;  %v15575_v3 = vld [vmem:[#allocation2 + $0x127] sm:$0xff] }
 0x59b   :  { %v15542_v29 = vadd.f32 1.0, %v10284_v56  ;;  %v15546_v26 = vpop.eup %10285  ;;  %v4806_v22 = vpop.permute.xlu0 %4805  ;;  %v3006_v2 = vadd.f32 %v2940_v32, %v2712_v37  ;;  %v4590_v44 = vor.u32 1.1754944e-38, %v4589_v55 }
 0x59c   :  { %v15555_v9 = vpop.eup %10287  ;;  %v9376_v56 = vmul.f32 -1.442695, %v15551_v57  ;;  %v4582_v4 = vadd.f32 %v15517_v18, %v4581_v47  ;;  %v15564_v19 = vpop.f32.mrf.mxu0  ;;  %v4159_v21 = vmul.f32 %v15546_v26, %v15503_v45  ;;  %vm4164_vm1 = vweird.f32 %v15546_v26 }
 0x59d   :  { %v15548_v13 = vpop.f32.mrf.mxu1  ;;  %10289 = vrcp.f32 %v15542_v29  ;;  %v3300_v31 = vadd.f32 %v3234_v52, %v3006_v2  ;;  %v4594_v32 = vmul.f32 %v15555_v9, %v15509_v15  ;;  %9466 = vmatmul.msk.f32.gmra.mxu2 %vm260_vm0, %v15499_v40  ;;  %v4154_v52 = vand.u32 2147483648, %v15445_v49  ;;  %vm15653_vm5 = vmor %vm4163_vm3, %vm4164_vm1 }
 0x59e   :  { %18513 = vst [vmem:[#allocation33_spill] sm:$0xff] %v15548_v13  ;;  %v4953_v13 = vmul.f32 %v4806_v22, %v14822_v16  ;;  %10291 = vpow2.f32 %v9376_v56  ;;  %v4586_v16 = vsel %vm4585_vm6, %v15517_v18, %v4582_v4  ;;  %v4604_v40 = vand.u32 2147483648, %v15509_v15 }
 0x59f   :  { %v4591_v55 = vsel %vm4588_vm7, %v4590_v44, %v4586_v16  ;;  %v4595_v18 = vsub.f32 1.0, %v4594_v32  ;;  %v4160_v37 = vsub.f32 1.0, %v4159_v21  ;;  %vm4599_vm10 = vweird.f32 %v15555_v9 }
 0x5a0   :  { %9427 = vmatmul.msk.f32.gmra.mxu1 %vm260_vm0, %v5236_v25  ;;  %5099 = vst.msk [vmem:[#allocation2 + $0x328] sm:$0xff] %vm260_vm0, %v4953_v13  ;;  %9538 = vmatmul.msk.f32.gmra.mxu3 %vm260_vm0, %v5279_v28  ;;  %v4147_v25 = vadd.f32 %v15494_v43, %v4146_v1  ;;  %v3368_v13 = vmul.f32 %v15440_v27, %v3300_v31  ;;  %v5962_v1 = vpop.f32.mrf.mxu2  ;;  %v4602_v27 = vand.u32 2147483647, %v15509_v15  ;;  %v4152_v28 = vand.u32 2147483647, %v15445_v49  ;;  %vm4600_vm13 = vmor %vm4598_vm12, %vm4599_vm10 }
 0x5a1   :  { %9610 = vmatmul.msk.f32.gmra.mxu0 %vm260_vm0, %v15575_v3  ;;  %4835 = vrot.lane.b32.xlu0 %v4591_v55, %s10819_s9  ;;  %v4596_v56 = vmul.f32 %v15555_v9, %v4595_v18  ;;  %v5963_v44 = vadd.f32 %v5962_v1, %v14551_v51  ;;  %v4155_v16 = vor.u32 1.1754944e-38, %v4154_v52  ;;  %v5237_v55 = vld [vmem:[#allocation2 + $0x2e8] sm:$0xff]  ;;  %v4605_v49 = vor.u32 1.1754944e-38, %v4604_v40 }
 0x5a2   :  { %v15589_v22 = vadd.f32 %v15453_v5, %v3368_v13  ;;  %v4808_v5 = vpop.permute.xlu1 %4807  ;;  %v4151_v31 = vsel %vm15596_vm11, %v15494_v43, %v4147_v25  ;;  %v4161_v43 = vmul.f32 %v15546_v26, %v4160_v37  ;;  %vm4603_vm14 = vcmp.eq.f32.partialorder %v4602_v27, 8.507059e+37  ;;  %v15627_v52 = vld [vmem:[#allocation2 + $0x12f] sm:$0xff] }
 0x5a3   :  { %v15600_v4 = vpop.eup %10289  ;;  %v6372_v21 = vpop.f32.mrf.mxu3  ;;  %v4954_v18 = vmul.f32 %v4808_v5, %v14857_v23  ;;  %v5280_v23 = vld [vmem:[#allocation2 + $0x111] sm:$0xff]  ;;  %vm4153_vm15 = vcmp.eq.f32.partialorder %v4152_v28, 8.507059e+37  ;;  %vm4613_vm4 = vweird.f32 %v15542_v29 }
 0x5a4   :  { %v10292_v32 = vpop.eup %10291  ;;  %v9377_v13 = vmul.f32 -1.442695, %v15589_v22  ;;  %v6564_v1 = vadd.f32 %v6372_v21, %v5963_v44  ;;  %v4609_v15 = vmul.f32 %v15600_v4, %v15542_v29  ;;  %v5238_v44 = vld [vmem:[#allocation2 + $0x2f0] sm:$0xff]  ;;  %vm4614_vm2 = vweird.f32 %v15600_v4 }
 0x5a5   :  { %v15586_v47 = vpop.f32.mrf.mxu1  ;;  %v15612_v51 = vadd.f32 1.0, %v10292_v32  ;;  %5100 = vst.msk [vmem:[#allocation2 + $0x330] sm:$0xff] %vm260_vm0, %v4954_v18  ;;  %9467 = vmatmul.msk.f32.gmra.mxu2 %vm260_vm0, %v15534_v46  ;;  %v4619_v46 = vand.u32 2147483648, %v15542_v29  ;;  %vm4615_vm6 = vmor %vm4613_vm4, %vm4614_vm2 }
 0x5a6   :  { %18514 = vst [vmem:[#allocation38_spill] sm:$0xff] %v15586_v47  ;;  %v4597_v47 = vadd.f32 %v15555_v9, %v4596_v56  ;;  %v15614_v2 = vpop.f32.mrf.mxu0  ;;  %10293 = vpow2.f32 %v9377_v13  ;;  %v4610_v37 = vsub.f32 1.0, %v4609_v15  ;;  %v4162_v56 = vadd.f32 %v15546_v26, %v4161_v43 }
 0x5a7   :  { %10295 = vrcp.f32 %v15612_v51  ;;  %v4816_v32 = vpop.permute.xlu2 %4815  ;;  %vm4628_vm10 = vweird.f32 %v15612_v51 }
 0x5a8   :  { %9428 = vmatmul.msk.f32.gmra.mxu1 %vm260_vm0, %v5237_v55  ;;  %v4601_v25 = vsel %vm4600_vm13, %v15555_v9, %v4597_v47  ;;  %9539 = vmatmul.msk.f32.gmra.mxu3 %vm260_vm0, %v5280_v23  ;;  %v4156_v9 = vsel %vm4153_vm15, %v4155_v16, %v4151_v31  ;;  %v15633_v47 = vadd.f32 %v15564_v19, %v6564_v1  ;;  %v5965_v21 = vpop.f32.mrf.mxu2  ;;  %v4617_v31 = vand.u32 2147483647, %v15542_v29 }
 0x5a9   :  { %v4606_v40 = vsel %vm4603_vm14, %v4605_v49, %v4601_v25  ;;  %9611 = vmatmul.msk.f32.gmra.mxu0 %vm260_vm0, %v15627_v52  ;;  %4777 = vrot.lane.b32.xlu0 %v4156_v9, %s10819_s9  ;;  %v4611_v5 = vmul.f32 %v15600_v4, %v4610_v37  ;;  %v4169_v19 = vand.u32 2147483648, %v15503_v45  ;;  %v5966_v28 = vadd.f32 %v5965_v21, %v14599_v39  ;;  %v5281_v25 = vld [vmem:[#allocation2 + $0x129] sm:$0xff] }
 0x5aa   :  { %4837 = vrot.lane.b32.xlu1 %v4606_v40, %s10819_s9  ;;  %v4167_v55 = vand.u32 2147483647, %v15503_v45  ;;  %v4958_v18 = vmul.f32 %v4816_v32, %v15052_v8  ;;  %v4620_v8 = vor.u32 1.1754944e-38, %v4619_v46  ;;  %v4166_v29 = vsel %vm15653_vm5, %v15546_v26, %v4162_v56  ;;  %v15672_v37 = vld [vmem:[#allocation2 + $0x147] sm:$0xff] }
 0x5ab   :  { %v6375_v16 = vpop.f32.mrf.mxu3  ;;  %v4612_v1 = vadd.f32 %v15600_v4, %v4611_v5  ;;  %vm4618_vm7 = vcmp.eq.f32.partialorder %v4617_v31, 8.507059e+37  ;;  %v4170_v40 = vor.u32 1.1754944e-38, %v4169_v19  ;;  %v5239_v21 = vld [vmem:[#allocation2 + $0x308] sm:$0xff]  ;;  %v4632_v19 = vand.u32 2147483647, %v15612_v51 }
 0x5ac   :  { %v10294_v13 = vpop.eup %10293  ;;  %v6565_v23 = vadd.f32 %v6375_v16, %v5966_v28  ;;  %5104 = vst.msk [vmem:[#allocation2 + $0x370] sm:$0xff] %vm260_vm0, %v4958_v18  ;;  %vm4168_vm8 = vcmp.eq.f32.partialorder %v4167_v55, 8.507059e+37  ;;  %v9659_v49 = vld [vmem:[%s18205_s4 + $0x108] sm:$0xff] }
 0x5ad   :  { %v15639_v27 = vpop.f32.mrf.mxu1  ;;  %v10296_v39 = vpop.eup %10295  ;;  %v15658_v43 = vadd.f32 1.0, %v10294_v13  ;;  %v4616_v15 = vsel %vm4615_vm6, %v15600_v4, %v4612_v1  ;;  %9468 = vmatmul.msk.f32.gmra.mxu2 %vm260_vm0, %v15575_v3  ;;  %v4171_v26 = vsel %vm4168_vm8, %v4170_v40, %v4166_v29  ;;  %v4634_v3 = vand.u32 2147483648, %v15612_v51  ;;  %6957 = vmatpush.msrb.mxu1 %v9659_v49 }
 0x5ae   :  { %v6672_v45 = vpop.f32.mrf.mxu0  ;;  %v4624_v9 = vmul.f32 %v10296_v39, %v15612_v51  ;;  %v4621_v46 = vsel %vm4618_vm7, %v4620_v8, %v4616_v15  ;;  %v15678_v56 = vadd.f32 %v15614_v2, %v6565_v23  ;;  %vm4629_vm9 = vweird.f32 %v10296_v39  ;;  %v5140_v51 = vld [vmem:[#allocation2 + $0x14f] sm:$0xff] }
 0x5af   :  { %10297 = vrcp.f32 %v15658_v43  ;;  %4839 = vrot.lane.b32.xlu2 %v4621_v46, %s10819_s9  ;;  %vm4630_vm11 = vmor %vm4628_vm10, %vm4629_vm9  ;;  %v4635_v23 = vor.u32 1.1754944e-38, %v4634_v3  ;;  %vm4633_vm12 = vcmp.eq.f32.partialorder %v4632_v19, 8.507059e+37  ;;  %v4649_v40 = vand.u32 2147483648, %v15658_v43 }
 0x5b0   :  { %9429 = vmatmul.msk.f32.gmra.mxu1 %vm260_vm0, %v5238_v44  ;;  %9540 = vmatmul.msk.f32.gmra.mxu3 %vm260_vm0, %v5281_v25  ;;  %v4625_v4 = vsub.f32 1.0, %v4624_v9  ;;  %v5968_v5 = vpop.f32.mrf.mxu2  ;;  %vm4643_vm14 = vweird.f32 %v15658_v43 }
 0x5b1   :  { %9612 = vmatmul.msk.f32.gmra.mxu0 %vm260_vm0, %v15672_v37  ;;  %v5969_v28 = vadd.f32 %v5968_v5, %v14644_v53  ;;  %v5282_v53 = vld [vmem:[#allocation2 + $0x131] sm:$0xff] }
 0x5b2   :  { %4779 = vrot.lane.b32.xlu1 %v4171_v26, %s10819_s9  ;;  %v4626_v31 = vmul.f32 %v10296_v39, %v4625_v4 }
 0x5b3   :  { %v6378_v16 = vpop.f32.mrf.mxu3 }
 0x5b4   :  { %v4812_v32 = vpop.permute.xlu0 %4811  ;;  %v4627_v2 = vadd.f32 %v10296_v39, %v4626_v31  ;;  %v6566_v18 = vadd.f32 %v6378_v16, %v5969_v28  ;;  %v4650_v28 = vor.u32 1.1754944e-38, %v4649_v40  ;;  %v5283_v16 = vld [vmem:[#allocation2 + $0x149] sm:$0xff] }
 0x5b5   :  { %v15682_v44 = vpop.f32.mrf.mxu1  ;;  %v4956_v55 = vmul.f32 %v4812_v32, %v14988_v62  ;;  %v10298_v13 = vpop.eup %10297  ;;  %9469 = vmatmul.msk.f32.gmra.mxu2 %vm260_vm0, %v15627_v52  ;;  %v4647_v52 = vand.u32 2147483647, %v15658_v43 }
 0x5b6   :  { %v6675_v1 = vpop.f32.mrf.mxu0  ;;  %v4631_v8 = vsel %vm4630_vm11, %v10296_v39, %v4627_v2  ;;  %v4639_v62 = vmul.f32 %v10298_v13, %v15658_v43  ;;  %v15697_v25 = vadd.f32 %v6672_v45, %v6566_v18  ;;  %vm4644_vm13 = vweird.f32 %v10298_v13  ;;  %v5240_v45 = vld [vmem:[#allocation2 + $0x310] sm:$0xff]  ;;  %v5241_v2 = vld [vmem:[#allocation2 + $0x328] sm:$0xff] }
 0x5b7   :  { %5102 = vst.msk [vmem:[#allocation2 + $0x350] sm:$0xff] %vm260_vm0, %v4956_v55  ;;  %v4636_v29 = vsel %vm4633_vm12, %v4635_v23, %v4631_v8  ;;  %vm4645_vm15 = vmor %vm4643_vm14, %vm4644_vm13  ;;  %vm4648_vm1 = vcmp.eq.f32.partialorder %v4647_v52, 8.507059e+37 }
 0x5b8   :  { %9430 = vmatmul.msk.f32.gmra.mxu1 %vm260_vm0, %v5239_v21  ;;  %9541 = vmatmul.msk.f32.gmra.mxu3 %vm260_vm0, %v5282_v53  ;;  %v4640_v15 = vsub.f32 1.0, %v4639_v62  ;;  %v5971_v9 = vpop.f32.mrf.mxu2  ;;  %v5142_v62 = vld [vmem:[#allocation2 + $0x16f] sm:$0xff] }
 0x5b9   :  { %9613 = vmatmul.msk.f32.gmra.mxu0 %vm260_vm0, %v5140_v51  ;;  %4841 = vrot.lane.b32.xlu2 %v4636_v29, %s10819_s9  ;;  %v5972_v26 = vadd.f32 %v5971_v9, %v14684_v14  ;;  %v5141_v14 = vld [vmem:[#allocation2 + $0x167] sm:$0xff] }
 0x5ba   :  { %v4641_v46 = vmul.f32 %v10298_v13, %v4640_v15  ;;  %v5242_v15 = vld [vmem:[#allocation2 + $0x330] sm:$0xff] }
 0x5bb   :  { %v6381_v4 = vpop.f32.mrf.mxu3  ;;  %v4814_v3 = vpop.permute.xlu1 %4813 }
 0x5bc   :  { %v4957_v21 = vmul.f32 %v4814_v3, %v15021_v0  ;;  %v4642_v5 = vadd.f32 %v10298_v13, %v4641_v46  ;;  %v6567_v31 = vadd.f32 %v6381_v4, %v5972_v26  ;;  %v5285_v4 = vld [vmem:[#allocation2 + $0x169] sm:$0xff] }
 0x5bd   :  { %v15702_v39 = vpop.f32.mrf.mxu1  ;;  %9470 = vmatmul.msk.f32.gmra.mxu2 %vm260_vm0, %v15672_v37  ;;  %v5143_v3 = vld [vmem:[#allocation2 + $0x187] sm:$0xff] }
 0x5be   :  { %v6678_v19 = vpop.f32.mrf.mxu0  ;;  %5103 = vst.msk [vmem:[#allocation2 + $0x368] sm:$0xff] %vm260_vm0, %v4957_v21  ;;  %v4646_v32 = vsel %vm4645_vm15, %v10298_v13, %v4642_v5  ;;  %v15713_v55 = vadd.f32 %v6675_v1, %v6567_v31  ;;  %v4822_v23 = vpop.permute.xlu2 %4821  ;;  %v5284_v1 = vld [vmem:[#allocation2 + $0x151] sm:$0xff] }
 0x5bf   :  { %v4651_v0 = vsel %vm4648_vm1, %v4650_v28, %v4646_v32  ;;  %v4961_v37 = vmul.f32 %v4822_v23, %v15157_v54 }
 0x5c0   :  { %9431 = vmatmul.msk.f32.gmra.mxu1 %vm260_vm0, %v5240_v45  ;;  %9542 = vmatmul.msk.f32.gmra.mxu3 %vm260_vm0, %v5283_v16  ;;  %v5974_v18 = vpop.f32.mrf.mxu2 }
 0x5c1   :  { %9614 = vmatmul.msk.f32.gmra.mxu0 %vm260_vm0, %v5141_v14  ;;  %4843 = vrot.lane.b32.xlu0 %v4651_v0, %s10819_s9  ;;  %v5975_v13 = vadd.f32 %v5974_v18, %v14730_v41  ;;  %5107 = vst.msk [vmem:[#allocation2 + $0x3a8] sm:$0xff] %vm260_vm0, %v4961_v37  ;;  %v5144_v0 = vld [vmem:[#allocation2 + $0x18f] sm:$0xff] }
 0x5c2   :  { %v18522_v18 = vld [vmem:[#allocation60_spill] sm:$0xff] }
 0x5c3   :  { %v6384_v49 = vpop.f32.mrf.mxu3 }
 0x5c4   :  { %v6568_v53 = vadd.f32 %v6384_v49, %v5975_v13 }
 0x5c5   :  { %v15717_v43 = vpop.f32.mrf.mxu1  ;;  %9471 = vmatmul.msk.f32.gmra.mxu2 %vm260_vm0, %v5140_v51 }
 0x5c6   :  { %v6681_v8 = vpop.f32.mrf.mxu0  ;;  %v15725_v29 = vadd.f32 %v6678_v19, %v6568_v53  ;;  %v5243_v19 = vld [vmem:[#allocation2 + $0x348] sm:$0xff] }
 0x5c7   :  { %v4818_v46 = vpop.permute.xlu0 %4817 }
 0x5c8   :  { %9432 = vmatmul.msk.f32.gmra.mxu1 %vm260_vm0, %v5241_v2  ;;  %9543 = vmatmul.msk.f32.gmra.mxu3 %vm260_vm0, %v5284_v1  ;;  %v5977_v54 = vpop.f32.mrf.mxu2  ;;  %v4959_v52 = vmul.f32 %v4818_v46, %v15089_v6  ;;  %v5244_v2 = vld [vmem:[#allocation2 + $0x350] sm:$0xff] }
 0x5c9   :  { %9615 = vmatmul.msk.f32.gmra.mxu0 %vm260_vm0, %v5142_v62  ;;  %v5978_v40 = vadd.f32 %v5977_v54, %v14775_v17  ;;  %v5287_v1 = vld [vmem:[#allocation2 + $0x189] sm:$0xff] }
 0x5ca   :  { %5105 = vst.msk [vmem:[#allocation2 + $0x388] sm:$0xff] %vm260_vm0, %v4959_v52  ;;  %v5245_v54 = vld [vmem:[#allocation2 + $0x368] sm:$0xff] }
 0x5cb   :  { %v6387_v9 = vpop.f32.mrf.mxu3 }
 0x5cc   :  { %v6569_v51 = vadd.f32 %v6387_v9, %v5978_v40  ;;  %v18525_v40 = vld [vmem:[#allocation6_spill] sm:$0xff] }
 0x5cd   :  { %v15728_v41 = vpop.f32.mrf.mxu1  ;;  %9472 = vmatmul.msk.f32.gmra.mxu2 %vm260_vm0, %v5141_v14  ;;  %v5286_v14 = vld [vmem:[#allocation2 + $0x171] sm:$0xff] }
 0x5ce   :  { %v15733_v26 = vpop.f32.mrf.mxu0  ;;  %v15738_v45 = vadd.f32 %v6681_v8, %v6569_v51  ;;  %v4820_v31 = vpop.permute.xlu1 %4819 }
 0x5cf   :  { %18519 = vst [vmem:[#allocation43_spill] sm:$0xff] %v15733_v26  ;;  %v4960_v28 = vmul.f32 %v4820_v31, %v15123_v58 }
 0x5d0   :  { %9433 = vmatmul.msk.f32.gmra.mxu1 %vm260_vm0, %v5242_v15  ;;  %9544 = vmatmul.msk.f32.gmra.mxu3 %vm260_vm0, %v5285_v4  ;;  %v5980_v6 = vpop.f32.mrf.mxu2 }
 0x5d1   :  { %9616 = vmatmul.msk.f32.gmra.mxu0 %vm260_vm0, %v5143_v3  ;;  %v5981_v21 = vadd.f32 %v5980_v6, %v14811_v34  ;;  %5106 = vst.msk [vmem:[#allocation2 + $0x390] sm:$0xff] %vm260_vm0, %v4960_v28  ;;  %v5288_v6 = vld [vmem:[#allocation2 + $0x191] sm:$0xff] }
 0x5d3   :  { %v6390_v5 = vpop.f32.mrf.mxu3 }
 0x5d4   :  { %v15746_v16 = vadd.f32 %v6390_v5, %v5981_v21  ;;  %v5146_v21 = vld [vmem:[#allocation2 + $0x1af] sm:$0xff] }
 0x5d5   :  { %v15741_v17 = vpop.f32.mrf.mxu1  ;;  %9473 = vmatmul.msk.f32.gmra.mxu2 %vm260_vm0, %v5142_v62  ;;  %v5145_v62 = vld [vmem:[#allocation2 + $0x1a7] sm:$0xff] }
 0x5d6   :  { %18520 = vst [vmem:[#allocation48_spill] sm:$0xff] %v15746_v16  ;;  %v15748_v32 = vpop.f32.mrf.mxu0  ;;  %v16294_v16 = vld [vmem:[#allocation2 + $0x188] sm:$0xff] }
 0x5d7   :  { %18521 = vst [vmem:[#allocation53_spill] sm:$0xff] %v15748_v32  ;;  %v9878_v32 = vld [vmem:[%s18205_s4 + $0x1e0] sm:$0xff] }
 0x5d8   :  { %9434 = vmatmul.msk.f32.gmra.mxu1 %vm260_vm0, %v5243_v19  ;;  %9545 = vmatmul.msk.f32.gmra.mxu3 %vm260_vm0, %v5286_v14  ;;  %v5983_v58 = vpop.f32.mrf.mxu2  ;;  %v4828_v23 = vpop.permute.xlu2 %4827 }
 0x5d9   :  { %9617 = vmatmul.msk.f32.gmra.mxu0 %vm260_vm0, %v5144_v0  ;;  %v5984_v13 = vadd.f32 %v5983_v58, %v18522_v18  ;;  %v4964_v37 = vmul.f32 %v4828_v23, %v15259_v50 }
 0x5db   :  { %v6393_v49 = vpop.f32.mrf.mxu3  ;;  %5110 = vst.msk [vmem:[#allocation2 + $0x3d0] sm:$0xff] %vm260_vm0, %v4964_v37  ;;  %v5247_v37 = vld [vmem:[#allocation2 + $0x388] sm:$0xff] }
 0x5dc   :  { %v15759_v53 = vadd.f32 %v6393_v49, %v5984_v13  ;;  %v5289_v13 = vld [vmem:[#allocation2 + $0x1a9] sm:$0xff] }
 0x5dd   :  { %v15754_v34 = vpop.f32.mrf.mxu1  ;;  %9474 = vmatmul.msk.f32.gmra.mxu2 %vm260_vm0, %v5143_v3  ;;  %v4824_v52 = vpop.permute.xlu0 %4823  ;;  %v5147_v49 = vld [vmem:[#allocation2 + $0x1c7] sm:$0xff] }
 0x5de   :  { %18523 = vst [vmem:[#allocation56_spill] sm:$0xff] %v15759_v53  ;;  %v15761_v8 = vpop.f32.mrf.mxu0  ;;  %v4962_v51 = vmul.f32 %v4824_v52, %v15190_v59  ;;  %v18528_v59 = vld [vmem:[#allocation7_spill] sm:$0xff]  ;;  %v9658_v52 = vld [vmem:[%s18205_s4 + $0x100] sm:$0xff] }
 0x5df   :  { %18524 = vst [vmem:[#allocation58_spill] sm:$0xff] %v15761_v8  ;;  %6958 = vmatpush.msrb.mxu1 %v9658_v52  ;;  %v5249_v52 = vld [vmem:[#allocation2 + $0x3a8] sm:$0xff]  ;;  %v16212_v8 = vld [vmem:[#allocation2 + $0x130] sm:$0xff] }
 0x5e0   :  { %9435 = vmatmul.msk.f32.gmra.mxu1 %vm260_vm0, %v5244_v2  ;;  %9546 = vmatmul.msk.f32.gmra.mxu3 %vm260_vm0, %v5287_v1  ;;  %v5986_v50 = vpop.f32.mrf.mxu2  ;;  %5108 = vst.msk [vmem:[#allocation2 + $0x3b0] sm:$0xff] %vm260_vm0, %v4962_v51  ;;  %v5246_v2 = vld [vmem:[#allocation2 + $0x370] sm:$0xff] }
 0x5e1   :  { %9618 = vmatmul.msk.f32.gmra.mxu0 %vm260_vm0, %v5145_v62  ;;  %v5987_v9 = vadd.f32 %v5986_v50, %v18525_v40  ;;  %v18531_v1 = vld [vmem:[#allocation8_spill] sm:$0xff] }
 0x5e2   :  { %v5290_v51 = vld [vmem:[#allocation2 + $0x1b1] sm:$0xff] }
 0x5e3   :  { %v6396_v46 = vpop.f32.mrf.mxu3 }
 0x5e4   :  { %v15772_v4 = vadd.f32 %v6396_v46, %v5987_v9 }
 0x5e5   :  { %v15767_v15 = vpop.f32.mrf.mxu1  ;;  %9475 = vmatmul.msk.f32.gmra.mxu2 %vm260_vm0, %v5144_v0 }
 0x5e6   :  { %18526 = vst [vmem:[#allocation61_spill] sm:$0xff] %v15772_v4  ;;  %v15774_v3 = vpop.f32.mrf.mxu0  ;;  %v4826_v14 = vpop.permute.xlu1 %4825  ;;  %v16226_v4 = vld [vmem:[#allocation2 + $0x148] sm:$0xff] }
 0x5e7   :  { %18527 = vst [vmem:[#allocation62_spill] sm:$0xff] %v15774_v3  ;;  %v4963_v58 = vmul.f32 %v4826_v14, %v15225_v63  ;;  %v16184_v3 = vld [vmem:[#allocation2 + $0x110] sm:$0xff] }
 0x5e8   :  { %9436 = vmatmul.msk.f32.gmra.mxu1 %vm260_vm0, %v5245_v54  ;;  %9547 = vmatmul.msk.f32.gmra.mxu3 %vm260_vm0, %v5288_v6  ;;  %v5989_v31 = vpop.f32.mrf.mxu2  ;;  %v5148_v6 = vld [vmem:[#allocation2 + $0x1cf] sm:$0xff] }
 0x5e9   :  { %9619 = vmatmul.msk.f32.gmra.mxu0 %vm260_vm0, %v5146_v21  ;;  %v5990_v19 = vadd.f32 %v5989_v31, %v18528_v59  ;;  %5109 = vst.msk [vmem:[#allocation2 + $0x3c8] sm:$0xff] %vm260_vm0, %v4963_v58  ;;  %v5248_v31 = vld [vmem:[#allocation2 + $0x390] sm:$0xff] }
 0x5eb   :  { %v6399_v28 = vpop.f32.mrf.mxu3 }
 0x5ec   :  { %v15785_v18 = vadd.f32 %v6399_v28, %v5990_v19  ;;  %v18534_v19 = vld [vmem:[#allocation9_spill] sm:$0xff] }
 0x5ed   :  { %v15780_v5 = vpop.f32.mrf.mxu1  ;;  %9476 = vmatmul.msk.f32.gmra.mxu2 %vm260_vm0, %v5145_v62 }
 0x5ee   :  { %18529 = vst [vmem:[#allocation63_spill] sm:$0xff] %v15785_v18  ;;  %v15787_v0 = vpop.f32.mrf.mxu0  ;;  %v16198_v18 = vld [vmem:[#allocation2 + $0x128] sm:$0xff] }
 0x5ef   :  { %18530 = vst [vmem:[#allocation64_spill] sm:$0xff] %v15787_v0 }
 0x5f0   :  { %9437 = vmatmul.msk.f32.gmra.mxu1 %vm260_vm0, %v5246_v2  ;;  %9548 = vmatmul.msk.f32.gmra.mxu3 %vm260_vm0, %v5289_v13  ;;  %v5992_v63 = vpop.f32.mrf.mxu2 }
 0x5f1   :  { %9620 = vmatmul.msk.f32.gmra.mxu0 %vm260_vm0, %v5147_v49  ;;  %v5993_v54 = vadd.f32 %v5992_v63, %v18531_v1  ;;  %v5149_v63 = vld [vmem:[#allocation2 + $0x1e7] sm:$0xff] }
 0x5f3   :  { %v6402_v50 = vpop.f32.mrf.mxu3 }
 0x5f4   :  { %v4834_v40 = vpop.permute.xlu2 %4833  ;;  %v15798_v46 = vadd.f32 %v6402_v50, %v5993_v54 }
 0x5f5   :  { %v15793_v23 = vpop.f32.mrf.mxu1  ;;  %v4967_v9 = vmul.f32 %v4834_v40, %v15369_v36  ;;  %9477 = vmatmul.msk.f32.gmra.mxu2 %vm260_vm0, %v5146_v21 }
 0x5f6   :  { %18532 = vst [vmem:[#allocation65_spill] sm:$0xff] %v15798_v46  ;;  %v15800_v62 = vpop.f32.mrf.mxu0  ;;  %v16170_v46 = vld [vmem:[#allocation2 + $0x108] sm:$0xff] }
 0x5f7   :  { %18533 = vst [vmem:[#allocation66_spill] sm:$0xff] %v15800_v62  ;;  %v4830_v2 = vpop.permute.xlu0 %4829  ;;  %v9879_v62 = vld [vmem:[%s18205_s4 + $0x1e8] sm:$0xff] }
 0x5f8   :  { %9438 = vmatmul.msk.f32.gmra.mxu1 %vm260_vm0, %v5247_v37  ;;  %5113 = vst.msk [vmem:[#allocation2 + $0x408] sm:$0xff] %vm260_vm0, %v4967_v9  ;;  %9549 = vmatmul.msk.f32.gmra.mxu3 %vm260_vm0, %v5290_v51  ;;  %v5995_v59 = vpop.f32.mrf.mxu2  ;;  %v4965_v58 = vmul.f32 %v4830_v2, %v15293_v7  ;;  %v5291_v37 = vld [vmem:[#allocation2 + $0x1c9] sm:$0xff]  ;;  %v18537_v7 = vld [vmem:[#allocation10_spill] sm:$0xff] }
 0x5f9   :  { %9621 = vmatmul.msk.f32.gmra.mxu0 %vm260_vm0, %v5148_v6  ;;  %v5996_v28 = vadd.f32 %v5995_v59, %v18534_v19  ;;  %v5292_v59 = vld [vmem:[#allocation2 + $0x1d1] sm:$0xff] }
 0x5fa   :  { %5111 = vst.msk [vmem:[#allocation2 + $0x3e8] sm:$0xff] %vm260_vm0, %v4965_v58  ;;  %v5150_v19 = vld [vmem:[#allocation2 + $0x1ef] sm:$0xff] }
 0x5fb   :  { %v6405_v14 = vpop.f32.mrf.mxu3  ;;  %v18540_v2 = vld [vmem:[#allocation12_spill] sm:$0xff] }
 0x5fc   :  { %v15814_v13 = vadd.f32 %v6405_v14, %v5996_v28  ;;  %v5250_v14 = vld [vmem:[#allocation2 + $0x3b0] sm:$0xff] }
 0x5fd   :  { %v15809_v36 = vpop.f32.mrf.mxu1  ;;  %9478 = vmatmul.msk.f32.gmra.mxu2 %vm260_vm0, %v5147_v49 }
 0x5fe   :  { %18535 = vst [vmem:[#allocation67_spill] sm:$0xff] %v15814_v13  ;;  %v15816_v21 = vpop.f32.mrf.mxu0 }
 0x5ff   :  { %18536 = vst [vmem:[#allocation68_spill] sm:$0xff] %v15816_v21  ;;  %v16088_v21 = vld [vmem:[#allocation2 + $0xb0] sm:$0xff] }
 0x600   :  { %9439 = vmatmul.msk.f32.gmra.mxu1 %vm260_vm0, %v5248_v31  ;;  %9550 = vmatmul.msk.f32.gmra.mxu3 %vm260_vm0, %v5291_v37  ;;  %v5998_v54 = vpop.f32.mrf.mxu2 }
 0x601   :  { %9622 = vmatmul.msk.f32.gmra.mxu0 %vm260_vm0, %v5149_v63  ;;  %v5999_v50 = vadd.f32 %v5998_v54, %v18537_v7  ;;  %v4832_v9 = vpop.permute.xlu1 %4831 }
 0x602   :  { %v4966_v51 = vmul.f32 %v4832_v9, %v15327_v61 }
 0x603   :  { %v6408_v40 = vpop.f32.mrf.mxu3 }
 0x604   :  { %v15827_v31 = vadd.f32 %v6408_v40, %v5999_v50  ;;  %5112 = vst.msk [vmem:[#allocation2 + $0x3f0] sm:$0xff] %vm260_vm0, %v4966_v51  ;;  %v5293_v40 = vld [vmem:[#allocation2 + $0x1e9] sm:$0xff] }
 0x605   :  { %v15822_v1 = vpop.f32.mrf.mxu1  ;;  %9479 = vmatmul.msk.f32.gmra.mxu2 %vm260_vm0, %v5148_v6 }
 0x606   :  { %18538 = vst [vmem:[#allocation69_spill] sm:$0xff] %v15827_v31  ;;  %v15829_v49 = vpop.f32.mrf.mxu0  ;;  %v16102_v31 = vld [vmem:[#allocation2 + $0xc8] sm:$0xff] }
 0x607   :  { %18539 = vst [vmem:[#allocation70_spill] sm:$0xff] %v15829_v49  ;;  %v16060_v49 = vld [vmem:[#allocation2 + $0x90] sm:$0xff] }
 0x608   :  { %9440 = vmatmul.msk.f32.gmra.mxu1 %vm260_vm0, %v5249_v52  ;;  %9551 = vmatmul.msk.f32.gmra.mxu3 %vm260_vm0, %v5292_v59  ;;  %v6001_v61 = vpop.f32.mrf.mxu2  ;;  %v5251_v52 = vld [vmem:[#allocation2 + $0x3c8] sm:$0xff] }
 0x609   :  { %9623 = vmatmul.msk.f32.gmra.mxu0 %vm260_vm0, %v5150_v19  ;;  %v6002_v58 = vadd.f32 %v6001_v61, %v18540_v2  ;;  %v4840_v54 = vpop.permute.xlu2 %4839 }
 0x60a   :  { %v4970_v7 = vmul.f32 %v4840_v54, %v15488_v10  ;;  %v5294_v54 = vld [vmem:[#allocation2 + $0x1f1] sm:$0xff] }
 0x60b   :  { %v6411_v37 = vpop.f32.mrf.mxu3 }
 0x60c   :  { %v15840_v50 = vadd.f32 %v6411_v37, %v6002_v58  ;;  %5116 = vst.msk [vmem:[#allocation2 + $0x430] sm:$0xff] %vm260_vm0, %v4970_v7 }
 0x60d   :  { %v15835_v28 = vpop.f32.mrf.mxu1  ;;  %9480 = vmatmul.msk.f32.gmra.mxu2 %vm260_vm0, %v5149_v63 }
 0x60e   :  { %18541 = vst [vmem:[#allocation71_spill] sm:$0xff] %v15840_v50  ;;  %v15842_v6 = vpop.f32.mrf.mxu0  ;;  %v16074_v50 = vld [vmem:[#allocation2 + $0xa8] sm:$0xff] }
 0x60f   :  { %18542 = vst [vmem:[#allocation72_spill] sm:$0xff] %v15842_v6 }
 0x610   :  { %9441 = vmatmul.msk.f32.gmra.mxu1 %vm260_vm0, %v5250_v14  ;;  %9552 = vmatmul.msk.f32.gmra.mxu3 %vm260_vm0, %v5293_v40  ;;  %v6004_v51 = vpop.f32.mrf.mxu2 }
 0x611   :  { %v6005_v59 = vadd.f32 %v6004_v51, %v15141_v42  ;;  %v5252_v51 = vld [vmem:[#allocation2 + $0x3d0] sm:$0xff] }
 0x613   :  { %v6414_v10 = vpop.f32.mrf.mxu3  ;;  %v4842_v61 = vpop.permute.xlu2 %4841 }
 0x614   :  { %v4971_v14 = vmul.f32 %v4842_v61, %v15551_v57  ;;  %v4836_v2 = vpop.permute.xlu0 %4835  ;;  %v15852_v58 = vadd.f32 %v6414_v10, %v6005_v59 }
 0x615   :  { %v15847_v9 = vpop.f32.mrf.mxu1  ;;  %v4968_v37 = vmul.f32 %v4836_v2, %v15406_v60  ;;  %9481 = vmatmul.msk.f32.gmra.mxu2 %vm260_vm0, %v5150_v19  ;;  %v5299_v2 = vld [vmem:[#allocation2 + $0x249] sm:$0xff] }
 0x616   :  { %18543 = vst [vmem:[#allocation73_spill] sm:$0xff] %v15852_v58  ;;  %v15855_v63 = vpop.f32.mrf.mxu0  ;;  %v16046_v58 = vld [vmem:[#allocation2 + $0x88] sm:$0xff] }
 0x617   :  { %18544 = vst [vmem:[#allocation74_spill] sm:$0xff] %v15855_v63  ;;  %v5166_v63 = vld [vmem:[#allocation2 + $0x2ef] sm:$0xff] }
 0x618   :  { %9442 = vmatmul.msk.f32.gmra.mxu1 %vm260_vm0, %v5251_v52  ;;  %5117 = vst.msk [vmem:[#allocation2 + $0x448] sm:$0xff] %vm260_vm0, %v4971_v14  ;;  %9553 = vmatmul.msk.f32.gmra.mxu3 %vm260_vm0, %v5294_v54  ;;  %v6007_v57 = vpop.f32.mrf.mxu2  ;;  %v5155_v14 = vld [vmem:[#allocation2 + $0x247] sm:$0xff] }
 0x619   :  { %5114 = vst.msk [vmem:[#allocation2 + $0x410] sm:$0xff] %vm260_vm0, %v4968_v37  ;;  %v6008_v7 = vadd.f32 %v6007_v57, %v15175_v20 }
 0x61b   :  { %v6417_v40 = vpop.f32.mrf.mxu3 }
 0x61c   :  { %v4838_v52 = vpop.permute.xlu1 %4837  ;;  %v4778_v59 = vpop.permute.xlu0 %4777  ;;  %v15866_v10 = vadd.f32 %v6417_v40, %v6008_v7 }
 0x61d   :  { %v15861_v42 = vpop.f32.mrf.mxu1  ;;  %v4969_v60 = vmul.f32 %v4838_v52, %v15456_v48  ;;  %v4939_v61 = vmul.f32 %v4778_v59, %v15357_v35  ;;  %9482 = vmatmul.msk.f32.gmra.mxu2 %vm260_vm0, %v5155_v14  ;;  %v5253_v48 = vld [vmem:[#allocation2 + $0x3e8] sm:$0xff] }
 0x61e   :  { %18545 = vst [vmem:[#allocation75_spill] sm:$0xff] %v15866_v10  ;;  %v15869_v19 = vpop.f32.mrf.mxu0 }
 0x61f   :  { %18546 = vst [vmem:[#allocation34_spill] sm:$0xff] %v15869_v19  ;;  %v15980_v19 = vld [vmem:[#allocation2 + $0x48] sm:$0xff] }
 0x620   :  { %9443 = vmatmul.msk.f32.gmra.mxu1 %vm260_vm0, %v5252_v51  ;;  %5115 = vst.msk [vmem:[#allocation2 + $0x428] sm:$0xff] %vm260_vm0, %v4969_v60  ;;  %9554 = vmatmul.msk.f32.gmra.mxu3 %vm260_vm0, %v5299_v2  ;;  %v6010_v37 = vpop.f32.mrf.mxu2  ;;  %v5156_v51 = vld [vmem:[#allocation2 + $0x24f] sm:$0xff]  ;;  %v9809_v2 = vld [vmem:[%s18205_s4 + $0x1b8] sm:$0xff] }
 0x621   :  { %5085 = vst.msk [vmem:[#allocation2 + $0x208] sm:$0xff] %vm260_vm0, %v4939_v61  ;;  %v6011_v54 = vadd.f32 %v6010_v37, %v15209_v24  ;;  %v5300_v60 = vld [vmem:[#allocation2 + $0x251] sm:$0xff]  ;;  %7539 = vmatpush.msra.mxu3 %v9809_v2  ;;  %v5255_v2 = vld [vmem:[#allocation2 + $0x408] sm:$0xff] }
 0x622   :  { %v9737_v61 = vld [vmem:[%s18205_s4 + $0x178] sm:$0xff] }
 0x623   :  { %v6420_v57 = vpop.f32.mrf.mxu3  ;;  %7245 = vmatpush.msra.mxu2 %v9737_v61 }
 0x624   :  { %v4780_v35 = vpop.permute.xlu1 %4779  ;;  %v15880_v40 = vadd.f32 %v6420_v57, %v6011_v54 }
 0x625   :  { %v15875_v20 = vpop.f32.mrf.mxu1  ;;  %v4940_v7 = vmul.f32 %v4780_v35, %v15412_v30  ;;  %9483 = vmatmul.msk.f32.gmra.mxu2 %vm260_vm0, %v5156_v51  ;;  %v5254_v30 = vld [vmem:[#allocation2 + $0x3f0] sm:$0xff] }
 0x626   :  { %18547 = vst [vmem:[#allocation11_spill] sm:$0xff] %v15880_v40  ;;  %v15882_v52 = vpop.f32.mrf.mxu0  ;;  %v5301_v51 = vld [vmem:[#allocation2 + $0x269] sm:$0xff]  ;;  %v18571_v40 = vld [vmem:[#allocation38_spill] sm:$0xff] }
 0x627   :  { %18548 = vst [vmem:[#allocation36_spill] sm:$0xff] %v15882_v52 }
 0x628   :  { %9444 = vmatmul.msk.f32.gmra.mxu1 %vm260_vm0, %v5253_v48  ;;  %5086 = vst.msk [vmem:[#allocation2 + $0x210] sm:$0xff] %vm260_vm0, %v4940_v7  ;;  %v5151_v59 = vld [vmem:[#allocation2 + $0x207] sm:$0xff]  ;;  %9555 = vmatmul.msk.f32.gmra.mxu3 %vm260_vm0, %v5300_v60  ;;  %v6013_v14 = vpop.f32.mrf.mxu2 }
 0x629   :  { %9624 = vmatmul.msk.f32.gmra.mxu0 %vm260_vm0, %v5151_v59  ;;  %v6014_v48 = vadd.f32 %v6013_v14, %v15243_v33  ;;  %v5157_v7 = vld [vmem:[#allocation2 + $0x267] sm:$0xff]  ;;  %v9881_v59 = vld [vmem:[%s18205_s4 + $0x1f8] sm:$0xff] }
 0x62a   :  { %7833 = vmatpush.msra.mxu0 %v9881_v59 }
 0x62b   :  { %v6423_v37 = vpop.f32.mrf.mxu3 }
 0x62c   :  { %v15898_v54 = vadd.f32 %v6423_v37, %v6014_v48 }
 0x62d   :  { %v15891_v24 = vpop.f32.mrf.mxu1  ;;  %9484 = vmatmul.msk.f32.gmra.mxu2 %vm260_vm0, %v5157_v7 }
 0x62e   :  { %18549 = vst [vmem:[#allocation57_spill] sm:$0xff] %v15898_v54  ;;  %v15900_v57 = vpop.f32.mrf.mxu0  ;;  %v10548_v54 = vld [vmem:[#allocation2 + $0x30] sm:$0xff] }
 0x62f   :  { %18550 = vst [vmem:[#allocation20_spill] sm:$0xff] %v15900_v57  ;;  %v5152_v35 = vld [vmem:[#allocation2 + $0x20f] sm:$0xff] }
 0x630   :  { %9445 = vmatmul.msk.f32.gmra.mxu1 %vm260_vm0, %v5254_v30  ;;  %9556 = vmatmul.msk.f32.gmra.mxu3 %vm260_vm0, %v5301_v51  ;;  %v6016_v33 = vpop.f32.mrf.mxu2  ;;  %v5158_v51 = vld [vmem:[#allocation2 + $0x26f] sm:$0xff] }
 0x631   :  { %9625 = vmatmul.msk.f32.gmra.mxu0 %vm260_vm0, %v5152_v35  ;;  %v6017_v61 = vadd.f32 %v6016_v33, %v15277_v38  ;;  %v9953_v35 = vld [vmem:[%s18205_s4 + $0x238] sm:$0xff]  ;;  %v5256_v33 = vld [vmem:[#allocation2 + $0x410] sm:$0xff] }
 0x632   :  { %8127 = vmatpush.msra.mxu1 %v9953_v35  ;;  %v5302_v38 = vld [vmem:[#allocation2 + $0x271] sm:$0xff] }
 0x633   :  { %v6426_v30 = vpop.f32.mrf.mxu3  ;;  %v4844_v14 = vpop.permute.xlu0 %4843 }
 0x634   :  { %v4972_v48 = vmul.f32 %v4844_v14, %v15589_v22  ;;  %v15913_v37 = vadd.f32 %v6426_v30, %v6017_v61 }
 0x635   :  { %v15905_v60 = vpop.f32.mrf.mxu1  ;;  %9485 = vmatmul.msk.f32.gmra.mxu2 %vm260_vm0, %v5158_v51 }
 0x636   :  { %18551 = vst [vmem:[#allocation50_spill] sm:$0xff] %v15913_v37  ;;  %v15919_v57 = vpop.f32.mrf.mxu0  ;;  %v5258_v37 = vld [vmem:[#allocation2 + $0x430] sm:$0xff] }
 0x637   :  { %5118 = vst.msk [vmem:[#allocation2 + $0x450] sm:$0xff] %vm260_vm0, %v4972_v48 }
 0x638   :  { %9446 = vmatmul.msk.f32.gmra.mxu1 %vm260_vm0, %v5255_v2  ;;  %18552 = vst [vmem:[#allocation22_spill] sm:$0xff] %v15919_v57  ;;  %9557 = vmatmul.msk.f32.gmra.mxu3 %vm260_vm0, %v5302_v38  ;;  %v6019_v59 = vpop.f32.mrf.mxu2  ;;  %v5159_v2 = vld [vmem:[#allocation2 + $0x287] sm:$0xff] }
 0x639   :  { %9626 = vmatmul.msk.f32.gmra.mxu0 %vm260_vm0, %v5157_v7  ;;  %v6020_v61 = vadd.f32 %v6019_v59, %v15311_v11  ;;  %v5303_v7 = vld [vmem:[#allocation2 + $0x289] sm:$0xff] }
 0x63a   :  { %v5257_v38 = vld [vmem:[#allocation2 + $0x428] sm:$0xff] }
 0x63b   :  { %v6429_v30 = vpop.f32.mrf.mxu3 }
 0x63c   :  { %v15928_v14 = vadd.f32 %v6429_v30, %v6020_v61  ;;  %v5160_v61 = vld [vmem:[#allocation2 + $0x28f] sm:$0xff] }
 0x63d   :  { %v15924_v22 = vpop.f32.mrf.mxu1  ;;  %9486 = vmatmul.msk.f32.gmra.mxu2 %vm260_vm0, %v5159_v2 }
 0x63e   :  { %18553 = vst [vmem:[#allocation52_spill] sm:$0xff] %v15928_v14  ;;  %v15933_v48 = vpop.f32.mrf.mxu0  ;;  %v18557_v14 = vld [vmem:[#allocation15_spill] sm:$0xff] }
 0x63f   :  { %18554 = vst [vmem:[#allocation13_spill] sm:$0xff] %v15933_v48 }
 0x640   :  { %9447 = vmatmul.msk.f32.gmra.mxu1 %vm260_vm0, %v5256_v33  ;;  %9558 = vmatmul.msk.f32.gmra.mxu3 %vm260_vm0, %v5303_v7  ;;  %v6022_v57 = vpop.f32.mrf.mxu2 }
 0x641   :  { %9627 = vmatmul.msk.f32.gmra.mxu0 %vm260_vm0, %v5158_v51  ;;  %v6023_v11 = vadd.f32 %v6022_v57, %v15347_v12  ;;  %v5304_v51 = vld [vmem:[#allocation2 + $0x291] sm:$0xff] }
 0x643   :  { %v6432_v59 = vpop.f32.mrf.mxu3 }
 0x644   :  { %v15939_v33 = vadd.f32 %v6432_v59, %v6023_v11  ;;  %v5161_v11 = vld [vmem:[#allocation2 + $0x2a7] sm:$0xff] }
 0x645   :  { %v15935_v35 = vpop.f32.mrf.mxu1  ;;  %9487 = vmatmul.msk.f32.gmra.mxu2 %vm260_vm0, %v5160_v61 }
 0x646   :  { %18555 = vst [vmem:[#allocation39_spill] sm:$0xff] %v15939_v33  ;;  %v15946_v48 = vpop.f32.mrf.mxu0 }
 0x647   :  { %18556 = vst [vmem:[#allocation14_spill] sm:$0xff] %v15946_v48  ;;  %v18559_v48 = vld [vmem:[#allocation18_spill] sm:$0xff] }
 0x648   :  { %9448 = vmatmul.msk.f32.gmra.mxu1 %vm260_vm0, %v5257_v38  ;;  %9559 = vmatmul.msk.f32.gmra.mxu3 %vm260_vm0, %v5304_v51  ;;  %v6025_v7 = vpop.f32.mrf.mxu2 }
 0x649   :  { %9628 = vmatmul.msk.f32.gmra.mxu0 %vm260_vm0, %v5159_v2  ;;  %v6026_v12 = vadd.f32 %v6025_v7, %v18557_v14  ;;  %v5305_v2 = vld [vmem:[#allocation2 + $0x2a9] sm:$0xff] }
 0x64a   :  { %v10547_v7 = vld [vmem:[#allocation2 + $0x28] sm:$0xff] }
 0x64b   :  { %v6435_v57 = vpop.f32.mrf.mxu3 }
 0x64c   :  { %v15950_v38 = vadd.f32 %v6435_v57, %v6026_v12  ;;  %v5162_v57 = vld [vmem:[#allocation2 + $0x2af] sm:$0xff] }
 0x64d   :  { %v15944_v30 = vpop.f32.mrf.mxu1  ;;  %9488 = vmatmul.msk.f32.gmra.mxu2 %vm260_vm0, %v5161_v11 }
 0x64e   :  { %18558 = vst [vmem:[#allocation41_spill] sm:$0xff] %v15950_v38 }
 0x650   :  { %9449 = vmatmul.msk.f32.gmra.mxu1 %vm260_vm0, %v5258_v37  ;;  %9560 = vmatmul.msk.f32.gmra.mxu3 %vm260_vm0, %v5305_v2  ;;  %v6028_v51 = vpop.f32.mrf.mxu2  ;;  %v15959_v37 = vpop.f32.mrf.mxu0 }
 0x651   :  { %9629 = vmatmul.msk.f32.gmra.mxu0 %vm260_vm0, %v5160_v61  ;;  %v6029_v33 = vadd.f32 %v6028_v51, %v18559_v48  ;;  %18560 = vst [vmem:[#allocation25_spill] sm:$0xff] %v15959_v37  ;;  %v5306_v61 = vld [vmem:[#allocation2 + $0x2b1] sm:$0xff]  ;;  %v18562_v48 = vld [vmem:[#allocation23_spill] sm:$0xff] }
 0x653   :  { %v6438_v14 = vpop.f32.mrf.mxu3 }
 0x654   :  { %v15961_v12 = vadd.f32 %v6438_v14, %v6029_v33  ;;  %v5163_v33 = vld [vmem:[#allocation2 + $0x2c7] sm:$0xff] }
 0x655   :  { %v15955_v59 = vpop.f32.mrf.mxu1  ;;  %9489 = vmatmul.msk.f32.gmra.mxu2 %vm260_vm0, %v5162_v57 }
 0x656   :  { %18561 = vst [vmem:[#allocation44_spill] sm:$0xff] %v15961_v12 }
 0x658   :  { %9666 = vmatmul.msk.f32.vlgmr.msrb.gmra.mxu1 %vm260_vm0, %v10547_v7  ;;  %9561 = vmatmul.msk.f32.gmra.mxu3 %vm260_vm0, %v5306_v61  ;;  %v6031_v38 = vpop.f32.mrf.mxu2  ;;  %v15972_v14 = vpop.f32.mrf.mxu0 }
 0x659   :  { %9630 = vmatmul.msk.f32.gmra.mxu0 %vm260_vm0, %v5161_v11  ;;  %v6032_v51 = vadd.f32 %v6031_v38, %v18562_v48  ;;  %18564 = vst [vmem:[#allocation46_spill] sm:$0xff] %v15972_v14  ;;  %v5307_v11 = vld [vmem:[#allocation2 + $0x2c9] sm:$0xff] }
 0x65a   :  { %v18565_v38 = vld [vmem:[#allocation28_spill] sm:$0xff] }
 0x65b   :  { %v6441_v52 = vpop.f32.mrf.mxu3 }
 0x65c   :  { %v15970_v7 = vadd.f32 %v6441_v52, %v6032_v51  ;;  %v5308_v51 = vld [vmem:[#allocation2 + $0x2d1] sm:$0xff] }
 0x65d   :  { %v15966_v2 = vpop.f32.mrf.mxu1  ;;  %9490 = vmatmul.msk.f32.gmra.mxu2 %vm260_vm0, %v5163_v33 }
 0x65e   :  { %18563 = vst [vmem:[#allocation27_spill] sm:$0xff] %v15970_v7 }
 0x660   :  { %9667 = vmatmul.msk.f32.gmra.mxu1 %vm260_vm0, %v10548_v54  ;;  %9562 = vmatmul.msk.f32.gmra.mxu3 %vm260_vm0, %v5307_v11  ;;  %v6034_v37 = vpop.f32.mrf.mxu2  ;;  %v9736_v54 = vld [vmem:[%s18205_s4 + $0x170] sm:$0xff] }
 0x661   :  { %9631 = vmatmul.msk.f32.gmra.mxu0 %vm260_vm0, %v5162_v57  ;;  %v6035_v48 = vadd.f32 %v6034_v37, %v18565_v38  ;;  %v5164_v57 = vld [vmem:[#allocation2 + $0x2cf] sm:$0xff]  ;;  %7246 = vmatpush.msra.mxu2 %v9736_v54  ;;  %v15992_v37 = vpop.f32.mrf.mxu0 }
 0x662   :  { %18567 = vst [vmem:[#allocation49_spill] sm:$0xff] %v15992_v37  ;;  %v16000_v54 = vld [vmem:[#allocation2 + $0x50] sm:$0xff] }
 0x663   :  { %v6444_v12 = vpop.f32.mrf.mxu3  ;;  %v5309_v37 = vld [vmem:[#allocation2 + $0x2e9] sm:$0xff] }
 0x664   :  { %v15984_v52 = vadd.f32 %v6444_v12, %v6035_v48  ;;  %v9808_v12 = vld [vmem:[%s18205_s4 + $0x1b0] sm:$0xff]  ;;  %v18568_v48 = vld [vmem:[#allocation33_spill] sm:$0xff] }
 0x665   :  { %v15977_v61 = vpop.f32.mrf.mxu1  ;;  %9491 = vmatmul.msk.f32.gmra.mxu2 %vm260_vm0, %v5164_v57  ;;  %7540 = vmatpush.msra.mxu3 %v9808_v12  ;;  %v9880_v12 = vld [vmem:[%s18205_s4 + $0x1f0] sm:$0xff] }
 0x666   :  { %18566 = vst [vmem:[#allocation16_spill] sm:$0xff] %v15984_v52  ;;  %7834 = vmatpush.msra.mxu0 %v9880_v12 }
 0x668   :  { %9668 = vmatmul.msk.f32.gmra.mxu1 %vm260_vm0, %v15980_v19  ;;  %9563 = vmatmul.msk.f32.gmra.mxu3 %vm260_vm0, %v5308_v51  ;;  %v6037_v38 = vpop.f32.mrf.mxu2  ;;  %v5165_v51 = vld [vmem:[#allocation2 + $0x2e7] sm:$0xff] }
 0x669   :  { %9632 = vmatmul.msk.f32.gmra.mxu0 %vm260_vm0, %v5163_v33  ;;  %v6038_v52 = vadd.f32 %v6037_v38, %v18568_v48  ;;  %v16014_v48 = vpop.f32.mrf.mxu0 }
 0x66a   :  { %18570 = vst [vmem:[#allocation51_spill] sm:$0xff] %v16014_v48  ;;  %7835 = vmatpush.msra.mxu0 %v9879_v62 }
 0x66b   :  { %v6447_v14 = vpop.f32.mrf.mxu3 }
 0x66c   :  { %v16004_v33 = vadd.f32 %v6447_v14, %v6038_v52  ;;  %7836 = vmatpush.msra.mxu0 %v9878_v32 }
 0x66d   :  { %v15994_v11 = vpop.f32.mrf.mxu1  ;;  %9492 = vmatmul.msk.f32.gmra.mxu2 %vm260_vm0, %v5165_v51 }
 0x66e   :  { %18569 = vst [vmem:[#allocation17_spill] sm:$0xff] %v16004_v33  ;;  %v16017_v33 = vld [vmem:[#allocation2 + $0x68] sm:$0xff] }
 0x670   :  { %9669 = vmatmul.msk.f32.gmra.mxu1 %vm260_vm0, %v16000_v54  ;;  %9564 = vmatmul.msk.f32.gmra.mxu3 %vm260_vm0, %v5309_v37  ;;  %v6040_v38 = vpop.f32.mrf.mxu2  ;;  %v9952_v37 = vld [vmem:[%s18205_s4 + $0x230] sm:$0xff] }
 0x671   :  { %9633 = vmatmul.msk.f32.gmra.mxu0 %vm260_vm0, %v5164_v57  ;;  %v6041_v14 = vadd.f32 %v6040_v38, %v18571_v40  ;;  %8128 = vmatpush.msra.mxu1 %v9952_v37  ;;  %v5310_v40 = vld [vmem:[#allocation2 + $0x2f1] sm:$0xff]  ;;  %v16036_v37 = vpop.f32.mrf.mxu0 }
 0x672   :  { %18573 = vst [vmem:[#allocation54_spill] sm:$0xff] %v16036_v37 }
 0x673   :  { %v6450_v52 = vpop.f32.mrf.mxu3 }
 0x674   :  { %v16021_v57 = vadd.f32 %v6450_v52, %v6041_v14  ;;  %v16032_v52 = vld [vmem:[#allocation2 + $0x70] sm:$0xff] }
 0x675   :  { %v16009_v7 = vpop.f32.mrf.mxu1  ;;  %9493 = vmatmul.msk.f32.gmra.mxu2 %vm260_vm0, %v5166_v63 }
 0x676   :  { %18572 = vst [vmem:[#allocation30_spill] sm:$0xff] %v16021_v57 }
 0x678   :  { %9670 = vmatmul.msk.f32.gmra.mxu1 %vm260_vm0, %v16017_v33  ;;  %9565 = vmatmul.msk.f32.gmra.mxu3 %vm260_vm0, %v5310_v40  ;;  %v6043_v12 = vpop.f32.mrf.mxu2  ;;  %v5311_v40 = vld [vmem:[#allocation2 + $0x309] sm:$0xff] }
 0x679   :  { %9634 = vmatmul.msk.f32.gmra.mxu0 %vm260_vm0, %v5165_v51  ;;  %v6044_v48 = vadd.f32 %v6043_v12, %v15639_v27  ;;  %v5167_v51 = vld [vmem:[#allocation2 + $0x307] sm:$0xff] }
 0x67b   :  { %v6453_v14 = vpop.f32.mrf.mxu3 }
 0x67c   :  { %v16038_v57 = vadd.f32 %v6453_v14, %v6044_v48  ;;  %v5168_v14 = vld [vmem:[#allocation2 + $0x30f] sm:$0xff] }
 0x67d   :  { %v16029_v38 = vpop.f32.mrf.mxu1  ;;  %9494 = vmatmul.msk.f32.gmra.mxu2 %vm260_vm0, %v5167_v51 }
 0x67e   :  { %18574 = vst [vmem:[#allocation32_spill] sm:$0xff] %v16038_v57 }
 0x680   :  { %9671 = vmatmul.msk.f32.gmra.mxu1 %vm260_vm0, %v16032_v52  ;;  %9566 = vmatmul.msk.f32.gmra.mxu3 %vm260_vm0, %v5311_v40  ;;  %v6046_v27 = vpop.f32.mrf.mxu2  ;;  %v5312_v40 = vld [vmem:[#allocation2 + $0x311] sm:$0xff] }
 0x681   :  { %9635 = vmatmul.msk.f32.gmra.mxu0 %vm260_vm0, %v5166_v63  ;;  %v6047_v12 = vadd.f32 %v6046_v27, %v15682_v44  ;;  %v16052_v63 = vpop.f32.mrf.mxu0 }
 0x682   :  { %18576 = vst [vmem:[#allocation19_spill] sm:$0xff] %v16052_v63 }
 0x683   :  { %v6456_v6 = vpop.f32.mrf.mxu3 }
 0x684   :  { %v16050_v48 = vadd.f32 %v6456_v6, %v6047_v12  ;;  %v5169_v12 = vld [vmem:[#allocation2 + $0x327] sm:$0xff] }
 0x685   :  { %v16043_v10 = vpop.f32.mrf.mxu1  ;;  %9495 = vmatmul.msk.f32.gmra.mxu2 %vm260_vm0, %v5168_v14 }
 0x686   :  { %18575 = vst [vmem:[#allocation55_spill] sm:$0xff] %v16050_v48 }
 0x688   :  { %9672 = vmatmul.msk.f32.gmra.mxu1 %vm260_vm0, %v16046_v58  ;;  %9567 = vmatmul.msk.f32.gmra.mxu3 %vm260_vm0, %v5312_v40  ;;  %v6049_v44 = vpop.f32.mrf.mxu2 }
 0x689   :  { %9636 = vmatmul.msk.f32.gmra.mxu0 %vm260_vm0, %v5167_v51  ;;  %v6050_v27 = vadd.f32 %v6049_v44, %v15702_v39  ;;  %v5313_v51 = vld [vmem:[#allocation2 + $0x329] sm:$0xff]  ;;  %v16069_v40 = vpop.f32.mrf.mxu0 }
 0x68a   :  { %18578 = vst [vmem:[#allocation21_spill] sm:$0xff] %v16069_v40 }
 0x68b   :  { %v6459_v37 = vpop.f32.mrf.mxu3 }
 0x68c   :  { %v16064_v6 = vadd.f32 %v6459_v37, %v6050_v27  ;;  %v5314_v27 = vld [vmem:[#allocation2 + $0x331] sm:$0xff] }
 0x68d   :  { %v16057_v57 = vpop.f32.mrf.mxu1  ;;  %9496 = vmatmul.msk.f32.gmra.mxu2 %vm260_vm0, %v5169_v12 }
 0x68e   :  { %18577 = vst [vmem:[#allocation59_spill] sm:$0xff] %v16064_v6 }
 0x690   :  { %9673 = vmatmul.msk.f32.gmra.mxu1 %vm260_vm0, %v16060_v49  ;;  %9568 = vmatmul.msk.f32.gmra.mxu3 %vm260_vm0, %v5313_v51  ;;  %v6052_v39 = vpop.f32.mrf.mxu2 }
 0x691   :  { %9637 = vmatmul.msk.f32.gmra.mxu0 %vm260_vm0, %v5168_v14  ;;  %v6053_v44 = vadd.f32 %v6052_v39, %v15717_v43  ;;  %v5170_v14 = vld [vmem:[#allocation2 + $0x32f] sm:$0xff]  ;;  %v16086_v40 = vpop.f32.mrf.mxu0 }
 0x692   :  { %18580 = vst [vmem:[#allocation37_spill] sm:$0xff] %v16086_v40 }
 0x693   :  { %v6462_v63 = vpop.f32.mrf.mxu3 }
 0x694   :  { %v16078_v37 = vadd.f32 %v6462_v63, %v6053_v44  ;;  %v5315_v44 = vld [vmem:[#allocation2 + $0x349] sm:$0xff] }
 0x695   :  { %v16071_v48 = vpop.f32.mrf.mxu1  ;;  %9497 = vmatmul.msk.f32.gmra.mxu2 %vm260_vm0, %v5170_v14 }
 0x696   :  { %18579 = vst [vmem:[#allocation35_spill] sm:$0xff] %v16078_v37 }
 0x698   :  { %9674 = vmatmul.msk.f32.gmra.mxu1 %vm260_vm0, %v16074_v50  ;;  %9569 = vmatmul.msk.f32.gmra.mxu3 %vm260_vm0, %v5314_v27  ;;  %v6055_v6 = vpop.f32.mrf.mxu2 }
 0x699   :  { %9638 = vmatmul.msk.f32.gmra.mxu0 %vm260_vm0, %v5169_v12  ;;  %v6056_v43 = vadd.f32 %v6055_v6, %v15728_v41  ;;  %v5171_v12 = vld [vmem:[#allocation2 + $0x347] sm:$0xff] }
 0x69b   :  { %v6465_v39 = vpop.f32.mrf.mxu3 }
 0x69c   :  { %v16092_v63 = vadd.f32 %v6465_v39, %v6056_v43  ;;  %v5172_v39 = vld [vmem:[#allocation2 + $0x34f] sm:$0xff] }
 0x69d   :  { %v16083_v51 = vpop.f32.mrf.mxu1  ;;  %9498 = vmatmul.msk.f32.gmra.mxu2 %vm260_vm0, %v5171_v12 }
 0x69e   :  { %18581 = vst [vmem:[#allocation24_spill] sm:$0xff] %v16092_v63 }
 0x6a0   :  { %9675 = vmatmul.msk.f32.gmra.mxu1 %vm260_vm0, %v16088_v21  ;;  %9570 = vmatmul.msk.f32.gmra.mxu3 %vm260_vm0, %v5315_v44  ;;  %v6058_v41 = vpop.f32.mrf.mxu2 }
 0x6a1   :  { %9639 = vmatmul.msk.f32.gmra.mxu0 %vm260_vm0, %v5170_v14  ;;  %v6059_v6 = vadd.f32 %v6058_v41, %v15741_v17  ;;  %v9735_v14 = vld [vmem:[%s18205_s4 + $0x168] sm:$0xff]  ;;  %v5316_v17 = vld [vmem:[#allocation2 + $0x351] sm:$0xff] }
 0x6a2   :  { %7247 = vmatpush.msra.mxu2 %v9735_v14  ;;  %v16122_v14 = vld [vmem:[#allocation2 + $0xd0] sm:$0xff] }
 0x6a3   :  { %v6468_v37 = vpop.f32.mrf.mxu3 }
 0x6a4   :  { %v16106_v43 = vadd.f32 %v6468_v37, %v6059_v6  ;;  %v9807_v37 = vld [vmem:[%s18205_s4 + $0x1a8] sm:$0xff] }
 0x6a5   :  { %v16097_v27 = vpop.f32.mrf.mxu1  ;;  %9499 = vmatmul.msk.f32.gmra.mxu2 %vm260_vm0, %v5172_v39  ;;  %7541 = vmatpush.msra.mxu3 %v9807_v37 }
 0x6a6   :  { %v16100_v40 = vpop.f32.mrf.mxu0  ;;  %18583 = vst [vmem:[#allocation40_spill] sm:$0xff] %v16106_v43 }
 0x6a7   :  { %18582 = vst [vmem:[#allocation26_spill] sm:$0xff] %v16100_v40  ;;  %v5317_v40 = vld [vmem:[#allocation2 + $0x369] sm:$0xff] }
 0x6a8   :  { %9676 = vmatmul.msk.f32.gmra.mxu1 %vm260_vm0, %v16102_v31  ;;  %9571 = vmatmul.msk.f32.gmra.mxu3 %vm260_vm0, %v5316_v17  ;;  %v6061_v41 = vpop.f32.mrf.mxu2  ;;  %v5173_v17 = vld [vmem:[#allocation2 + $0x367] sm:$0xff] }
 0x6a9   :  { %9640 = vmatmul.msk.f32.gmra.mxu0 %vm260_vm0, %v5171_v12  ;;  %v6062_v6 = vadd.f32 %v6061_v41, %v15754_v34 }
 0x6ab   :  { %v6471_v43 = vpop.f32.mrf.mxu3 }
 0x6ac   :  { %v16126_v12 = vadd.f32 %v6471_v43, %v6062_v6  ;;  %v16139_v6 = vld [vmem:[#allocation2 + $0xe8] sm:$0xff] }
 0x6ad   :  { %v16114_v44 = vpop.f32.mrf.mxu1  ;;  %9500 = vmatmul.msk.f32.gmra.mxu2 %vm260_vm0, %v5173_v17 }
 0x6ae   :  { %v16120_v63 = vpop.f32.mrf.mxu0  ;;  %18585 = vst [vmem:[#allocation29_spill] sm:$0xff] %v16126_v12 }
 0x6af   :  { %18584 = vst [vmem:[#allocation42_spill] sm:$0xff] %v16120_v63 }
 0x6b0   :  { %9677 = vmatmul.msk.f32.gmra.mxu1 %vm260_vm0, %v16122_v14  ;;  %9572 = vmatmul.msk.f32.gmra.mxu3 %vm260_vm0, %v5317_v40  ;;  %v6064_v41 = vpop.f32.mrf.mxu2  ;;  %v9951_v40 = vld [vmem:[%s18205_s4 + $0x228] sm:$0xff] }
 0x6b1   :  { %9641 = vmatmul.msk.f32.gmra.mxu0 %vm260_vm0, %v5172_v39  ;;  %v6065_v37 = vadd.f32 %v6064_v41, %v15767_v15  ;;  %8129 = vmatpush.msra.mxu1 %v9951_v40  ;;  %v5174_v15 = vld [vmem:[#allocation2 + $0x36f] sm:$0xff] }
 0x6b2   :  { %v5318_v41 = vld [vmem:[#allocation2 + $0x371] sm:$0xff] }
 0x6b3   :  { %v6474_v63 = vpop.f32.mrf.mxu3 }
 0x6b4   :  { %v16143_v39 = vadd.f32 %v6474_v63, %v6065_v37 }
 0x6b5   :  { %v16131_v34 = vpop.f32.mrf.mxu1  ;;  %9501 = vmatmul.msk.f32.gmra.mxu2 %vm260_vm0, %v5174_v15 }
 0x6b6   :  { %v16137_v43 = vpop.f32.mrf.mxu0  ;;  %18587 = vst [vmem:[#allocation45_spill] sm:$0xff] %v16143_v39  ;;  %v16156_v39 = vld [vmem:[#allocation2 + $0xf0] sm:$0xff] }
 0x6b7   :  { %18586 = vst [vmem:[#allocation31_spill] sm:$0xff] %v16137_v43 }
 0x6b8   :  { %9678 = vmatmul.msk.f32.gmra.mxu1 %vm260_vm0, %v16139_v6  ;;  %9573 = vmatmul.msk.f32.gmra.mxu3 %vm260_vm0, %v5318_v41  ;;  %v6067_v12 = vpop.f32.mrf.mxu2  ;;  %v5319_v41 = vld [vmem:[#allocation2 + $0x389] sm:$0xff] }
 0x6b9   :  { %9642 = vmatmul.msk.f32.gmra.mxu0 %vm260_vm0, %v5173_v17  ;;  %v6068_v43 = vadd.f32 %v6067_v12, %v15780_v5  ;;  %v5175_v17 = vld [vmem:[#allocation2 + $0x387] sm:$0xff] }
 0x6bb   :  { %v6477_v63 = vpop.f32.mrf.mxu3 }
 0x6bc   :  { %v16160_v40 = vadd.f32 %v6477_v63, %v6068_v43  ;;  %v5320_v63 = vld [vmem:[#allocation2 + $0x391] sm:$0xff] }
 0x6bd   :  { %v16151_v62 = vpop.f32.mrf.mxu1  ;;  %9502 = vmatmul.msk.f32.gmra.mxu2 %vm260_vm0, %v5175_v17 }
 0x6be   :  { %v16154_v37 = vpop.f32.mrf.mxu0  ;;  %18589 = vst [vmem:[#allocation60_spill] sm:$0xff] %v16160_v40 }
 0x6bf   :  { %18588 = vst [vmem:[#allocation47_spill] sm:$0xff] %v16154_v37 }
 0x6c0   :  { %9679 = vmatmul.msk.f32.gmra.mxu1 %vm260_vm0, %v16156_v39  ;;  %9574 = vmatmul.msk.f32.gmra.mxu3 %vm260_vm0, %v5319_v41  ;;  %v6070_v5 = vpop.f32.mrf.mxu2 }
 0x6c1   :  { %9643 = vmatmul.msk.f32.gmra.mxu0 %vm260_vm0, %v5174_v15  ;;  %v6071_v12 = vadd.f32 %v6070_v5, %v15793_v23  ;;  %v5176_v15 = vld [vmem:[#allocation2 + $0x38f] sm:$0xff] }
 0x6c3   :  { %v6480_v37 = vpop.f32.mrf.mxu3 }
 0x6c4   :  { %v16174_v43 = vadd.f32 %v6480_v37, %v6071_v12  ;;  %v5321_v12 = vld [vmem:[#allocation2 + $0x3a9] sm:$0xff] }
 0x6c5   :  { %v16165_v13 = vpop.f32.mrf.mxu1  ;;  %9503 = vmatmul.msk.f32.gmra.mxu2 %vm260_vm0, %v5176_v15 }
 0x6c6   :  { %v16168_v0 = vpop.f32.mrf.mxu0  ;;  %18591 = vst [vmem:[#allocation7_spill] sm:$0xff] %v16174_v43 }
 0x6c7   :  { %18590 = vst [vmem:[#allocation6_spill] sm:$0xff] %v16168_v0 }
 0x6c8   :  { %9680 = vmatmul.msk.f32.gmra.mxu1 %vm260_vm0, %v16170_v46  ;;  %9575 = vmatmul.msk.f32.gmra.mxu3 %vm260_vm0, %v5320_v63  ;;  %v6073_v23 = vpop.f32.mrf.mxu2 }
 0x6c9   :  { %9644 = vmatmul.msk.f32.gmra.mxu0 %vm260_vm0, %v5175_v17  ;;  %v6074_v5 = vadd.f32 %v6073_v23, %v15809_v36  ;;  %v5177_v17 = vld [vmem:[#allocation2 + $0x3a7] sm:$0xff] }
 0x6cb   :  { %v6483_v40 = vpop.f32.mrf.mxu3 }
 0x6cc   :  { %v16188_v37 = vadd.f32 %v6483_v40, %v6074_v5  ;;  %v5322_v5 = vld [vmem:[#allocation2 + $0x3b1] sm:$0xff] }
 0x6cd   :  { %v16179_v41 = vpop.f32.mrf.mxu1  ;;  %9504 = vmatmul.msk.f32.gmra.mxu2 %vm260_vm0, %v5177_v17 }
 0x6ce   :  { %v16182_v0 = vpop.f32.mrf.mxu0  ;;  %18593 = vst [vmem:[#allocation9_spill] sm:$0xff] %v16188_v37 }
 0x6cf   :  { %18592 = vst [vmem:[#allocation8_spill] sm:$0xff] %v16182_v0 }
 0x6d0   :  { %9681 = vmatmul.msk.f32.gmra.mxu1 %vm260_vm0, %v16184_v3  ;;  %9576 = vmatmul.msk.f32.gmra.mxu3 %vm260_vm0, %v5321_v12  ;;  %v6076_v36 = vpop.f32.mrf.mxu2 }
 0x6d1   :  { %9645 = vmatmul.msk.f32.gmra.mxu0 %vm260_vm0, %v5176_v15  ;;  %v6077_v23 = vadd.f32 %v6076_v36, %v15822_v1  ;;  %v5178_v15 = vld [vmem:[#allocation2 + $0x3af] sm:$0xff] }
 0x6d3   :  { %v6486_v43 = vpop.f32.mrf.mxu3 }
 0x6d4   :  { %v16202_v40 = vadd.f32 %v6486_v43, %v6077_v23  ;;  %v5323_v23 = vld [vmem:[#allocation2 + $0x3c9] sm:$0xff] }
 0x6d5   :  { %v16193_v63 = vpop.f32.mrf.mxu1  ;;  %9505 = vmatmul.msk.f32.gmra.mxu2 %vm260_vm0, %v5178_v15 }
 0x6d6   :  { %v16196_v0 = vpop.f32.mrf.mxu0  ;;  %18595 = vst [vmem:[#allocation12_spill] sm:$0xff] %v16202_v40 }
 0x6d7   :  { %18594 = vst [vmem:[#allocation10_spill] sm:$0xff] %v16196_v0 }
 0x6d8   :  { %9682 = vmatmul.msk.f32.gmra.mxu1 %vm260_vm0, %v16198_v18  ;;  %9577 = vmatmul.msk.f32.gmra.mxu3 %vm260_vm0, %v5322_v5  ;;  %v6079_v1 = vpop.f32.mrf.mxu2 }
 0x6d9   :  { %9646 = vmatmul.msk.f32.gmra.mxu0 %vm260_vm0, %v5177_v17  ;;  %v6080_v36 = vadd.f32 %v6079_v1, %v15835_v28  ;;  %v5179_v17 = vld [vmem:[#allocation2 + $0x3c7] sm:$0xff] }
 0x6db   :  { %v6489_v37 = vpop.f32.mrf.mxu3 }
 0x6dc   :  { %v16216_v43 = vadd.f32 %v6489_v37, %v6080_v36  ;;  %v5180_v36 = vld [vmem:[#allocation2 + $0x3cf] sm:$0xff] }
 0x6dd   :  { %v16207_v12 = vpop.f32.mrf.mxu1  ;;  %9506 = vmatmul.msk.f32.gmra.mxu2 %vm260_vm0, %v5179_v17 }
 0x6de   :  { %v16210_v0 = vpop.f32.mrf.mxu0  ;;  %18597 = vst [vmem:[#allocation18_spill] sm:$0xff] %v16216_v43 }
 0x6df   :  { %18596 = vst [vmem:[#allocation15_spill] sm:$0xff] %v16210_v0 }
 0x6e0   :  { %9683 = vmatmul.msk.f32.gmra.mxu1 %vm260_vm0, %v16212_v8  ;;  %9578 = vmatmul.msk.f32.gmra.mxu3 %vm260_vm0, %v5323_v23  ;;  %v6082_v28 = vpop.f32.mrf.mxu2 }
 0x6e1   :  { %9647 = vmatmul.msk.f32.gmra.mxu0 %vm260_vm0, %v5178_v15  ;;  %v6083_v1 = vadd.f32 %v6082_v28, %v15847_v9  ;;  %v9734_v15 = vld [vmem:[%s18205_s4 + $0x160] sm:$0xff]  ;;  %v5324_v9 = vld [vmem:[#allocation2 + $0x3d1] sm:$0xff] }
 0x6e2   :  { %7248 = vmatpush.msra.mxu2 %v9734_v15  ;;  %v16246_v15 = vld [vmem:[#allocation2 + $0x150] sm:$0xff] }
 0x6e3   :  { %v6492_v40 = vpop.f32.mrf.mxu3 }
 0x6e4   :  { %v16230_v37 = vadd.f32 %v6492_v40, %v6083_v1  ;;  %v9806_v1 = vld [vmem:[%s18205_s4 + $0x1a0] sm:$0xff] }
 0x6e5   :  { %v16221_v5 = vpop.f32.mrf.mxu1  ;;  %9507 = vmatmul.msk.f32.gmra.mxu2 %vm260_vm0, %v5180_v36  ;;  %7542 = vmatpush.msra.mxu3 %v9806_v1 }
 0x6e6   :  { %v16224_v0 = vpop.f32.mrf.mxu0  ;;  %18599 = vst [vmem:[#allocation28_spill] sm:$0xff] %v16230_v37 }
 0x6e7   :  { %18598 = vst [vmem:[#allocation23_spill] sm:$0xff] %v16224_v0 }
 0x6e8   :  { %9684 = vmatmul.msk.f32.gmra.mxu1 %vm260_vm0, %v16226_v4  ;;  %9579 = vmatmul.msk.f32.gmra.mxu3 %vm260_vm0, %v5324_v9  ;;  %v6085_v28 = vpop.f32.mrf.mxu2  ;;  %v5181_v9 = vld [vmem:[#allocation2 + $0x3e7] sm:$0xff] }
 0x6e9   :  { %9648 = vmatmul.msk.f32.gmra.mxu0 %vm260_vm0, %v5179_v17  ;;  %v6086_v43 = vadd.f32 %v6085_v28, %v15861_v42  ;;  %v5325_v42 = vld [vmem:[#allocation2 + $0x3e9] sm:$0xff] }
 0x6eb   :  { %v6495_v40 = vpop.f32.mrf.mxu3 }
 0x6ec   :  { %v16250_v17 = vadd.f32 %v6495_v40, %v6086_v43  ;;  %v16263_v40 = vld [vmem:[#allocation2 + $0x168] sm:$0xff] }
 0x6ed   :  { %v16238_v23 = vpop.f32.mrf.mxu1  ;;  %9508 = vmatmul.msk.f32.gmra.mxu2 %vm260_vm0, %v5181_v9 }
 0x6ee   :  { %v16244_v37 = vpop.f32.mrf.mxu0  ;;  %18601 = vst [vmem:[#allocation38_spill] sm:$0xff] %v16250_v17 }
 0x6ef   :  { %18600 = vst [vmem:[#allocation33_spill] sm:$0xff] %v16244_v37 }
 0x6f0   :  { %9685 = vmatmul.msk.f32.gmra.mxu1 %vm260_vm0, %v16246_v15  ;;  %9580 = vmatmul.msk.f32.gmra.mxu3 %vm260_vm0, %v5325_v42  ;;  %v6088_v0 = vpop.f32.mrf.mxu2  ;;  %v9950_v42 = vld [vmem:[%s18205_s4 + $0x220] sm:$0xff] }
 0x6f1   :  { %9649 = vmatmul.msk.f32.gmra.mxu0 %vm260_vm0, %v5180_v36  ;;  %v6089_v1 = vadd.f32 %v6088_v0, %v15875_v20  ;;  %8130 = vmatpush.msra.mxu1 %v9950_v42  ;;  %v5182_v0 = vld [vmem:[#allocation2 + $0x3ef] sm:$0xff] }
 0x6f2   :  { %v5326_v20 = vld [vmem:[#allocation2 + $0x3f1] sm:$0xff] }
 0x6f3   :  { %v6498_v37 = vpop.f32.mrf.mxu3 }
 0x6f4   :  { %v16267_v36 = vadd.f32 %v6498_v37, %v6089_v1 }
 0x6f5   :  { %v16255_v28 = vpop.f32.mrf.mxu1  ;;  %9509 = vmatmul.msk.f32.gmra.mxu2 %vm260_vm0, %v5182_v0 }
 0x6f6   :  { %v16261_v43 = vpop.f32.mrf.mxu0  ;;  %18603 = vst [vmem:[#allocation77_spill] sm:$0xff] %v16267_v36  ;;  %v16280_v36 = vld [vmem:[#allocation2 + $0x170] sm:$0xff] }
 0x6f7   :  { %18602 = vst [vmem:[#allocation76_spill] sm:$0xff] %v16261_v43 }
 0x6f8   :  { %9686 = vmatmul.msk.f32.gmra.mxu1 %vm260_vm0, %v16263_v40  ;;  %9581 = vmatmul.msk.f32.gmra.mxu3 %vm260_vm0, %v5326_v20  ;;  %v6091_v17 = vpop.f32.mrf.mxu2  ;;  %v5327_v20 = vld [vmem:[#allocation2 + $0x409] sm:$0xff] }
 0x6f9   :  { %9650 = vmatmul.msk.f32.gmra.mxu0 %vm260_vm0, %v5181_v9  ;;  %v6092_v43 = vadd.f32 %v6091_v17, %v15891_v24  ;;  %v5183_v9 = vld [vmem:[#allocation2 + $0x407] sm:$0xff] }
 0x6fb   :  { %v6501_v37 = vpop.f32.mrf.mxu3 }
 0x6fc   :  { %v16284_v42 = vadd.f32 %v6501_v37, %v6092_v43  ;;  %v5328_v37 = vld [vmem:[#allocation2 + $0x411] sm:$0xff] }
 0x6fd   :  { %v16275_v32 = vpop.f32.mrf.mxu1  ;;  %9510 = vmatmul.msk.f32.gmra.mxu2 %vm260_vm0, %v5183_v9 }
 0x6fe   :  { %v16278_v1 = vpop.f32.mrf.mxu0  ;;  %18605 = vst [vmem:[#allocation79_spill] sm:$0xff] %v16284_v42 }
 0x6ff   :  { %18604 = vst [vmem:[#allocation78_spill] sm:$0xff] %v16278_v1 }
 0x700   :  { %9687 = vmatmul.msk.f32.gmra.mxu1 %vm260_vm0, %v16280_v36  ;;  %9582 = vmatmul.msk.f32.gmra.mxu3 %vm260_vm0, %v5327_v20  ;;  %v6094_v24 = vpop.f32.mrf.mxu2 }
 0x701   :  { %9651 = vmatmul.msk.f32.gmra.mxu0 %vm260_vm0, %v5182_v0  ;;  %v6095_v17 = vadd.f32 %v6094_v24, %v15905_v60  ;;  %v5184_v0 = vld [vmem:[#allocation2 + $0x40f] sm:$0xff] }
 0x703   :  { %v6504_v1 = vpop.f32.mrf.mxu3 }
 0x704   :  { %v16298_v43 = vadd.f32 %v6504_v1, %v6095_v17  ;;  %v5329_v17 = vld [vmem:[#allocation2 + $0x429] sm:$0xff] }
 0x705   :  { %v16289_v53 = vpop.f32.mrf.mxu1  ;;  %9511 = vmatmul.msk.f32.gmra.mxu2 %vm260_vm0, %v5184_v0 }
 0x706   :  { %18606 = vst [vmem:[#allocation80_spill] sm:$0xff] %v16289_v53  ;;  %v16292_v26 = vpop.f32.mrf.mxu0  ;;  %v16308_v53 = vld [vmem:[#allocation2 + $0x190] sm:$0xff] }
 0x707   :  { %18607 = vst [vmem:[#allocation81_spill] sm:$0xff] %v16292_v26 }
 0x708   :  { %9688 = vmatmul.msk.f32.gmra.mxu1 %vm260_vm0, %v16294_v16  ;;  %18608 = vst [vmem:[#allocation82_spill] sm:$0xff] %v16298_v43  ;;  %9583 = vmatmul.msk.f32.gmra.mxu3 %vm260_vm0, %v5328_v37  ;;  %v6097_v60 = vpop.f32.mrf.mxu2 }
 0x709   :  { %9652 = vmatmul.msk.f32.gmra.mxu0 %vm260_vm0, %v5183_v9  ;;  %v6098_v24 = vadd.f32 %v6097_v60, %v15924_v22  ;;  %v5185_v9 = vld [vmem:[#allocation2 + $0x427] sm:$0xff] }
 0x70b   :  { %v6507_v42 = vpop.f32.mrf.mxu3 }
 0x70c   :  { %v16312_v1 = vadd.f32 %v6507_v42, %v6098_v24  ;;  %v9805_v24 = vld [vmem:[%s18205_s4 + $0x198] sm:$0xff] }
 0x70d   :  { %v16303_v20 = vpop.f32.mrf.mxu1  ;;  %9512 = vmatmul.msk.f32.gmra.mxu2 %vm260_vm0, %v5185_v9  ;;  %7543 = vmatpush.msra.mxu3 %v9805_v24  ;;  %v9803_v24 = vld [vmem:[%s18205_s4 + $0x188] sm:$0xff] }
 0x70e   :  { %18609 = vst [vmem:[#allocation83_spill] sm:$0xff] %v16303_v20  ;;  %v16306_v26 = vpop.f32.mrf.mxu0  ;;  %v16322_v20 = vld [vmem:[#allocation2 + $0x1a8] sm:$0xff] }
 0x70f   :  { %18610 = vst [vmem:[#allocation84_spill] sm:$0xff] %v16306_v26 }
 0x710   :  { %9689 = vmatmul.msk.f32.gmra.mxu1 %vm260_vm0, %v16308_v53  ;;  %18611 = vst [vmem:[#allocation85_spill] sm:$0xff] %v16312_v1  ;;  %9584 = vmatmul.msk.f32.gmra.mxu3 %vm260_vm0, %v5329_v17  ;;  %v6100_v22 = vpop.f32.mrf.mxu2  ;;  %v5186_v17 = vld [vmem:[#allocation2 + $0x42f] sm:$0xff] }
 0x711   :  { %9653 = vmatmul.msk.f32.gmra.mxu0 %vm260_vm0, %v5184_v0  ;;  %v6101_v60 = vadd.f32 %v6100_v22, %v15935_v35  ;;  %18614 = vst [vmem:[#allocation88_spill] sm:$0xff] %v16322_v20  ;;  %v9733_v0 = vld [vmem:[%s18205_s4 + $0x158] sm:$0xff]  ;;  %v9732_v35 = vld [vmem:[%s18205_s4 + $0x150] sm:$0xff] }
 0x712   :  { %7249 = vmatpush.msra.mxu2 %v9733_v0  ;;  %v5330_v22 = vld [vmem:[#allocation2 + $0x431] sm:$0xff]  ;;  %v9731_v0 = vld [vmem:[%s18205_s4 + $0x148] sm:$0xff] }
 0x713   :  { %v6510_v43 = vpop.f32.mrf.mxu3 }
 0x714   :  { %v16326_v42 = vadd.f32 %v6510_v43, %v6101_v60  ;;  %v9804_v43 = vld [vmem:[%s18205_s4 + $0x190] sm:$0xff]  ;;  %7250 = vmatpush.msra.mxu2 %v9732_v35  ;;  %v9730_v35 = vld [vmem:[%s18205_s4 + $0x140] sm:$0xff] }
 0x715   :  { %v16317_v37 = vpop.f32.mrf.mxu1  ;;  %9513 = vmatmul.msk.f32.gmra.mxu2 %vm260_vm0, %v5186_v17  ;;  %7544 = vmatpush.msra.mxu3 %v9804_v43  ;;  %v9802_v43 = vld [vmem:[%s18205_s4 + $0x180] sm:$0xff] }
 0x716   :  { %18612 = vst [vmem:[#allocation86_spill] sm:$0xff] %v16317_v37  ;;  %v16320_v26 = vpop.f32.mrf.mxu0  ;;  %7251 = vmatpush.msra.mxu2 %v9731_v0 }
 0x717   :  { %18613 = vst [vmem:[#allocation87_spill] sm:$0xff] %v16320_v26  ;;  %7545 = vmatpush.msra.mxu3 %v9803_v24 }
 0x718   :  { %9690 = vmatmul.msk.f32.gmra.mxu1 %vm260_vm0, %v16322_v20  ;;  %18615 = vst [vmem:[#allocation89_spill] sm:$0xff] %v16326_v42  ;;  %9585 = vmatmul.msk.f32.gmra.mxu3 %vm260_vm0, %v5330_v22  ;;  %v6103_v42 = vpop.f32.mrf.mxu2  ;;  %v16360_v22 = vld [vmem:[#allocation2 + $0x1b0] sm:$0xff] }
 0x719   :  { %9654 = vmatmul.msk.f32.gmra.mxu0 %vm260_vm0, %v5185_v9  ;;  %v6104_v9 = vadd.f32 %v6103_v42, %v15944_v30  ;;  %7252 = vmatpush.msra.mxu2 %v9730_v35  ;;  %v10573_v30 = vld [vmem:[#allocation2 + $0x29] sm:$0xff]  ;;  %v10576_v35 = vld [vmem:[#allocation2 + $0x31] sm:$0xff] }
 0x71a   :  { %7546 = vmatpush.msra.mxu3 %v9802_v43  ;;  %v10574_v42 = vld [vmem:[#allocation2 + $0x47] sm:$0xff]  ;;  %v10577_v43 = vld [vmem:[#allocation2 + $0x4f] sm:$0xff] }
 0x71b   :  { %v6513_v1 = vpop.f32.mrf.mxu3 }
 0x71d   :  { %v16343_v60 = vpop.f32.mrf.mxu1  ;;  %9738 = vmatmul.msk.f32.vlgmr.msra.gmra.mxu2 %vm260_vm0, %v10573_v30 }
 0x71e   :  { %18616 = vst [vmem:[#allocation90_spill] sm:$0xff] %v16343_v60  ;;  %v16352_v26 = vpop.f32.mrf.mxu0  ;;  %v16364_v60 = vadd.f32 %v6513_v1, %v6104_v9  ;;  %v16374_v1 = vld [vmem:[#allocation2 + $0x1c8] sm:$0xff] }
 0x71f   :  { %18617 = vst [vmem:[#allocation91_spill] sm:$0xff] %v16352_v26  ;;  %v5187_v9 = vld [vmem:[#allocation2 + $0x447] sm:$0xff] }
 0x720   :  { %9691 = vmatmul.msk.f32.gmra.mxu1 %vm260_vm0, %v16360_v22  ;;  %18618 = vst [vmem:[#allocation92_spill] sm:$0xff] %v16364_v60  ;;  %9810 = vmatmul.msk.f32.vlgmr.msra.gmra.mxu3 %vm260_vm0, %v10574_v42  ;;  %v6106_v24 = vpop.f32.mrf.mxu2 }
 0x721   :  { %9655 = vmatmul.msk.f32.gmra.mxu0 %vm260_vm0, %v5186_v17  ;;  %v6107_v26 = vadd.f32 %v6106_v24, %v15955_v59 }
 0x723   :  { %v6516_v20 = vpop.f32.mrf.mxu3 }
 0x724   :  { %v16378_v17 = vadd.f32 %v6516_v20, %v6107_v26  ;;  %v9877_v20 = vld [vmem:[%s18205_s4 + $0x1d8] sm:$0xff] }
 0x725   :  { %v16369_v0 = vpop.f32.mrf.mxu1  ;;  %9739 = vmatmul.msk.f32.gmra.mxu2 %vm260_vm0, %v10576_v35  ;;  %v5188_v35 = vld [vmem:[#allocation2 + $0x44f] sm:$0xff]  ;;  %7837 = vmatpush.msra.mxu0 %v9877_v20 }
 0x726   :  { %v16372_v37 = vpop.f32.mrf.mxu0  ;;  %18620 = vst [vmem:[#allocation94_spill] sm:$0xff] %v16378_v17 }
 0x727   :  { %18619 = vst [vmem:[#allocation93_spill] sm:$0xff] %v16372_v37  ;;  %v16388_v37 = vld [vmem:[#allocation2 + $0x1d0] sm:$0xff] }
 0x728   :  { %9692 = vmatmul.msk.f32.gmra.mxu1 %vm260_vm0, %v16374_v1  ;;  %9811 = vmatmul.msk.f32.gmra.mxu3 %vm260_vm0, %v10577_v43  ;;  %v6109_v30 = vpop.f32.mrf.mxu2  ;;  %v10580_v43 = vld [vmem:[#allocation2 + $0x67] sm:$0xff] }
 0x729   :  { %9656 = vmatmul.msk.f32.gmra.mxu0 %vm260_vm0, %v5187_v9  ;;  %v6110_v42 = vadd.f32 %v6109_v30, %v15966_v2  ;;  %v9876_v9 = vld [vmem:[%s18205_s4 + $0x1d0] sm:$0xff]  ;;  %v9875_v30 = vld [vmem:[%s18205_s4 + $0x1c8] sm:$0xff] }
 0x72a   :  { %v16401_v2 = vld [vmem:[#allocation2 + $0x49] sm:$0xff]  ;;  %7838 = vmatpush.msra.mxu0 %v9876_v9 }
 0x72b   :  { %v6519_v24 = vpop.f32.mrf.mxu3  ;;  %18623 = vst [vmem:[#allocation97_spill] sm:$0xff] %v16401_v2 }
 0x72c   :  { %v16392_v26 = vadd.f32 %v6519_v24, %v6110_v42  ;;  %7839 = vmatpush.msra.mxu0 %v9875_v30  ;;  %v9949_v30 = vld [vmem:[%s18205_s4 + $0x218] sm:$0xff] }
 0x72d   :  { %v16383_v59 = vpop.f32.mrf.mxu1  ;;  %9740 = vmatmul.msk.f32.gmra.mxu2 %vm260_vm0, %v16401_v2  ;;  %8131 = vmatpush.msra.mxu1 %v9949_v30  ;;  %v16438_v30 = vld [vmem:[#allocation2 + $0x1f0] sm:$0xff]  ;;  %v16454_v2 = vld [vmem:[#allocation2 + $0x208] sm:$0xff] }
 0x72e   :  { %v16386_v60 = vpop.f32.mrf.mxu0  ;;  %18622 = vst [vmem:[#allocation96_spill] sm:$0xff] %v16392_v26  ;;  %v9874_v26 = vld [vmem:[%s18205_s4 + $0x1c0] sm:$0xff] }
 0x72f   :  { %18621 = vst [vmem:[#allocation95_spill] sm:$0xff] %v16386_v60  ;;  %7840 = vmatpush.msra.mxu0 %v9874_v26  ;;  %v10583_v26 = vld [vmem:[#allocation2 + $0x6f] sm:$0xff] }
 0x730   :  { %9693 = vmatmul.msk.f32.gmra.mxu1 %vm260_vm0, %v16388_v37  ;;  %9812 = vmatmul.msk.f32.gmra.mxu3 %vm260_vm0, %v10580_v43  ;;  %v6112_v24 = vpop.f32.mrf.mxu2  ;;  %v16417_v43 = vld [vmem:[#allocation2 + $0x1e8] sm:$0xff] }
 0x731   :  { %9657 = vmatmul.msk.f32.gmra.mxu0 %vm260_vm0, %v5188_v35  ;;  %v6113_v20 = vadd.f32 %v6112_v24, %v15977_v61  ;;  %v16428_v61 = vld [vmem:[#allocation2 + $0x51] sm:$0xff]  ;;  %v16446_v60 = vld [vmem:[#allocation2 + $0x69] sm:$0xff] }
 0x732   :  { %18626 = vst [vmem:[#allocation100_spill] sm:$0xff] %v16428_v61 }
 0x733   :  { %v6522_v35 = vpop.f32.mrf.mxu3  ;;  %18629 = vst [vmem:[#allocation103_spill] sm:$0xff] %v16446_v60 }
 0x734   :  { %v16421_v9 = vadd.f32 %v6522_v35, %v6113_v20 }
 0x735   :  { %v16409_v42 = vpop.f32.mrf.mxu1  ;;  %9741 = vmatmul.msk.f32.gmra.mxu2 %vm260_vm0, %v16428_v61 }
 0x736   :  { %v16415_v17 = vpop.f32.mrf.mxu0  ;;  %18625 = vst [vmem:[#allocation99_spill] sm:$0xff] %v16421_v9 }
 0x737   :  { %18624 = vst [vmem:[#allocation98_spill] sm:$0xff] %v16415_v17 }
 0x738   :  { %9694 = vmatmul.msk.f32.gmra.mxu1 %vm260_vm0, %v16417_v43  ;;  %9813 = vmatmul.msk.f32.gmra.mxu3 %vm260_vm0, %v10583_v26  ;;  %v6115_v20 = vpop.f32.mrf.mxu2  ;;  %v10586_v26 = vld [vmem:[#allocation2 + $0x87] sm:$0xff] }
 0x739   :  { %9882 = vmatmul.msk.f32.vlgmr.msra.gmra.mxu0 %vm260_vm0, %v15980_v19  ;;  %v6116_v35 = vadd.f32 %v6115_v20, %v15994_v11 }
 0x73b   :  { %v6525_v9 = vpop.f32.mrf.mxu3 }
 0x73c   :  { %v16442_v19 = vadd.f32 %v6525_v9, %v6116_v35  ;;  %v16464_v35 = vld [vmem:[#allocation2 + $0x71] sm:$0xff] }
 0x73d   :  { %v16433_v24 = vpop.f32.mrf.mxu1  ;;  %9742 = vmatmul.msk.f32.gmra.mxu2 %vm260_vm0, %v16446_v60  ;;  %18632 = vst [vmem:[#allocation106_spill] sm:$0xff] %v16464_v35  ;;  %v16472_v60 = vld [vmem:[#allocation2 + $0x210] sm:$0xff] }
 0x73e   :  { %v16436_v17 = vpop.f32.mrf.mxu0  ;;  %18628 = vst [vmem:[#allocation102_spill] sm:$0xff] %v16442_v19 }
 0x73f   :  { %18627 = vst [vmem:[#allocation101_spill] sm:$0xff] %v16436_v17 }
 0x740   :  { %9695 = vmatmul.msk.f32.gmra.mxu1 %vm260_vm0, %v16438_v30  ;;  %9814 = vmatmul.msk.f32.gmra.mxu3 %vm260_vm0, %v10586_v26  ;;  %v6118_v20 = vpop.f32.mrf.mxu2  ;;  %v10588_v26 = vld [vmem:[#allocation2 + $0x8f] sm:$0xff] }
 0x741   :  { %9883 = vmatmul.msk.f32.gmra.mxu0 %vm260_vm0, %v16000_v54  ;;  %v6119_v17 = vadd.f32 %v6118_v20, %v16009_v7 }
 0x743   :  { %v6528_v61 = vpop.f32.mrf.mxu3 }
 0x744   :  { %v16460_v54 = vadd.f32 %v6528_v61, %v6119_v17  ;;  %v16482_v61 = vld [vmem:[#allocation2 + $0x89] sm:$0xff] }
 0x745   :  { %v16451_v11 = vpop.f32.mrf.mxu1  ;;  %9743 = vmatmul.msk.f32.gmra.mxu2 %vm260_vm0, %v16464_v35 }
 0x746   :  { %v16456_v9 = vpop.f32.mrf.mxu0  ;;  %18631 = vst [vmem:[#allocation105_spill] sm:$0xff] %v16460_v54 }
 0x747   :  { %18630 = vst [vmem:[#allocation104_spill] sm:$0xff] %v16456_v9 }
 0x748   :  { %9696 = vmatmul.msk.f32.gmra.mxu1 %vm260_vm0, %v16454_v2  ;;  %9815 = vmatmul.msk.f32.gmra.mxu3 %vm260_vm0, %v10588_v26  ;;  %v6121_v20 = vpop.f32.mrf.mxu2  ;;  %v10590_v26 = vld [vmem:[#allocation2 + $0xa7] sm:$0xff] }
 0x749   :  { %9884 = vmatmul.msk.f32.gmra.mxu0 %vm260_vm0, %v16017_v33  ;;  %v6122_v19 = vadd.f32 %v6121_v20, %v16029_v38 }
 0x74b   :  { %v6531_v9 = vpop.f32.mrf.mxu3 }
 0x74c   :  { %v16478_v33 = vadd.f32 %v6531_v9, %v6122_v19  ;;  %v10591_v19 = vld [vmem:[#allocation2 + $0x268] sm:$0xff]  ;;  %v16497_v9 = vld [vmem:[#allocation2 + $0x91] sm:$0xff] }
 0x74d   :  { %v16469_v7 = vpop.f32.mrf.mxu1  ;;  %9744 = vmatmul.msk.f32.gmra.mxu2 %vm260_vm0, %v16482_v61 }
 0x74e   :  { %v16474_v17 = vpop.f32.mrf.mxu0  ;;  %18634 = vst [vmem:[#allocation108_spill] sm:$0xff] %v16478_v33 }
 0x74f   :  { %18633 = vst [vmem:[#allocation107_spill] sm:$0xff] %v16474_v17 }
 0x750   :  { %9697 = vmatmul.msk.f32.gmra.mxu1 %vm260_vm0, %v16472_v60  ;;  %9816 = vmatmul.msk.f32.gmra.mxu3 %vm260_vm0, %v10590_v26  ;;  %v6124_v20 = vpop.f32.mrf.mxu2  ;;  %v10593_v26 = vld [vmem:[#allocation2 + $0xaf] sm:$0xff] }
 0x751   :  { %9885 = vmatmul.msk.f32.gmra.mxu0 %vm260_vm0, %v16032_v52  ;;  %v6125_v54 = vadd.f32 %v6124_v20, %v16043_v10 }
 0x753   :  { %v6534_v17 = vpop.f32.mrf.mxu3 }
 0x754   :  { %v16493_v52 = vadd.f32 %v6534_v17, %v6125_v54  ;;  %v10594_v54 = vld [vmem:[#allocation2 + $0x270] sm:$0xff] }
 0x755   :  { %v16487_v38 = vpop.f32.mrf.mxu1  ;;  %9745 = vmatmul.msk.f32.gmra.mxu2 %vm260_vm0, %v16497_v9  ;;  %v16512_v17 = vld [vmem:[#allocation2 + $0xa9] sm:$0xff] }
 0x756   :  { %v16490_v35 = vpop.f32.mrf.mxu0  ;;  %18636 = vst [vmem:[#allocation110_spill] sm:$0xff] %v16493_v52 }
 0x757   :  { %18635 = vst [vmem:[#allocation109_spill] sm:$0xff] %v16490_v35 }
 0x758   :  { %9698 = vmatmul.msk.f32.gmra.mxu1 %vm260_vm0, %v10591_v19  ;;  %9817 = vmatmul.msk.f32.gmra.mxu3 %vm260_vm0, %v10593_v26  ;;  %v6127_v20 = vpop.f32.mrf.mxu2  ;;  %18639 = vst [vmem:[#allocation113_spill] sm:$0xff] %v16512_v17  ;;  %v10596_v26 = vld [vmem:[#allocation2 + $0xc7] sm:$0xff] }
 0x759   :  { %9886 = vmatmul.msk.f32.gmra.mxu0 %vm260_vm0, %v16046_v58  ;;  %v6128_v33 = vadd.f32 %v6127_v20, %v16057_v57 }
 0x75b   :  { %v6537_v35 = vpop.f32.mrf.mxu3 }
 0x75c   :  { %v16508_v58 = vadd.f32 %v6537_v35, %v6128_v33  ;;  %v16522_v35 = vld [vmem:[#allocation2 + $0x288] sm:$0xff]  ;;  %v16530_v33 = vld [vmem:[#allocation2 + $0xb1] sm:$0xff] }
 0x75d   :  { %v16502_v10 = vpop.f32.mrf.mxu1  ;;  %9746 = vmatmul.msk.f32.gmra.mxu2 %vm260_vm0, %v16512_v17  ;;  %18642 = vst [vmem:[#allocation116_spill] sm:$0xff] %v16530_v33 }
 0x75e   :  { %v16505_v19 = vpop.f32.mrf.mxu0  ;;  %18638 = vst [vmem:[#allocation112_spill] sm:$0xff] %v16508_v58 }
 0x75f   :  { %18637 = vst [vmem:[#allocation111_spill] sm:$0xff] %v16505_v19 }
 0x760   :  { %9699 = vmatmul.msk.f32.gmra.mxu1 %vm260_vm0, %v10594_v54  ;;  %9818 = vmatmul.msk.f32.gmra.mxu3 %vm260_vm0, %v10596_v26  ;;  %v6130_v20 = vpop.f32.mrf.mxu2  ;;  %v10599_v26 = vld [vmem:[#allocation2 + $0xcf] sm:$0xff] }
 0x761   :  { %9887 = vmatmul.msk.f32.gmra.mxu0 %vm260_vm0, %v16060_v49  ;;  %v6131_v52 = vadd.f32 %v6130_v20, %v16071_v48 }
 0x763   :  { %v6540_v19 = vpop.f32.mrf.mxu3 }
 0x764   :  { %v16526_v49 = vadd.f32 %v6540_v19, %v6131_v52  ;;  %v16540_v52 = vld [vmem:[#allocation2 + $0x290] sm:$0xff] }
 0x765   :  { %v16517_v57 = vpop.f32.mrf.mxu1  ;;  %9747 = vmatmul.msk.f32.gmra.mxu2 %vm260_vm0, %v16530_v33  ;;  %v16548_v19 = vld [vmem:[#allocation2 + $0xc9] sm:$0xff] }
 0x766   :  { %v16520_v54 = vpop.f32.mrf.mxu0  ;;  %18641 = vst [vmem:[#allocation115_spill] sm:$0xff] %v16526_v49 }
 0x767   :  { %18640 = vst [vmem:[#allocation114_spill] sm:$0xff] %v16520_v54 }
 0x768   :  { %9700 = vmatmul.msk.f32.gmra.mxu1 %vm260_vm0, %v16522_v35  ;;  %9819 = vmatmul.msk.f32.gmra.mxu3 %vm260_vm0, %v10599_v26  ;;  %v6133_v20 = vpop.f32.mrf.mxu2  ;;  %18645 = vst [vmem:[#allocation119_spill] sm:$0xff] %v16548_v19  ;;  %v10602_v26 = vld [vmem:[#allocation2 + $0xe7] sm:$0xff] }
 0x769   :  { %9888 = vmatmul.msk.f32.gmra.mxu0 %vm260_vm0, %v16074_v50  ;;  %v6134_v58 = vadd.f32 %v6133_v20, %v16083_v51 }
 0x76b   :  { %v6543_v54 = vpop.f32.mrf.mxu3 }
 0x76c   :  { %v16544_v50 = vadd.f32 %v6543_v54, %v6134_v58  ;;  %v16558_v58 = vld [vmem:[#allocation2 + $0x2a8] sm:$0xff]  ;;  %v9948_v54 = vld [vmem:[%s18205_s4 + $0x210] sm:$0xff] }
 0x76d   :  { %v16535_v48 = vpop.f32.mrf.mxu1  ;;  %9748 = vmatmul.msk.f32.gmra.mxu2 %vm260_vm0, %v16548_v19  ;;  %8132 = vmatpush.msra.mxu1 %v9948_v54  ;;  %v16579_v54 = vld [vmem:[#allocation2 + $0x2b0] sm:$0xff] }
 0x76e   :  { %v16538_v17 = vpop.f32.mrf.mxu0  ;;  %18644 = vst [vmem:[#allocation118_spill] sm:$0xff] %v16544_v50 }
 0x76f   :  { %18643 = vst [vmem:[#allocation117_spill] sm:$0xff] %v16538_v17 }
 0x770   :  { %9701 = vmatmul.msk.f32.gmra.mxu1 %vm260_vm0, %v16540_v52  ;;  %9820 = vmatmul.msk.f32.gmra.mxu3 %vm260_vm0, %v10602_v26  ;;  %v6136_v20 = vpop.f32.mrf.mxu2  ;;  %v16569_v26 = vld [vmem:[#allocation2 + $0xd1] sm:$0xff] }
 0x771   :  { %9889 = vmatmul.msk.f32.gmra.mxu0 %vm260_vm0, %v16088_v21  ;;  %v6137_v49 = vadd.f32 %v6136_v20, %v16097_v27  ;;  %18648 = vst [vmem:[#allocation122_spill] sm:$0xff] %v16569_v26  ;;  %v10605_v27 = vld [vmem:[#allocation2 + $0xef] sm:$0xff] }
 0x773   :  { %v6546_v17 = vpop.f32.mrf.mxu3 }
 0x774   :  { %v16562_v21 = vadd.f32 %v6546_v17, %v6137_v49 }
 0x775   :  { %v16553_v51 = vpop.f32.mrf.mxu1  ;;  %9749 = vmatmul.msk.f32.gmra.mxu2 %vm260_vm0, %v16569_v26 }
 0x776   :  { %v16556_v33 = vpop.f32.mrf.mxu0  ;;  %18647 = vst [vmem:[#allocation121_spill] sm:$0xff] %v16562_v21 }
 0x777   :  { %18646 = vst [vmem:[#allocation120_spill] sm:$0xff] %v16556_v33  ;;  %v16587_v33 = vld [vmem:[#allocation2 + $0xe9] sm:$0xff] }
 0x778   :  { %9702 = vmatmul.msk.f32.gmra.mxu1 %vm260_vm0, %v16558_v58  ;;  %9821 = vmatmul.msk.f32.gmra.mxu3 %vm260_vm0, %v10605_v27  ;;  %v6139_v17 = vpop.f32.mrf.mxu2  ;;  %18651 = vst [vmem:[#allocation125_spill] sm:$0xff] %v16587_v33  ;;  %v10608_v27 = vld [vmem:[#allocation2 + $0x107] sm:$0xff] }
 0x779   :  { %9890 = vmatmul.msk.f32.gmra.mxu0 %vm260_vm0, %v16102_v31  ;;  %v6140_v49 = vadd.f32 %v6139_v17, %v16114_v44 }
 0x77b   :  { %v6549_v21 = vpop.f32.mrf.mxu3 }
 0x77c   :  { %v16583_v31 = vadd.f32 %v6549_v21, %v6140_v49  ;;  %v16597_v21 = vld [vmem:[#allocation2 + $0x2c8] sm:$0xff]  ;;  %v16605_v49 = vld [vmem:[#allocation2 + $0xf1] sm:$0xff] }
 0x77d   :  { %v16574_v20 = vpop.f32.mrf.mxu1  ;;  %9750 = vmatmul.msk.f32.gmra.mxu2 %vm260_vm0, %v16587_v33  ;;  %18654 = vst [vmem:[#allocation128_spill] sm:$0xff] %v16605_v49 }
 0x77e   :  { %v16577_v50 = vpop.f32.mrf.mxu0  ;;  %18650 = vst [vmem:[#allocation124_spill] sm:$0xff] %v16583_v31 }
 0x77f   :  { %18649 = vst [vmem:[#allocation123_spill] sm:$0xff] %v16577_v50 }
 0x780   :  { %9703 = vmatmul.msk.f32.gmra.mxu1 %vm260_vm0, %v16579_v54  ;;  %9822 = vmatmul.msk.f32.gmra.mxu3 %vm260_vm0, %v10608_v27  ;;  %v6142_v17 = vpop.f32.mrf.mxu2  ;;  %v10611_v27 = vld [vmem:[#allocation2 + $0x10f] sm:$0xff] }
 0x781   :  { %9891 = vmatmul.msk.f32.gmra.mxu0 %vm260_vm0, %v16122_v14  ;;  %v6143_v50 = vadd.f32 %v6142_v17, %v16131_v34 }
 0x783   :  { %v6552_v26 = vpop.f32.mrf.mxu3 }
 0x784   :  { %v16601_v14 = vadd.f32 %v6552_v26, %v6143_v50  ;;  %v16615_v50 = vld [vmem:[#allocation2 + $0x2d0] sm:$0xff] }
 0x785   :  { %v16592_v44 = vpop.f32.mrf.mxu1  ;;  %9751 = vmatmul.msk.f32.gmra.mxu2 %vm260_vm0, %v16605_v49  ;;  %v16623_v26 = vld [vmem:[#allocation2 + $0x109] sm:$0xff] }
 0x786   :  { %v16595_v19 = vpop.f32.mrf.mxu0  ;;  %18653 = vst [vmem:[#allocation127_spill] sm:$0xff] %v16601_v14 }
 0x787   :  { %18652 = vst [vmem:[#allocation126_spill] sm:$0xff] %v16595_v19 }
 0x788   :  { %9704 = vmatmul.msk.f32.gmra.mxu1 %vm260_vm0, %v16597_v21  ;;  %9823 = vmatmul.msk.f32.gmra.mxu3 %vm260_vm0, %v10611_v27  ;;  %v6145_v17 = vpop.f32.mrf.mxu2  ;;  %18657 = vst [vmem:[#allocation131_spill] sm:$0xff] %v16623_v26  ;;  %v10614_v27 = vld [vmem:[#allocation2 + $0x127] sm:$0xff] }
 0x789   :  { %9892 = vmatmul.msk.f32.gmra.mxu0 %vm260_vm0, %v16139_v6  ;;  %v6146_v31 = vadd.f32 %v6145_v17, %v16151_v62 }
 0x78b   :  { %v6555_v19 = vpop.f32.mrf.mxu3 }
 0x78c   :  { %v16619_v6 = vadd.f32 %v6555_v19, %v6146_v31  ;;  %v16633_v19 = vld [vmem:[#allocation2 + $0x2e8] sm:$0xff]  ;;  %v16641_v31 = vld [vmem:[#allocation2 + $0x111] sm:$0xff] }
 0x78d   :  { %v16610_v34 = vpop.f32.mrf.mxu1  ;;  %9752 = vmatmul.msk.f32.gmra.mxu2 %vm260_vm0, %v16623_v26  ;;  %18660 = vst [vmem:[#allocation134_spill] sm:$0xff] %v16641_v31 }
 0x78e   :  { %v16613_v33 = vpop.f32.mrf.mxu0  ;;  %18656 = vst [vmem:[#allocation130_spill] sm:$0xff] %v16619_v6 }
 0x78f   :  { %18655 = vst [vmem:[#allocation129_spill] sm:$0xff] %v16613_v33 }
 0x790   :  { %9705 = vmatmul.msk.f32.gmra.mxu1 %vm260_vm0, %v16615_v50  ;;  %9824 = vmatmul.msk.f32.gmra.mxu3 %vm260_vm0, %v10614_v27  ;;  %v6148_v17 = vpop.f32.mrf.mxu2  ;;  %v10617_v27 = vld [vmem:[#allocation2 + $0x12f] sm:$0xff] }
 0x791   :  { %9893 = vmatmul.msk.f32.gmra.mxu0 %vm260_vm0, %v16156_v39  ;;  %v6149_v14 = vadd.f32 %v6148_v17, %v16165_v13 }
 0x793   :  { %v6558_v33 = vpop.f32.mrf.mxu3 }
 0x794   :  { %v16637_v39 = vadd.f32 %v6558_v33, %v6149_v14  ;;  %v16651_v33 = vld [vmem:[#allocation2 + $0x2f0] sm:$0xff] }
 0x795   :  { %v16628_v62 = vpop.f32.mrf.mxu1  ;;  %9753 = vmatmul.msk.f32.gmra.mxu2 %vm260_vm0, %v16641_v31  ;;  %v16659_v14 = vld [vmem:[#allocation2 + $0x129] sm:$0xff] }
 0x796   :  { %v16631_v49 = vpop.f32.mrf.mxu0  ;;  %18659 = vst [vmem:[#allocation133_spill] sm:$0xff] %v16637_v39  ;;  %v16846_v31 = vld [vmem:[#allocation2 + $0x390] sm:$0xff] }
 0x797   :  { %18658 = vst [vmem:[#allocation132_spill] sm:$0xff] %v16631_v49 }
 0x798   :  { %9706 = vmatmul.msk.f32.gmra.mxu1 %vm260_vm0, %v16633_v19  ;;  %9825 = vmatmul.msk.f32.gmra.mxu3 %vm260_vm0, %v10617_v27  ;;  %v6151_v17 = vpop.f32.mrf.mxu2  ;;  %18663 = vst [vmem:[#allocation137_spill] sm:$0xff] %v16659_v14  ;;  %v10620_v27 = vld [vmem:[#allocation2 + $0x147] sm:$0xff] }
 0x799   :  { %9894 = vmatmul.msk.f32.gmra.mxu0 %vm260_vm0, %v16170_v46  ;;  %v6152_v6 = vadd.f32 %v6151_v17, %v16179_v41  ;;  %v7152_v41 = vadd.f32 %v16193_v63, %v15633_v47  ;;  %v10623_v47 = vld [vmem:[#allocation2 + $0x14f] sm:$0xff]  ;;  %v7153_v63 = vadd.f32 %v16207_v12, %v15678_v56  ;;  %v10626_v56 = vld [vmem:[#allocation2 + $0x167] sm:$0xff]  ;;  %v7154_v12 = vadd.f32 %v16221_v5, %v15697_v25 }
 0x79a   :  { %v16719_v25 = vld [vmem:[#allocation2 + $0x151] sm:$0xff] }
 0x79b   :  { %v6561_v49 = vpop.f32.mrf.mxu3  ;;  %18672 = vst [vmem:[#allocation146_spill] sm:$0xff] %v16719_v25  ;;  %v10629_v5 = vld [vmem:[#allocation2 + $0x16f] sm:$0xff] }
 0x79c   :  { %v16655_v46 = vadd.f32 %v6561_v49, %v6152_v6 }
 0x79d   :  { %v16646_v13 = vpop.f32.mrf.mxu1  ;;  %9754 = vmatmul.msk.f32.gmra.mxu2 %vm260_vm0, %v16659_v14 }
 0x79e   :  { %v16649_v26 = vpop.f32.mrf.mxu0  ;;  %18662 = vst [vmem:[#allocation136_spill] sm:$0xff] %v16655_v46  ;;  %v16670_v46 = vld [vmem:[#allocation2 + $0x308] sm:$0xff] }
 0x79f   :  { %18661 = vst [vmem:[#allocation135_spill] sm:$0xff] %v16649_v26 }
 0x7a0   :  { %9707 = vmatmul.msk.f32.gmra.mxu1 %vm260_vm0, %v16651_v33  ;;  %9826 = vmatmul.msk.f32.gmra.mxu3 %vm260_vm0, %v10620_v27  ;;  %v7254_v39 = vpop.f32.mrf.mxu2  ;;  %v16678_v27 = vld [vmem:[#allocation2 + $0x131] sm:$0xff] }
 0x7a1   :  { %9895 = vmatmul.msk.f32.gmra.mxu0 %vm260_vm0, %v16184_v3  ;;  %v7446_v26 = vadd.f32 %v7254_v39, %v7152_v41  ;;  %18666 = vst [vmem:[#allocation140_spill] sm:$0xff] %v16678_v27 }
 0x7a3   :  { %v7548_v49 = vpop.f32.mrf.mxu3 }
 0x7a4   :  { %v16674_v3 = vadd.f32 %v7548_v49, %v7446_v26 }
 0x7a5   :  { %v16666_v17 = vpop.f32.mrf.mxu1  ;;  %9755 = vmatmul.msk.f32.gmra.mxu2 %vm260_vm0, %v16678_v27 }
 0x7a6   :  { %v16668_v6 = vpop.f32.mrf.mxu0  ;;  %18665 = vst [vmem:[#allocation139_spill] sm:$0xff] %v16674_v3  ;;  %v16689_v3 = vld [vmem:[#allocation2 + $0x310] sm:$0xff] }
 0x7a7   :  { %18664 = vst [vmem:[#allocation138_spill] sm:$0xff] %v16668_v6 }
 0x7a8   :  { %9708 = vmatmul.msk.f32.gmra.mxu1 %vm260_vm0, %v16670_v46  ;;  %9827 = vmatmul.msk.f32.gmra.mxu3 %vm260_vm0, %v10623_v47  ;;  %v7257_v41 = vpop.f32.mrf.mxu2  ;;  %v16697_v47 = vld [vmem:[#allocation2 + $0x149] sm:$0xff] }
 0x7a9   :  { %9896 = vmatmul.msk.f32.gmra.mxu0 %vm260_vm0, %v16198_v18  ;;  %v7447_v6 = vadd.f32 %v7257_v41, %v7153_v63  ;;  %18669 = vst [vmem:[#allocation143_spill] sm:$0xff] %v16697_v47 }
 0x7ab   :  { %v7551_v26 = vpop.f32.mrf.mxu3 }
 0x7ac   :  { %v16693_v18 = vadd.f32 %v7551_v26, %v7447_v6 }
 0x7ad   :  { %v16685_v39 = vpop.f32.mrf.mxu1  ;;  %9756 = vmatmul.msk.f32.gmra.mxu2 %vm260_vm0, %v16697_v47  ;;  %v16730_v47 = vld [vmem:[#allocation2 + $0x330] sm:$0xff] }
 0x7ae   :  { %v16687_v49 = vpop.f32.mrf.mxu0  ;;  %18668 = vst [vmem:[#allocation142_spill] sm:$0xff] %v16693_v18  ;;  %v16708_v18 = vld [vmem:[#allocation2 + $0x328] sm:$0xff] }
 0x7af   :  { %18667 = vst [vmem:[#allocation141_spill] sm:$0xff] %v16687_v49 }
 0x7b0   :  { %9709 = vmatmul.msk.f32.gmra.mxu1 %vm260_vm0, %v16689_v3  ;;  %9828 = vmatmul.msk.f32.gmra.mxu3 %vm260_vm0, %v10626_v56  ;;  %v7260_v41 = vpop.f32.mrf.mxu2  ;;  %v9947_v56 = vld [vmem:[%s18205_s4 + $0x208] sm:$0xff] }
 0x7b1   :  { %9897 = vmatmul.msk.f32.gmra.mxu0 %vm260_vm0, %v16212_v8  ;;  %v7448_v49 = vadd.f32 %v7260_v41, %v7154_v12  ;;  %8133 = vmatpush.msra.mxu1 %v9947_v56 }
 0x7b3   :  { %v7554_v6 = vpop.f32.mrf.mxu3 }
 0x7b4   :  { %v16712_v8 = vadd.f32 %v7554_v6, %v7448_v49  ;;  %v7155_v49 = vadd.f32 %v16238_v23, %v15713_v55  ;;  %v10632_v55 = vld [vmem:[#allocation2 + $0x187] sm:$0xff]  ;;  %v7156_v23 = vadd.f32 %v16255_v28, %v15725_v29  ;;  %v10635_v29 = vld [vmem:[#allocation2 + $0x18f] sm:$0xff]  ;;  %v7157_v28 = vadd.f32 %v16275_v32, %v15738_v45 }
 0x7b5   :  { %v16704_v63 = vpop.f32.mrf.mxu1  ;;  %9757 = vmatmul.msk.f32.gmra.mxu2 %vm260_vm0, %v16719_v25  ;;  %v16778_v45 = vld [vmem:[#allocation2 + $0x189] sm:$0xff] }
 0x7b6   :  { %v16706_v26 = vpop.f32.mrf.mxu0  ;;  %18671 = vst [vmem:[#allocation145_spill] sm:$0xff] %v16712_v8  ;;  %v10638_v32 = vld [vmem:[#allocation2 + $0x1a7] sm:$0xff] }
 0x7b7   :  { %18670 = vst [vmem:[#allocation144_spill] sm:$0xff] %v16706_v26 }
 0x7b8   :  { %9710 = vmatmul.msk.f32.gmra.mxu1 %vm260_vm0, %v16708_v18  ;;  %9829 = vmatmul.msk.f32.gmra.mxu3 %vm260_vm0, %v10629_v5  ;;  %v7263_v41 = vpop.f32.mrf.mxu2  ;;  %v16738_v5 = vld [vmem:[#allocation2 + $0x169] sm:$0xff] }
 0x7b9   :  { %9898 = vmatmul.msk.f32.gmra.mxu0 %vm260_vm0, %v16226_v4  ;;  %v7449_v6 = vadd.f32 %v7263_v41, %v7155_v49  ;;  %18675 = vst [vmem:[#allocation149_spill] sm:$0xff] %v16738_v5 }
 0x7bb   :  { %v7557_v8 = vpop.f32.mrf.mxu3 }
 0x7bc   :  { %v16734_v4 = vadd.f32 %v7557_v8, %v7449_v6 }
 0x7bd   :  { %v16726_v12 = vpop.f32.mrf.mxu1  ;;  %9758 = vmatmul.msk.f32.gmra.mxu2 %vm260_vm0, %v16738_v5 }
 0x7be   :  { %v16728_v56 = vpop.f32.mrf.mxu0  ;;  %18674 = vst [vmem:[#allocation148_spill] sm:$0xff] %v16734_v4  ;;  %v16749_v4 = vld [vmem:[#allocation2 + $0x348] sm:$0xff] }
 0x7bf   :  { %18673 = vst [vmem:[#allocation147_spill] sm:$0xff] %v16728_v56 }
 0x7c0   :  { %9711 = vmatmul.msk.f32.gmra.mxu1 %vm260_vm0, %v16730_v47  ;;  %9830 = vmatmul.msk.f32.gmra.mxu3 %vm260_vm0, %v10632_v55  ;;  %v7266_v41 = vpop.f32.mrf.mxu2  ;;  %v16757_v55 = vld [vmem:[#allocation2 + $0x171] sm:$0xff] }
 0x7c1   :  { %9899 = vmatmul.msk.f32.gmra.mxu0 %vm260_vm0, %v16246_v15  ;;  %v7450_v25 = vadd.f32 %v7266_v41, %v7156_v23  ;;  %18678 = vst [vmem:[#allocation152_spill] sm:$0xff] %v16757_v55 }
 0x7c3   :  { %v7560_v8 = vpop.f32.mrf.mxu3 }
 0x7c4   :  { %v16753_v15 = vadd.f32 %v7560_v8, %v7450_v25 }
 0x7c5   :  { %v16745_v49 = vpop.f32.mrf.mxu1  ;;  %9759 = vmatmul.msk.f32.gmra.mxu2 %vm260_vm0, %v16757_v55  ;;  %v18681_v55 = vld [vmem:[#allocation48_spill] sm:$0xff] }
 0x7c6   :  { %v16747_v6 = vpop.f32.mrf.mxu0  ;;  %18677 = vst [vmem:[#allocation151_spill] sm:$0xff] %v16753_v15  ;;  %v16768_v15 = vld [vmem:[#allocation2 + $0x350] sm:$0xff] }
 0x7c7   :  { %18676 = vst [vmem:[#allocation150_spill] sm:$0xff] %v16747_v6  ;;  %v18682_v6 = vld [vmem:[#allocation43_spill] sm:$0xff] }
 0x7c8   :  { %9712 = vmatmul.msk.f32.gmra.mxu1 %vm260_vm0, %v16749_v4  ;;  %9831 = vmatmul.msk.f32.gmra.mxu3 %vm260_vm0, %v10635_v29  ;;  %v7269_v41 = vpop.f32.mrf.mxu2  ;;  %v6864_v29 = vadd.f32 %v18682_v6, %v18681_v55  ;;  %18683 = vst [vmem:[#allocation48_spill] sm:$0xff] %v16778_v45  ;;  %v16788_v6 = vld [vmem:[#allocation2 + $0x368] sm:$0xff]  ;;  %v18687_v55 = vld [vmem:[#allocation56_spill] sm:$0xff] }
 0x7c9   :  { %9900 = vmatmul.msk.f32.gmra.mxu0 %vm260_vm0, %v16263_v40  ;;  %v7451_v5 = vadd.f32 %v7269_v41, %v7157_v28  ;;  %v18684_v28 = vld [vmem:[#allocation80_spill] sm:$0xff] }
 0x7ca   :  { %v7158_v41 = vadd.f32 %v18684_v28, %v6864_v29  ;;  %v16798_v29 = vld [vmem:[#allocation2 + $0x191] sm:$0xff]  ;;  %v18690_v28 = vld [vmem:[#allocation83_spill] sm:$0xff] }
 0x7cb   :  { %v7563_v25 = vpop.f32.mrf.mxu3  ;;  %18689 = vst [vmem:[#allocation56_spill] sm:$0xff] %v16798_v29 }
 0x7cc   :  { %v16772_v40 = vadd.f32 %v7563_v25, %v7451_v5 }
 0x7cd   :  { %v16764_v23 = vpop.f32.mrf.mxu1  ;;  %9760 = vmatmul.msk.f32.gmra.mxu2 %vm260_vm0, %v16778_v45  ;;  %v18688_v45 = vld [vmem:[#allocation53_spill] sm:$0xff] }
 0x7ce   :  { %v16766_v8 = vpop.f32.mrf.mxu0  ;;  %18680 = vst [vmem:[#allocation154_spill] sm:$0xff] %v16772_v40  ;;  %v6865_v26 = vadd.f32 %v18688_v45, %v18687_v55  ;;  %v16808_v45 = vld [vmem:[#allocation2 + $0x370] sm:$0xff]  ;;  %v18693_v55 = vld [vmem:[#allocation61_spill] sm:$0xff] }
 0x7cf   :  { %18679 = vst [vmem:[#allocation153_spill] sm:$0xff] %v16766_v8 }
 0x7d0   :  { %9713 = vmatmul.msk.f32.gmra.mxu1 %vm260_vm0, %v16768_v15  ;;  %9832 = vmatmul.msk.f32.gmra.mxu3 %vm260_vm0, %v10638_v32  ;;  %v7272_v5 = vpop.f32.mrf.mxu2  ;;  %v10641_v32 = vld [vmem:[#allocation2 + $0x1af] sm:$0xff] }
 0x7d1   :  { %9901 = vmatmul.msk.f32.gmra.mxu0 %vm260_vm0, %v16280_v36  ;;  %v7452_v25 = vadd.f32 %v7272_v5, %v7158_v41  ;;  %v7159_v41 = vadd.f32 %v18690_v28, %v6865_v26  ;;  %v16818_v26 = vld [vmem:[#allocation2 + $0x1a9] sm:$0xff]  ;;  %v18696_v28 = vld [vmem:[#allocation86_spill] sm:$0xff] }
 0x7d2   :  { %18695 = vst [vmem:[#allocation61_spill] sm:$0xff] %v16818_v26 }
 0x7d3   :  { %v7566_v40 = vpop.f32.mrf.mxu3 }
 0x7d4   :  { %v16792_v36 = vadd.f32 %v7566_v40, %v7452_v25 }
 0x7d5   :  { %v16784_v8 = vpop.f32.mrf.mxu1  ;;  %9761 = vmatmul.msk.f32.gmra.mxu2 %vm260_vm0, %v16798_v29  ;;  %v18694_v29 = vld [vmem:[#allocation58_spill] sm:$0xff] }
 0x7d6   :  { %v16786_v56 = vpop.f32.mrf.mxu0  ;;  %18686 = vst [vmem:[#allocation80_spill] sm:$0xff] %v16792_v36  ;;  %v6866_v27 = vadd.f32 %v18694_v29, %v18693_v55  ;;  %v18700_v55 = vld [vmem:[#allocation63_spill] sm:$0xff] }
 0x7d7   :  { %18685 = vst [vmem:[#allocation43_spill] sm:$0xff] %v16786_v56 }
 0x7d8   :  { %9714 = vmatmul.msk.f32.gmra.mxu1 %vm260_vm0, %v16788_v6  ;;  %9833 = vmatmul.msk.f32.gmra.mxu3 %vm260_vm0, %v10641_v32  ;;  %v7275_v40 = vpop.f32.mrf.mxu2  ;;  %v10644_v32 = vld [vmem:[#allocation2 + $0x1c7] sm:$0xff] }
 0x7d9   :  { %9902 = vmatmul.msk.f32.gmra.mxu0 %vm260_vm0, %v16294_v16  ;;  %v7453_v25 = vadd.f32 %v7275_v40, %v7159_v41  ;;  %v7160_v41 = vadd.f32 %v18696_v28, %v6866_v27  ;;  %v16838_v27 = vld [vmem:[#allocation2 + $0x1b1] sm:$0xff] }
 0x7da   :  { %18703 = vst [vmem:[#allocation63_spill] sm:$0xff] %v16838_v27  ;;  %v10647_v28 = vld [vmem:[#allocation2 + $0x1cf] sm:$0xff] }
 0x7db   :  { %v7569_v36 = vpop.f32.mrf.mxu3 }
 0x7dc   :  { %v16812_v16 = vadd.f32 %v7569_v36, %v7453_v25 }
 0x7dd   :  { %v16804_v5 = vpop.f32.mrf.mxu1  ;;  %9762 = vmatmul.msk.f32.gmra.mxu2 %vm260_vm0, %v16818_v26  ;;  %v18701_v26 = vld [vmem:[#allocation62_spill] sm:$0xff] }
 0x7de   :  { %v16806_v56 = vpop.f32.mrf.mxu0  ;;  %18692 = vst [vmem:[#allocation83_spill] sm:$0xff] %v16812_v16  ;;  %v6867_v14 = vadd.f32 %v18701_v26, %v18700_v55  ;;  %v18706_v55 = vld [vmem:[#allocation65_spill] sm:$0xff] }
 0x7df   :  { %18691 = vst [vmem:[#allocation53_spill] sm:$0xff] %v16806_v56  ;;  %v16826_v56 = vld [vmem:[#allocation2 + $0x388] sm:$0xff] }
 0x7e0   :  { %9715 = vmatmul.msk.f32.gmra.mxu1 %vm260_vm0, %v16808_v45  ;;  %9834 = vmatmul.msk.f32.gmra.mxu3 %vm260_vm0, %v10644_v32  ;;  %v7278_v36 = vpop.f32.mrf.mxu2  ;;  %18697 = vst [vmem:[#allocation58_spill] sm:$0xff] %v16826_v56  ;;  %v18702_v32 = vld [vmem:[#allocation88_spill] sm:$0xff] }
 0x7e1   :  { %9903 = vmatmul.msk.f32.gmra.mxu0 %vm260_vm0, %v16308_v53  ;;  %v7454_v25 = vadd.f32 %v7278_v36, %v7160_v41  ;;  %v18704_v41 = vld [vmem:[#allocation90_spill] sm:$0xff] }
 0x7e2   :  { %v7161_v36 = vadd.f32 %v18704_v41, %v6867_v14  ;;  %v16858_v14 = vld [vmem:[#allocation2 + $0x1c9] sm:$0xff] }
 0x7e3   :  { %v7572_v16 = vpop.f32.mrf.mxu3  ;;  %18709 = vst [vmem:[#allocation90_spill] sm:$0xff] %v16858_v14 }
 0x7e4   :  { %v16830_v53 = vadd.f32 %v7572_v16, %v7454_v25 }
 0x7e5   :  { %v16824_v40 = vpop.f32.mrf.mxu1  ;;  %9763 = vmatmul.msk.f32.gmra.mxu2 %vm260_vm0, %v16838_v27 }
 0x7e6   :  { %18698 = vst [vmem:[#allocation86_spill] sm:$0xff] %v16830_v53  ;;  %v16832_v29 = vpop.f32.mrf.mxu0 }
 0x7e7   :  { %18699 = vst [vmem:[#allocation155_spill] sm:$0xff] %v16832_v29 }
 0x7e8   :  { %9716 = vmatmul.msk.f32.gmra.mxu1 %vm260_vm0, %v16826_v56  ;;  %9835 = vmatmul.msk.f32.gmra.mxu3 %vm260_vm0, %v10647_v28  ;;  %v7281_v25 = vpop.f32.mrf.mxu2  ;;  %v10650_v28 = vld [vmem:[#allocation2 + $0x1e7] sm:$0xff] }
 0x7e9   :  { %9904 = vmatmul.msk.f32.gmra.mxu0 %vm260_vm0, %v18702_v32  ;;  %v7455_v53 = vadd.f32 %v7281_v25, %v7161_v36  ;;  %v18707_v32 = vld [vmem:[#allocation64_spill] sm:$0xff] }
 0x7ea   :  { %v6868_v27 = vadd.f32 %v18707_v32, %v18706_v55  ;;  %v16866_v55 = vld [vmem:[#allocation2 + $0x3a8] sm:$0xff]  ;;  %v9946_v32 = vld [vmem:[%s18205_s4 + $0x200] sm:$0xff] }
 0x7eb   :  { %v7575_v29 = vpop.f32.mrf.mxu3  ;;  %8134 = vmatpush.msra.mxu1 %v9946_v32 }
 0x7ec   :  { %v16850_v26 = vadd.f32 %v7575_v29, %v7455_v53  ;;  %v7162_v41 = vadd.f32 %v16369_v0, %v6868_v27  ;;  %v16879_v27 = vld [vmem:[#allocation2 + $0x1d1] sm:$0xff] }
 0x7ed   :  { %v16844_v16 = vpop.f32.mrf.mxu1  ;;  %9764 = vmatmul.msk.f32.gmra.mxu2 %vm260_vm0, %v16858_v14  ;;  %18713 = vst [vmem:[#allocation64_spill] sm:$0xff] %v16879_v27  ;;  %v18717_v14 = vld [vmem:[#allocation68_spill] sm:$0xff] }
 0x7ee   :  { %18705 = vst [vmem:[#allocation62_spill] sm:$0xff] %v16850_v26  ;;  %v16854_v56 = vpop.f32.mrf.mxu0  ;;  %v18712_v26 = vld [vmem:[#allocation66_spill] sm:$0xff] }
 0x7ef   :  { %18708 = vst [vmem:[#allocation88_spill] sm:$0xff] %v16854_v56 }
 0x7f0   :  { %9717 = vmatmul.msk.f32.gmra.mxu1 %vm260_vm0, %v16846_v31  ;;  %9836 = vmatmul.msk.f32.gmra.mxu3 %vm260_vm0, %v10650_v28  ;;  %v7284_v29 = vpop.f32.mrf.mxu2  ;;  %v18711_v28 = vld [vmem:[#allocation67_spill] sm:$0xff] }
 0x7f1   :  { %9905 = vmatmul.msk.f32.gmra.mxu0 %vm260_vm0, %v16360_v22  ;;  %v7456_v36 = vadd.f32 %v7284_v29, %v7162_v41  ;;  %v6869_v0 = vadd.f32 %v18712_v26, %v18711_v28  ;;  %v10653_v41 = vld [vmem:[#allocation2 + $0x1ef] sm:$0xff] }
 0x7f2   :  { %v16889_v28 = vld [vmem:[#allocation2 + $0x3b0] sm:$0xff] }
 0x7f3   :  { %v7578_v25 = vpop.f32.mrf.mxu3  ;;  %v7163_v29 = vadd.f32 %v16383_v59, %v6869_v0  ;;  %v16899_v59 = vld [vmem:[#allocation2 + $0x1e9] sm:$0xff] }
 0x7f4   :  { %v16870_v22 = vadd.f32 %v7578_v25, %v7456_v36  ;;  %v10656_v0 = vld [vmem:[#allocation2 + $0x207] sm:$0xff] }
 0x7f5   :  { %v16864_v53 = vpop.f32.mrf.mxu1  ;;  %9765 = vmatmul.msk.f32.gmra.mxu2 %vm260_vm0, %v16879_v27  ;;  %v18716_v27 = vld [vmem:[#allocation69_spill] sm:$0xff] }
 0x7f6   :  { %18710 = vst [vmem:[#allocation65_spill] sm:$0xff] %v16870_v22  ;;  %v16885_v36 = vpop.f32.mrf.mxu0  ;;  %v6870_v56 = vadd.f32 %v18717_v14, %v18716_v27  ;;  %v16909_v27 = vld [vmem:[#allocation2 + $0x3c8] sm:$0xff] }
 0x7f7   :  { %18714 = vst [vmem:[#allocation67_spill] sm:$0xff] %v16885_v36 }
 0x7f8   :  { %9718 = vmatmul.msk.f32.gmra.mxu1 %vm260_vm0, %v16866_v55  ;;  %9837 = vmatmul.msk.f32.gmra.mxu3 %vm260_vm0, %v10653_v41  ;;  %v7287_v32 = vpop.f32.mrf.mxu2  ;;  %18718 = vst [vmem:[#allocation69_spill] sm:$0xff] %v16899_v59  ;;  %v7164_v41 = vadd.f32 %v16409_v42, %v6870_v56  ;;  %v16919_v42 = vld [vmem:[#allocation2 + $0x1f1] sm:$0xff] }
 0x7f9   :  { %9906 = vmatmul.msk.f32.gmra.mxu0 %vm260_vm0, %v16374_v1  ;;  %v7457_v22 = vadd.f32 %v7287_v32, %v7163_v29  ;;  %v10659_v56 = vld [vmem:[#allocation2 + $0x20f] sm:$0xff] }
 0x7fb   :  { %v7581_v26 = vpop.f32.mrf.mxu3 }
 0x7fc   :  { %v16893_v1 = vadd.f32 %v7581_v26, %v7457_v22 }
 0x7fd   :  { %v16887_v25 = vpop.f32.mrf.mxu1  ;;  %9766 = vmatmul.msk.f32.gmra.mxu2 %vm260_vm0, %v16899_v59  ;;  %v18722_v59 = vld [vmem:[#allocation70_spill] sm:$0xff] }
 0x7fe   :  { %18715 = vst [vmem:[#allocation66_spill] sm:$0xff] %v16893_v1  ;;  %v16907_v32 = vpop.f32.mrf.mxu0  ;;  %v18721_v1 = vld [vmem:[#allocation71_spill] sm:$0xff] }
 0x7ff   :  { %18719 = vst [vmem:[#allocation68_spill] sm:$0xff] %v16907_v32  ;;  %v6871_v36 = vadd.f32 %v18722_v59, %v18721_v1  ;;  %v5153_v59 = vld [vmem:[#allocation2 + $0x227] sm:$0xff]  ;;  %v18729_v32 = vld [vmem:[#allocation72_spill] sm:$0xff] }
 0x800   :  { %9719 = vmatmul.msk.f32.gmra.mxu1 %vm260_vm0, %v16889_v28  ;;  %9838 = vmatmul.msk.f32.gmra.mxu3 %vm260_vm0, %v10656_v0  ;;  %v7290_v22 = vpop.f32.mrf.mxu2  ;;  %18723 = vst [vmem:[#allocation71_spill] sm:$0xff] %v16919_v42 }
 0x801   :  { %9907 = vmatmul.msk.f32.gmra.mxu0 %vm260_vm0, %v16388_v37  ;;  %v7458_v26 = vadd.f32 %v7290_v22, %v7164_v41  ;;  %v7165_v0 = vadd.f32 %v16433_v24, %v6871_v36 }
 0x803   :  { %v7584_v14 = vpop.f32.mrf.mxu3 }
 0x804   :  { %v16913_v37 = vadd.f32 %v7584_v14, %v7458_v26 }
 0x805   :  { %v16905_v29 = vpop.f32.mrf.mxu1  ;;  %9767 = vmatmul.msk.f32.gmra.mxu2 %vm260_vm0, %v16919_v42  ;;  %v16935_v42 = vld [vmem:[#allocation2 + $0x209] sm:$0xff] }
 0x806   :  { %18720 = vst [vmem:[#allocation156_spill] sm:$0xff] %v16913_v37  ;;  %v16927_v37 = vld [vmem:[#allocation2 + $0x3d0] sm:$0xff] }
 0x807   :  { %18724 = vst [vmem:[#allocation70_spill] sm:$0xff] %v16927_v37 }
 0x808   :  { %9720 = vmatmul.msk.f32.gmra.mxu1 %vm260_vm0, %v16909_v27  ;;  %9839 = vmatmul.msk.f32.gmra.mxu3 %vm260_vm0, %v10659_v56  ;;  %v7293_v22 = vpop.f32.mrf.mxu2  ;;  %18727 = vst [vmem:[#allocation159_spill] sm:$0xff] %v16935_v42  ;;  %v18728_v56 = vld [vmem:[#allocation73_spill] sm:$0xff] }
 0x809   :  { %9908 = vmatmul.msk.f32.gmra.mxu0 %vm260_vm0, %v16417_v43  ;;  %v7459_v26 = vadd.f32 %v7293_v22, %v7165_v0  ;;  %v16931_v43 = vpop.f32.mrf.mxu0  ;;  %v6872_v24 = vadd.f32 %v18729_v32, %v18728_v56  ;;  %v16953_v56 = vld [vmem:[#allocation2 + $0x211] sm:$0xff] }
 0x80a   :  { %18725 = vst [vmem:[#allocation157_spill] sm:$0xff] %v16931_v43  ;;  %v18734_v43 = vld [vmem:[#allocation74_spill] sm:$0xff] }
 0x80b   :  { %v7587_v14 = vpop.f32.mrf.mxu3  ;;  %v7166_v36 = vadd.f32 %v16451_v11, %v6872_v24  ;;  %18732 = vst [vmem:[#allocation160_spill] sm:$0xff] %v16953_v56 }
 0x80c   :  { %v16933_v1 = vadd.f32 %v7587_v14, %v7459_v26 }
 0x80d   :  { %v16925_v41 = vpop.f32.mrf.mxu1  ;;  %9768 = vmatmul.msk.f32.gmra.mxu2 %vm260_vm0, %v16935_v42  ;;  %v18733_v42 = vld [vmem:[#allocation75_spill] sm:$0xff] }
 0x80e   :  { %18726 = vst [vmem:[#allocation158_spill] sm:$0xff] %v16933_v1  ;;  %v16947_v1 = vld [vmem:[#allocation2 + $0x3e8] sm:$0xff] }
 0x810   :  { %9721 = vmatmul.msk.f32.gmra.mxu1 %vm260_vm0, %v16927_v37  ;;  %9840 = vmatmul.msk.f32.gmra.mxu3 %vm260_vm0, %v5153_v59  ;;  %v7296_v22 = vpop.f32.mrf.mxu2  ;;  %v6873_v59 = vadd.f32 %v18734_v43, %v18733_v42  ;;  %v18738_v43 = vld [vmem:[#allocation34_spill] sm:$0xff] }
 0x811   :  { %9909 = vmatmul.msk.f32.gmra.mxu0 %vm260_vm0, %v16438_v30  ;;  %v7460_v26 = vadd.f32 %v7296_v22, %v7166_v36  ;;  %v5154_v30 = vld [vmem:[#allocation2 + $0x22f] sm:$0xff]  ;;  %v16957_v37 = vpop.f32.mrf.mxu0 }
 0x812   :  { %v7167_v11 = vadd.f32 %v16469_v7, %v6873_v59  ;;  %v10664_v7 = vld [vmem:[#allocation2 + $0x287] sm:$0xff] }
 0x813   :  { %v7590_v14 = vpop.f32.mrf.mxu3 }
 0x814   :  { %v16951_v32 = vadd.f32 %v7590_v14, %v7460_v26  ;;  %v16967_v14 = vld [vmem:[#allocation2 + $0x3f0] sm:$0xff] }
 0x815   :  { %v16945_v0 = vpop.f32.mrf.mxu1  ;;  %9769 = vmatmul.msk.f32.gmra.mxu2 %vm260_vm0, %v16953_v56  ;;  %v17000_v56 = vld [vmem:[#allocation2 + $0x410] sm:$0xff] }
 0x816   :  { %18730 = vst [vmem:[#allocation73_spill] sm:$0xff] %v16945_v0 }
 0x817   :  { %18731 = vst [vmem:[#allocation72_spill] sm:$0xff] %v16951_v32 }
 0x818   :  { %9722 = vmatmul.msk.f32.gmra.mxu1 %vm260_vm0, %v16947_v1  ;;  %9841 = vmatmul.msk.f32.gmra.mxu3 %vm260_vm0, %v5154_v30  ;;  %v7299_v36 = vpop.f32.mrf.mxu2  ;;  %v10663_v30 = vld [vmem:[#allocation2 + $0x269] sm:$0xff] }
 0x819   :  { %9910 = vmatmul.msk.f32.gmra.mxu0 %vm260_vm0, %v16454_v2  ;;  %v7461_v22 = vadd.f32 %v7299_v36, %v7167_v11  ;;  %v18737_v2 = vld [vmem:[#allocation11_spill] sm:$0xff]  ;;  %v16980_v11 = vpop.f32.mrf.mxu0 }
 0x81a   :  { %v6874_v0 = vadd.f32 %v18738_v43, %v18737_v2  ;;  %v16984_v2 = vld [vmem:[#allocation2 + $0x408] sm:$0xff]  ;;  %v18741_v43 = vld [vmem:[#allocation57_spill] sm:$0xff] }
 0x81b   :  { %v7593_v26 = vpop.f32.mrf.mxu3 }
 0x81c   :  { %v16971_v42 = vadd.f32 %v7593_v26, %v7461_v22  ;;  %v7168_v59 = vadd.f32 %v16487_v38, %v6874_v0  ;;  %v10666_v38 = vld [vmem:[#allocation2 + $0x271] sm:$0xff] }
 0x81d   :  { %v16965_v24 = vpop.f32.mrf.mxu1  ;;  %9770 = vmatmul.msk.f32.gmra.mxu2 %vm260_vm0, %v10663_v30  ;;  %v18742_v30 = vld [vmem:[#allocation36_spill] sm:$0xff] }
 0x81e   :  { %18735 = vst [vmem:[#allocation75_spill] sm:$0xff] %v16965_v24  ;;  %v10667_v0 = vld [vmem:[#allocation2 + $0x28f] sm:$0xff] }
 0x81f   :  { %18736 = vst [vmem:[#allocation74_spill] sm:$0xff] %v16971_v42  ;;  %v5225_v42 = vld [vmem:[#allocation2 + $0x228] sm:$0xff] }
 0x820   :  { %9723 = vmatmul.msk.f32.gmra.mxu1 %vm260_vm0, %v16967_v14  ;;  %9842 = vmatmul.msk.f32.gmra.mxu3 %vm260_vm0, %v10664_v7  ;;  %v7302_v22 = vpop.f32.mrf.mxu2  ;;  %v6875_v7 = vadd.f32 %v18742_v30, %v18741_v43  ;;  %v18745_v43 = vld [vmem:[#allocation50_spill] sm:$0xff]  ;;  %v18746_v30 = vld [vmem:[#allocation20_spill] sm:$0xff] }
 0x821   :  { %9911 = vmatmul.msk.f32.gmra.mxu0 %vm260_vm0, %v16472_v60  ;;  %v7462_v26 = vadd.f32 %v7302_v22, %v7168_v59  ;;  %v16998_v32 = vpop.f32.mrf.mxu0 }
 0x822   :  { %v7169_v59 = vadd.f32 %v16502_v10, %v6875_v7  ;;  %v17009_v10 = vld [vmem:[#allocation2 + $0x289] sm:$0xff] }
 0x823   :  { %v7596_v24 = vpop.f32.mrf.mxu3  ;;  %18747 = vst [vmem:[#allocation50_spill] sm:$0xff] %v17009_v10 }
 0x824   :  { %v16988_v60 = vadd.f32 %v7596_v24, %v7462_v26 }
 0x825   :  { %v16982_v36 = vpop.f32.mrf.mxu1  ;;  %9771 = vmatmul.msk.f32.gmra.mxu2 %vm260_vm0, %v10666_v38  ;;  %v6876_v38 = vadd.f32 %v18746_v30, %v18745_v43  ;;  %v18750_v30 = vld [vmem:[#allocation52_spill] sm:$0xff] }
 0x826   :  { %18739 = vst [vmem:[#allocation11_spill] sm:$0xff] %v16982_v36 }
 0x827   :  { %18740 = vst [vmem:[#allocation34_spill] sm:$0xff] %v16988_v60  ;;  %v5226_v60 = vld [vmem:[#allocation2 + $0x230] sm:$0xff]  ;;  %v7170_v7 = vadd.f32 %v16517_v57, %v6876_v38 }
 0x828   :  { %9724 = vmatmul.msk.f32.gmra.mxu1 %vm260_vm0, %v16984_v2  ;;  %9843 = vmatmul.msk.f32.gmra.mxu3 %vm260_vm0, %v10667_v0  ;;  %v7305_v36 = vpop.f32.mrf.mxu2  ;;  %v17029_v57 = vld [vmem:[#allocation2 + $0x291] sm:$0xff] }
 0x829   :  { %9912 = vmatmul.msk.f32.gmra.mxu0 %vm260_vm0, %v5225_v42  ;;  %v7463_v24 = vadd.f32 %v7305_v36, %v7169_v59  ;;  %v10670_v36 = vld [vmem:[#allocation2 + $0x2a7] sm:$0xff]  ;;  %18752 = vst [vmem:[#allocation52_spill] sm:$0xff] %v17029_v57  ;;  %v10673_v38 = vld [vmem:[#allocation2 + $0x2af] sm:$0xff] }
 0x82b   :  { %v7599_v26 = vpop.f32.mrf.mxu3 }
 0x82c   :  { %v17004_v42 = vadd.f32 %v7599_v26, %v7463_v24 }
 0x82d   :  { %v16996_v22 = vpop.f32.mrf.mxu1  ;;  %9772 = vmatmul.msk.f32.gmra.mxu2 %vm260_vm0, %v17009_v10 }
 0x82e   :  { %18743 = vst [vmem:[#allocation57_spill] sm:$0xff] %v16996_v22  ;;  %v17017_v22 = vld [vmem:[#allocation2 + $0x428] sm:$0xff] }
 0x82f   :  { %18744 = vst [vmem:[#allocation36_spill] sm:$0xff] %v17004_v42  ;;  %v18751_v42 = vld [vmem:[#allocation22_spill] sm:$0xff] }
 0x830   :  { %9725 = vmatmul.msk.f32.gmra.mxu1 %vm260_vm0, %v17000_v56  ;;  %9844 = vmatmul.msk.f32.gmra.mxu3 %vm260_vm0, %v10670_v36  ;;  %v7308_v59 = vpop.f32.mrf.mxu2  ;;  %v6877_v10 = vadd.f32 %v18751_v42, %v18750_v30  ;;  %v18755_v42 = vld [vmem:[#allocation39_spill] sm:$0xff]  ;;  %v18756_v30 = vld [vmem:[#allocation13_spill] sm:$0xff] }
 0x831   :  { %9913 = vmatmul.msk.f32.gmra.mxu0 %vm260_vm0, %v5226_v60  ;;  %v7464_v24 = vadd.f32 %v7308_v59, %v7170_v7  ;;  %v17021_v60 = vpop.f32.mrf.mxu0 }
 0x832   :  { %v7171_v36 = vadd.f32 %v16535_v48, %v6877_v10  ;;  %v17049_v48 = vld [vmem:[#allocation2 + $0x2a9] sm:$0xff] }
 0x833   :  { %v7602_v26 = vpop.f32.mrf.mxu3  ;;  %v10676_v10 = vld [vmem:[#allocation2 + $0x2c7] sm:$0xff] }
 0x834   :  { %v17023_v43 = vadd.f32 %v7602_v26, %v7464_v24 }
 0x835   :  { %v17015_v0 = vpop.f32.mrf.mxu1  ;;  %9773 = vmatmul.msk.f32.gmra.mxu2 %vm260_vm0, %v17029_v57 }
 0x836   :  { %18748 = vst [vmem:[#allocation20_spill] sm:$0xff] %v17015_v0  ;;  %v17037_v0 = vld [vmem:[#allocation2 + $0x430] sm:$0xff] }
 0x837   :  { %18749 = vst [vmem:[#allocation161_spill] sm:$0xff] %v17023_v43  ;;  %v6878_v43 = vadd.f32 %v18756_v30, %v18755_v42  ;;  %v17057_v42 = vld [vmem:[#allocation2 + $0x448] sm:$0xff]  ;;  %v18759_v30 = vld [vmem:[#allocation41_spill] sm:$0xff] }
 0x838   :  { %9726 = vmatmul.msk.f32.gmra.mxu1 %vm260_vm0, %v17017_v22  ;;  %9845 = vmatmul.msk.f32.gmra.mxu3 %vm260_vm0, %v10673_v38  ;;  %v7311_v59 = vpop.f32.mrf.mxu2 }
 0x839   :  { %9914 = vmatmul.msk.f32.gmra.mxu0 %vm260_vm0, %v16522_v35  ;;  %v7465_v24 = vadd.f32 %v7311_v59, %v7171_v36  ;;  %v17045_v57 = vpop.f32.mrf.mxu0  ;;  %v7172_v38 = vadd.f32 %v16553_v51, %v6878_v43  ;;  %v10678_v51 = vld [vmem:[#allocation2 + $0x2cf] sm:$0xff] }
 0x83b   :  { %v7605_v26 = vpop.f32.mrf.mxu3 }
 0x83c   :  { %v17041_v35 = vadd.f32 %v7605_v26, %v7465_v24 }
 0x83d   :  { %v17035_v7 = vpop.f32.mrf.mxu1  ;;  %9774 = vmatmul.msk.f32.gmra.mxu2 %vm260_vm0, %v17049_v48 }
 0x83e   :  { %18753 = vst [vmem:[#allocation22_spill] sm:$0xff] %v17035_v7  ;;  %v18760_v7 = vld [vmem:[#allocation14_spill] sm:$0xff] }
 0x83f   :  { %18754 = vst [vmem:[#allocation162_spill] sm:$0xff] %v17041_v35  ;;  %v6879_v35 = vadd.f32 %v18760_v7, %v18759_v30  ;;  %v17077_v30 = vld [vmem:[#allocation2 + $0x450] sm:$0xff] }
 0x840   :  { %9727 = vmatmul.msk.f32.gmra.mxu1 %vm260_vm0, %v17037_v0  ;;  %9846 = vmatmul.msk.f32.gmra.mxu3 %vm260_vm0, %v10676_v10  ;;  %v7314_v59 = vpop.f32.mrf.mxu2  ;;  %v17067_v10 = vld [vmem:[#allocation2 + $0x2b1] sm:$0xff] }
 0x841   :  { %9915 = vmatmul.msk.f32.gmra.mxu0 %vm260_vm0, %v16540_v52  ;;  %v7466_v24 = vadd.f32 %v7314_v59, %v7172_v38  ;;  %18761 = vst [vmem:[#allocation41_spill] sm:$0xff] %v17067_v10  ;;  %v7173_v43 = vadd.f32 %v16574_v20, %v6879_v35  ;;  %v17073_v38 = vpop.f32.mrf.mxu0  ;;  %v17087_v20 = vld [vmem:[#allocation2 + $0x2c9] sm:$0xff] }
 0x842   :  { %v10680_v35 = vld [vmem:[#allocation2 + $0x2e7] sm:$0xff] }
 0x843   :  { %v7608_v26 = vpop.f32.mrf.mxu3 }
 0x844   :  { %v17061_v52 = vadd.f32 %v7608_v26, %v7466_v24 }
 0x845   :  { %v17055_v36 = vpop.f32.mrf.mxu1  ;;  %9775 = vmatmul.msk.f32.gmra.mxu2 %vm260_vm0, %v17067_v10 }
 0x846   :  { %18757 = vst [vmem:[#allocation39_spill] sm:$0xff] %v17055_v36  ;;  %v18764_v36 = vld [vmem:[#allocation44_spill] sm:$0xff] }
 0x847   :  { %18758 = vst [vmem:[#allocation13_spill] sm:$0xff] %v17061_v52  ;;  %v18765_v52 = vld [vmem:[#allocation25_spill] sm:$0xff] }
 0x848   :  { %9728 = vmatmul.msk.f32.gmra.mxu1 %vm260_vm0, %v17057_v42  ;;  %9847 = vmatmul.msk.f32.gmra.mxu3 %vm260_vm0, %v10678_v51  ;;  %v7317_v24 = vpop.f32.mrf.mxu2  ;;  %v6880_v10 = vadd.f32 %v18765_v52, %v18764_v36  ;;  %18766 = vst [vmem:[#allocation44_spill] sm:$0xff] %v17087_v20  ;;  %v18768_v52 = vld [vmem:[#allocation97_spill] sm:$0xff] }
 0x849   :  { %9916 = vmatmul.msk.f32.gmra.mxu0 %vm260_vm0, %v16558_v58  ;;  %v7467_v26 = vadd.f32 %v7317_v24, %v7173_v43 }
 0x84a   :  { %v7174_v51 = vadd.f32 %v16592_v44, %v6880_v10  ;;  %v10682_v44 = vld [vmem:[#allocation2 + $0x2ef] sm:$0xff] }
 0x84b   :  { %v7611_v7 = vpop.f32.mrf.mxu3 }
 0x84c   :  { %v17081_v58 = vadd.f32 %v7611_v7, %v7467_v26  ;;  %v17095_v26 = vpop.f32.mrf.mxu0 }
 0x84d   :  { %v17075_v59 = vpop.f32.mrf.mxu1  ;;  %9776 = vmatmul.msk.f32.gmra.mxu2 %vm260_vm0, %v17087_v20 }
 0x84e   :  { %18762 = vst [vmem:[#allocation14_spill] sm:$0xff] %v17075_v59  ;;  %v18770_v59 = vld [vmem:[#allocation27_spill] sm:$0xff] }
 0x84f   :  { %18763 = vst [vmem:[#allocation163_spill] sm:$0xff] %v17081_v58  ;;  %v18771_v58 = vld [vmem:[#allocation46_spill] sm:$0xff] }
 0x850   :  { %9729 = vmatmul.msk.f32.gmra.mxu1 %vm260_vm0, %v17077_v30  ;;  %9848 = vmatmul.msk.f32.gmra.mxu3 %vm260_vm0, %v10680_v35  ;;  %v7320_v24 = vpop.f32.mrf.mxu2  ;;  %v6881_v20 = vadd.f32 %v18771_v58, %v18770_v59  ;;  %v17105_v35 = vld [vmem:[#allocation2 + $0x2d1] sm:$0xff] }
 0x851   :  { %9917 = vmatmul.msk.f32.gmra.mxu0 %vm260_vm0, %v16579_v54  ;;  %v7468_v7 = vadd.f32 %v7320_v24, %v7174_v51  ;;  %v18775_v58 = vld [vmem:[#allocation16_spill] sm:$0xff] }
 0x852   :  { %v7175_v10 = vadd.f32 %v16610_v34, %v6881_v20  ;;  %v10684_v34 = vld [vmem:[#allocation2 + $0x307] sm:$0xff] }
 0x853   :  { %v7614_v36 = vpop.f32.mrf.mxu3 }
 0x854   :  { %v17099_v54 = vadd.f32 %v7614_v36, %v7468_v7  ;;  %v17115_v59 = vpop.f32.mrf.mxu0 }
 0x855   :  { %v17093_v43 = vpop.f32.mrf.mxu1  ;;  %9777 = vmatmul.msk.f32.gmra.mxu2 %vm260_vm0, %v17105_v35 }
 0x856   :  { %18767 = vst [vmem:[#allocation25_spill] sm:$0xff] %v17093_v43  ;;  %v18776_v43 = vld [vmem:[#allocation49_spill] sm:$0xff] }
 0x857   :  { %18769 = vst [vmem:[#allocation97_spill] sm:$0xff] %v17099_v54  ;;  %v6882_v54 = vadd.f32 %v18776_v43, %v18775_v58  ;;  %v18781_v58 = vld [vmem:[#allocation51_spill] sm:$0xff] }
 0x858   :  { %9954 = vmatmul.msk.f32.vlgmr.msra.gmra.mxu1 %vm260_vm0, %v18768_v52  ;;  %9849 = vmatmul.msk.f32.gmra.mxu3 %vm260_vm0, %v10682_v44  ;;  %v7323_v24 = vpop.f32.mrf.mxu2  ;;  %v18773_v52 = vld [vmem:[#allocation100_spill] sm:$0xff] }
 0x859   :  { %9918 = vmatmul.msk.f32.gmra.mxu0 %vm260_vm0, %v16597_v21  ;;  %v7469_v7 = vadd.f32 %v7323_v24, %v7175_v10  ;;  %v17123_v44 = vld [vmem:[#allocation2 + $0x2e9] sm:$0xff]  ;;  %v7176_v20 = vadd.f32 %v16628_v62, %v6882_v54 }
 0x85a   :  { %v10686_v62 = vld [vmem:[#allocation2 + $0x30f] sm:$0xff] }
 0x85b   :  { %v7617_v36 = vpop.f32.mrf.mxu3 }
 0x85c   :  { %v17117_v21 = vadd.f32 %v7617_v36, %v7469_v7 }
 0x85d   :  { %v17111_v51 = vpop.f32.mrf.mxu1  ;;  %9778 = vmatmul.msk.f32.gmra.mxu2 %vm260_vm0, %v17123_v44 }
 0x85e   :  { %18772 = vst [vmem:[#allocation27_spill] sm:$0xff] %v17111_v51 }
 0x85f   :  { %18774 = vst [vmem:[#allocation46_spill] sm:$0xff] %v17117_v21  ;;  %v17137_v21 = vpop.f32.mrf.mxu0 }
 0x860   :  { %9955 = vmatmul.msk.f32.gmra.mxu1 %vm260_vm0, %v18773_v52  ;;  %9850 = vmatmul.msk.f32.gmra.mxu3 %vm260_vm0, %v10684_v34  ;;  %v7326_v24 = vpop.f32.mrf.mxu2  ;;  %v18778_v52 = vld [vmem:[#allocation103_spill] sm:$0xff]  ;;  %v17141_v34 = vld [vmem:[#allocation2 + $0x2f1] sm:$0xff] }
 0x861   :  { %9919 = vmatmul.msk.f32.gmra.mxu0 %vm260_vm0, %v16615_v50  ;;  %v7470_v7 = vadd.f32 %v7326_v24, %v7176_v20  ;;  %v18780_v50 = vld [vmem:[#allocation17_spill] sm:$0xff] }
 0x862   :  { %v6883_v51 = vadd.f32 %v18781_v58, %v18780_v50  ;;  %v18785_v58 = vld [vmem:[#allocation54_spill] sm:$0xff] }
 0x863   :  { %v7620_v36 = vpop.f32.mrf.mxu3 }
 0x864   :  { %v17133_v43 = vadd.f32 %v7620_v36, %v7470_v7  ;;  %v7177_v54 = vadd.f32 %v16646_v13, %v6883_v51  ;;  %v10688_v13 = vld [vmem:[#allocation2 + $0x327] sm:$0xff] }
 0x865   :  { %v17129_v10 = vpop.f32.mrf.mxu1  ;;  %9779 = vmatmul.msk.f32.gmra.mxu2 %vm260_vm0, %v17141_v34 }
 0x866   :  { %18777 = vst [vmem:[#allocation100_spill] sm:$0xff] %v17129_v10 }
 0x867   :  { %18779 = vst [vmem:[#allocation16_spill] sm:$0xff] %v17133_v43  ;;  %v17157_v43 = vld [vmem:[#allocation2 + $0x309] sm:$0xff] }
 0x868   :  { %9956 = vmatmul.msk.f32.gmra.mxu1 %vm260_vm0, %v18778_v52  ;;  %9851 = vmatmul.msk.f32.gmra.mxu3 %vm260_vm0, %v10686_v62  ;;  %v7329_v24 = vpop.f32.mrf.mxu2  ;;  %v18783_v52 = vld [vmem:[#allocation106_spill] sm:$0xff]  ;;  %v17163_v62 = vpop.f32.mrf.mxu0 }
 0x869   :  { %9920 = vmatmul.msk.f32.gmra.mxu0 %vm260_vm0, %v16633_v19  ;;  %v7471_v7 = vadd.f32 %v7329_v24, %v7177_v54  ;;  %v18784_v19 = vld [vmem:[#allocation30_spill] sm:$0xff] }
 0x86a   :  { %v6884_v10 = vadd.f32 %v18785_v58, %v18784_v19  ;;  %v18788_v19 = vld [vmem:[#allocation19_spill] sm:$0xff] }
 0x86b   :  { %v7623_v36 = vpop.f32.mrf.mxu3 }
 0x86c   :  { %v17151_v50 = vadd.f32 %v7623_v36, %v7471_v7  ;;  %v7178_v51 = vadd.f32 %v16666_v17, %v6884_v10  ;;  %v10690_v17 = vld [vmem:[#allocation2 + $0x32f] sm:$0xff] }
 0x86d   :  { %v17147_v20 = vpop.f32.mrf.mxu1  ;;  %9780 = vmatmul.msk.f32.gmra.mxu2 %vm260_vm0, %v17157_v43 }
 0x86e   :  { %18782 = vst [vmem:[#allocation49_spill] sm:$0xff] %v17147_v20 }
 0x870   :  { %9957 = vmatmul.msk.f32.gmra.mxu1 %vm260_vm0, %v18783_v52  ;;  %9852 = vmatmul.msk.f32.gmra.mxu3 %vm260_vm0, %v10688_v13  ;;  %v7332_v24 = vpop.f32.mrf.mxu2  ;;  %v18787_v52 = vld [vmem:[#allocation32_spill] sm:$0xff] }
 0x871   :  { %9921 = vmatmul.msk.f32.gmra.mxu0 %vm260_vm0, %v16651_v33  ;;  %v7472_v7 = vadd.f32 %v7332_v24, %v7178_v51  ;;  %v6885_v58 = vadd.f32 %v18788_v19, %v18787_v52  ;;  %v17175_v13 = vld [vmem:[#allocation2 + $0x311] sm:$0xff]  ;;  %v17183_v24 = vpop.f32.mrf.mxu0  ;;  %v18790_v52 = vld [vmem:[#allocation55_spill] sm:$0xff] }
 0x872   :  { %v18791_v19 = vld [vmem:[#allocation21_spill] sm:$0xff] }
 0x873   :  { %v7626_v36 = vpop.f32.mrf.mxu3  ;;  %v7179_v10 = vadd.f32 %v16685_v39, %v6885_v58  ;;  %v10692_v39 = vld [vmem:[#allocation2 + $0x347] sm:$0xff] }
 0x874   :  { %v17169_v33 = vadd.f32 %v7626_v36, %v7472_v7 }
 0x875   :  { %v17165_v54 = vpop.f32.mrf.mxu1  ;;  %9781 = vmatmul.msk.f32.gmra.mxu2 %vm260_vm0, %v17175_v13 }
 0x876   :  { %18786 = vst [vmem:[#allocation103_spill] sm:$0xff] %v17165_v54  ;;  %v6886_v54 = vadd.f32 %v18791_v19, %v18790_v52  ;;  %v18793_v52 = vld [vmem:[#allocation113_spill] sm:$0xff]  ;;  %v18795_v19 = vld [vmem:[#allocation59_spill] sm:$0xff] }
 0x878   :  { %9958 = vmatmul.msk.f32.gmra.mxu1 %vm260_vm0, %v16482_v61  ;;  %9853 = vmatmul.msk.f32.gmra.mxu3 %vm260_vm0, %v10690_v17  ;;  %v7335_v61 = vpop.f32.mrf.mxu2  ;;  %v17193_v17 = vld [vmem:[#allocation2 + $0x329] sm:$0xff]  ;;  %v7180_v58 = vadd.f32 %v16704_v63, %v6886_v54 }
 0x879   :  { %9922 = vmatmul.msk.f32.gmra.mxu0 %vm260_vm0, %v16670_v46  ;;  %v7473_v7 = vadd.f32 %v7335_v61, %v7179_v10  ;;  %v10694_v63 = vld [vmem:[#allocation2 + $0x34f] sm:$0xff] }
 0x87b   :  { %v7629_v36 = vpop.f32.mrf.mxu3 }
 0x87c   :  { %v17187_v46 = vadd.f32 %v7629_v36, %v7473_v7  ;;  %v17201_v36 = vpop.f32.mrf.mxu0 }
 0x87d   :  { %v17181_v51 = vpop.f32.mrf.mxu1  ;;  %9782 = vmatmul.msk.f32.gmra.mxu2 %vm260_vm0, %v17193_v17 }
 0x87e   :  { %18789 = vst [vmem:[#allocation17_spill] sm:$0xff] %v17181_v51  ;;  %v18796_v51 = vld [vmem:[#allocation37_spill] sm:$0xff] }
 0x87f   :  { %v6887_v20 = vadd.f32 %v18796_v51, %v18795_v19  ;;  %v18801_v19 = vld [vmem:[#allocation26_spill] sm:$0xff] }
 0x880   :  { %9959 = vmatmul.msk.f32.gmra.mxu1 %vm260_vm0, %v16497_v9  ;;  %9854 = vmatmul.msk.f32.gmra.mxu3 %vm260_vm0, %v10692_v39  ;;  %v7338_v9 = vpop.f32.mrf.mxu2  ;;  %v17211_v39 = vld [vmem:[#allocation2 + $0x331] sm:$0xff] }
 0x881   :  { %9923 = vmatmul.msk.f32.gmra.mxu0 %vm260_vm0, %v16689_v3  ;;  %v7474_v61 = vadd.f32 %v7338_v9, %v7180_v58  ;;  %v7181_v54 = vadd.f32 %v16726_v12, %v6887_v20  ;;  %v10696_v12 = vld [vmem:[#allocation2 + $0x367] sm:$0xff] }
 0x883   :  { %v7632_v7 = vpop.f32.mrf.mxu3 }
 0x884   :  { %v17205_v3 = vadd.f32 %v7632_v7, %v7474_v61 }
 0x885   :  { %v17199_v10 = vpop.f32.mrf.mxu1  ;;  %9783 = vmatmul.msk.f32.gmra.mxu2 %vm260_vm0, %v17211_v39 }
 0x886   :  { %18792 = vst [vmem:[#allocation51_spill] sm:$0xff] %v17199_v10 }
 0x887   :  { %18794 = vst [vmem:[#allocation106_spill] sm:$0xff] %v17205_v3  ;;  %v17225_v3 = vpop.f32.mrf.mxu0 }
 0x888   :  { %9960 = vmatmul.msk.f32.gmra.mxu1 %vm260_vm0, %v18793_v52  ;;  %9855 = vmatmul.msk.f32.gmra.mxu3 %vm260_vm0, %v10694_v63  ;;  %v7341_v9 = vpop.f32.mrf.mxu2  ;;  %v18798_v52 = vld [vmem:[#allocation116_spill] sm:$0xff] }
 0x889   :  { %9924 = vmatmul.msk.f32.gmra.mxu0 %vm260_vm0, %v16708_v18  ;;  %v7475_v61 = vadd.f32 %v7341_v9, %v7181_v54  ;;  %v18800_v18 = vld [vmem:[#allocation35_spill] sm:$0xff] }
 0x88a   :  { %v6888_v10 = vadd.f32 %v18801_v19, %v18800_v18  ;;  %v17229_v63 = vld [vmem:[#allocation2 + $0x349] sm:$0xff]  ;;  %v18805_v19 = vld [vmem:[#allocation42_spill] sm:$0xff] }
 0x88b   :  { %v7635_v7 = vpop.f32.mrf.mxu3 }
 0x88c   :  { %v17221_v51 = vadd.f32 %v7635_v7, %v7475_v61  ;;  %v7182_v20 = vadd.f32 %v16745_v49, %v6888_v10  ;;  %v10698_v49 = vld [vmem:[#allocation2 + $0x36f] sm:$0xff] }
 0x88d   :  { %v17217_v58 = vpop.f32.mrf.mxu1  ;;  %9784 = vmatmul.msk.f32.gmra.mxu2 %vm260_vm0, %v17229_v63 }
 0x88e   :  { %18797 = vst [vmem:[#allocation30_spill] sm:$0xff] %v17217_v58 }
 0x88f   :  { %18799 = vst [vmem:[#allocation54_spill] sm:$0xff] %v17221_v51  ;;  %v17245_v51 = vld [vmem:[#allocation2 + $0x351] sm:$0xff] }
 0x890   :  { %9961 = vmatmul.msk.f32.gmra.mxu1 %vm260_vm0, %v18798_v52  ;;  %9856 = vmatmul.msk.f32.gmra.mxu3 %vm260_vm0, %v10696_v12  ;;  %v7344_v9 = vpop.f32.mrf.mxu2  ;;  %v18803_v52 = vld [vmem:[#allocation119_spill] sm:$0xff]  ;;  %v17251_v12 = vpop.f32.mrf.mxu0 }
 0x891   :  { %9925 = vmatmul.msk.f32.gmra.mxu0 %vm260_vm0, %v16730_v47  ;;  %v7476_v61 = vadd.f32 %v7344_v9, %v7182_v20  ;;  %v18804_v47 = vld [vmem:[#allocation24_spill] sm:$0xff] }
 0x892   :  { %v6889_v58 = vadd.f32 %v18805_v19, %v18804_v47  ;;  %v18809_v47 = vld [vmem:[#allocation40_spill] sm:$0xff]  ;;  %v18810_v19 = vld [vmem:[#allocation31_spill] sm:$0xff] }
 0x893   :  { %v7638_v7 = vpop.f32.mrf.mxu3 }
 0x894   :  { %v17239_v18 = vadd.f32 %v7638_v7, %v7476_v61  ;;  %v7183_v10 = vadd.f32 %v16764_v23, %v6889_v58  ;;  %v10700_v23 = vld [vmem:[#allocation2 + $0x387] sm:$0xff] }
 0x895   :  { %v17235_v54 = vpop.f32.mrf.mxu1  ;;  %9785 = vmatmul.msk.f32.gmra.mxu2 %vm260_vm0, %v17245_v51 }
 0x896   :  { %18802 = vst [vmem:[#allocation32_spill] sm:$0xff] %v17235_v54  ;;  %v6890_v54 = vadd.f32 %v18810_v19, %v18809_v47  ;;  %v18812_v47 = vld [vmem:[#allocation125_spill] sm:$0xff] }
 0x897   :  { %v18814_v19 = vld [vmem:[#allocation29_spill] sm:$0xff] }
 0x898   :  { %9962 = vmatmul.msk.f32.gmra.mxu1 %vm260_vm0, %v18803_v52  ;;  %9857 = vmatmul.msk.f32.gmra.mxu3 %vm260_vm0, %v10698_v49  ;;  %v7347_v9 = vpop.f32.mrf.mxu2  ;;  %v18807_v52 = vld [vmem:[#allocation122_spill] sm:$0xff]  ;;  %v17263_v49 = vld [vmem:[#allocation2 + $0x369] sm:$0xff]  ;;  %v7184_v58 = vadd.f32 %v16784_v8, %v6890_v54 }
 0x899   :  { %9926 = vmatmul.msk.f32.gmra.mxu0 %vm260_vm0, %v16749_v4  ;;  %v7477_v61 = vadd.f32 %v7347_v9, %v7183_v10  ;;  %v10702_v8 = vld [vmem:[#allocation2 + $0x38f] sm:$0xff] }
 0x89b   :  { %v7641_v7 = vpop.f32.mrf.mxu3 }
 0x89c   :  { %v17257_v4 = vadd.f32 %v7641_v7, %v7477_v61  ;;  %v17271_v61 = vpop.f32.mrf.mxu0 }
 0x89d   :  { %v17253_v20 = vpop.f32.mrf.mxu1  ;;  %9786 = vmatmul.msk.f32.gmra.mxu2 %vm260_vm0, %v17263_v49 }
 0x89e   :  { %18806 = vst [vmem:[#allocation19_spill] sm:$0xff] %v17253_v20  ;;  %v18815_v20 = vld [vmem:[#allocation47_spill] sm:$0xff] }
 0x89f   :  { %18808 = vst [vmem:[#allocation55_spill] sm:$0xff] %v17257_v4  ;;  %v6891_v4 = vadd.f32 %v18815_v20, %v18814_v19  ;;  %v18817_v20 = vld [vmem:[#allocation128_spill] sm:$0xff]  ;;  %v18819_v19 = vld [vmem:[#allocation45_spill] sm:$0xff] }
 0x8a0   :  { %9963 = vmatmul.msk.f32.gmra.mxu1 %vm260_vm0, %v18807_v52  ;;  %9858 = vmatmul.msk.f32.gmra.mxu3 %vm260_vm0, %v10700_v23  ;;  %v7350_v9 = vpop.f32.mrf.mxu2  ;;  %v17281_v23 = vld [vmem:[#allocation2 + $0x371] sm:$0xff] }
 0x8a1   :  { %9927 = vmatmul.msk.f32.gmra.mxu0 %vm260_vm0, %v16768_v15  ;;  %v7478_v7 = vadd.f32 %v7350_v9, %v7184_v58  ;;  %v7185_v54 = vadd.f32 %v16804_v5, %v6891_v4  ;;  %v10704_v5 = vld [vmem:[#allocation2 + $0x3a7] sm:$0xff] }
 0x8a3   :  { %v7644_v52 = vpop.f32.mrf.mxu3 }
 0x8a4   :  { %v17275_v15 = vadd.f32 %v7644_v52, %v7478_v7 }
 0x8a5   :  { %v17269_v10 = vpop.f32.mrf.mxu1  ;;  %9787 = vmatmul.msk.f32.gmra.mxu2 %vm260_vm0, %v17281_v23 }
 0x8a6   :  { %18811 = vst [vmem:[#allocation21_spill] sm:$0xff] %v17269_v10  ;;  %v18820_v10 = vld [vmem:[#allocation6_spill] sm:$0xff] }
 0x8a7   :  { %18813 = vst [vmem:[#allocation113_spill] sm:$0xff] %v17275_v15  ;;  %v6892_v15 = vadd.f32 %v18820_v10, %v18819_v19  ;;  %v18826_v19 = vld [vmem:[#allocation8_spill] sm:$0xff] }
 0x8a8   :  { %9964 = vmatmul.msk.f32.gmra.mxu1 %vm260_vm0, %v18812_v47  ;;  %9859 = vmatmul.msk.f32.gmra.mxu3 %vm260_vm0, %v10702_v8  ;;  %v7353_v9 = vpop.f32.mrf.mxu2  ;;  %v17289_v47 = vpop.f32.mrf.mxu0  ;;  %v17299_v8 = vld [vmem:[#allocation2 + $0x389] sm:$0xff] }
 0x8a9   :  { %9928 = vmatmul.msk.f32.gmra.mxu0 %vm260_vm0, %v16788_v6  ;;  %v7479_v7 = vadd.f32 %v7353_v9, %v7185_v54  ;;  %18821 = vst [vmem:[#allocation116_spill] sm:$0xff] %v17299_v8  ;;  %v7186_v4 = vadd.f32 %v16824_v40, %v6892_v15  ;;  %v10706_v40 = vld [vmem:[#allocation2 + $0x3af] sm:$0xff] }
 0x8ab   :  { %v7647_v52 = vpop.f32.mrf.mxu3 }
 0x8ac   :  { %v17293_v6 = vadd.f32 %v7647_v52, %v7479_v7 }
 0x8ad   :  { %v17287_v58 = vpop.f32.mrf.mxu1  ;;  %9788 = vmatmul.msk.f32.gmra.mxu2 %vm260_vm0, %v17299_v8  ;;  %v18827_v8 = vld [vmem:[#allocation58_spill] sm:$0xff] }
 0x8ae   :  { %18816 = vst [vmem:[#allocation59_spill] sm:$0xff] %v17287_v58 }
 0x8af   :  { %18818 = vst [vmem:[#allocation37_spill] sm:$0xff] %v17293_v6 }
 0x8b0   :  { %9965 = vmatmul.msk.f32.gmra.mxu1 %vm260_vm0, %v18817_v20  ;;  %9860 = vmatmul.msk.f32.gmra.mxu3 %vm260_vm0, %v10704_v5  ;;  %v7356_v9 = vpop.f32.mrf.mxu2  ;;  %v18823_v20 = vld [vmem:[#allocation131_spill] sm:$0xff]  ;;  %v17313_v6 = vpop.f32.mrf.mxu0  ;;  %v17317_v5 = vld [vmem:[#allocation2 + $0x391] sm:$0xff] }
 0x8b1   :  { %9929 = vmatmul.msk.f32.gmra.mxu0 %vm260_vm0, %v16808_v45  ;;  %v7480_v7 = vadd.f32 %v7356_v9, %v7186_v4  ;;  %v18825_v45 = vld [vmem:[#allocation60_spill] sm:$0xff] }
 0x8b2   :  { %v6893_v58 = vadd.f32 %v18826_v19, %v18825_v45  ;;  %v18832_v19 = vld [vmem:[#allocation10_spill] sm:$0xff] }
 0x8b3   :  { %v7650_v52 = vpop.f32.mrf.mxu3 }
 0x8b4   :  { %v17309_v10 = vadd.f32 %v7650_v52, %v7480_v7  ;;  %v7187_v15 = vadd.f32 %v16844_v16, %v6893_v58  ;;  %v10708_v16 = vld [vmem:[#allocation2 + $0x3c7] sm:$0xff] }
 0x8b5   :  { %v17305_v54 = vpop.f32.mrf.mxu1  ;;  %9789 = vmatmul.msk.f32.gmra.mxu2 %vm260_vm0, %v17317_v5 }
 0x8b6   :  { %18822 = vst [vmem:[#allocation35_spill] sm:$0xff] %v17305_v54 }
 0x8b7   :  { %18824 = vst [vmem:[#allocation26_spill] sm:$0xff] %v17309_v10  ;;  %v17333_v10 = vld [vmem:[#allocation2 + $0x3a9] sm:$0xff] }
 0x8b8   :  { %9966 = vmatmul.msk.f32.gmra.mxu1 %vm260_vm0, %v18823_v20  ;;  %9861 = vmatmul.msk.f32.gmra.mxu3 %vm260_vm0, %v10706_v40  ;;  %v7359_v9 = vpop.f32.mrf.mxu2  ;;  %v18829_v20 = vld [vmem:[#allocation134_spill] sm:$0xff]  ;;  %v17339_v40 = vpop.f32.mrf.mxu0 }
 0x8b9   :  { %9930 = vmatmul.msk.f32.gmra.mxu0 %vm260_vm0, %v18827_v8  ;;  %v7481_v7 = vadd.f32 %v7359_v9, %v7187_v15  ;;  %v18831_v8 = vld [vmem:[#allocation7_spill] sm:$0xff] }
 0x8ba   :  { %v6894_v54 = vadd.f32 %v18832_v19, %v18831_v8  ;;  %v18836_v8 = vld [vmem:[#allocation9_spill] sm:$0xff]  ;;  %v18837_v19 = vld [vmem:[#allocation15_spill] sm:$0xff] }
 0x8bb   :  { %v7653_v52 = vpop.f32.mrf.mxu3 }
 0x8bc   :  { %v17327_v45 = vadd.f32 %v7653_v52, %v7481_v7  ;;  %v7188_v58 = vadd.f32 %v16864_v53, %v6894_v54  ;;  %v10710_v53 = vld [vmem:[#allocation2 + $0x3cf] sm:$0xff] }
 0x8bd   :  { %v17323_v4 = vpop.f32.mrf.mxu1  ;;  %9790 = vmatmul.msk.f32.gmra.mxu2 %vm260_vm0, %v17333_v10 }
 0x8be   :  { %18828 = vst [vmem:[#allocation119_spill] sm:$0xff] %v17323_v4  ;;  %v6895_v4 = vadd.f32 %v18837_v19, %v18836_v8  ;;  %v18840_v8 = vld [vmem:[#allocation140_spill] sm:$0xff] }
 0x8bf   :  { %18830 = vst [vmem:[#allocation24_spill] sm:$0xff] %v17327_v45  ;;  %v18842_v19 = vld [vmem:[#allocation12_spill] sm:$0xff] }
 0x8c0   :  { %9967 = vmatmul.msk.f32.gmra.mxu1 %vm260_vm0, %v18829_v20  ;;  %9862 = vmatmul.msk.f32.gmra.mxu3 %vm260_vm0, %v10708_v16  ;;  %v7362_v9 = vpop.f32.mrf.mxu2  ;;  %v18834_v20 = vld [vmem:[#allocation137_spill] sm:$0xff]  ;;  %v7189_v54 = vadd.f32 %v16887_v25, %v6895_v4  ;;  %v10712_v25 = vld [vmem:[#allocation2 + $0x3e7] sm:$0xff] }
 0x8c1   :  { %9931 = vmatmul.msk.f32.gmra.mxu0 %vm260_vm0, %v16846_v31  ;;  %v7482_v7 = vadd.f32 %v7362_v9, %v7188_v58  ;;  %v17351_v16 = vld [vmem:[#allocation2 + $0x3b1] sm:$0xff]  ;;  %v18845_v4 = vld [vmem:[#allocation139_spill] sm:$0xff] }
 0x8c2   :  { %18838 = vst [vmem:[#allocation40_spill] sm:$0xff] %v17351_v16 }
 0x8c3   :  { %v7656_v52 = vpop.f32.mrf.mxu3 }
 0x8c4   :  { %v17345_v31 = vadd.f32 %v7656_v52, %v7482_v7  ;;  %v17359_v7 = vpop.f32.mrf.mxu0 }
 0x8c5   :  { %v17341_v15 = vpop.f32.mrf.mxu1  ;;  %9791 = vmatmul.msk.f32.gmra.mxu2 %vm260_vm0, %v17351_v16 }
 0x8c6   :  { %18833 = vst [vmem:[#allocation42_spill] sm:$0xff] %v17341_v15  ;;  %v18843_v15 = vld [vmem:[#allocation23_spill] sm:$0xff] }
 0x8c7   :  { %18835 = vst [vmem:[#allocation122_spill] sm:$0xff] %v17345_v31  ;;  %v6896_v31 = vadd.f32 %v18843_v15, %v18842_v19  ;;  %v17380_v15 = vld [vmem:[%s18206_s5] ss:$0 sm:$0xff] }
 0x8c8   :  { %9968 = vmatmul.msk.f32.gmra.mxu1 %vm260_vm0, %v18834_v20  ;;  %9863 = vmatmul.msk.f32.gmra.mxu3 %vm260_vm0, %v10710_v53  ;;  %v7365_v9 = vpop.f32.mrf.mxu2  ;;  %v17369_v53 = vld [vmem:[#allocation2 + $0x3c9] sm:$0xff]  ;;  %v17385_v19 = vld [vmem:[%s18207_s6] ss:$0 sm:$0xff] }
 0x8c9   :  { %9932 = vmatmul.msk.f32.gmra.mxu0 %vm260_vm0, %v16866_v55  ;;  %v7483_v52 = vadd.f32 %v7365_v9, %v7189_v54  ;;  %18844 = vst [vmem:[#allocation29_spill] sm:$0xff] %v17369_v53  ;;  %v18846_v54 = vld [vmem:[#allocation144_spill] sm:$0xff] }
 0x8ca   :  { %v8034_v9 = vadd.f32 %v18846_v54, %v18845_v4  ;;  %v18849_v54 = vld [vmem:[#allocation18_spill] sm:$0xff] }
 0x8cb   :  { %v7659_v20 = vpop.f32.mrf.mxu3 }
 0x8cc   :  { %v17363_v55 = vadd.f32 %v7659_v20, %v7483_v52  ;;  %v7190_v52 = vadd.f32 %v16905_v29, %v6896_v31  ;;  %v18847_v29 = vld [vmem:[#allocation143_spill] sm:$0xff] }
 0x8cd   :  { %v17357_v58 = vpop.f32.mrf.mxu1  ;;  %9792 = vmatmul.msk.f32.gmra.mxu2 %vm260_vm0, %v17369_v53  ;;  %v18850_v53 = vld [vmem:[#allocation33_spill] sm:$0xff] }
 0x8ce   :  { %18839 = vst [vmem:[#allocation31_spill] sm:$0xff] %v17357_v58  ;;  %v6897_v16 = vadd.f32 %v18850_v53, %v18849_v54  ;;  %v10715_v53 = vld [vmem:[%s18201_s0 + $0x19] sm:$0xff] }
 0x8cf   :  { %18841 = vst [vmem:[#allocation125_spill] sm:$0xff] %v17363_v55  ;;  %v17387_v55 = vpop.f32.mrf.mxu0 }
 0x8d0   :  { %9969 = vmatmul.msk.f32.gmra.mxu1 %vm260_vm0, %v18840_v8  ;;  %9864 = vmatmul.msk.f32.gmra.mxu3 %vm260_vm0, %v10712_v25 }
 0x8d1   :  { %9933 = vmatmul.msk.f32.gmra.mxu0 %vm260_vm0, %v16889_v28  ;;  %v7368_v28 = vpop.f32.mrf.mxu2 }
 0x8d2   :  { %v7484_v58 = vadd.f32 %v7368_v28, %v7190_v52  ;;  %v10714_v52 = vld [vmem:[#allocation2 + $0x3ef] sm:$0xff]  ;;  %v18852_v28 = vld [vmem:[#allocation142_spill] sm:$0xff] }
 0x8d3   :  { %v7662_v25 = vpop.f32.mrf.mxu3 }
 0x8d4   :  { %v17392_v31 = vadd.f32 %v7662_v25, %v7484_v58  ;;  %v7191_v25 = vadd.f32 %v16925_v41, %v6897_v16 }
 0x8d5   :  { %v8136_v20 = vpop.f32.mrf.mxu1 }
 0x8d6   :  { %v8328_v8 = vadd.f32 %v8136_v20, %v8034_v9  ;;  %18848 = vst [vmem:[#allocation47_spill] sm:$0xff] %v17392_v31  ;;  %v17399_v20 = vld [vmem:[#allocation2 + $0x3d1] sm:$0xff] }
 0x8d7   :  { %18851 = vst [vmem:[#allocation128_spill] sm:$0xff] %v17399_v20  ;;  %9793 = vmatmul.msk.f32.gmra.mxu2 %vm260_vm0, %v17399_v20  ;;  %v17416_v41 = vpop.f32.mrf.mxu0 }
 0x8d8   :  { %v8396_v4 = vmul.f32 %v17380_v15, %v8328_v8  ;;  %9970 = vmatmul.msk.f32.gmra.mxu1 %vm260_vm0, %v18847_v29  ;;  %9865 = vmatmul.msk.f32.gmra.mxu3 %vm260_vm0, %v10714_v52  ;;  %v18853_v8 = vld [vmem:[#allocation147_spill] sm:$0xff]  ;;  %v18854_v52 = vld [vmem:[#allocation146_spill] sm:$0xff] }
 0x8d9   :  { %9934 = vmatmul.msk.f32.gmra.mxu0 %vm260_vm0, %v16909_v27  ;;  %v8035_v58 = vadd.f32 %v18853_v8, %v18852_v28  ;;  %v7371_v27 = vpop.f32.mrf.mxu2  ;;  %v18855_v8 = vld [vmem:[#allocation70_spill] sm:$0xff] }
 0x8da   :  { %v8464_v9 = vadd.f32 %v17385_v19, %v8396_v4  ;;  %v7485_v31 = vadd.f32 %v7371_v27, %v7191_v25  ;;  %v18856_v25 = vld [vmem:[#allocation145_spill] sm:$0xff] }
 0x8db   :  { %v7665_v20 = vpop.f32.mrf.mxu3 }
 0x8dc   :  { %v8528_v4 = vadd.f32 %v10715_v53, %v8464_v9  ;;  %v17414_v28 = vadd.f32 %v7665_v20, %v7485_v31  ;;  %v17421_v9 = vld [vmem:[#allocation2 + $0x3e9] sm:$0xff]  ;;  %v18857_v53 = vld [vmem:[#allocation150_spill] sm:$0xff] }
 0x8dd   :  { %v8139_v29 = vpop.f32.mrf.mxu1  ;;  %v10718_v31 = vld [vmem:[%s18201_s0 + $0x21] sm:$0xff] }
 0x8de   :  { %8592 = vst.msk [vmem:[#allocation3] sm:$0xff] %vm260_vm0, %v8528_v4  ;;  %v8329_v54 = vadd.f32 %v8139_v29, %v8035_v58  ;;  %v10717_v58 = vld [vmem:[#allocation2 + $0x407] sm:$0xff]  ;;  %v8036_v4 = vadd.f32 %v18857_v53, %v18856_v25  ;;  %v18860_v25 = vld [vmem:[#allocation153_spill] sm:$0xff] }
 0x8df   :  { %9794 = vmatmul.msk.f32.gmra.mxu2 %vm260_vm0, %v17421_v9 }
 0x8e0   :  { %v8397_v45 = vmul.f32 %v17380_v15, %v8329_v54  ;;  %9971 = vmatmul.msk.f32.gmra.mxu1 %vm260_vm0, %v18854_v52  ;;  %9866 = vmatmul.msk.f32.gmra.mxu3 %vm260_vm0, %v10717_v58  ;;  %v18858_v54 = vld [vmem:[#allocation149_spill] sm:$0xff]  ;;  %v18859_v58 = vld [vmem:[#allocation148_spill] sm:$0xff] }
 0x8e1   :  { %9935 = vmatmul.msk.f32.gmra.mxu0 %vm260_vm0, %v18855_v8  ;;  %v17438_v8 = vld [vmem:[#allocation2 + $0x3f1] sm:$0xff]  ;;  %v8037_v53 = vadd.f32 %v18860_v25, %v18859_v58  ;;  %v18862_v58 = vld [vmem:[#allocation151_spill] sm:$0xff] }
 0x8e2   :  { %v8465_v16 = vadd.f32 %v17385_v19, %v8397_v45  ;;  %v18863_v25 = vld [vmem:[#allocation43_spill] sm:$0xff] }
 0x8e4   :  { %v8529_v20 = vadd.f32 %v10718_v31, %v8465_v16  ;;  %v10720_v16 = vld [vmem:[#allocation2 + $0x40f] sm:$0xff] }
 0x8e5   :  { %v8142_v45 = vpop.f32.mrf.mxu1  ;;  %v10721_v31 = vld [vmem:[%s18201_s0 + $0x31] sm:$0xff] }
 0x8e6   :  { %8593 = vst.msk [vmem:[#allocation3 + $0x8] sm:$0xff] %vm260_vm0, %v8529_v20  ;;  %v8330_v29 = vadd.f32 %v8142_v45, %v8036_v4  ;;  %v17445_v4 = vpop.f32.mrf.mxu0 }
 0x8e7   :  { %9795 = vmatmul.msk.f32.gmra.mxu2 %vm260_vm0, %v17438_v8 }
 0x8e8   :  { %v8398_v27 = vmul.f32 %v17380_v15, %v8330_v29  ;;  %9972 = vmatmul.msk.f32.gmra.mxu1 %vm260_vm0, %v18858_v54  ;;  %9867 = vmatmul.msk.f32.gmra.mxu3 %vm260_vm0, %v10720_v16  ;;  %v17457_v16 = vld [vmem:[#allocation2 + $0x409] sm:$0xff] }
 0x8e9   :  { %9936 = vmatmul.msk.f32.gmra.mxu0 %vm260_vm0, %v16947_v1 }
 0x8ea   :  { %v8466_v52 = vadd.f32 %v17385_v19, %v8398_v27  ;;  %v18861_v27 = vld [vmem:[#allocation152_spill] sm:$0xff] }
 0x8ec   :  { %v8530_v20 = vadd.f32 %v10721_v31, %v8466_v52  ;;  %v10723_v52 = vld [vmem:[#allocation2 + $0x427] sm:$0xff]  ;;  %v10724_v31 = vld [vmem:[%s18201_s0 + $0x39] sm:$0xff] }
 0x8ed   :  { %v8145_v45 = vpop.f32.mrf.mxu1 }
 0x8ee   :  { %8594 = vst.msk [vmem:[#allocation3 + $0x10] sm:$0xff] %vm260_vm0, %v8530_v20  ;;  %v8331_v1 = vadd.f32 %v8145_v45, %v8037_v53  ;;  %v8038_v53 = vadd.f32 %v18863_v25, %v18862_v58  ;;  %v17476_v58 = vld [vmem:[#allocation2 + $0x411] sm:$0xff]  ;;  %v18866_v25 = vld [vmem:[#allocation154_spill] sm:$0xff] }
 0x8ef   :  { %9796 = vmatmul.msk.f32.gmra.mxu2 %vm260_vm0, %v17457_v16  ;;  %18865 = vst [vmem:[#allocation45_spill] sm:$0xff] %v17476_v58 }
 0x8f0   :  { %v8399_v29 = vmul.f32 %v17380_v15, %v8331_v1  ;;  %9973 = vmatmul.msk.f32.gmra.mxu1 %vm260_vm0, %v18861_v27  ;;  %9868 = vmatmul.msk.f32.gmra.mxu3 %vm260_vm0, %v10723_v52  ;;  %v17467_v1 = vpop.f32.mrf.mxu0  ;;  %v18864_v27 = vld [vmem:[#allocation48_spill] sm:$0xff] }
 0x8f1   :  { %9937 = vmatmul.msk.f32.gmra.mxu0 %vm260_vm0, %v16967_v14 }
 0x8f2   :  { %v8467_v54 = vadd.f32 %v17385_v19, %v8399_v29 }
 0x8f4   :  { %v8531_v20 = vadd.f32 %v10724_v31, %v8467_v54  ;;  %v10726_v54 = vld [vmem:[#allocation2 + $0x42f] sm:$0xff] }
 0x8f5   :  { %v8148_v45 = vpop.f32.mrf.mxu1 }
 0x8f6   :  { %8595 = vst.msk [vmem:[#allocation3 + $0x18] sm:$0xff] %vm260_vm0, %v8531_v20  ;;  %v8332_v14 = vadd.f32 %v8148_v45, %v8038_v53  ;;  %v18867_v53 = vld [vmem:[#allocation53_spill] sm:$0xff]  ;;  %v10727_v20 = vld [vmem:[%s18201_s0 + $0x49] sm:$0xff] }
 0x8f7   :  { %9797 = vmatmul.msk.f32.gmra.mxu2 %vm260_vm0, %v17476_v58  ;;  %v8039_v31 = vadd.f32 %v18867_v53, %v18866_v25  ;;  %v18868_v58 = vld [vmem:[#allocation56_spill] sm:$0xff] }
 0x8f8   :  { %v8400_v29 = vmul.f32 %v17380_v15, %v8332_v14  ;;  %9974 = vmatmul.msk.f32.gmra.mxu1 %vm260_vm0, %v18864_v27  ;;  %9869 = vmatmul.msk.f32.gmra.mxu3 %vm260_vm0, %v10726_v54  ;;  %v17495_v25 = vld [vmem:[#allocation2 + $0x429] sm:$0xff] }
 0x8f9   :  { %9938 = vmatmul.msk.f32.gmra.mxu0 %vm260_vm0, %v16984_v2  ;;  %18869 = vst [vmem:[#allocation6_spill] sm:$0xff] %v17495_v25  ;;  %v18870_v53 = vld [vmem:[#allocation80_spill] sm:$0xff] }
 0x8fa   :  { %v8468_v52 = vadd.f32 %v17385_v19, %v8400_v29  ;;  %v17487_v29 = vpop.f32.mrf.mxu0 }
 0x8fc   :  { %v8532_v45 = vadd.f32 %v10727_v20, %v8468_v52  ;;  %v10729_v52 = vld [vmem:[#allocation2 + $0x447] sm:$0xff] }
 0x8fd   :  { %v8151_v14 = vpop.f32.mrf.mxu1 }
 0x8fe   :  { %8596 = vst.msk [vmem:[#allocation3 + $0x20] sm:$0xff] %vm260_vm0, %v8532_v45  ;;  %v8333_v2 = vadd.f32 %v8151_v14, %v8039_v31  ;;  %v18871_v31 = vld [vmem:[#allocation155_spill] sm:$0xff] }
 0x8ff   :  { %9798 = vmatmul.msk.f32.gmra.mxu2 %vm260_vm0, %v17495_v25  ;;  %v8040_v20 = vadd.f32 %v18871_v31, %v18870_v53  ;;  %v17514_v53 = vld [vmem:[#allocation2 + $0x431] sm:$0xff]  ;;  %v18874_v31 = vld [vmem:[#allocation83_spill] sm:$0xff] }
 0x900   :  { %v8401_v27 = vmul.f32 %v17380_v15, %v8333_v2  ;;  %9975 = vmatmul.msk.f32.gmra.mxu1 %vm260_vm0, %v18868_v58  ;;  %9870 = vmatmul.msk.f32.gmra.mxu3 %vm260_vm0, %v10729_v52  ;;  %v10730_v58 = vld [vmem:[%s18201_s0 + $0x51] sm:$0xff]  ;;  %18873 = vst [vmem:[#allocation131_spill] sm:$0xff] %v17514_v53 }
 0x901   :  { %9939 = vmatmul.msk.f32.gmra.mxu0 %vm260_vm0, %v17000_v56 }
 0x902   :  { %v8469_v54 = vadd.f32 %v17385_v19, %v8401_v27  ;;  %v18872_v27 = vld [vmem:[#allocation61_spill] sm:$0xff]  ;;  %v17509_v25 = vpop.f32.mrf.mxu0 }
 0x904   :  { %v8533_v45 = vadd.f32 %v10730_v58, %v8469_v54  ;;  %v10732_v54 = vld [vmem:[#allocation2 + $0x44f] sm:$0xff] }
 0x905   :  { %v8154_v14 = vpop.f32.mrf.mxu1 }
 0x906   :  { %8597 = vst.msk [vmem:[#allocation3 + $0x28] sm:$0xff] %vm260_vm0, %v8533_v45  ;;  %v8334_v56 = vadd.f32 %v8154_v14, %v8040_v20  ;;  %v18875_v20 = vld [vmem:[#allocation88_spill] sm:$0xff]  ;;  %v10733_v45 = vld [vmem:[%s18201_s0 + $0x61] sm:$0xff] }
 0x907   :  { %9799 = vmatmul.msk.f32.gmra.mxu2 %vm260_vm0, %v17514_v53  ;;  %v8041_v58 = vadd.f32 %v18875_v20, %v18874_v31  ;;  %v17528_v53 = vld [vmem:[#allocation2 + $0x449] sm:$0xff]  ;;  %v18878_v31 = vld [vmem:[#allocation86_spill] sm:$0xff] }
 0x908   :  { %v8402_v2 = vmul.f32 %v17380_v15, %v8334_v56  ;;  %9976 = vmatmul.msk.f32.gmra.mxu1 %vm260_vm0, %v18872_v27  ;;  %9871 = vmatmul.msk.f32.gmra.mxu3 %vm260_vm0, %v10732_v54  ;;  %v18876_v27 = vld [vmem:[#allocation63_spill] sm:$0xff]  ;;  %18877 = vst [vmem:[#allocation60_spill] sm:$0xff] %v17528_v53 }
 0x909   :  { %9940 = vmatmul.msk.f32.gmra.mxu0 %vm260_vm0, %v17017_v22  ;;  %v18879_v20 = vld [vmem:[#allocation67_spill] sm:$0xff] }
 0x90a   :  { %v8470_v52 = vadd.f32 %v17385_v19, %v8402_v2 }
 0x90c   :  { %v8534_v14 = vadd.f32 %v10733_v45, %v8470_v52  ;;  %v5189_v52 = vld [vmem:[#allocation2 + $0x467] sm:$0xff]  ;;  %v17538_v45 = vpop.f32.mrf.mxu0 }
 0x90d   :  { %v8157_v56 = vpop.f32.mrf.mxu1 }
 0x90e   :  { %8598 = vst.msk [vmem:[#allocation3 + $0x30] sm:$0xff] %vm260_vm0, %v8534_v14  ;;  %v8335_v22 = vadd.f32 %v8157_v56, %v8041_v58  ;;  %v8042_v58 = vadd.f32 %v18879_v20, %v18878_v31  ;;  %v10734_v14 = vld [vmem:[%s18201_s0 + $0x69] sm:$0xff]  ;;  %v18882_v20 = vld [vmem:[#allocation62_spill] sm:$0xff] }
 0x90f   :  { %9800 = vmatmul.msk.f32.gmra.mxu2 %vm260_vm0, %v17528_v53 }
 0x910   :  { %v8403_v2 = vmul.f32 %v17380_v15, %v8335_v22  ;;  %9977 = vmatmul.msk.f32.gmra.mxu1 %vm260_vm0, %v18876_v27  ;;  %9872 = vmatmul.msk.f32.gmra.mxu3 %vm260_vm0, %v5189_v52  ;;  %v18880_v27 = vld [vmem:[#allocation90_spill] sm:$0xff]  ;;  %v17547_v52 = vld [vmem:[#allocation2 + $0x451] sm:$0xff] }
 0x911   :  { %9941 = vmatmul.msk.f32.gmra.mxu0 %vm260_vm0, %v17037_v0  ;;  %18881 = vst [vmem:[#allocation8_spill] sm:$0xff] %v17547_v52 }
 0x912   :  { %v8471_v54 = vadd.f32 %v17385_v19, %v8403_v2 }
 0x914   :  { %v8535_v56 = vadd.f32 %v10734_v14, %v8471_v54  ;;  %v5190_v54 = vld [vmem:[#allocation2 + $0x46f] sm:$0xff] }
 0x915   :  { %v8160_v22 = vpop.f32.mrf.mxu1 }
 0x916   :  { %8599 = vst.msk [vmem:[#allocation3 + $0x38] sm:$0xff] %vm260_vm0, %v8535_v56  ;;  %v8336_v0 = vadd.f32 %v8160_v22, %v8042_v58  ;;  %v18883_v58 = vld [vmem:[#allocation68_spill] sm:$0xff]  ;;  %v10735_v56 = vld [vmem:[%s18201_s0 + $0x79] sm:$0xff] }
 0x917   :  { %9801 = vmatmul.msk.f32.gmra.mxu2 %vm260_vm0, %v17547_v52  ;;  %v8043_v14 = vadd.f32 %v18883_v58, %v18882_v20  ;;  %v18884_v52 = vld [vmem:[#allocation64_spill] sm:$0xff]  ;;  %v18885_v20 = vld [vmem:[#allocation65_spill] sm:$0xff] }
 0x918   :  { %v8404_v2 = vmul.f32 %v17380_v15, %v8336_v0  ;;  %9978 = vmatmul.msk.f32.gmra.mxu1 %vm260_vm0, %v18880_v27  ;;  %9873 = vmatmul.msk.f32.gmra.mxu3 %vm260_vm0, %v5190_v54  ;;  %v17560_v27 = vpop.f32.mrf.mxu0  ;;  %v18886_v58 = vld [vmem:[#allocation157_spill] sm:$0xff] }
 0x919   :  { %9942 = vmatmul.msk.f32.gmra.mxu0 %vm260_vm0, %v17057_v42  ;;  %v8044_v53 = vadd.f32 %v18886_v58, %v18885_v20  ;;  %v18888_v20 = vld [vmem:[#allocation66_spill] sm:$0xff] }
 0x91a   :  { %v8472_v31 = vadd.f32 %v17385_v19, %v8404_v2  ;;  %v8045_v58 = vadd.f32 %v16957_v37, %v18888_v20  ;;  %v18890_v37 = vld [vmem:[#allocation156_spill] sm:$0xff] }
 0x91b   :  { %v8046_v20 = vadd.f32 %v16980_v11, %v18890_v37  ;;  %v10739_v11 = vld [vmem:[%s18201_s0 + $0xa9] sm:$0xff] }
 0x91c   :  { %v8536_v22 = vadd.f32 %v10735_v56, %v8472_v31  ;;  %v10736_v31 = vld [vmem:[%s18201_s0 + $0x81] sm:$0xff] }
 0x91d   :  { %v8163_v0 = vpop.f32.mrf.mxu1 }
 0x91e   :  { %8600 = vst.msk [vmem:[#allocation3 + $0x40] sm:$0xff] %vm260_vm0, %v8536_v22  ;;  %v8337_v42 = vadd.f32 %v8163_v0, %v8043_v14  ;;  %v5261_v0 = vld [vmem:[#allocation2 + $0x468] sm:$0xff] }
 0x920   :  { %v8405_v2 = vmul.f32 %v17380_v15, %v8337_v42  ;;  %9979 = vmatmul.msk.f32.gmra.mxu1 %vm260_vm0, %v18884_v52  ;;  %v17575_v42 = vpop.f32.mrf.mxu0 }
 0x921   :  { %9943 = vmatmul.msk.f32.gmra.mxu0 %vm260_vm0, %v17077_v30 }
 0x922   :  { %v8473_v54 = vadd.f32 %v17385_v19, %v8405_v2  ;;  %v18887_v2 = vld [vmem:[#allocation69_spill] sm:$0xff] }
 0x924   :  { %v8537_v56 = vadd.f32 %v10736_v31, %v8473_v54  ;;  %v10737_v54 = vld [vmem:[%s18201_s0 + $0x91] sm:$0xff] }
 0x925   :  { %v8166_v22 = vpop.f32.mrf.mxu1 }
 0x926   :  { %8601 = vst.msk [vmem:[#allocation3 + $0x48] sm:$0xff] %vm260_vm0, %v8537_v56  ;;  %v8338_v14 = vadd.f32 %v8166_v22, %v8044_v53  ;;  %v5262_v22 = vld [vmem:[#allocation2 + $0x470] sm:$0xff] }
 0x928   :  { %v8406_v52 = vmul.f32 %v17380_v15, %v8338_v14  ;;  %9980 = vmatmul.msk.f32.gmra.mxu1 %vm260_vm0, %v18887_v2  ;;  %v18889_v2 = vld [vmem:[#allocation71_spill] sm:$0xff] }
 0x929   :  { %9944 = vmatmul.msk.f32.gmra.mxu0 %vm260_vm0, %v5261_v0 }
 0x92a   :  { %v8474_v30 = vadd.f32 %v17385_v19, %v8406_v52  ;;  %v17591_v52 = vpop.f32.mrf.mxu0 }
 0x92c   :  { %v8538_v53 = vadd.f32 %v10737_v54, %v8474_v30  ;;  %v10738_v30 = vld [vmem:[%s18201_s0 + $0x99] sm:$0xff] }
 0x92d   :  { %v8169_v31 = vpop.f32.mrf.mxu1 }
 0x92e   :  { %8602 = vst.msk [vmem:[#allocation3 + $0x50] sm:$0xff] %vm260_vm0, %v8538_v53  ;;  %v8339_v56 = vadd.f32 %v8169_v31, %v8045_v58 }
 0x930   :  { %v8407_v14 = vmul.f32 %v17380_v15, %v8339_v56  ;;  %9981 = vmatmul.msk.f32.gmra.mxu1 %vm260_vm0, %v18889_v2  ;;  %v18891_v56 = vld [vmem:[#allocation159_spill] sm:$0xff] }
 0x931   :  { %9945 = vmatmul.msk.f32.gmra.mxu0 %vm260_vm0, %v5262_v22  ;;  %v18892_v22 = vld [vmem:[#allocation158_spill] sm:$0xff] }
 0x932   :  { %v8475_v0 = vadd.f32 %v17385_v19, %v8407_v14  ;;  %v8047_v2 = vadd.f32 %v16998_v32, %v18892_v22  ;;  %v10740_v32 = vld [vmem:[%s18201_s0 + $0xb1] sm:$0xff]  ;;  %v5297_v22 = vld [vmem:[#allocation2 + $0x229] sm:$0xff] }
 0x934   :  { %v8539_v58 = vadd.f32 %v10738_v30, %v8475_v0 }
 0x935   :  { %v8172_v54 = vpop.f32.mrf.mxu1 }
 0x936   :  { %8603 = vst.msk [vmem:[#allocation3 + $0x58] sm:$0xff] %vm260_vm0, %v8539_v58  ;;  %v8340_v53 = vadd.f32 %v8172_v54, %v8046_v20  ;;  %v18893_v58 = vld [vmem:[#allocation160_spill] sm:$0xff] }
 0x938   :  { %v8408_v31 = vmul.f32 %v17380_v15, %v8340_v53  ;;  %9982 = vmatmul.msk.f32.gmra.mxu1 %vm260_vm0, %v18891_v56  ;;  %v18894_v53 = vld [vmem:[#allocation72_spill] sm:$0xff] }
 0x93a   :  { %v8476_v14 = vadd.f32 %v17385_v19, %v8408_v31  ;;  %v8048_v31 = vadd.f32 %v17021_v60, %v18894_v53  ;;  %v10741_v60 = vld [vmem:[%s18201_s0 + $0xc1] sm:$0xff] }
 0x93c   :  { %v8540_v37 = vadd.f32 %v10739_v11, %v8476_v14 }
 0x93d   :  { %v8175_v0 = vpop.f32.mrf.mxu1 }
 0x93e   :  { %8604 = vst.msk [vmem:[#allocation3 + $0x60] sm:$0xff] %vm260_vm0, %v8540_v37  ;;  %v8341_v30 = vadd.f32 %v8175_v0, %v8047_v2  ;;  %v18895_v0 = vld [vmem:[#allocation74_spill] sm:$0xff] }
 0x940   :  { %v8409_v20 = vmul.f32 %v17380_v15, %v8341_v30  ;;  %9983 = vmatmul.msk.f32.gmra.mxu1 %vm260_vm0, %v18893_v58  ;;  %v8049_v30 = vadd.f32 %v17045_v57, %v18895_v0  ;;  %v10742_v57 = vld [vmem:[%s18201_s0 + $0xc9] sm:$0xff]  ;;  %v18897_v0 = vld [vmem:[#allocation50_spill] sm:$0xff] }
 0x942   :  { %v8477_v54 = vadd.f32 %v17385_v19, %v8409_v20 }
 0x944   :  { %v8541_v56 = vadd.f32 %v10740_v32, %v8477_v54  ;;  %v5298_v54 = vld [vmem:[#allocation2 + $0x231] sm:$0xff] }
 0x945   :  { %v8178_v14 = vpop.f32.mrf.mxu1 }
 0x946   :  { %8605 = vst.msk [vmem:[#allocation3 + $0x68] sm:$0xff] %vm260_vm0, %v8541_v56  ;;  %v8342_v2 = vadd.f32 %v8178_v14, %v8048_v31  ;;  %v18896_v56 = vld [vmem:[#allocation34_spill] sm:$0xff] }
 0x947   :  { %v8050_v14 = vadd.f32 %v17073_v38, %v18896_v56  ;;  %v10743_v38 = vld [vmem:[%s18201_s0 + $0xd9] sm:$0xff] }
 0x948   :  { %v8410_v11 = vmul.f32 %v17380_v15, %v8342_v2  ;;  %9984 = vmatmul.msk.f32.gmra.mxu1 %vm260_vm0, %v5297_v22 }
 0x94a   :  { %v8478_v37 = vadd.f32 %v17385_v19, %v8410_v11 }
 0x94c   :  { %v8542_v20 = vadd.f32 %v10741_v60, %v8478_v37  ;;  %v18898_v60 = vld [vmem:[#allocation36_spill] sm:$0xff] }
 0x94d   :  { %v8181_v58 = vpop.f32.mrf.mxu1 }
 0x94e   :  { %8606 = vst.msk [vmem:[#allocation3 + $0x70] sm:$0xff] %vm260_vm0, %v8542_v20  ;;  %v8343_v53 = vadd.f32 %v8181_v58, %v8049_v30  ;;  %v8051_v20 = vadd.f32 %v17095_v26, %v18898_v60  ;;  %v10744_v26 = vld [vmem:[%s18201_s0 + $0xe1] sm:$0xff] }
 0x950   :  { %v8411_v31 = vmul.f32 %v17380_v15, %v8343_v53  ;;  %9985 = vmatmul.msk.f32.gmra.mxu1 %vm260_vm0, %v5298_v54 }
 0x952   :  { %v8479_v32 = vadd.f32 %v17385_v19, %v8411_v31 }
 0x954   :  { %v8543_v22 = vadd.f32 %v10742_v57, %v8479_v32  ;;  %v18899_v32 = vld [vmem:[#allocation52_spill] sm:$0xff] }
 0x955   :  { %v8184_v2 = vpop.f32.mrf.mxu1 }
 0x956   :  { %8607 = vst.msk [vmem:[#allocation3 + $0x78] sm:$0xff] %vm260_vm0, %v8543_v22  ;;  %v8344_v11 = vadd.f32 %v8184_v2, %v8050_v14  ;;  %v18900_v14 = vld [vmem:[#allocation161_spill] sm:$0xff] }
 0x957   :  { %v8052_v57 = vadd.f32 %v17115_v59, %v18900_v14  ;;  %v10745_v59 = vld [vmem:[%s18201_s0 + $0xf1] sm:$0xff] }
 0x958   :  { %v8412_v37 = vmul.f32 %v17380_v15, %v8344_v11  ;;  %9986 = vmatmul.msk.f32.gmra.mxu1 %vm260_vm0, %v18897_v0 }
 0x95a   :  { %v8480_v30 = vadd.f32 %v17385_v19, %v8412_v37 }
 0x95c   :  { %v8544_v58 = vadd.f32 %v10743_v38, %v8480_v30  ;;  %v18901_v30 = vld [vmem:[#allocation162_spill] sm:$0xff] }
 0x95d   :  { %v8187_v54 = vpop.f32.mrf.mxu1  ;;  %v8053_v60 = vadd.f32 %v17137_v21, %v18901_v30  ;;  %v10746_v21 = vld [vmem:[%s18201_s0 + $0xf9] sm:$0xff] }
 0x95e   :  { %8608 = vst.msk [vmem:[#allocation3 + $0x80] sm:$0xff] %vm260_vm0, %v8544_v58  ;;  %v8345_v53 = vadd.f32 %v8187_v54, %v8051_v20 }
 0x960   :  { %v8413_v31 = vmul.f32 %v17380_v15, %v8345_v53  ;;  %9987 = vmatmul.msk.f32.gmra.mxu1 %vm260_vm0, %v18899_v32  ;;  %v18902_v53 = vld [vmem:[#allocation41_spill] sm:$0xff] }
 0x962   :  { %v8481_v56 = vadd.f32 %v17385_v19, %v8413_v31  ;;  %v18903_v31 = vld [vmem:[#allocation13_spill] sm:$0xff] }
 0x963   :  { %v8054_v32 = vadd.f32 %v17163_v62, %v18903_v31  ;;  %v10747_v62 = vld [vmem:[%s18201_s0 + $0x109] sm:$0xff] }
 0x964   :  { %v8545_v22 = vadd.f32 %v10744_v26, %v8481_v56 }
 0x965   :  { %v8190_v2 = vpop.f32.mrf.mxu1 }
 0x966   :  { %8609 = vst.msk [vmem:[#allocation3 + $0x88] sm:$0xff] %vm260_vm0, %v8545_v22  ;;  %v8346_v11 = vadd.f32 %v8190_v2, %v8052_v57  ;;  %v18904_v22 = vld [vmem:[#allocation44_spill] sm:$0xff] }
 0x968   :  { %v8414_v37 = vmul.f32 %v17380_v15, %v8346_v11  ;;  %9988 = vmatmul.msk.f32.gmra.mxu1 %vm260_vm0, %v17049_v48  ;;  %v18905_v11 = vld [vmem:[#allocation163_spill] sm:$0xff] }
 0x96a   :  { %v8482_v0 = vadd.f32 %v17385_v19, %v8414_v37  ;;  %v8055_v37 = vadd.f32 %v17183_v24, %v18905_v11  ;;  %v10748_v24 = vld [vmem:[%s18201_s0 + $0x111] sm:$0xff] }
 0x96c   :  { %v8546_v20 = vadd.f32 %v10745_v59, %v8482_v0 }
 0x96d   :  { %v8193_v38 = vpop.f32.mrf.mxu1 }
 0x96e   :  { %8610 = vst.msk [vmem:[#allocation3 + $0x90] sm:$0xff] %vm260_vm0, %v8546_v20  ;;  %v8347_v58 = vadd.f32 %v8193_v38, %v8053_v60  ;;  %v18906_v38 = vld [vmem:[#allocation97_spill] sm:$0xff] }
 0x970   :  { %v8415_v54 = vmul.f32 %v17380_v15, %v8347_v58  ;;  %9989 = vmatmul.msk.f32.gmra.mxu1 %vm260_vm0, %v18902_v53  ;;  %v8056_v58 = vadd.f32 %v17201_v36, %v18906_v38  ;;  %v10749_v36 = vld [vmem:[%s18201_s0 + $0x121] sm:$0xff] }
 0x972   :  { %v8483_v48 = vadd.f32 %v17385_v19, %v8415_v54 }
 0x974   :  { %v8547_v56 = vadd.f32 %v10746_v21, %v8483_v48 }
 0x975   :  { %v8196_v14 = vpop.f32.mrf.mxu1 }
 0x976   :  { %8611 = vst.msk [vmem:[#allocation3 + $0x98] sm:$0xff] %vm260_vm0, %v8547_v56  ;;  %v8348_v57 = vadd.f32 %v8196_v14, %v8054_v32  ;;  %v18907_v32 = vld [vmem:[#allocation46_spill] sm:$0xff] }
 0x977   :  { %v8057_v21 = vadd.f32 %v17225_v3, %v18907_v32  ;;  %v10750_v3 = vld [vmem:[%s18201_s0 + $0x129] sm:$0xff] }
 0x978   :  { %v8416_v26 = vmul.f32 %v17380_v15, %v8348_v57  ;;  %9990 = vmatmul.msk.f32.gmra.mxu1 %vm260_vm0, %v18904_v22  ;;  %v18908_v22 = vld [vmem:[#allocation16_spill] sm:$0xff] }
 0x97a   :  { %v8484_v2 = vadd.f32 %v17385_v19, %v8416_v26 }
 0x97c   :  { %v8548_v0 = vadd.f32 %v10747_v62, %v8484_v2  ;;  %v8058_v2 = vadd.f32 %v17251_v12, %v18908_v22  ;;  %v10751_v12 = vld [vmem:[%s18201_s0 + $0x139] sm:$0xff] }
 0x97d   :  { %v8199_v30 = vpop.f32.mrf.mxu1 }
 0x97e   :  { %8612 = vst.msk [vmem:[#allocation3 + $0xa0] sm:$0xff] %vm260_vm0, %v8548_v0  ;;  %v8349_v60 = vadd.f32 %v8199_v30, %v8055_v37  ;;  %v8059_v30 = vadd.f32 %v17271_v61, %v17151_v50  ;;  %v10752_v50 = vld [vmem:[%s18201_s0 + $0x141] sm:$0xff] }
 0x980   :  { %v8417_v59 = vmul.f32 %v17380_v15, %v8349_v60  ;;  %9991 = vmatmul.msk.f32.gmra.mxu1 %vm260_vm0, %v17105_v35 }
 0x982   :  { %v8485_v20 = vadd.f32 %v17385_v19, %v8417_v59 }
 0x984   :  { %v8549_v54 = vadd.f32 %v10748_v24, %v8485_v20 }
 0x985   :  { %v8202_v53 = vpop.f32.mrf.mxu1 }
 0x986   :  { %8613 = vst.msk [vmem:[#allocation3 + $0xa8] sm:$0xff] %vm260_vm0, %v8549_v54  ;;  %v8350_v48 = vadd.f32 %v8202_v53, %v8056_v58  ;;  %v8060_v58 = vadd.f32 %v17289_v47, %v17169_v33  ;;  %v10753_v33 = vld [vmem:[%s18201_s0 + $0x151] sm:$0xff] }
 0x988   :  { %v8418_v31 = vmul.f32 %v17380_v15, %v8350_v48  ;;  %9992 = vmatmul.msk.f32.gmra.mxu1 %vm260_vm0, %v17123_v44  ;;  %v8061_v48 = vadd.f32 %v17313_v6, %v17187_v46  ;;  %v10754_v46 = vld [vmem:[%s18201_s0 + $0x159] sm:$0xff] }
 0x98a   :  { %v8486_v35 = vadd.f32 %v17385_v19, %v8418_v31 }
 0x98c   :  { %v8550_v56 = vadd.f32 %v10749_v36, %v8486_v35 }
 0x98d   :  { %v8205_v14 = vpop.f32.mrf.mxu1 }
 0x98e   :  { %8614 = vst.msk [vmem:[#allocation3 + $0xb0] sm:$0xff] %vm260_vm0, %v8550_v56  ;;  %v8351_v57 = vadd.f32 %v8205_v14, %v8057_v21  ;;  %v18909_v21 = vld [vmem:[#allocation106_spill] sm:$0xff] }
 0x98f   :  { %v8062_v36 = vadd.f32 %v17339_v40, %v18909_v21  ;;  %v10755_v40 = vld [vmem:[%s18201_s0 + $0x169] sm:$0xff]  ;;  %v17817_v21 = vpop.f32.mrf.mxu0 }
 0x990   :  { %v8419_v26 = vmul.f32 %v17380_v15, %v8351_v57  ;;  %9993 = vmatmul.msk.f32.gmra.mxu1 %vm260_vm0, %v17141_v34 }
 0x992   :  { %v8487_v44 = vadd.f32 %v17385_v19, %v8419_v26  ;;  %v18910_v26 = vld [vmem:[#allocation54_spill] sm:$0xff] }
 0x994   :  { %v8551_v11 = vadd.f32 %v10750_v3, %v8487_v44  ;;  %v8063_v44 = vadd.f32 %v17359_v7, %v18910_v26  ;;  %v10756_v7 = vld [vmem:[%s18201_s0 + $0x171] sm:$0xff] }
 0x995   :  { %v8208_v37 = vpop.f32.mrf.mxu1 }
 0x996   :  { %8615 = vst.msk [vmem:[#allocation3 + $0xb8] sm:$0xff] %vm260_vm0, %v8551_v11  ;;  %v8352_v62 = vadd.f32 %v8208_v37, %v8058_v2  ;;  %v8064_v37 = vadd.f32 %v17387_v55, %v17239_v18  ;;  %v10757_v18 = vld [vmem:[%s18201_s0 + $0x181] sm:$0xff] }
 0x998   :  { %v8420_v0 = vmul.f32 %v17380_v15, %v8352_v62  ;;  %9994 = vmatmul.msk.f32.gmra.mxu1 %vm260_vm0, %v17157_v43 }
 0x99a   :  { %v8488_v34 = vadd.f32 %v17385_v19, %v8420_v0 }
 0x99c   :  { %v8552_v60 = vadd.f32 %v10751_v12, %v8488_v34  ;;  %v18911_v12 = vld [vmem:[#allocation55_spill] sm:$0xff] }
 0x99d   :  { %v8211_v59 = vpop.f32.mrf.mxu1 }
 0x99e   :  { %8616 = vst.msk [vmem:[#allocation3 + $0xc0] sm:$0xff] %vm260_vm0, %v8552_v60  ;;  %v8353_v20 = vadd.f32 %v8211_v59, %v8059_v30  ;;  %v8065_v60 = vadd.f32 %v17416_v41, %v18911_v12  ;;  %v10758_v41 = vld [vmem:[%s18201_s0 + $0x189] sm:$0xff] }
 0x9a0   :  { %v8421_v38 = vmul.f32 %v17380_v15, %v8353_v20  ;;  %9995 = vmatmul.msk.f32.gmra.mxu1 %vm260_vm0, %v17175_v13 }
 0x9a2   :  { %v8489_v43 = vadd.f32 %v17385_v19, %v8421_v38 }
 0x9a4   :  { %v8553_v61 = vadd.f32 %v10752_v50, %v8489_v43  ;;  %v18912_v43 = vld [vmem:[#allocation113_spill] sm:$0xff] }
 0x9a5   :  { %v8214_v24 = vpop.f32.mrf.mxu1 }
 0x9a6   :  { %8617 = vst.msk [vmem:[#allocation3 + $0xc8] sm:$0xff] %vm260_vm0, %v8553_v61  ;;  %v8354_v54 = vadd.f32 %v8214_v24, %v8060_v58  ;;  %v8066_v58 = vadd.f32 %v17445_v4, %v18912_v43  ;;  %v10759_v4 = vld [vmem:[%s18201_s0 + $0x1c9] sm:$0xff]  ;;  %v10763_v43 = vld [vmem:[%s18201_s0 + $0x1f9] sm:$0xff] }
 0x9a8   :  { %v8422_v53 = vmul.f32 %v17380_v15, %v8354_v54  ;;  %9996 = vmatmul.msk.f32.gmra.mxu1 %vm260_vm0, %v17193_v17 }
 0x9aa   :  { %v8490_v13 = vadd.f32 %v17385_v19, %v8422_v53  ;;  %v18913_v53 = vld [vmem:[#allocation116_spill] sm:$0xff] }
 0x9ac   :  { %v8554_v47 = vadd.f32 %v10753_v33, %v8490_v13  ;;  %v18914_v13 = vld [vmem:[#allocation37_spill] sm:$0xff] }
 0x9ad   :  { %v8217_v31 = vpop.f32.mrf.mxu1 }
 0x9ae   :  { %8618 = vst.msk [vmem:[#allocation3 + $0xd0] sm:$0xff] %vm260_vm0, %v8554_v47  ;;  %v8355_v35 = vadd.f32 %v8217_v31, %v8061_v48  ;;  %v8067_v48 = vadd.f32 %v17467_v1, %v18914_v13  ;;  %v17808_v47 = vpop.f32.mrf.mxu2 }
 0x9b0   :  { %v8423_v32 = vmul.f32 %v17380_v15, %v8355_v35  ;;  %9997 = vmatmul.msk.f32.gmra.mxu1 %vm260_vm0, %v17211_v39 }
 0x9b2   :  { %v8491_v17 = vadd.f32 %v17385_v19, %v8423_v32 }
 0x9b4   :  { %v8555_v6 = vadd.f32 %v10754_v46, %v8491_v17  ;;  %v17814_v17 = vpop.f32.mrf.mxu3 }
 0x9b5   :  { %v8220_v56 = vpop.f32.mrf.mxu1 }
 0x9b6   :  { %8619 = vst.msk [vmem:[#allocation3 + $0xd8] sm:$0xff] %vm260_vm0, %v8555_v6  ;;  %v8356_v14 = vadd.f32 %v8220_v56, %v8062_v36  ;;  %v18915_v36 = vld [vmem:[#allocation26_spill] sm:$0xff]  ;;  %v10760_v6 = vld [vmem:[%s18201_s0 + $0x1d1] sm:$0xff] }
 0x9b7   :  { %v8068_v46 = vadd.f32 %v17487_v29, %v18915_v36  ;;  %v18924_v36 = vld [vmem:[#allocation76_spill] sm:$0xff] }
 0x9b8   :  { %v8424_v57 = vmul.f32 %v17380_v15, %v8356_v14  ;;  %9998 = vmatmul.msk.f32.gmra.mxu1 %vm260_vm0, %v17229_v63 }
 0x9ba   :  { %v8492_v39 = vadd.f32 %v17385_v19, %v8424_v57 }
 0x9bc   :  { %v8556_v22 = vadd.f32 %v10755_v40, %v8492_v39  ;;  %v17825_v39 = vpop.f32.mrf.mxu2  ;;  %v17833_v40 = vpop.f32.mrf.mxu3 }
 0x9bd   :  { %v8223_v2 = vpop.f32.mrf.mxu1 }
 0x9be   :  { %8620 = vst.msk [vmem:[#allocation3 + $0xe0] sm:$0xff] %vm260_vm0, %v8556_v22  ;;  %v8357_v3 = vadd.f32 %v8223_v2, %v8063_v44  ;;  %v18916_v44 = vld [vmem:[#allocation24_spill] sm:$0xff]  ;;  %v10761_v22 = vld [vmem:[%s18201_s0 + $0x1e1] sm:$0xff] }
 0x9bf   :  { %v8069_v29 = vadd.f32 %v17509_v25, %v18916_v44 }
 0x9c0   :  { %v8425_v11 = vmul.f32 %v17380_v15, %v8357_v3  ;;  %9999 = vmatmul.msk.f32.gmra.mxu1 %vm260_vm0, %v17245_v51  ;;  %v17838_v3 = vpop.f32.mrf.mxu0 }
 0x9c2   :  { %v8493_v63 = vadd.f32 %v17385_v19, %v8425_v11 }
 0x9c4   :  { %v8557_v62 = vadd.f32 %v10756_v7, %v8493_v63  ;;  %v17844_v7 = vpop.f32.mrf.mxu2  ;;  %v17852_v12 = vpop.f32.mrf.mxu3 }
 0x9c5   :  { %v8226_v0 = vpop.f32.mrf.mxu1 }
 0x9c6   :  { %8621 = vst.msk [vmem:[#allocation3 + $0xe8] sm:$0xff] %vm260_vm0, %v8557_v62  ;;  %v8358_v34 = vadd.f32 %v8226_v0, %v8064_v37  ;;  %v18917_v37 = vld [vmem:[#allocation40_spill] sm:$0xff]  ;;  %v18918_v62 = vld [vmem:[#allocation122_spill] sm:$0xff] }
 0x9c7   :  { %v8070_v0 = vadd.f32 %v17538_v45, %v18918_v62 }
 0x9c8   :  { %v8426_v30 = vmul.f32 %v17380_v15, %v8358_v34  ;;  %10000 = vmatmul.msk.f32.gmra.mxu1 %vm260_vm0, %v17263_v49  ;;  %v10762_v34 = vld [vmem:[%s18201_s0 + $0x1e9] sm:$0xff] }
 0x9ca   :  { %v8494_v51 = vadd.f32 %v17385_v19, %v8426_v30 }
 0x9cc   :  { %v8558_v55 = vadd.f32 %v10757_v18, %v8494_v51  ;;  %v17855_v18 = vpop.f32.mrf.mxu0 }
 0x9cd   :  { %v8229_v59 = vpop.f32.mrf.mxu1 }
 0x9ce   :  { %8622 = vst.msk [vmem:[#allocation3 + $0xf0] sm:$0xff] %vm260_vm0, %v8558_v55  ;;  %v8359_v20 = vadd.f32 %v8229_v59, %v8065_v60  ;;  %v18919_v59 = vld [vmem:[#allocation29_spill] sm:$0xff] }
 0x9d0   :  { %v8427_v38 = vmul.f32 %v17380_v15, %v8359_v20  ;;  %10001 = vmatmul.msk.f32.gmra.mxu1 %vm260_vm0, %v17281_v23  ;;  %v17861_v20 = vpop.f32.mrf.mxu2 }
 0x9d2   :  { %v8495_v49 = vadd.f32 %v17385_v19, %v8427_v38  ;;  %v18920_v38 = vld [vmem:[#allocation125_spill] sm:$0xff] }
 0x9d4   :  { %v8559_v50 = vadd.f32 %v10758_v41, %v8495_v49  ;;  %v8071_v49 = vadd.f32 %v17560_v27, %v18920_v38 }
 0x9d5   :  { %v8232_v61 = vpop.f32.mrf.mxu1 }
 0x9d6   :  { %8623 = vst.msk [vmem:[#allocation3 + $0xf8] sm:$0xff] %vm260_vm0, %v8559_v50  ;;  %v8360_v24 = vadd.f32 %v8232_v61, %v8066_v58  ;;  %v17869_v61 = vpop.f32.mrf.mxu3 }
 0x9d8   :  { %v8428_v54 = vmul.f32 %v17380_v15, %v8360_v24  ;;  %10002 = vmatmul.msk.f32.gmra.mxu1 %vm260_vm0, %v18913_v53  ;;  %v17874_v53 = vpop.f32.mrf.mxu0 }
 0x9da   :  { %v8496_v23 = vadd.f32 %v17385_v19, %v8428_v54  ;;  %v18921_v54 = vld [vmem:[#allocation128_spill] sm:$0xff] }
 0x9dc   :  { %v8560_v33 = vadd.f32 %v10759_v4, %v8496_v23  ;;  %v18922_v23 = vld [vmem:[#allocation47_spill] sm:$0xff] }
 0x9dd   :  { %v8235_v31 = vpop.f32.mrf.mxu1  ;;  %v8072_v13 = vadd.f32 %v17575_v42, %v18922_v23 }
 0x9de   :  { %8624 = vst.msk [vmem:[#allocation3 + $0x100] sm:$0xff] %vm260_vm0, %v8560_v33  ;;  %v8361_v35 = vadd.f32 %v8235_v31, %v8067_v48  ;;  %v10764_v48 = vld [vmem:[%s18201_s0 + $0x201] sm:$0xff]  ;;  %v17882_v33 = vpop.f32.mrf.mxu2  ;;  %v17890_v42 = vpop.f32.mrf.mxu3 }
 0x9e0   :  { %v8429_v32 = vmul.f32 %v17380_v15, %v8361_v35  ;;  %10003 = vmatmul.msk.f32.gmra.mxu1 %vm260_vm0, %v17317_v5 }
 0x9e2   :  { %v8497_v1 = vadd.f32 %v17385_v19, %v8429_v32 }
 0x9e4   :  { %v8561_v56 = vadd.f32 %v10760_v6, %v8497_v1  ;;  %v18923_v1 = vld [vmem:[#allocation28_spill] sm:$0xff] }
 0x9e5   :  { %v8238_v14 = vpop.f32.mrf.mxu1 }
 0x9e6   :  { %8625 = vst.msk [vmem:[#allocation3 + $0x108] sm:$0xff] %vm260_vm0, %v8561_v56  ;;  %v8362_v57 = vadd.f32 %v8238_v14, %v8068_v46  ;;  %v6898_v46 = vadd.f32 %v18924_v36, %v18923_v1  ;;  %v17893_v56 = vpop.f32.mrf.mxu0  ;;  %v18925_v14 = vld [vmem:[#allocation73_spill] sm:$0xff] }
 0x9e7   :  { %v18935_v1 = vld [vmem:[#allocation57_spill] sm:$0xff] }
 0x9e8   :  { %v8430_v5 = vmul.f32 %v17380_v15, %v8362_v57  ;;  %10004 = vmatmul.msk.f32.gmra.mxu1 %vm260_vm0, %v17333_v10  ;;  %v7192_v57 = vadd.f32 %v18925_v14, %v6898_v46 }
 0x9ea   :  { %v8498_v26 = vadd.f32 %v17385_v19, %v8430_v5  ;;  %v8073_v5 = vadd.f32 %v17591_v52, %v17414_v28  ;;  %v18927_v28 = vld [vmem:[#allocation78_spill] sm:$0xff] }
 0x9ec   :  { %v8562_v2 = vadd.f32 %v10761_v22, %v8498_v26  ;;  %v10765_v26 = vld [vmem:[%s18201_s0 + $0x211] sm:$0xff] }
 0x9ed   :  { %v8241_v11 = vpop.f32.mrf.mxu1 }
 0x9ee   :  { %8626 = vst.msk [vmem:[#allocation3 + $0x110] sm:$0xff] %vm260_vm0, %v8562_v2  ;;  %v8363_v63 = vadd.f32 %v8241_v11, %v8069_v29  ;;  %v7486_v29 = vadd.f32 %v17808_v47, %v7192_v57  ;;  %v17903_v2 = vpop.f32.mrf.mxu2 }
 0x9f0   :  { %v8431_v10 = vmul.f32 %v17380_v15, %v8363_v63  ;;  %10005 = vmatmul.msk.f32.gmra.mxu1 %vm260_vm0, %v18917_v37  ;;  %v18926_v63 = vld [vmem:[#allocation38_spill] sm:$0xff] }
 0x9f1   :  { %v6899_v52 = vadd.f32 %v18927_v28, %v18926_v63 }
 0x9f2   :  { %v8499_v25 = vadd.f32 %v17385_v19, %v8431_v10  ;;  %v7780_v10 = vadd.f32 %v17814_v17, %v7486_v29 }
 0x9f4   :  { %v8563_v30 = vadd.f32 %v10762_v34, %v8499_v25  ;;  %v18928_v25 = vld [vmem:[#allocation75_spill] sm:$0xff]  ;;  %v8074_v47 = vadd.f32 %v17817_v21, %v7780_v10  ;;  %v10766_v34 = vld [vmem:[%s18201_s0 + $0x219] sm:$0xff] }
 0x9f5   :  { %v8244_v51 = vpop.f32.mrf.mxu1  ;;  %v7193_v62 = vadd.f32 %v18928_v25, %v6899_v52 }
 0x9f6   :  { %8627 = vst.msk [vmem:[#allocation3 + $0x118] sm:$0xff] %vm260_vm0, %v8563_v30  ;;  %v8364_v60 = vadd.f32 %v8244_v51, %v8070_v0  ;;  %v17914_v0 = vpop.f32.mrf.mxu3  ;;  %v17919_v51 = vpop.f32.mrf.mxu0 }
 0x9f7   :  { %v17926_v21 = vpop.f32.mrf.mxu2 }
 0x9f8   :  { %v8432_v55 = vmul.f32 %v17380_v15, %v8364_v60  ;;  %10006 = vmatmul.msk.f32.gmra.mxu1 %vm260_vm0, %v18919_v59  ;;  %v7487_v60 = vadd.f32 %v17825_v39, %v7193_v62  ;;  %v18929_v59 = vld [vmem:[#allocation77_spill] sm:$0xff] }
 0x9fa   :  { %v8500_v45 = vadd.f32 %v17385_v19, %v8432_v55 }
 0x9fc   :  { %v8564_v58 = vadd.f32 %v10763_v43, %v8500_v45  ;;  %v18930_v45 = vld [vmem:[#allocation81_spill] sm:$0xff] }
 0x9fd   :  { %v8247_v41 = vpop.f32.mrf.mxu1  ;;  %v6900_v38 = vadd.f32 %v18930_v45, %v18929_v59 }
 0x9fe   :  { %8628 = vst.msk [vmem:[#allocation3 + $0x120] sm:$0xff] %vm260_vm0, %v8564_v58  ;;  %v8365_v50 = vadd.f32 %v8247_v41, %v8071_v49  ;;  %v7781_v49 = vadd.f32 %v17833_v40, %v7487_v60  ;;  %v18931_v58 = vld [vmem:[#allocation11_spill] sm:$0xff]  ;;  %v17941_v40 = vpop.f32.mrf.mxu0  ;;  %v18941_v60 = vld [vmem:[#allocation85_spill] sm:$0xff] }
 0x9ff   :  { %v7194_v41 = vadd.f32 %v18931_v58, %v6900_v38  ;;  %v10770_v58 = vld [vmem:[%s18201_s0 + $0x249] sm:$0xff] }
 0xa00   :  { %v8433_v24 = vmul.f32 %v17380_v15, %v8365_v50  ;;  %10007 = vmatmul.msk.f32.gmra.mxu1 %vm260_vm0, %v18921_v54  ;;  %v8075_v39 = vadd.f32 %v17838_v3, %v7781_v49  ;;  %v10767_v50 = vld [vmem:[%s18201_s0 + $0x229] sm:$0xff] }
 0xa01   :  { %v18933_v3 = vld [vmem:[#allocation79_spill] sm:$0xff] }
 0xa02   :  { %v8501_v27 = vadd.f32 %v17385_v19, %v8433_v24 }
 0xa04   :  { %v8565_v4 = vadd.f32 %v10764_v48, %v8501_v27  ;;  %v17938_v27 = vpop.f32.mrf.mxu3  ;;  %v18932_v48 = vld [vmem:[#allocation45_spill] sm:$0xff] }
 0xa05   :  { %v8250_v31 = vpop.f32.mrf.mxu1 }
 0xa06   :  { %8629 = vst.msk [vmem:[#allocation3 + $0x128] sm:$0xff] %vm260_vm0, %v8565_v4  ;;  %v8366_v35 = vadd.f32 %v8250_v31, %v8072_v13  ;;  %v18934_v4 = vld [vmem:[#allocation84_spill] sm:$0xff]  ;;  %v17964_v29 = vpop.f32.mrf.mxu0 }
 0xa07   :  { %v6901_v31 = vadd.f32 %v18934_v4, %v18933_v3  ;;  %v18947_v4 = vld [vmem:[#allocation39_spill] sm:$0xff] }
 0xa08   :  { %v8434_v32 = vmul.f32 %v17380_v15, %v8366_v35  ;;  %10008 = vmatmul.msk.f32.gmra.mxu1 %vm260_vm0, %v17421_v9 }
 0xa09   :  { %v7195_v36 = vadd.f32 %v18935_v1, %v6901_v31 }
 0xa0a   :  { %v8502_v6 = vadd.f32 %v17385_v19, %v8434_v32 }
 0xa0c   :  { %v8566_v44 = vadd.f32 %v10765_v26, %v8502_v6  ;;  %v10768_v6 = vld [vmem:[%s18201_s0 + $0x231] sm:$0xff] }
 0xa0d   :  { %v8253_v9 = vpop.f32.mrf.mxu1 }
 0xa0e   :  { %8630 = vst.msk [vmem:[#allocation3 + $0x130] sm:$0xff] %vm260_vm0, %v8566_v44  ;;  %v8367_v22 = vadd.f32 %v8253_v9, %v8073_v5  ;;  %v7489_v5 = vadd.f32 %v17861_v20, %v7195_v36  ;;  %v18936_v9 = vld [vmem:[#allocation6_spill] sm:$0xff]  ;;  %v18939_v20 = vld [vmem:[#allocation20_spill] sm:$0xff]  ;;  %v17988_v38 = vpop.f32.mrf.mxu0 }
 0xa10   :  { %v8435_v11 = vmul.f32 %v17380_v15, %v8367_v22  ;;  %10009 = vmatmul.msk.f32.gmra.mxu1 %vm260_vm0, %v17438_v8  ;;  %v18938_v22 = vld [vmem:[#allocation87_spill] sm:$0xff]  ;;  %v7783_v63 = vadd.f32 %v17869_v61, %v7489_v5 }
 0xa12   :  { %v8503_v37 = vadd.f32 %v17385_v19, %v8435_v11  ;;  %v8077_v10 = vadd.f32 %v17874_v53, %v7783_v63  ;;  %v18942_v53 = vld [vmem:[#allocation91_spill] sm:$0xff] }
 0xa13   :  { %v10772_v63 = vld [vmem:[%s18201_s0 + $0x261] sm:$0xff] }
 0xa14   :  { %v8567_v30 = vadd.f32 %v10766_v34, %v8503_v37  ;;  %v10769_v37 = vld [vmem:[%s18201_s0 + $0x241] sm:$0xff] }
 0xa15   :  { %v8256_v8 = vpop.f32.mrf.mxu1 }
 0xa16   :  { %8631 = vst.msk [vmem:[#allocation3 + $0x138] sm:$0xff] %vm260_vm0, %v8567_v30  ;;  %v8368_v17 = vadd.f32 %v8256_v8, %v8074_v47  ;;  %v18940_v8 = vld [vmem:[#allocation131_spill] sm:$0xff]  ;;  %v7989_v36 = vpop.f32.mrf.mxu0 }
 0xa18   :  { %v8436_v55 = vmul.f32 %v17380_v15, %v8368_v17  ;;  %10010 = vmatmul.msk.f32.gmra.mxu1 %vm260_vm0, %v17457_v16  ;;  %v7488_v16 = vadd.f32 %v17844_v7, %v7194_v41  ;;  %v17950_v7 = vpop.f32.mrf.mxu2  ;;  %v6903_v17 = vadd.f32 %v18942_v53, %v18941_v60  ;;  %v18954_v53 = vld [vmem:[#allocation25_spill] sm:$0xff] }
 0xa1a   :  { %v8504_v43 = vadd.f32 %v17385_v19, %v8436_v55  ;;  %v7782_v35 = vadd.f32 %v17852_v12, %v7488_v16  ;;  %v17959_v12 = vpop.f32.mrf.mxu3  ;;  %v18944_v16 = vld [vmem:[#allocation60_spill] sm:$0xff] }
 0xa1c   :  { %v8568_v24 = vadd.f32 %v10767_v50, %v8504_v43  ;;  %v8076_v46 = vadd.f32 %v17855_v18, %v7782_v35  ;;  %v18937_v18 = vld [vmem:[#allocation82_spill] sm:$0xff] }
 0xa1d   :  { %v8259_v54 = vpop.f32.mrf.mxu1  ;;  %v6902_v11 = vadd.f32 %v18938_v22, %v18937_v18  ;;  %v18951_v22 = vld [vmem:[#allocation14_spill] sm:$0xff] }
 0xa1e   :  { %8632 = vst.msk [vmem:[#allocation3 + $0x140] sm:$0xff] %vm260_vm0, %v8568_v24  ;;  %v8369_v23 = vadd.f32 %v8259_v54, %v8075_v39 }
 0xa1f   :  { %v7196_v52 = vadd.f32 %v18939_v20, %v6902_v11 }
 0xa20   :  { %v8437_v13 = vmul.f32 %v17380_v15, %v8369_v23  ;;  %10011 = vmatmul.msk.f32.gmra.mxu1 %vm260_vm0, %v18932_v48  ;;  %v17975_v62 = vpop.f32.mrf.mxu2  ;;  %v18945_v23 = vld [vmem:[#allocation89_spill] sm:$0xff] }
 0xa21   :  { %v7490_v34 = vadd.f32 %v17882_v33, %v7196_v52  ;;  %v18943_v33 = vld [vmem:[#allocation22_spill] sm:$0xff]  ;;  %v5333_v52 = vld [vmem:[#allocation2 + $0x469] sm:$0xff] }
 0xa22   :  { %v8505_v32 = vadd.f32 %v17385_v19, %v8437_v13  ;;  %v17985_v59 = vpop.f32.mrf.mxu3  ;;  %v7197_v49 = vadd.f32 %v18943_v33, %v6903_v17  ;;  %v18946_v13 = vld [vmem:[#allocation93_spill] sm:$0xff] }
 0xa23   :  { %v7784_v55 = vadd.f32 %v17890_v42, %v7490_v34  ;;  %v18952_v34 = vld [vmem:[#allocation94_spill] sm:$0xff] }
 0xa24   :  { %v8569_v14 = vadd.f32 %v10768_v6, %v8505_v32  ;;  %v7491_v50 = vadd.f32 %v17903_v2, %v7197_v49  ;;  %v10771_v32 = vld [vmem:[%s18201_s0 + $0x259] sm:$0xff]  ;;  %v5334_v49 = vld [vmem:[#allocation2 + $0x471] sm:$0xff] }
 0xa25   :  { %v8262_v57 = vpop.f32.mrf.mxu1  ;;  %v8078_v43 = vadd.f32 %v17893_v56, %v7784_v55  ;;  %v6904_v56 = vadd.f32 %v18946_v13, %v18945_v23  ;;  %v10773_v55 = vld [vmem:[%s18201_s0 + $0x271] sm:$0xff]  ;;  %v18957_v23 = vld [vmem:[#allocation27_spill] sm:$0xff] }
 0xa26   :  { %8633 = vst.msk [vmem:[#allocation3 + $0x148] sm:$0xff] %vm260_vm0, %v8569_v14  ;;  %v8370_v26 = vadd.f32 %v8262_v57, %v8076_v46  ;;  %v7785_v48 = vadd.f32 %v17914_v0, %v7491_v50  ;;  %v18948_v57 = vld [vmem:[#allocation8_spill] sm:$0xff] }
 0xa27   :  { %v7198_v31 = vadd.f32 %v18947_v4, %v6904_v56  ;;  %v18955_v50 = vld [vmem:[#allocation96_spill] sm:$0xff]  ;;  %v10774_v56 = vld [vmem:[%s18201_s0 + $0x279] sm:$0xff] }
 0xa28   :  { %v8438_v44 = vmul.f32 %v17380_v15, %v8370_v26  ;;  %10012 = vmatmul.msk.f32.gmra.mxu1 %vm260_vm0, %v18936_v9  ;;  %v7401_v24 = vpop.f32.mrf.mxu2  ;;  %v8079_v2 = vadd.f32 %v17919_v51, %v7785_v48  ;;  %v18949_v51 = vld [vmem:[#allocation92_spill] sm:$0xff]  ;;  %v18950_v26 = vld [vmem:[#allocation95_spill] sm:$0xff] }
 0xa29   :  { %v7492_v6 = vadd.f32 %v17926_v21, %v7198_v31 }
 0xa2a   :  { %v8506_v28 = vadd.f32 %v17385_v19, %v8438_v44  ;;  %v7695_v35 = vpop.f32.mrf.mxu3  ;;  %v6905_v44 = vadd.f32 %v18950_v26, %v18949_v51  ;;  %v10777_v26 = vld [vmem:[%s18201_s0 + $0x289] sm:$0xff] }
 0xa2b   :  { %v7786_v9 = vadd.f32 %v17938_v27, %v7492_v6  ;;  %v7992_v27 = vpop.f32.mrf.mxu0  ;;  %v18061_v6 = vld [vmem:[%s18207_s6] ss:$0 sm:$0xff]  ;;  %s8660_s6 = sshll.u32 %s10821_s26, 4  ;;  %s8661_s6 = int_to_ptr.vmem [resolvable:$true] %s8660_s6 }
 0xa2c   :  { %v8570_v25 = vadd.f32 %v10769_v37, %v8506_v28  ;;  %v7199_v11 = vadd.f32 %v18951_v22, %v6905_v44 }
 0xa2d   :  { %v8265_v47 = vpop.f32.mrf.mxu1  ;;  %v8080_v21 = vadd.f32 %v17941_v40, %v7786_v9  ;;  %v18953_v40 = vld [vmem:[#allocation98_spill] sm:$0xff] }
 0xa2e   :  { %8634 = vst.msk [vmem:[#allocation3 + $0x150] sm:$0xff] %vm260_vm0, %v8570_v25  ;;  %v8371_v30 = vadd.f32 %v8265_v47, %v8077_v10  ;;  %v7493_v10 = vadd.f32 %v17950_v7, %v7199_v11 }
 0xa30   :  { %v8439_v61 = vmul.f32 %v17380_v15, %v8371_v30  ;;  %10013 = vmatmul.msk.f32.gmra.mxu1 %vm260_vm0, %v18940_v8  ;;  %v7404_v5 = vpop.f32.mrf.mxu2  ;;  %v6906_v30 = vadd.f32 %v18953_v40, %v18952_v34 }
 0xa32   :  { %v8507_v45 = vadd.f32 %v17385_v19, %v8439_v61  ;;  %v7698_v37 = vpop.f32.mrf.mxu3  ;;  %v7787_v61 = vadd.f32 %v17959_v12, %v7493_v10  ;;  %v7200_v17 = vadd.f32 %v18954_v53, %v6906_v30 }
 0xa34   :  { %v8571_v41 = vadd.f32 %v10770_v58, %v8507_v45  ;;  %v8081_v7 = vadd.f32 %v17964_v29, %v7787_v61  ;;  %v18956_v29 = vld [vmem:[#allocation101_spill] sm:$0xff] }
 0xa35   :  { %v8268_v39 = vpop.f32.mrf.mxu1 }
 0xa36   :  { %8635 = vst.msk [vmem:[#allocation3 + $0x158] sm:$0xff] %vm260_vm0, %v8571_v41  ;;  %v8372_v42 = vadd.f32 %v8268_v39, %v8078_v43  ;;  %v7494_v43 = vadd.f32 %v17975_v62, %v7200_v17  ;;  %v7995_v39 = vpop.f32.mrf.mxu0  ;;  %v18964_v17 = vld [vmem:[#allocation105_spill] sm:$0xff] }
 0xa38   :  { %v8440_v54 = vmul.f32 %v17380_v15, %v8372_v42  ;;  %10014 = vmatmul.msk.f32.gmra.mxu1 %vm260_vm0, %v18944_v16  ;;  %v7407_v60 = vpop.f32.mrf.mxu2  ;;  %v6907_v42 = vadd.f32 %v18956_v29, %v18955_v50 }
 0xa3a   :  { %v8508_v3 = vadd.f32 %v17385_v19, %v8440_v54  ;;  %v7701_v12 = vpop.f32.mrf.mxu3  ;;  %v7788_v54 = vadd.f32 %v17985_v59, %v7494_v43  ;;  %v7201_v13 = vadd.f32 %v18957_v23, %v6907_v42  ;;  %v18053_v59 = vld [vmem:[%s18206_s5] ss:$0 sm:$0xff]  ;;  %v18968_v23 = vld [vmem:[#allocation111_spill] sm:$0xff] }
 0xa3c   :  { %v8572_v1 = vadd.f32 %v10771_v32, %v8508_v3  ;;  %v8082_v62 = vadd.f32 %v17988_v38, %v7788_v54  ;;  %v7495_v4 = vadd.f32 %v7401_v24, %v7201_v13  ;;  %v18959_v38 = vld [vmem:[#allocation104_spill] sm:$0xff] }
 0xa3d   :  { %v8271_v46 = vpop.f32.mrf.mxu1 }
 0xa3e   :  { %8636 = vst.msk [vmem:[#allocation3 + $0x160] sm:$0xff] %vm260_vm0, %v8572_v1  ;;  %v8373_v14 = vadd.f32 %v8271_v46, %v8079_v2  ;;  %v18958_v2 = vld [vmem:[#allocation99_spill] sm:$0xff]  ;;  %v7789_v1 = vadd.f32 %v7695_v35, %v7495_v4 }
 0xa3f   :  { %v6908_v32 = vadd.f32 %v18959_v38, %v18958_v2 }
 0xa40   :  { %v8441_v0 = vmul.f32 %v17380_v15, %v8373_v14  ;;  %10015 = vmatmul.msk.f32.gmra.mxu1 %vm260_vm0, %v18948_v57  ;;  %v7998_v14 = vpop.f32.mrf.mxu0  ;;  %v8083_v51 = vadd.f32 %v7989_v36, %v7789_v1  ;;  %v18963_v36 = vld [vmem:[#allocation49_spill] sm:$0xff] }
 0xa42   :  { %v8509_v18 = vadd.f32 %v17385_v19, %v8441_v0  ;;  %v7704_v46 = vpop.f32.mrf.mxu3  ;;  %v18960_v0 = vld [vmem:[#allocation100_spill] sm:$0xff] }
 0xa43   :  { %v7202_v57 = vadd.f32 %v18960_v0, %v6908_v32  ;;  %v18971_v0 = vld [vmem:[#allocation114_spill] sm:$0xff] }
 0xa44   :  { %v8573_v28 = vadd.f32 %v10772_v63, %v8509_v18  ;;  %v18962_v63 = vld [vmem:[#allocation107_spill] sm:$0xff] }
 0xa45   :  { %v8274_v20 = vpop.f32.mrf.mxu1  ;;  %v7496_v18 = vadd.f32 %v7404_v5, %v7202_v57  ;;  %v10778_v5 = vld [vmem:[%s18201_s0 + $0x291] sm:$0xff] }
 0xa46   :  { %8637 = vst.msk [vmem:[#allocation3 + $0x168] sm:$0xff] %vm260_vm0, %v8573_v28  ;;  %v8374_v25 = vadd.f32 %v8274_v20, %v8080_v21  ;;  %v18961_v21 = vld [vmem:[#allocation102_spill] sm:$0xff] }
 0xa47   :  { %v6909_v28 = vadd.f32 %v18962_v63, %v18961_v21  ;;  %v7790_v20 = vadd.f32 %v7698_v37, %v7496_v18  ;;  %v10781_v18 = vld [vmem:[%s18201_s0 + $0x2b9] sm:$0xff] }
 0xa48   :  { %v8442_v47 = vmul.f32 %v17380_v15, %v8374_v25  ;;  %10016 = vmatmul.msk.f32.gmra.mxu1 %vm260_vm0, %v5333_v52  ;;  %v8001_v40 = vpop.f32.mrf.mxu0 }
 0xa49   :  { %v7203_v10 = vadd.f32 %v18963_v36, %v6909_v28  ;;  %v8084_v25 = vadd.f32 %v7992_v27, %v7790_v20  ;;  %v18973_v20 = vld [vmem:[#allocation112_spill] sm:$0xff] }
 0xa4a   :  { %v8510_v8 = vadd.f32 %v17385_v19, %v8442_v47  ;;  %v7707_v47 = vpop.f32.mrf.mxu3 }
 0xa4b   :  { %v7497_v61 = vadd.f32 %v7407_v60, %v7203_v10 }
 0xa4c   :  { %v8574_v45 = vadd.f32 %v10773_v55, %v8510_v8 }
 0xa4d   :  { %v8277_v33 = vpop.f32.mrf.mxu1 }
 0xa4e   :  { %8638 = vst.msk [vmem:[#allocation3 + $0x170] sm:$0xff] %vm260_vm0, %v8574_v45  ;;  %v8375_v58 = vadd.f32 %v8277_v33, %v8081_v7  ;;  %v18965_v7 = vld [vmem:[#allocation109_spill] sm:$0xff]  ;;  %v7791_v45 = vadd.f32 %v7701_v12, %v7497_v61  ;;  %v18966_v33 = vld [vmem:[#allocation103_spill] sm:$0xff]  ;;  %v18967_v12 = vld [vmem:[#allocation108_spill] sm:$0xff] }
 0xa4f   :  { %v6910_v55 = vadd.f32 %v18965_v7, %v18964_v17  ;;  %v6911_v13 = vadd.f32 %v18968_v23, %v18967_v12  ;;  %v10782_v61 = vld [vmem:[%s18201_s0 + $0x2c1] sm:$0xff] }
 0xa50   :  { %v8443_v41 = vmul.f32 %v17380_v15, %v8375_v58  ;;  %10017 = vmatmul.msk.f32.gmra.mxu1 %vm260_vm0, %v5334_v49  ;;  %v7410_v15 = vpop.f32.mrf.mxu2  ;;  %v8085_v43 = vadd.f32 %v7995_v39, %v7791_v45  ;;  %v10779_v58 = vld [vmem:[%s18201_s0 + $0x2a1] sm:$0xff]  ;;  %v8004_v54 = vpop.f32.mrf.mxu0 }
 0xa51   :  { %v7204_v49 = vadd.f32 %v18966_v33, %v6910_v55  ;;  %v18976_v45 = vld [vmem:[#allocation115_spill] sm:$0xff] }
 0xa52   :  { %v8511_v16 = vadd.f32 %v17385_v19, %v8443_v41  ;;  %v7710_v29 = vpop.f32.mrf.mxu3 }
 0xa53   :  { %v7498_v50 = vadd.f32 %v7410_v15, %v7204_v49  ;;  %v10780_v15 = vld [vmem:[%s18201_s0 + $0x2a9] sm:$0xff] }
 0xa54   :  { %v8575_v48 = vadd.f32 %v10774_v56, %v8511_v16 }
 0xa55   :  { %v8280_v3 = vpop.f32.mrf.mxu1 }
 0xa56   :  { %8639 = vst.msk [vmem:[#allocation3 + $0x178] sm:$0xff] %vm260_vm0, %v8575_v48  ;;  %v8376_v31 = vadd.f32 %v8280_v3, %v8082_v62  ;;  %v7792_v62 = vadd.f32 %v7704_v46, %v7498_v50  ;;  %v18969_v48 = vld [vmem:[#allocation17_spill] sm:$0xff] }
 0xa57   :  { %v7205_v3 = vadd.f32 %v18969_v48, %v6911_v13 }
 0xa58   :  { %v8444_v19 = vmul.f32 %v18053_v59, %v8376_v31  ;;  %v7413_v22 = vpop.f32.mrf.mxu2  ;;  %v8086_v4 = vadd.f32 %v7998_v14, %v7792_v62  ;;  %v8007_v46 = vpop.f32.mrf.mxu0 }
 0xa59   :  { %v7499_v2 = vadd.f32 %v7413_v22, %v7205_v3 }
 0xa5a   :  { %v8512_v24 = vadd.f32 %v18061_v6, %v8444_v19  ;;  %v7713_v32 = vpop.f32.mrf.mxu3 }
 0xa5c   :  { %v8576_v44 = vadd.f32 %v10777_v26, %v8512_v24  ;;  %v18970_v24 = vld [vmem:[#allocation110_spill] sm:$0xff]  ;;  %v18972_v26 = vld [vmem:[#allocation51_spill] sm:$0xff] }
 0xa5d   :  { %v8283_v9 = vpop.f32.mrf.mxu1  ;;  %v6912_v57 = vadd.f32 %v18971_v0, %v18970_v24 }
 0xa5e   :  { %8640 = vst.msk [vmem:[#allocation3 + $0x180] sm:$0xff] %vm260_vm0, %v8576_v44  ;;  %v8377_v35 = vadd.f32 %v8283_v9, %v8083_v51  ;;  %v7793_v51 = vadd.f32 %v7707_v47, %v7499_v2  ;;  %v10784_v2 = vld [vmem:[%s18201_s0 + $0x2d9] sm:$0xff] }
 0xa5f   :  { %v7206_v44 = vadd.f32 %v18972_v26, %v6912_v57 }
 0xa60   :  { %v8445_v11 = vmul.f32 %v18053_v59, %v8377_v35  ;;  %v7416_v37 = vpop.f32.mrf.mxu2  ;;  %v8087_v9 = vadd.f32 %v8001_v40, %v7793_v51  ;;  %v18982_v51 = vld [vmem:[#allocation121_spill] sm:$0xff] }
 0xa61   :  { %v7500_v21 = vadd.f32 %v7416_v37, %v7206_v44 }
 0xa62   :  { %v8513_v52 = vadd.f32 %v18061_v6, %v8445_v11 }
 0xa63   :  { %v7794_v10 = vadd.f32 %v7710_v29, %v7500_v21  ;;  %v10783_v29 = vld [vmem:[%s18201_s0 + $0x2d1] sm:$0xff]  ;;  %v10785_v21 = vld [vmem:[%s18201_s0 + $0x2e9] sm:$0xff] }
 0xa64   :  { %v8577_v34 = vadd.f32 %v10778_v5, %v8513_v52  ;;  %v18974_v52 = vld [vmem:[#allocation117_spill] sm:$0xff]  ;;  %v8010_v5 = vpop.f32.mrf.mxu0 }
 0xa65   :  { %v8286_v30 = vpop.f32.mrf.mxu1  ;;  %v6913_v36 = vadd.f32 %v18974_v52, %v18973_v20 }
 0xa66   :  { %8641 = vst.msk [vmem:[#allocation3 + $0x188] sm:$0xff] %vm260_vm0, %v8577_v34  ;;  %v8378_v8 = vadd.f32 %v8286_v30, %v8084_v25  ;;  %v7716_v25 = vpop.f32.mrf.mxu3  ;;  %v18975_v34 = vld [vmem:[#allocation30_spill] sm:$0xff]  ;;  %v8088_v30 = vadd.f32 %v8004_v54, %v7794_v10 }
 0xa67   :  { %v7207_v40 = vadd.f32 %v18975_v34, %v6913_v36 }
 0xa68   :  { %v8446_v53 = vmul.f32 %v18053_v59, %v8378_v8  ;;  %v7419_v56 = vpop.f32.mrf.mxu2 }
 0xa69   :  { %v7501_v37 = vadd.f32 %v7419_v56, %v7207_v40  ;;  %v18980_v56 = vld [vmem:[#allocation123_spill] sm:$0xff] }
 0xa6a   :  { %v8514_v27 = vadd.f32 %v18061_v6, %v8446_v53 }
 0xa6b   :  { %v7795_v49 = vadd.f32 %v7713_v32, %v7501_v37  ;;  %v10786_v37 = vld [vmem:[%s18201_s0 + $0x2f1] sm:$0xff] }
 0xa6c   :  { %v8578_v60 = vadd.f32 %v10779_v58, %v8514_v27  ;;  %v18977_v27 = vld [vmem:[#allocation120_spill] sm:$0xff]  ;;  %v8013_v54 = vpop.f32.mrf.mxu0 }
 0xa6d   :  { %v8289_v41 = vpop.f32.mrf.mxu1  ;;  %v6914_v33 = vadd.f32 %v18977_v27, %v18976_v45  ;;  %v18978_v58 = vld [vmem:[#allocation32_spill] sm:$0xff]  ;;  %v8089_v50 = vadd.f32 %v8007_v46, %v7795_v49  ;;  %v18988_v49 = vld [vmem:[#allocation127_spill] sm:$0xff] }
 0xa6e   :  { %8642 = vst.msk [vmem:[#allocation3 + $0x190] sm:$0xff] %vm260_vm0, %v8578_v60  ;;  %v8379_v42 = vadd.f32 %v8289_v41, %v8085_v43  ;;  %v7719_v41 = vpop.f32.mrf.mxu3 }
 0xa6f   :  { %v7208_v60 = vadd.f32 %v18978_v58, %v6914_v33 }
 0xa70   :  { %v8447_v16 = vmul.f32 %v18053_v59, %v8379_v42  ;;  %v7422_v22 = vpop.f32.mrf.mxu2 }
 0xa71   :  { %v7502_v12 = vadd.f32 %v7422_v22, %v7208_v60 }
 0xa72   :  { %v8515_v39 = vadd.f32 %v18061_v6, %v8447_v16 }
 0xa73   :  { %v7796_v3 = vadd.f32 %v7716_v25, %v7502_v12  ;;  %v10787_v12 = vld [vmem:[%s18201_s0 + $0x301] sm:$0xff] }
 0xa74   :  { %v8579_v31 = vadd.f32 %v10780_v15, %v8515_v39  ;;  %v18979_v39 = vld [vmem:[#allocation118_spill] sm:$0xff]  ;;  %v18981_v15 = vld [vmem:[#allocation19_spill] sm:$0xff]  ;;  %v8016_v0 = vpop.f32.mrf.mxu0 }
 0xa75   :  { %v8292_v19 = vpop.f32.mrf.mxu1  ;;  %v6915_v48 = vadd.f32 %v18980_v56, %v18979_v39 }
 0xa76   :  { %8643 = vst.msk [vmem:[#allocation3 + $0x198] sm:$0xff] %vm260_vm0, %v8579_v31  ;;  %v8380_v38 = vadd.f32 %v8292_v19, %v8086_v4  ;;  %v8090_v19 = vadd.f32 %v8010_v5, %v7796_v3  ;;  %v7722_v46 = vpop.f32.mrf.mxu3  ;;  %v18986_v5 = vld [vmem:[#allocation129_spill] sm:$0xff]  ;;  %v18991_v3 = vld [vmem:[#allocation130_spill] sm:$0xff] }
 0xa77   :  { %v7209_v31 = vadd.f32 %v18981_v15, %v6915_v48 }
 0xa78   :  { %v8448_v1 = vmul.f32 %v18053_v59, %v8380_v38  ;;  %v7425_v7 = vpop.f32.mrf.mxu2 }
 0xa7a   :  { %v8516_v14 = vadd.f32 %v18061_v6, %v8448_v1  ;;  %v7503_v1 = vadd.f32 %v7425_v7, %v7209_v31 }
 0xa7c   :  { %v8580_v35 = vadd.f32 %v10781_v18, %v8516_v14  ;;  %v18983_v14 = vld [vmem:[#allocation126_spill] sm:$0xff]  ;;  %v7797_v44 = vadd.f32 %v7719_v41, %v7503_v1  ;;  %v8019_v25 = vpop.f32.mrf.mxu0 }
 0xa7d   :  { %v8295_v11 = vpop.f32.mrf.mxu1  ;;  %v6916_v26 = vadd.f32 %v18983_v14, %v18982_v51 }
 0xa7e   :  { %8644 = vst.msk [vmem:[#allocation3 + $0x1a0] sm:$0xff] %vm260_vm0, %v8580_v35  ;;  %v8381_v63 = vadd.f32 %v8295_v11, %v8087_v9  ;;  %v18984_v35 = vld [vmem:[#allocation21_spill] sm:$0xff]  ;;  %v8091_v11 = vadd.f32 %v8013_v54, %v7797_v44  ;;  %v7725_v36 = vpop.f32.mrf.mxu3 }
 0xa7f   :  { %v7210_v22 = vadd.f32 %v18984_v35, %v6916_v26 }
 0xa80   :  { %v8449_v28 = vmul.f32 %v18053_v59, %v8381_v63  ;;  %v7428_v62 = vpop.f32.mrf.mxu2 }
 0xa81   :  { %v7504_v20 = vadd.f32 %v7428_v62, %v7210_v22 }
 0xa82   :  { %v8517_v47 = vadd.f32 %v18061_v6, %v8449_v28 }
 0xa83   :  { %v7798_v40 = vadd.f32 %v7722_v46, %v7504_v20  ;;  %v10788_v46 = vld [vmem:[%s18201_s0 + $0x309] sm:$0xff]  ;;  %v10789_v20 = vld [vmem:[%s18201_s0 + $0x319] sm:$0xff] }
 0xa84   :  { %v8581_v8 = vadd.f32 %v10782_v61, %v8517_v47  ;;  %v18985_v47 = vld [vmem:[#allocation124_spill] sm:$0xff]  ;;  %v18987_v61 = vld [vmem:[#allocation59_spill] sm:$0xff] }
 0xa85   :  { %v8298_v53 = vpop.f32.mrf.mxu1  ;;  %v6917_v34 = vadd.f32 %v18986_v5, %v18985_v47 }
 0xa86   :  { %8645 = vst.msk [vmem:[#allocation3 + $0x1a8] sm:$0xff] %vm260_vm0, %v8581_v8  ;;  %v8382_v17 = vadd.f32 %v8298_v53, %v8088_v30  ;;  %v8092_v53 = vadd.f32 %v8016_v0, %v7798_v40  ;;  %v7728_v41 = vpop.f32.mrf.mxu3  ;;  %v18997_v40 = vld [vmem:[#allocation136_spill] sm:$0xff] }
 0xa87   :  { %v7211_v8 = vadd.f32 %v18987_v61, %v6917_v34 }
 0xa88   :  { %v8450_v55 = vmul.f32 %v18053_v59, %v8382_v17  ;;  %v7431_v18 = vpop.f32.mrf.mxu2 }
 0xa89   :  { %v7505_v45 = vadd.f32 %v7431_v18, %v7211_v8  ;;  %v18995_v18 = vld [vmem:[#allocation138_spill] sm:$0xff] }
 0xa8a   :  { %v8518_v43 = vadd.f32 %v18061_v6, %v8450_v55 }
 0xa8b   :  { %v7799_v60 = vadd.f32 %v7725_v36, %v7505_v45  ;;  %v10790_v45 = vld [vmem:[%s18201_s0 + $0x321] sm:$0xff] }
 0xa8c   :  { %v8582_v42 = vadd.f32 %v10783_v29, %v8518_v43  ;;  %v18989_v43 = vld [vmem:[#allocation132_spill] sm:$0xff]  ;;  %v8022_v29 = vpop.f32.mrf.mxu0 }
 0xa8d   :  { %v8301_v16 = vpop.f32.mrf.mxu1  ;;  %v6918_v58 = vadd.f32 %v18989_v43, %v18988_v49 }
 0xa8e   :  { %8646 = vst.msk [vmem:[#allocation3 + $0x1b0] sm:$0xff] %vm260_vm0, %v8582_v42  ;;  %v8383_v23 = vadd.f32 %v8301_v16, %v8089_v50  ;;  %v18990_v42 = vld [vmem:[#allocation35_spill] sm:$0xff]  ;;  %v8093_v16 = vadd.f32 %v8019_v25, %v7799_v60 }
 0xa8f   :  { %v7212_v54 = vadd.f32 %v18990_v42, %v6918_v58 }
 0xa90   :  { %v8451_v13 = vmul.f32 %v18053_v59, %v8383_v23  ;;  %v7434_v7 = vpop.f32.mrf.mxu2 }
 0xa91   :  { %v7506_v62 = vadd.f32 %v7434_v7, %v7212_v54  ;;  %v10791_v54 = vld [vmem:[%s18201_s0 + $0x331] sm:$0xff] }
 0xa92   :  { %v8519_v4 = vadd.f32 %v18061_v6, %v8451_v13 }
 0xa93   :  { %v7800_v31 = vadd.f32 %v7728_v41, %v7506_v62 }
 0xa94   :  { %v8583_v38 = vadd.f32 %v10784_v2, %v8519_v4  ;;  %v18992_v4 = vld [vmem:[#allocation135_spill] sm:$0xff]  ;;  %v8025_v0 = vpop.f32.mrf.mxu0 }
 0xa95   :  { %v8304_v32 = vpop.f32.mrf.mxu1  ;;  %v6919_v15 = vadd.f32 %v18992_v4, %v18991_v3  ;;  %v18993_v2 = vld [vmem:[#allocation119_spill] sm:$0xff]  ;;  %v8094_v1 = vadd.f32 %v8022_v29, %v7800_v31 }
 0xa96   :  { %8647 = vst.msk [vmem:[#allocation3 + $0x1b8] sm:$0xff] %vm260_vm0, %v8583_v38  ;;  %v8384_v24 = vadd.f32 %v8304_v32, %v8090_v19  ;;  %v7731_v32 = vpop.f32.mrf.mxu3 }
 0xa97   :  { %v7213_v38 = vadd.f32 %v18993_v2, %v6919_v15 }
 0xa98   :  { %v8452_v57 = vmul.f32 %v18053_v59, %v8384_v24  ;;  %v7437_v56 = vpop.f32.mrf.mxu2 }
 0xa99   :  { %v7507_v51 = vadd.f32 %v7437_v56, %v7213_v38 }
 0xa9a   :  { %v8520_v9 = vadd.f32 %v18061_v6, %v8452_v57 }
 0xa9b   :  { %v7801_v22 = vadd.f32 %v7731_v32, %v7507_v51 }
 0xa9c   :  { %v8584_v63 = vadd.f32 %v10785_v21, %v8520_v9  ;;  %v18994_v9 = vld [vmem:[#allocation133_spill] sm:$0xff]  ;;  %v18996_v21 = vld [vmem:[#allocation42_spill] sm:$0xff]  ;;  %v8028_v5 = vpop.f32.mrf.mxu0 }
 0xa9d   :  { %v8307_v28 = vpop.f32.mrf.mxu1  ;;  %v6920_v35 = vadd.f32 %v18995_v18, %v18994_v9 }
 0xa9e   :  { %8648 = vst.msk [vmem:[#allocation3 + $0x1c0] sm:$0xff] %vm260_vm0, %v8584_v63  ;;  %v8385_v52 = vadd.f32 %v8307_v28, %v8091_v11  ;;  %v8095_v28 = vadd.f32 %v8025_v0, %v7801_v22  ;;  %v7734_v36 = vpop.f32.mrf.mxu3 }
 0xa9f   :  { %v7214_v63 = vadd.f32 %v18996_v21, %v6920_v35 }
 0xaa0   :  { %v8453_v10 = vmul.f32 %v18053_v59, %v8385_v52  ;;  %v7440_v44 = vpop.f32.mrf.mxu2 }
 0xaa1   :  { %v7508_v25 = vadd.f32 %v7440_v44, %v7214_v63 }
 0xaa2   :  { %v8521_v30 = vadd.f32 %v18061_v6, %v8453_v10 }
 0xaa3   :  { %v7802_v8 = vadd.f32 %v7734_v36, %v7508_v25 }
 0xaa4   :  { %v8585_v17 = vadd.f32 %v10786_v37, %v8521_v30  ;;  %v18998_v30 = vld [vmem:[#allocation141_spill] sm:$0xff]  ;;  %v8031_v41 = vpop.f32.mrf.mxu0 }
 0xaa5   :  { %v8310_v55 = vpop.f32.mrf.mxu1  ;;  %v6921_v61 = vadd.f32 %v18998_v30, %v18997_v40 }
 0xaa6   :  { %8649 = vst.msk [vmem:[#allocation3 + $0x1c8] sm:$0xff] %vm260_vm0, %v8585_v17  ;;  %v8386_v27 = vadd.f32 %v8310_v55, %v8092_v53  ;;  %v18999_v17 = vld [vmem:[#allocation31_spill] sm:$0xff]  ;;  %v8096_v55 = vadd.f32 %v8028_v5, %v7802_v8  ;;  %v7737_v58 = vpop.f32.mrf.mxu3 }
 0xaa7   :  { %v7215_v7 = vadd.f32 %v18999_v17, %v6921_v61 }
 0xaa8   :  { %v8454_v33 = vmul.f32 %v18053_v59, %v8386_v27  ;;  %v7443_v37 = vpop.f32.mrf.mxu2 }
 0xaa9   :  { %v7509_v49 = vadd.f32 %v7443_v37, %v7215_v7 }
 0xaaa   :  { %v8522_v50 = vadd.f32 %v18061_v6, %v8454_v33 }
 0xaac   :  { %v8586_v23 = vadd.f32 %v10787_v12, %v8522_v50  ;;  %v7803_v50 = vadd.f32 %v7737_v58, %v7509_v49 }
 0xaad   :  { %v8313_v13 = vpop.f32.mrf.mxu1 }
 0xaae   :  { %8650 = vst.msk [vmem:[#allocation3 + $0x1d0] sm:$0xff] %vm260_vm0, %v8586_v23  ;;  %v8387_v39 = vadd.f32 %v8313_v13, %v8093_v16  ;;  %v8097_v42 = vadd.f32 %v8031_v41, %v7803_v50 }
 0xab0   :  { %v8455_v48 = vmul.f32 %v18053_v59, %v8387_v39  ;;  %v10792_v39 = vld [vmem:[%s18201_s0 + $0x339] sm:$0xff] }
 0xab2   :  { %v8523_v19 = vadd.f32 %v18061_v6, %v8455_v48 }
 0xab4   :  { %v8587_v24 = vadd.f32 %v10788_v46, %v8523_v19 }
 0xab5   :  { %v8316_v57 = vpop.f32.mrf.mxu1 }
 0xab6   :  { %8651 = vst.msk [vmem:[#allocation3 + $0x1d8] sm:$0xff] %vm260_vm0, %v8587_v24  ;;  %v8388_v14 = vadd.f32 %v8316_v57, %v8094_v1 }
 0xab8   :  { %v8456_v26 = vmul.f32 %v18053_v59, %v8388_v14 }
 0xaba   :  { %v8524_v11 = vadd.f32 %v18061_v6, %v8456_v26 }
 0xabc   :  { %v8588_v52 = vadd.f32 %v10789_v20, %v8524_v11 }
 0xabd   :  { %v8319_v10 = vpop.f32.mrf.mxu1 }
 0xabe   :  { %8652 = vst.msk [vmem:[#allocation3 + $0x1e0] sm:$0xff] %vm260_vm0, %v8588_v52  ;;  %v8389_v47 = vadd.f32 %v8319_v10, %v8095_v28 }
 0xac0   :  { %v8457_v34 = vmul.f32 %v18053_v59, %v8389_v47 }
 0xac2   :  { %v8525_v53 = vadd.f32 %v18061_v6, %v8457_v34 }
 0xac4   :  { %v8589_v27 = vadd.f32 %v10790_v45, %v8525_v53 }
 0xac5   :  { %v8322_v33 = vpop.f32.mrf.mxu1 }
 0xac6   :  { %8653 = vst.msk [vmem:[#allocation3 + $0x1e8] sm:$0xff] %vm260_vm0, %v8589_v27  ;;  %v8390_v43 = vadd.f32 %v8322_v33, %v8096_v55 }
 0xac8   :  { %v8458_v60 = vmul.f32 %v18053_v59, %v8390_v43 }
 0xaca   :  { %v8526_v29 = vadd.f32 %v18061_v6, %v8458_v60 }
 0xacc   :  { %v8590_v16 = vadd.f32 %v10791_v54, %v8526_v29 }
 0xacd   :  { %v8325_v12 = vpop.f32.mrf.mxu1 }
 0xace   :  { %8654 = vst.msk [vmem:[#allocation3 + $0x1f0] sm:$0xff] %vm260_vm0, %v8590_v16  ;;  %v8391_v23 = vadd.f32 %v8325_v12, %v8097_v42 }
 0xad0   :  { %v8459_v13 = vmul.f32 %v18053_v59, %v8391_v23 }
 0xad2   :  { %v8527_v62 = vadd.f32 %v18061_v6, %v8459_v13 }
 0xad4   :  { %v8591_v56 = vadd.f32 %v10792_v39, %v8527_v62 }
 0xad6   :  { %8655 = vst.msk [vmem:[#allocation3 + $0x1f8] sm:$0xff] %vm260_vm0, %v8591_v56 }
 0xad7   :  { %8668 = dma.vmem_to_hbm [thread:$0]  %s8661_s6, 8192, %s8663_s29, [#allocation4], %s10822_s8, %s10822_s8, %s10823_s10  }
 0xad8   :  { %10817 = dma.done.wait [#allocation4], 8192  }
 0xad9   :  { %10818 = vsyncadd [#allocation4], 4294959104 }
 0xada   :  { %8673 = vsyncpa [#allocation4], 1 }

</bundles_post_ra>
